<compile_context>
chip_gen: v6e
topology: v6e:2x2x1
jax: 0.10.0
libtpu: 0.0.40
codegen_flags: <defaults>
</compile_context>

<pallas_src>
import functools

import jax
import jax.numpy as jnp
from jax import lax
from jax.experimental import pallas as pl
from jax.experimental.pallas import tpu as pltpu


_SLACK = 8  # zero rows appended to a1/a2 so the farthest (kh=2, kw=2) tap
            # slice stays in bounds (needs >= 2; 8 keeps sublane alignment).


def _round_up(x, m):
    return (x + m - 1) // m * m


def _mask_border(y, rows, wp, h, w, t0, off):
    """Zero the out-of-frame rows/columns of a flat (rows*wp, C) activation.

    Flat position (r, cp) maps to frame pixel (t0 + r - off, cp - off), where
    `off` is how many conv steps this layer is ahead of the final output.
    Rows form a contiguous flat range (tested on a sublane iota of the 2-D
    view); columns are periodic (tested on a sublane iota of the 3-D view).
    """
    c = y.shape[-1]
    n = rows * wp
    p = lax.broadcasted_iota(jnp.int32, (n, c), 0)
    row_ok = (p >= (off - t0) * wp) & (p < (h + off - t0) * wp)
    col = lax.broadcasted_iota(jnp.int32, (rows, wp, c), 1)
    col_ok = ((col >= off) & (col < off + w)).reshape(n, c)
    return jnp.where(row_ok & col_ok, y, 0.0)


def _fused_kernel(x_hbm, w1_ref, b1_ref, w2_ref, b2_ref, w3_ref, b3_ref,
                  o_ref,
                  xbuf_ref, a1_ref, p2_ref, a2_ref, p3_ref, dma_sem,
                  *, H, W, TH, WP):
    N1 = (TH + 4) * WP    # conv1 rows kept for conv2 (2-row halo), flattened
    N2 = (TH + 2) * WP    # conv2 rows kept for conv3 (1-row halo), flattened
    N3 = TH * WP          # conv3 rows (this tile's output), flattened
    n = pl.program_id(0)
    i = pl.program_id(1)
    t0 = i * TH           # first output row of this tile (frame coords)

    # ---- input: overlapping (4-row halo) window of the im2col'd frame ------
    base = (n * (H + 4) + i * TH) * WP
    in_copy = pltpu.make_async_copy(x_hbm.at[pl.ds(base, N1)], xbuf_ref, dma_sem)
    in_copy.start()
    in_copy.wait()

    # ---- conv1 (3 -> 64): one K=27 im2col matmul ----------------------------
    y1 = jnp.dot(xbuf_ref[...], w1_ref[...], preferred_element_type=jnp.float32)
    y1 = jnp.maximum(y1 + b1_ref[...], 0.0)
    y1 = _mask_border(y1, TH + 4, WP, H, W, t0, 2)
    a1_ref[0:N1, :] = y1.astype(jnp.bfloat16)
    a1_ref[N1:, :] = jnp.zeros((_SLACK, a1_ref.shape[1]), jnp.bfloat16)

    # ---- conv2 (64 -> 128): kw taps folded into K=192, 3 matmuls ------------
    acc2 = None
    for kh in range(3):
        for kw in range(3):
            s = kh * WP + kw
            p2_ref[:, kw * 64:(kw + 1) * 64] = a1_ref[s:s + N2, :]
        part = jnp.dot(p2_ref[...], w2_ref[kh],
                       preferred_element_type=jnp.float32)
        acc2 = part if acc2 is None else acc2 + part
    y2 = jnp.maximum(acc2 + b2_ref[...], 0.0)
    y2 = _mask_border(y2, TH + 2, WP, H, W, t0, 1)
    a2_ref[0:N2, :] = y2.astype(jnp.bfloat16)
    a2_ref[N2:, :] = jnp.zeros((_SLACK, a2_ref.shape[1]), jnp.bfloat16)

    # ---- conv3 (128 -> 3, cout padded to 8): kw folded into K=384 -----------
    acc3 = None
    for kh in range(3):
        for kw in range(3):
            s = kh * WP + kw
            p3_ref[:, kw * 128:(kw + 1) * 128] = a2_ref[s:s + N3, :]
        part = jnp.dot(p3_ref[...], w3_ref[kh],
                       preferred_element_type=jnp.float32)
        acc3 = part if acc3 is None else acc3 + part
    y3 = acc3 + b3_ref[...]
    # Lane-dense store: (8, N3) with the flat pixel index on lanes.
    o_ref[...] = y3.T


def _vmem_capacity_bytes():
    try:
        info = pltpu.get_tpu_info()
        for name in ("vmem_capacity_bytes", "vmem_size_bytes", "vmem_bytes"):
            cap = getattr(info, name, None)
            if cap:
                return int(cap)
    except Exception:
        pass
    return 64 * 1024 * 1024  # conservative (v7x per-core VMEM)


def _pick_tile_h(H, wp, n_batch, budget_bytes):
    """Largest row-tile (divisor of H) whose per-step VMEM footprint fits."""
    def est(th):
        n1 = (th + 4) * wp
        n2 = (th + 2) * wp
        n3 = th * wp
        lane = lambda c: _round_up(c, 128)
        scratch = (n1 * lane(27) * 2                 # xbuf bf16
                   + (n1 + _SLACK) * lane(64) * 2    # a1 bf16
                   + n2 * lane(192) * 2              # p2 bf16
                   + (n2 + _SLACK) * lane(128) * 2   # a2 bf16
                   + n3 * lane(384) * 2)             # p3 bf16
        temps = (3 * n1 * lane(64) * 4               # conv1 f32 temporaries
                 + 4 * n2 * lane(128) * 4            # conv2 f32 temporaries
                 + 3 * n3 * lane(8) * 4)             # conv3 f32 temporaries
        outbuf = 2 * 8 * _round_up(n3, 128) * 4      # double-buffered (8, N3) f32
        return scratch + temps + outbuf + (1 << 20)  # + weights / headroom

    divisors = [d for d in range(H, 0, -1) if H % d == 0]
    fitting = [d for d in divisors if est(d) <= budget_bytes]
    if not fitting:
        # TODO(synk): width (column) tiling instead of this best-effort fallback.
        return 1
    th = fitting[0]
    if n_batch == 1 and th == H and H > 1:
        smaller = [d for d in fitting if d < H]
        if smaller:
            th = smaller[0]   # nt >= 2 so v7x's second TensorCore has work
    return th


def init_params(key):
    """Deterministic params matching nn.Conv2d(3,64,3), (64,128,3), (128,3,3).

    Weights are HWIO (kh, kw, cin, cout); Kaiming-style uniform init like
    PyTorch's default (bound 1/sqrt(fan_in))."""
    def conv_init(k, cin, cout):
        kw_, kb_ = jax.random.split(k)
        fan_in = cin * 3 * 3
        bound = 1.0 / jnp.sqrt(fan_in)
        w = jax.random.uniform(kw_, (3, 3, cin, cout), jnp.float32,
                               minval=-bound, maxval=bound)
        b = jax.random.uniform(kb_, (cout,), jnp.float32,
                               minval=-bound, maxval=bound)
        return w, b

    k1, k2, k3 = jax.random.split(key, 3)
    return {
        "conv1": conv_init(k1, 3, 64),
        "conv2": conv_init(k2, 64, 128),
        "conv3": conv_init(k3, 128, 3),
    }


def video_style_transfer(params, x_nchw, tile_h=None):
    """Forward pass matching VideoStyleTransfer: NCHW f32 in, NCHW f32 out."""
    N, C, H, W = x_nchw.shape
    assert C == 3, x_nchw.shape
    WP = _round_up(W + 6, 8)          # padded width shared by every layer
    cap = _vmem_capacity_bytes()
    TH = _pick_tile_h(H, WP, N, int(cap * 0.4)) if tile_h is None else tile_h
    assert H % TH == 0, (H, TH)
    nt = H // TH

    w1, b1 = params["conv1"]
    w2, b2 = params["conv2"]
    w3, b3 = params["conv3"]
    # bf16 weights for the MXU (f32 accumulation in-kernel); layouts match the
    # in-kernel im2col / patch ordering (kh major, kw, then cin).
    w1r = w1.reshape(27, 64).astype(jnp.bfloat16)
    w2r = w2.reshape(3, 192, 128).astype(jnp.bfloat16)
    w3p = jnp.pad(w3, ((0, 0), (0, 0), (0, 0), (0, 5)))        # cout 3 -> 8
    w3r = w3p.reshape(3, 384, 8).astype(jnp.bfloat16)
    b1r = b1.reshape(1, 64).astype(jnp.float32)
    b2r = b2.reshape(1, 128).astype(jnp.float32)
    b3r = jnp.pad(b3, (0, 5)).reshape(1, 8).astype(jnp.float32)

    # One pad + im2col of the 3-channel frame: for every conv1 position
    # (frame rows -2..H+1, padded cols 0..WP-1) the 27-long (kh, kw, cin)
    # window.  The kernel reads overlapping row windows of this array itself.
    x = jnp.transpose(x_nchw, (0, 2, 3, 1)).astype(jnp.bfloat16)   # NHWC bf16
    WPI = WP + 2
    xp = jnp.pad(x, ((0, 0), (3, 3), (3, WPI - 3 - W), (0, 0)))    # (N,H+6,WPI,3)
    H4 = H + 4
    taps = [xp[:, kh:kh + H4, kw:kw + WP, :]
            for kh in range(3) for kw in range(3)]
    x_im2col = jnp.concatenate(taps, axis=-1)                      # (N,H4,WP,27)
    x_flat = x_im2col.reshape(N * H4 * WP, 27)

    N1 = (TH + 4) * WP
    N2 = (TH + 2) * WP
    N3 = TH * WP

    kernel = functools.partial(_fused_kernel, H=H, W=W, TH=TH, WP=WP)
    flops = 2 * 9 * N * H * W * (3 * 64 + 64 * 128 + 128 * 3)
    bytes_accessed = (x_flat.size * 2 + N * nt * 8 * N3 * 4
                      + (w1r.size + w2r.size + w3r.size) * 2)

    y = pl.pallas_call(
        kernel,
        out_shape=jax.ShapeDtypeStruct((N, nt, 8, N3), jnp.float32),
        grid_spec=pltpu.PrefetchScalarGridSpec(
            num_scalar_prefetch=0,
            grid=(N, nt),
            in_specs=[
                pl.BlockSpec(memory_space=pl.ANY),            # im2col'd frame (HBM)
                pl.BlockSpec((27, 64), lambda n, i: (0, 0)),
                pl.BlockSpec((1, 64), lambda n, i: (0, 0)),
                pl.BlockSpec((3, 192, 128), lambda n, i: (0, 0, 0)),
                pl.BlockSpec((1, 128), lambda n, i: (0, 0)),
                pl.BlockSpec((3, 384, 8), lambda n, i: (0, 0, 0)),
                pl.BlockSpec((1, 8), lambda n, i: (0, 0)),
            ],
            out_specs=pl.BlockSpec((None, None, 8, N3),
                                   lambda n, i: (n, i, 0, 0)),
            scratch_shapes=[
                pltpu.VMEM((N1, 27), jnp.bfloat16),             # xbuf (im2col tile)
                pltpu.VMEM((N1 + _SLACK, 64), jnp.bfloat16),    # a1
                pltpu.VMEM((N2, 192), jnp.bfloat16),            # p2 (kw-folded)
                pltpu.VMEM((N2 + _SLACK, 128), jnp.bfloat16),   # a2
                pltpu.VMEM((N3, 384), jnp.bfloat16),            # p3 (kw-folded)
                pltpu.SemaphoreType.DMA,                        # input DMA sem
            ]),
        compiler_params=pltpu.CompilerParams(
            dimension_semantics=("parallel", "parallel"),
            vmem_limit_bytes=int(min(cap * 3 // 4, 96 * 1024 * 1024))),
        cost_estimate=pl.CostEstimate(
            flops=int(flops), transcendentals=0,
            bytes_accessed=int(bytes_accessed)),
    )(x_flat, w1r, b1r, w2r, b2r, w3r, b3r)

    # (N, nt, 8, TH*WP) -> NCHW, dropping padded channels / halo columns.
    y = y.reshape(N, nt, 8, TH, WP)
    y = jnp.transpose(y, (0, 2, 1, 3, 4)).reshape(N, 8, H, WP)
    return y[:, :3, :, :W]


def _reference(params, x_nchw, quantized):
    """lax.conv reference.  quantized=True models the kernel's bf16 operand /
    bf16 intermediate-activation rounding (f32 accumulation)."""
    def q(a):
        return a.astype(jnp.bfloat16).astype(jnp.float32) if quantized else a

    def conv(x, w, b, relu):
        y = lax.conv_general_dilated(
            x, q(w), window_strides=(1, 1), padding="SAME",
            dimension_numbers=("NHWC", "HWIO", "NHWC"),
            precision=lax.Precision.HIGHEST)
        y = y + b[None, None, None, :]
        return jnp.maximum(y, 0.0) if relu else y

    w1, b1 = params["conv1"]
    w2, b2 = params["conv2"]
    w3, b3 = params["conv3"]
    x = q(jnp.transpose(x_nchw, (0, 2, 3, 1)))
    x = q(conv(x, w1, b1, True))
    x = q(conv(x, w2, b2, True))
    x = conv(x, w3, b3, False)
    return jnp.transpose(x, (0, 3, 1, 2))


if __name__ == "__main__":
    key = jax.random.PRNGKey(0)
    pkey, k1, k2 = jax.random.split(key, 3)
    params = init_params(pkey)

    fwd = jax.jit(video_style_transfer, static_argnames=("tile_h",))

    # Case 1: batch=2, 16x16 RGB frames, tile_h=8 -> 2 row tiles per frame
    # (exercises the cross-tile halo DMA and SAME-border masking).
    x1 = jax.random.normal(k1, (2, 3, 16, 16), jnp.float32)
    out1 = jax.block_until_ready(fwd(params, x1, tile_h=8))
    assert out1.shape == (2, 3, 16, 16), out1.shape
    ref1 = _reference(params, x1, quantized=True)
    assert jnp.allclose(out1, ref1, atol=2e-3, rtol=2e-3), \
        float(jnp.max(jnp.abs(out1 - ref1)))

    # Case 2: non-square frame, auto tile size (nt >= 2 preferred at batch=1).
    x2 = jax.random.normal(k2, (1, 3, 24, 20), jnp.float32)
    out2 = jax.block_until_ready(fwd(params, x2))
    assert out2.shape == (1, 3, 24, 20), out2.shape
    ref2 = _reference(params, x2, quantized=True)
    assert jnp.allclose(out2, ref2, atol=2e-3, rtol=2e-3), \
        float(jnp.max(jnp.abs(out2 - ref2)))

    print("KERNEL_OK")
</pallas_src>

<mosaic_0001>
module attributes {stable_mosaic.version = 11 : i64} {
  func.func @_fused_kernel(%arg0: i32, %arg1: i32, %arg2: memref<960x27xbf16, #tpu.memory_space<any>>, %arg3: memref<27x64xbf16, #tpu.memory_space<vmem>>, %arg4: memref<1x64xf32, #tpu.memory_space<vmem>>, %arg5: memref<3x192x128xbf16, #tpu.memory_space<vmem>>, %arg6: memref<1x128xf32, #tpu.memory_space<vmem>>, %arg7: memref<3x384x8xbf16, #tpu.memory_space<vmem>>, %arg8: memref<1x8xf32, #tpu.memory_space<vmem>>, %arg9: memref<1x1x8x192xf32, #tpu.memory_space<vmem>>, %arg10: memref<288x27xbf16, #tpu.memory_space<vmem>>, %arg11: memref<296x64xbf16, #tpu.memory_space<vmem>>, %arg12: memref<240x192xbf16, #tpu.memory_space<vmem>>, %arg13: memref<248x128xbf16, #tpu.memory_space<vmem>>, %arg14: memref<192x384xbf16, #tpu.memory_space<vmem>>, %arg15: memref<!tpu.dma_semaphore, #tpu.memory_space<semaphore_mem>>) attributes {dimension_semantics = [#tpu.dimension_semantics<parallel>, #tpu.dimension_semantics<parallel>], iteration_bounds = array<i64: 2, 2>, scalar_prefetch = 0 : i64, scratch_operands = 6 : i64, tpu.core_type = #tpu.core_type<tc>, window_params = [{}, {pipeline_mode = #tpu.pipeline_mode<synchronous>, transform_indices = @transform_1, window_bounds = array<i64: 27, 64>}, {pipeline_mode = #tpu.pipeline_mode<synchronous>, transform_indices = @transform_2, window_bounds = array<i64: 1, 64>}, {pipeline_mode = #tpu.pipeline_mode<synchronous>, transform_indices = @transform_3, window_bounds = array<i64: 3, 192, 128>}, {pipeline_mode = #tpu.pipeline_mode<synchronous>, transform_indices = @transform_4, window_bounds = array<i64: 1, 128>}, {pipeline_mode = #tpu.pipeline_mode<synchronous>, transform_indices = @transform_5, window_bounds = array<i64: 3, 384, 8>}, {pipeline_mode = #tpu.pipeline_mode<synchronous>, transform_indices = @transform_6, window_bounds = array<i64: 1, 8>}, {transform_indices = @transform_7, window_bounds = array<i64: 1, 1, 8, 192>}]} {
    %c8_i32 = arith.constant 8 : i32
    %0 = arith.muli %arg1, %c8_i32 : i32
    %c20_i32 = arith.constant 20 : i32
    %1 = arith.muli %arg0, %c20_i32 : i32
    %c8_i32_0 = arith.constant 8 : i32
    %2 = arith.muli %arg1, %c8_i32_0 : i32
    %3 = arith.addi %1, %2 : i32
    %c24_i32 = arith.constant 24 : i32
    %4 = arith.muli %3, %c24_i32 : i32
    %c0_i32 = arith.constant 0 : i32
    %5 = tpu.memref_slice %arg2[%4, %c0_i32] : memref<960x27xbf16, #tpu.memory_space<any>> -> memref<288x27xbf16, #tpu.memory_space<any>>
    tpu.enqueue_dma source(%5 : memref<288x27xbf16, #tpu.memory_space<any>>) target(%arg10 : memref<288x27xbf16, #tpu.memory_space<vmem>>) target_semaphore(%arg15 : memref<!tpu.dma_semaphore, #tpu.memory_space<semaphore_mem>>)
    %c0_i32_1 = arith.constant 0 : i32
    %6 = tpu.memref_slice %arg2[%4, %c0_i32_1] : memref<960x27xbf16, #tpu.memory_space<any>> -> memref<288x27xbf16, #tpu.memory_space<any>>
    tpu.wait_dma2 semaphore(%arg15 : memref<!tpu.dma_semaphore, #tpu.memory_space<semaphore_mem>>) src(%6 : memref<288x27xbf16, #tpu.memory_space<any>>) dst(%arg10 : memref<288x27xbf16, #tpu.memory_space<vmem>>)
    %c0 = arith.constant 0 : index
    %c0_2 = arith.constant 0 : index
    %7 = vector.load %arg10[%c0, %c0_2] : memref<288x27xbf16, #tpu.memory_space<vmem>>, vector<288x27xbf16>
    %c0_3 = arith.constant 0 : index
    %c0_4 = arith.constant 0 : index
    %8 = vector.load %arg3[%c0_3, %c0_4] : memref<27x64xbf16, #tpu.memory_space<vmem>>, vector<27x64xbf16>
    %cst = arith.constant dense<0.000000e+00> : vector<288x64xf32>
    %9 = tpu.matmul %7, %8, %cst {dimension_numbers = #tpu.dot_dimension_numbers<[1], [0], [0], [1], [0, 0, 1, 1], [], []>} : vector<288x27xbf16>, vector<27x64xbf16>, vector<288x64xf32> -> vector<288x64xf32>
    %c0_5 = arith.constant 0 : index
    %c0_6 = arith.constant 0 : index
    %10 = vector.load %arg4[%c0_5, %c0_6] : memref<1x64xf32, #tpu.memory_space<vmem>>, vector<1x64xf32>
    %11 = vector.broadcast %10 : vector<1x64xf32> to vector<288x64xf32>
    %12 = arith.addf %9, %11 : vector<288x64xf32>
    %cst_7 = arith.constant 0.000000e+00 : f32
    %13 = vector.broadcast %cst_7 : f32 to vector<288x64xf32>
    %14 = arith.maximumf %12, %13 : vector<288x64xf32>
    %15 = tpu.iota {dimensions = array<i32: 0>} : vector<288x64xi32>
    %c2_i32 = arith.constant 2 : i32
    %16 = arith.subi %c2_i32, %0 : i32
    %c24_i32_8 = arith.constant 24 : i32
    %17 = arith.muli %16, %c24_i32_8 : i32
    %18 = vector.broadcast %17 : i32 to vector<288x64xi32>
    %19 = arith.cmpi sge, %15, %18 : vector<288x64xi32>
    %c18_i32 = arith.constant 18 : i32
    %20 = arith.subi %c18_i32, %0 : i32
    %c24_i32_9 = arith.constant 24 : i32
    %21 = arith.muli %20, %c24_i32_9 : i32
    %22 = vector.broadcast %21 : i32 to vector<288x64xi32>
    %23 = arith.cmpi slt, %15, %22 : vector<288x64xi32>
    %24 = arith.andi %19, %23 : vector<288x64xi1>
    %25 = tpu.iota {dimensions = array<i32: 1>} : vector<12x24x64xi32>
    %c2_i32_10 = arith.constant 2 : i32
    %26 = vector.broadcast %c2_i32_10 : i32 to vector<12x24x64xi32>
    %27 = arith.cmpi sge, %25, %26 : vector<12x24x64xi32>
    %c18_i32_11 = arith.constant 18 : i32
    %28 = vector.broadcast %c18_i32_11 : i32 to vector<12x24x64xi32>
    %29 = arith.cmpi slt, %25, %28 : vector<12x24x64xi32>
    %30 = arith.andi %27, %29 : vector<12x24x64xi1>
    %31 = vector.shape_cast %30 : vector<12x24x64xi1> to vector<288x64xi1>
    %32 = arith.andi %24, %31 : vector<288x64xi1>
    %cst_12 = arith.constant 0.000000e+00 : f32
    %33 = vector.broadcast %cst_12 : f32 to vector<288x64xf32>
    %34 = arith.select %32, %14, %33 : vector<288x64xi1>, vector<288x64xf32>
    %35 = arith.truncf %34 : vector<288x64xf32> to vector<288x64xbf16>
    %c0_13 = arith.constant 0 : index
    %c0_14 = arith.constant 0 : index
    %36 = vector.load %arg11[%c0_13, %c0_14] : memref<296x64xbf16, #tpu.memory_space<vmem>>, vector<288x64xbf16>
    tpu.vector_store %arg11[%c0_13, %c0_14], %35 {strides = array<i32>} : memref<296x64xbf16, #tpu.memory_space<vmem>>, vector<288x64xbf16>,
    %cst_15 = arith.constant 0.000000e+00 : bf16
    %37 = vector.broadcast %cst_15 : bf16 to vector<8x64xbf16>
    %c288 = arith.constant 288 : index
    %c0_16 = arith.constant 0 : index
    %38 = vector.load %arg11[%c288, %c0_16] : memref<296x64xbf16, #tpu.memory_space<vmem>>, vector<8x64xbf16>
    tpu.vector_store %arg11[%c288, %c0_16], %37 {strides = array<i32>} : memref<296x64xbf16, #tpu.memory_space<vmem>>, vector<8x64xbf16>,
    %c0_17 = arith.constant 0 : index
    %c0_18 = arith.constant 0 : index
    %39 = vector.load %arg11[%c0_17, %c0_18] : memref<296x64xbf16, #tpu.memory_space<vmem>>, vector<240x64xbf16>
    %c0_19 = arith.constant 0 : index
    %c0_20 = arith.constant 0 : index
    %40 = vector.load %arg12[%c0_19, %c0_20] : memref<240x192xbf16, #tpu.memory_space<vmem>>, vector<240x64xbf16>
    tpu.vector_store %arg12[%c0_19, %c0_20], %39 {strides = array<i32>} : memref<240x192xbf16, #tpu.memory_space<vmem>>, vector<240x64xbf16>,
    %c1 = arith.constant 1 : index
    %c0_21 = arith.constant 0 : index
    %41 = vector.load %arg11[%c1, %c0_21] : memref<296x64xbf16, #tpu.memory_space<vmem>>, vector<240x64xbf16>
    %c0_22 = arith.constant 0 : index
    %c64 = arith.constant 64 : index
    %42 = vector.load %arg12[%c0_22, %c64] : memref<240x192xbf16, #tpu.memory_space<vmem>>, vector<240x64xbf16>
    tpu.vector_store %arg12[%c0_22, %c64], %41 {strides = array<i32>} : memref<240x192xbf16, #tpu.memory_space<vmem>>, vector<240x64xbf16>,
    %c2 = arith.constant 2 : index
    %c0_23 = arith.constant 0 : index
    %43 = vector.load %arg11[%c2, %c0_23] : memref<296x64xbf16, #tpu.memory_space<vmem>>, vector<240x64xbf16>
    %c0_24 = arith.constant 0 : index
    %c128 = arith.constant 128 : index
    %44 = vector.load %arg12[%c0_24, %c128] : memref<240x192xbf16, #tpu.memory_space<vmem>>, vector<240x64xbf16>
    tpu.vector_store %arg12[%c0_24, %c128], %43 {strides = array<i32>} : memref<240x192xbf16, #tpu.memory_space<vmem>>, vector<240x64xbf16>,
    %c0_25 = arith.constant 0 : index
    %c0_26 = arith.constant 0 : index
    %45 = vector.load %arg12[%c0_25, %c0_26] : memref<240x192xbf16, #tpu.memory_space<vmem>>, vector<240x192xbf16>
    %c0_27 = arith.constant 0 : index
    %c0_28 = arith.constant 0 : index
    %c0_29 = arith.constant 0 : index
    %46 = vector.load %arg5[%c0_27, %c0_28, %c0_29] : memref<3x192x128xbf16, #tpu.memory_space<vmem>>, vector<1x192x128xbf16>
    %47 = vector.shape_cast %46 : vector<1x192x128xbf16> to vector<192x128xbf16>
    %cst_30 = arith.constant dense<0.000000e+00> : vector<240x128xf32>
    %48 = tpu.matmul %45, %47, %cst_30 {dimension_numbers = #tpu.dot_dimension_numbers<[1], [0], [0], [1], [0, 0, 1, 1], [], []>} : vector<240x192xbf16>, vector<192x128xbf16>, vector<240x128xf32> -> vector<240x128xf32>
    %c24 = arith.constant 24 : index
    %c0_31 = arith.constant 0 : index
    %49 = vector.load %arg11[%c24, %c0_31] : memref<296x64xbf16, #tpu.memory_space<vmem>>, vector<240x64xbf16>
    %c0_32 = arith.constant 0 : index
    %c0_33 = arith.constant 0 : index
    %50 = vector.load %arg12[%c0_32, %c0_33] : memref<240x192xbf16, #tpu.memory_space<vmem>>, vector<240x64xbf16>
    tpu.vector_store %arg12[%c0_32, %c0_33], %49 {strides = array<i32>} : memref<240x192xbf16, #tpu.memory_space<vmem>>, vector<240x64xbf16>,
    %c25 = arith.constant 25 : index
    %c0_34 = arith.constant 0 : index
    %51 = vector.load %arg11[%c25, %c0_34] : memref<296x64xbf16, #tpu.memory_space<vmem>>, vector<240x64xbf16>
    %c0_35 = arith.constant 0 : index
    %c64_36 = arith.constant 64 : index
    %52 = vector.load %arg12[%c0_35, %c64_36] : memref<240x192xbf16, #tpu.memory_space<vmem>>, vector<240x64xbf16>
    tpu.vector_store %arg12[%c0_35, %c64_36], %51 {strides = array<i32>} : memref<240x192xbf16, #tpu.memory_space<vmem>>, vector<240x64xbf16>,
    %c26 = arith.constant 26 : index
    %c0_37 = arith.constant 0 : index
    %53 = vector.load %arg11[%c26, %c0_37] : memref<296x64xbf16, #tpu.memory_space<vmem>>, vector<240x64xbf16>
    %c0_38 = arith.constant 0 : index
    %c128_39 = arith.constant 128 : index
    %54 = vector.load %arg12[%c0_38, %c128_39] : memref<240x192xbf16, #tpu.memory_space<vmem>>, vector<240x64xbf16>
    tpu.vector_store %arg12[%c0_38, %c128_39], %53 {strides = array<i32>} : memref<240x192xbf16, #tpu.memory_space<vmem>>, vector<240x64xbf16>,
    %c0_40 = arith.constant 0 : index
    %c0_41 = arith.constant 0 : index
    %55 = vector.load %arg12[%c0_40, %c0_41] : memref<240x192xbf16, #tpu.memory_space<vmem>>, vector<240x192xbf16>
    %c1_42 = arith.constant 1 : index
    %c0_43 = arith.constant 0 : index
    %c0_44 = arith.constant 0 : index
    %56 = vector.load %arg5[%c1_42, %c0_43, %c0_44] : memref<3x192x128xbf16, #tpu.memory_space<vmem>>, vector<1x192x128xbf16>
    %57 = vector.shape_cast %56 : vector<1x192x128xbf16> to vector<192x128xbf16>
    %cst_45 = arith.constant dense<0.000000e+00> : vector<240x128xf32>
    %58 = tpu.matmul %55, %57, %cst_45 {dimension_numbers = #tpu.dot_dimension_numbers<[1], [0], [0], [1], [0, 0, 1, 1], [], []>} : vector<240x192xbf16>, vector<192x128xbf16>, vector<240x128xf32> -> vector<240x128xf32>
    %59 = arith.addf %48, %58 : vector<240x128xf32>
    %c48 = arith.constant 48 : index
    %c0_46 = arith.constant 0 : index
    %60 = vector.load %arg11[%c48, %c0_46] : memref<296x64xbf16, #tpu.memory_space<vmem>>, vector<240x64xbf16>
    %c0_47 = arith.constant 0 : index
    %c0_48 = arith.constant 0 : index
    %61 = vector.load %arg12[%c0_47, %c0_48] : memref<240x192xbf16, #tpu.memory_space<vmem>>, vector<240x64xbf16>
    tpu.vector_store %arg12[%c0_47, %c0_48], %60 {strides = array<i32>} : memref<240x192xbf16, #tpu.memory_space<vmem>>, vector<240x64xbf16>,
    %c49 = arith.constant 49 : index
    %c0_49 = arith.constant 0 : index
    %62 = vector.load %arg11[%c49, %c0_49] : memref<296x64xbf16, #tpu.memory_space<vmem>>, vector<240x64xbf16>
    %c0_50 = arith.constant 0 : index
    %c64_51 = arith.constant 64 : index
    %63 = vector.load %arg12[%c0_50, %c64_51] : memref<240x192xbf16, #tpu.memory_space<vmem>>, vector<240x64xbf16>
    tpu.vector_store %arg12[%c0_50, %c64_51], %62 {strides = array<i32>} : memref<240x192xbf16, #tpu.memory_space<vmem>>, vector<240x64xbf16>,
    %c50 = arith.constant 50 : index
    %c0_52 = arith.constant 0 : index
    %64 = vector.load %arg11[%c50, %c0_52] : memref<296x64xbf16, #tpu.memory_space<vmem>>, vector<240x64xbf16>
    %c0_53 = arith.constant 0 : index
    %c128_54 = arith.constant 128 : index
    %65 = vector.load %arg12[%c0_53, %c128_54] : memref<240x192xbf16, #tpu.memory_space<vmem>>, vector<240x64xbf16>
    tpu.vector_store %arg12[%c0_53, %c128_54], %64 {strides = array<i32>} : memref<240x192xbf16, #tpu.memory_space<vmem>>, vector<240x64xbf16>,
    %c0_55 = arith.constant 0 : index
    %c0_56 = arith.constant 0 : index
    %66 = vector.load %arg12[%c0_55, %c0_56] : memref<240x192xbf16, #tpu.memory_space<vmem>>, vector<240x192xbf16>
    %c2_57 = arith.constant 2 : index
    %c0_58 = arith.constant 0 : index
    %c0_59 = arith.constant 0 : index
    %67 = vector.load %arg5[%c2_57, %c0_58, %c0_59] : memref<3x192x128xbf16, #tpu.memory_space<vmem>>, vector<1x192x128xbf16>
    %68 = vector.shape_cast %67 : vector<1x192x128xbf16> to vector<192x128xbf16>
    %cst_60 = arith.constant dense<0.000000e+00> : vector<240x128xf32>
    %69 = tpu.matmul %66, %68, %cst_60 {dimension_numbers = #tpu.dot_dimension_numbers<[1], [0], [0], [1], [0, 0, 1, 1], [], []>} : vector<240x192xbf16>, vector<192x128xbf16>, vector<240x128xf32> -> vector<240x128xf32>
    %70 = arith.addf %59, %69 : vector<240x128xf32>
    %c0_61 = arith.constant 0 : index
    %c0_62 = arith.constant 0 : index
    %71 = vector.load %arg6[%c0_61, %c0_62] : memref<1x128xf32, #tpu.memory_space<vmem>>, vector<1x128xf32>
    %72 = vector.broadcast %71 : vector<1x128xf32> to vector<240x128xf32>
    %73 = arith.addf %70, %72 : vector<240x128xf32>
    %cst_63 = arith.constant 0.000000e+00 : f32
    %74 = vector.broadcast %cst_63 : f32 to vector<240x128xf32>
    %75 = arith.maximumf %73, %74 : vector<240x128xf32>
    %76 = tpu.iota {dimensions = array<i32: 0>} : vector<240x128xi32>
    %c1_i32 = arith.constant 1 : i32
    %77 = arith.subi %c1_i32, %0 : i32
    %c24_i32_64 = arith.constant 24 : i32
    %78 = arith.muli %77, %c24_i32_64 : i32
    %79 = vector.broadcast %78 : i32 to vector<240x128xi32>
    %80 = arith.cmpi sge, %76, %79 : vector<240x128xi32>
    %c17_i32 = arith.constant 17 : i32
    %81 = arith.subi %c17_i32, %0 : i32
    %c24_i32_65 = arith.constant 24 : i32
    %82 = arith.muli %81, %c24_i32_65 : i32
    %83 = vector.broadcast %82 : i32 to vector<240x128xi32>
    %84 = arith.cmpi slt, %76, %83 : vector<240x128xi32>
    %85 = arith.andi %80, %84 : vector<240x128xi1>
    %86 = tpu.iota {dimensions = array<i32: 1>} : vector<10x24x128xi32>
    %c1_i32_66 = arith.constant 1 : i32
    %87 = vector.broadcast %c1_i32_66 : i32 to vector<10x24x128xi32>
    %88 = arith.cmpi sge, %86, %87 : vector<10x24x128xi32>
    %c17_i32_67 = arith.constant 17 : i32
    %89 = vector.broadcast %c17_i32_67 : i32 to vector<10x24x128xi32>
    %90 = arith.cmpi slt, %86, %89 : vector<10x24x128xi32>
    %91 = arith.andi %88, %90 : vector<10x24x128xi1>
    %92 = vector.shape_cast %91 : vector<10x24x128xi1> to vector<240x128xi1>
    %93 = arith.andi %85, %92 : vector<240x128xi1>
    %cst_68 = arith.constant 0.000000e+00 : f32
    %94 = vector.broadcast %cst_68 : f32 to vector<240x128xf32>
    %95 = arith.select %93, %75, %94 : vector<240x128xi1>, vector<240x128xf32>
    %96 = arith.truncf %95 : vector<240x128xf32> to vector<240x128xbf16>
    %c0_69 = arith.constant 0 : index
    %c0_70 = arith.constant 0 : index
    %97 = vector.load %arg13[%c0_69, %c0_70] : memref<248x128xbf16, #tpu.memory_space<vmem>>, vector<240x128xbf16>
    tpu.vector_store %arg13[%c0_69, %c0_70], %96 {strides = array<i32>} : memref<248x128xbf16, #tpu.memory_space<vmem>>, vector<240x128xbf16>,
    %cst_71 = arith.constant 0.000000e+00 : bf16
    %98 = vector.broadcast %cst_71 : bf16 to vector<8x128xbf16>
    %c240 = arith.constant 240 : index
    %c0_72 = arith.constant 0 : index
    %99 = vector.load %arg13[%c240, %c0_72] : memref<248x128xbf16, #tpu.memory_space<vmem>>, vector<8x128xbf16>
    tpu.vector_store %arg13[%c240, %c0_72], %98 {strides = array<i32>} : memref<248x128xbf16, #tpu.memory_space<vmem>>, vector<8x128xbf16>,
    %c0_73 = arith.constant 0 : index
    %c0_74 = arith.constant 0 : index
    %100 = vector.load %arg13[%c0_73, %c0_74] : memref<248x128xbf16, #tpu.memory_space<vmem>>, vector<192x128xbf16>
    %c0_75 = arith.constant 0 : index
    %c0_76 = arith.constant 0 : index
    %101 = vector.load %arg14[%c0_75, %c0_76] : memref<192x384xbf16, #tpu.memory_space<vmem>>, vector<192x128xbf16>
    tpu.vector_store %arg14[%c0_75, %c0_76], %100 {strides = array<i32>} : memref<192x384xbf16, #tpu.memory_space<vmem>>, vector<192x128xbf16>,
    %c1_77 = arith.constant 1 : index
    %c0_78 = arith.constant 0 : index
    %102 = vector.load %arg13[%c1_77, %c0_78] : memref<248x128xbf16, #tpu.memory_space<vmem>>, vector<192x128xbf16>
    %c0_79 = arith.constant 0 : index
    %c128_80 = arith.constant 128 : index
    %103 = vector.load %arg14[%c0_79, %c128_80] : memref<192x384xbf16, #tpu.memory_space<vmem>>, vector<192x128xbf16>
    tpu.vector_store %arg14[%c0_79, %c128_80], %102 {strides = array<i32>} : memref<192x384xbf16, #tpu.memory_space<vmem>>, vector<192x128xbf16>,
    %c2_81 = arith.constant 2 : index
    %c0_82 = arith.constant 0 : index
    %104 = vector.load %arg13[%c2_81, %c0_82] : memref<248x128xbf16, #tpu.memory_space<vmem>>, vector<192x128xbf16>
    %c0_83 = arith.constant 0 : index
    %c256 = arith.constant 256 : index
    %105 = vector.load %arg14[%c0_83, %c256] : memref<192x384xbf16, #tpu.memory_space<vmem>>, vector<192x128xbf16>
    tpu.vector_store %arg14[%c0_83, %c256], %104 {strides = array<i32>} : memref<192x384xbf16, #tpu.memory_space<vmem>>, vector<192x128xbf16>,
    %c0_84 = arith.constant 0 : index
    %c0_85 = arith.constant 0 : index
    %106 = vector.load %arg14[%c0_84, %c0_85] : memref<192x384xbf16, #tpu.memory_space<vmem>>, vector<192x384xbf16>
    %c0_86 = arith.constant 0 : index
    %c0_87 = arith.constant 0 : index
    %c0_88 = arith.constant 0 : index
    %107 = vector.load %arg7[%c0_86, %c0_87, %c0_88] : memref<3x384x8xbf16, #tpu.memory_space<vmem>>, vector<1x384x8xbf16>
    %108 = vector.shape_cast %107 : vector<1x384x8xbf16> to vector<384x8xbf16>
    %cst_89 = arith.constant dense<0.000000e+00> : vector<192x8xf32>
    %109 = tpu.matmul %106, %108, %cst_89 {dimension_numbers = #tpu.dot_dimension_numbers<[1], [0], [0], [1], [0, 0, 1, 1], [], []>} : vector<192x384xbf16>, vector<384x8xbf16>, vector<192x8xf32> -> vector<192x8xf32>
    %c24_90 = arith.constant 24 : index
    %c0_91 = arith.constant 0 : index
    %110 = vector.load %arg13[%c24_90, %c0_91] : memref<248x128xbf16, #tpu.memory_space<vmem>>, vector<192x128xbf16>
    %c0_92 = arith.constant 0 : index
    %c0_93 = arith.constant 0 : index
    %111 = vector.load %arg14[%c0_92, %c0_93] : memref<192x384xbf16, #tpu.memory_space<vmem>>, vector<192x128xbf16>
    tpu.vector_store %arg14[%c0_92, %c0_93], %110 {strides = array<i32>} : memref<192x384xbf16, #tpu.memory_space<vmem>>, vector<192x128xbf16>,
    %c25_94 = arith.constant 25 : index
    %c0_95 = arith.constant 0 : index
    %112 = vector.load %arg13[%c25_94, %c0_95] : memref<248x128xbf16, #tpu.memory_space<vmem>>, vector<192x128xbf16>
    %c0_96 = arith.constant 0 : index
    %c128_97 = arith.constant 128 : index
    %113 = vector.load %arg14[%c0_96, %c128_97] : memref<192x384xbf16, #tpu.memory_space<vmem>>, vector<192x128xbf16>
    tpu.vector_store %arg14[%c0_96, %c128_97], %112 {strides = array<i32>} : memref<192x384xbf16, #tpu.memory_space<vmem>>, vector<192x128xbf16>,
    %c26_98 = arith.constant 26 : index
    %c0_99 = arith.constant 0 : index
    %114 = vector.load %arg13[%c26_98, %c0_99] : memref<248x128xbf16, #tpu.memory_space<vmem>>, vector<192x128xbf16>
    %c0_100 = arith.constant 0 : index
    %c256_101 = arith.constant 256 : index
    %115 = vector.load %arg14[%c0_100, %c256_101] : memref<192x384xbf16, #tpu.memory_space<vmem>>, vector<192x128xbf16>
    tpu.vector_store %arg14[%c0_100, %c256_101], %114 {strides = array<i32>} : memref<192x384xbf16, #tpu.memory_space<vmem>>, vector<192x128xbf16>,
    %c0_102 = arith.constant 0 : index
    %c0_103 = arith.constant 0 : index
    %116 = vector.load %arg14[%c0_102, %c0_103] : memref<192x384xbf16, #tpu.memory_space<vmem>>, vector<192x384xbf16>
    %c1_104 = arith.constant 1 : index
    %c0_105 = arith.constant 0 : index
    %c0_106 = arith.constant 0 : index
    %117 = vector.load %arg7[%c1_104, %c0_105, %c0_106] : memref<3x384x8xbf16, #tpu.memory_space<vmem>>, vector<1x384x8xbf16>
    %118 = vector.shape_cast %117 : vector<1x384x8xbf16> to vector<384x8xbf16>
    %cst_107 = arith.constant dense<0.000000e+00> : vector<192x8xf32>
    %119 = tpu.matmul %116, %118, %cst_107 {dimension_numbers = #tpu.dot_dimension_numbers<[1], [0], [0], [1], [0, 0, 1, 1], [], []>} : vector<192x384xbf16>, vector<384x8xbf16>, vector<192x8xf32> -> vector<192x8xf32>
    %120 = arith.addf %109, %119 : vector<192x8xf32>
    %c48_108 = arith.constant 48 : index
    %c0_109 = arith.constant 0 : index
    %121 = vector.load %arg13[%c48_108, %c0_109] : memref<248x128xbf16, #tpu.memory_space<vmem>>, vector<192x128xbf16>
    %c0_110 = arith.constant 0 : index
    %c0_111 = arith.constant 0 : index
    %122 = vector.load %arg14[%c0_110, %c0_111] : memref<192x384xbf16, #tpu.memory_space<vmem>>, vector<192x128xbf16>
    tpu.vector_store %arg14[%c0_110, %c0_111], %121 {strides = array<i32>} : memref<192x384xbf16, #tpu.memory_space<vmem>>, vector<192x128xbf16>,
    %c49_112 = arith.constant 49 : index
    %c0_113 = arith.constant 0 : index
    %123 = vector.load %arg13[%c49_112, %c0_113] : memref<248x128xbf16, #tpu.memory_space<vmem>>, vector<192x128xbf16>
    %c0_114 = arith.constant 0 : index
    %c128_115 = arith.constant 128 : index
    %124 = vector.load %arg14[%c0_114, %c128_115] : memref<192x384xbf16, #tpu.memory_space<vmem>>, vector<192x128xbf16>
    tpu.vector_store %arg14[%c0_114, %c128_115], %123 {strides = array<i32>} : memref<192x384xbf16, #tpu.memory_space<vmem>>, vector<192x128xbf16>,
    %c50_116 = arith.constant 50 : index
    %c0_117 = arith.constant 0 : index
    %125 = vector.load %arg13[%c50_116, %c0_117] : memref<248x128xbf16, #tpu.memory_space<vmem>>, vector<192x128xbf16>
    %c0_118 = arith.constant 0 : index
    %c256_119 = arith.constant 256 : index
    %126 = vector.load %arg14[%c0_118, %c256_119] : memref<192x384xbf16, #tpu.memory_space<vmem>>, vector<192x128xbf16>
    tpu.vector_store %arg14[%c0_118, %c256_119], %125 {strides = array<i32>} : memref<192x384xbf16, #tpu.memory_space<vmem>>, vector<192x128xbf16>,
    %c0_120 = arith.constant 0 : index
    %c0_121 = arith.constant 0 : index
    %127 = vector.load %arg14[%c0_120, %c0_121] : memref<192x384xbf16, #tpu.memory_space<vmem>>, vector<192x384xbf16>
    %c2_122 = arith.constant 2 : index
    %c0_123 = arith.constant 0 : index
    %c0_124 = arith.constant 0 : index
    %128 = vector.load %arg7[%c2_122, %c0_123, %c0_124] : memref<3x384x8xbf16, #tpu.memory_space<vmem>>, vector<1x384x8xbf16>
    %129 = vector.shape_cast %128 : vector<1x384x8xbf16> to vector<384x8xbf16>
    %cst_125 = arith.constant dense<0.000000e+00> : vector<192x8xf32>
    %130 = tpu.matmul %127, %129, %cst_125 {dimension_numbers = #tpu.dot_dimension_numbers<[1], [0], [0], [1], [0, 0, 1, 1], [], []>} : vector<192x384xbf16>, vector<384x8xbf16>, vector<192x8xf32> -> vector<192x8xf32>
    %131 = arith.addf %120, %130 : vector<192x8xf32>
    %c0_126 = arith.constant 0 : index
    %c0_127 = arith.constant 0 : index
    %132 = vector.load %arg8[%c0_126, %c0_127] : memref<1x8xf32, #tpu.memory_space<vmem>>, vector<1x8xf32>
    %133 = vector.broadcast %132 : vector<1x8xf32> to vector<192x8xf32>
    %134 = arith.addf %131, %133 : vector<192x8xf32>
    %135 = tpu.transpose %134, [1, 0] : vector<192x8xf32> -> vector<8x192xf32>
    %c0_128 = arith.constant 0 : index
    %c0_129 = arith.constant 0 : index
    %c0_130 = arith.constant 0 : index
    %c0_131 = arith.constant 0 : index
    %136 = vector.load %arg9[%c0_128, %c0_129, %c0_130, %c0_131] : memref<1x1x8x192xf32, #tpu.memory_space<vmem>>, vector<1x1x8x192xf32>
    %137 = vector.shape_cast %136 : vector<1x1x8x192xf32> to vector<8x192xf32>
    %138 = vector.shape_cast %135 : vector<8x192xf32> to vector<1x1x8x192xf32>
    tpu.vector_store %arg9[%c0_128, %c0_129, %c0_130, %c0_131], %138 {strides = array<i32>} : memref<1x1x8x192xf32, #tpu.memory_space<vmem>>, vector<1x1x8x192xf32>,
    return
  }
  func.func @transform_1(%arg0: i32, %arg1: i32) -> (i32, i32) {
    %c0_i32 = arith.constant 0 : i32
    %c0_i32_0 = arith.constant 0 : i32
    %c0_i32_1 = arith.constant 0 : i32
    return %c0_i32, %c0_i32_0 : i32, i32
  }
  func.func @transform_2(%arg0: i32, %arg1: i32) -> (i32, i32) {
    %c0_i32 = arith.constant 0 : i32
    %c0_i32_0 = arith.constant 0 : i32
    %c0_i32_1 = arith.constant 0 : i32
    return %c0_i32, %c0_i32_0 : i32, i32
  }
  func.func @transform_3(%arg0: i32, %arg1: i32) -> (i32, i32, i32) {
    %c0_i32 = arith.constant 0 : i32
    %c0_i32_0 = arith.constant 0 : i32
    %c0_i32_1 = arith.constant 0 : i32
    %c0_i32_2 = arith.constant 0 : i32
    return %c0_i32, %c0_i32_0, %c0_i32_1 : i32, i32, i32
  }
  func.func @transform_4(%arg0: i32, %arg1: i32) -> (i32, i32) {
    %c0_i32 = arith.constant 0 : i32
    %c0_i32_0 = arith.constant 0 : i32
    %c0_i32_1 = arith.constant 0 : i32
    return %c0_i32, %c0_i32_0 : i32, i32
  }
  func.func @transform_5(%arg0: i32, %arg1: i32) -> (i32, i32, i32) {
    %c0_i32 = arith.constant 0 : i32
    %c0_i32_0 = arith.constant 0 : i32
    %c0_i32_1 = arith.constant 0 : i32
    %c0_i32_2 = arith.constant 0 : i32
    return %c0_i32, %c0_i32_0, %c0_i32_1 : i32, i32, i32
  }
  func.func @transform_6(%arg0: i32, %arg1: i32) -> (i32, i32) {
    %c0_i32 = arith.constant 0 : i32
    %c0_i32_0 = arith.constant 0 : i32
    %c0_i32_1 = arith.constant 0 : i32
    return %c0_i32, %c0_i32_0 : i32, i32
  }
  func.func @transform_7(%arg0: i32, %arg1: i32) -> (i32, i32, i32, i32) {
    %c0_i32 = arith.constant 0 : i32
    %c0_i32_0 = arith.constant 0 : i32
    %c0_i32_1 = arith.constant 0 : i32
    return %arg0, %arg1, %c0_i32, %c0_i32_0 : i32, i32, i32, i32
  }
}

</mosaic_0001>

<bundles_post_ra>
// kernel: video_style_transfer.1
= control target key start
LH: loop header
LB: loop body
LE: loop exit
PB: predicated region body
PF: predicated region fallthrough
CT: control target
= control target key end

     0   :  { %s10770_s24 = smov 0   ;;  %s10772_s25 = smov 0   ;;  %s16074_s0 = inlined_call_operand.vmem [shape: bf16[960,27], index: 0, kind: input, shape index: {}]   ;;  %s16075_s1 = inlined_call_operand.vmem [shape: bf16[27,64], index: 1, kind: input, shape index: {}]   ;;  %s16076_s2 = inlined_call_operand.vmem [shape: f32[1,64], index: 2, kind: input, shape index: {}]   ;;  %s16077_s3 = inlined_call_operand.vmem [shape: bf16[3,192,128], index: 3, kind: input, shape index: {}]   ;;  %s16078_s4 = inlined_call_operand.vmem [shape: f32[1,128], index: 4, kind: input, shape index: {}]   ;;  %s16079_s5 = inlined_call_operand.vmem [shape: bf16[3,384,8], index: 5, kind: input, shape index: {}]   ;;  %s16080_s6 = inlined_call_operand.vmem [shape: f32[1,8], index: 6, kind: input, shape index: {}]   ;;  %s16081_s7 = inlined_call_operand.vmem [shape: f32[2,2,8,192], index: 7, kind: output, shape index: {}]  }
   0x1   :  { %s10774_s26 = smov 0   ;;  %s10776_s27 = smov 0  }
   0x2   :  { %s10778_s28 = smov 0  }
   0x3 LB: > { %s26_s29 = sadd.s32 1, %s10717_s26  ;;  %s29_s30 = sadd.s32 1, %s10721_s27  ;;  %s10725_s28 = sphi %s10778_s28, %s17_s28   ;;  %s10721_s27 = sphi %s10776_s27, %s16634_s27   ;;  %s10717_s26 = sphi %s10774_s26, %s16633_s26   ;;  %s10713_s25 = sphi %s10772_s25, %s16632_s25   ;;  %s10709_s24 = sphi %s10770_s24, %s16631_s24  }
   0x4   : > { %p27_p0 = scmp.ge.s32.totalorder %s26_s29, 2  ;;  %p9060_p1 = scmp.ge.s32.totalorder %s10725_s28, 1 }
   0x5   : > { %p217_p2 = scmp.lt.s32.totalorder %s10725_s28, 5 }
   0x6   : > { %s16636_s29 = smov (%p27_p0, %s26_s29), 0  ;;  %s16638_s30 = smov (!%p27_p0, %s29_s30), %s10721_s27 }
   0x7   : > { %p218_p3 = pnand %p9060_p1, %p217_p2  ;;  %p31_p4 = scmp.ge.s32.totalorder %s16638_s30, 2 }
   0x9   : > { %s16640_s30 = smov (%p31_p4, %s16638_s30), 0  ;;  %221 = sbr.rel (%p218_p3) target bundleno = 1630 (0x65e), region = 44 }
   0xe   : > { %p246_p5 = scmp.lt.s32.totalorder %s10713_s25, 1  ;;  %p248_p6 = scmp.lt.s32.totalorder %s10709_s24, 1 }
   0xf   : > { %s10800_s8 = sshll.u32 %s10709_s24, 3  ;;  %s257_s9 = smul.u32 20, %s10713_s25 }
  0x10   : > { %s16642_s25 = smov (!%p246_p5, %s10713_s25), 1  ;;  %s16644_s24 = smov (!%p248_p6, %s10709_s24), 1 }
  0x11   : > { %s9062_s10 = sshll.u32 %s16642_s25, 2  ;;  %s258_s11 = sadd.s32 %s10800_s8, %s257_s9 }
  0x12   : > { %s9061_s12 = sshll.u32 %s16644_s24, 1  ;;  %s259_s13 = smul.u32 24, %s258_s11 }
  0x13   : > { %s252_s14 = sadd.s32 %s9062_s10, %s9061_s12 }
  0x14   : > { %s9063_s15 = sshll.u32 %s252_s14, 3  ;;  %s260_s16 = sshra.s32 %s259_s13, 3 }
  0x15   : > { %s10806_s19 = scalar_lea.vmem %s16081_s7, %s9063_s15  ;;  %s9065_s20 = sshll.u32 %s260_s16, 2 }
  0x16   : > { %s10811_s23 = scalar_lea.vmem %s16074_s0, %s9065_s20 }
  0x17   : > { %v297_v0 = vld [vmem:[%s10811_s23] sm:$0xff]  ;;  %v299_v1 = vld [vmem:[%s10811_s23 + $0x8] sm:$0xff]  ;;  %v301_v2 = vld [vmem:[%s10811_s23 + $0x10] sm:$0xff] }
  0x18   : > { %298 = vst [vmem:[#allocation2] sm:$0xff] %v297_v0  ;;  %300 = vst [vmem:[#allocation2 + $0x8] sm:$0xff] %v299_v1  ;;  %v303_v3 = vld [vmem:[%s10811_s23 + $0x18] sm:$0xff]  ;;  %v305_v4 = vld [vmem:[%s10811_s23 + $0x20] sm:$0xff] }
  0x19   : > { %302 = vst [vmem:[#allocation2 + $0x10] sm:$0xff] %v301_v2  ;;  %v307_v5 = vld [vmem:[%s10811_s23 + $0x28] sm:$0xff]  ;;  %304 = vst [vmem:[#allocation2 + $0x18] sm:$0xff] %v303_v3  ;;  %v309_v6 = vld [vmem:[%s10811_s23 + $0x30] sm:$0xff] }
  0x1a   : > { %306 = vst [vmem:[#allocation2 + $0x20] sm:$0xff] %v305_v4  ;;  %308 = vst [vmem:[#allocation2 + $0x28] sm:$0xff] %v307_v5  ;;  %v311_v7 = vld [vmem:[%s10811_s23 + $0x38] sm:$0xff]  ;;  %v313_v8 = vld [vmem:[%s10811_s23 + $0x40] sm:$0xff] }
  0x1b   : > { %310 = vst [vmem:[#allocation2 + $0x30] sm:$0xff] %v309_v6  ;;  %312 = vst [vmem:[#allocation2 + $0x38] sm:$0xff] %v311_v7  ;;  %v315_v9 = vld [vmem:[%s10811_s23 + $0x48] sm:$0xff]  ;;  %v317_v10 = vld [vmem:[%s10811_s23 + $0x50] sm:$0xff] }
  0x1c   : > { %314 = vst [vmem:[#allocation2 + $0x40] sm:$0xff] %v313_v8  ;;  %v319_v11 = vld [vmem:[%s10811_s23 + $0x58] sm:$0xff]  ;;  %316 = vst [vmem:[#allocation2 + $0x48] sm:$0xff] %v315_v9  ;;  %v321_v12 = vld [vmem:[%s10811_s23 + $0x60] sm:$0xff] }
  0x1d   : > { %318 = vst [vmem:[#allocation2 + $0x50] sm:$0xff] %v317_v10  ;;  %320 = vst [vmem:[#allocation2 + $0x58] sm:$0xff] %v319_v11  ;;  %v323_v13 = vld [vmem:[%s10811_s23 + $0x68] sm:$0xff]  ;;  %v325_v14 = vld [vmem:[%s10811_s23 + $0x70] sm:$0xff] }
  0x1e   : > { %322 = vst [vmem:[#allocation2 + $0x60] sm:$0xff] %v321_v12  ;;  %324 = vst [vmem:[#allocation2 + $0x68] sm:$0xff] %v323_v13  ;;  %v327_v15 = vld [vmem:[%s10811_s23 + $0x78] sm:$0xff]  ;;  %v329_v16 = vld [vmem:[%s10811_s23 + $0x80] sm:$0xff] }
  0x1f   : > { %326 = vst [vmem:[#allocation2 + $0x70] sm:$0xff] %v325_v14  ;;  %v331_v17 = vld [vmem:[%s10811_s23 + $0x88] sm:$0xff]  ;;  %328 = vst [vmem:[#allocation2 + $0x78] sm:$0xff] %v327_v15 }
  0x20   : > { %330 = vst [vmem:[#allocation2 + $0x80] sm:$0xff] %v329_v16  ;;  %332 = vst [vmem:[#allocation2 + $0x88] sm:$0xff] %v331_v17 }
  0x21   : > { %340 = vsyncadd [#allocation7], 2304 }
  0x22   : > { %10705 = dma.done.wait [#allocation7], 2304 }
  0x23   : > { %10706 = vsyncadd [#allocation7], 4294964992  ;;  %vm548_vm0 = vcmask 1044480   ;;  %vm549_vm1 = vcmask 1045504   ;;  %v10727_v18 = vmov 65535   ;;  %v10397_v22 = vld [vmem:[%s16075_s1] sm:$0xff]   ;;  %v768_v42 = vlaneseq }
  0x24   : > { %v550_v19 = vsel %vm548_vm0, 4294967295, %v10727_v18  ;;  %v10396_v21 = vld [vmem:[%s16075_s1 + $0x8] sm:$0x3f]   ;;  %vm493_vm2 = vcmask 220160   ;;  %v10398_v24 = vld [vmem:[#allocation2] sm:$0xff]   ;;  %v10400_v26 = vld [vmem:[#allocation2 + $0x10] sm:$0xff]  }
  0x25   : > { %v551_v20 = vsel %vm549_vm1, %v550_v19, 0  ;;  %10180 = vmatprep.mubr.msk.bf16.mxu0 %vm493_vm2, %v10398_v24  ;;  %v10399_v25 = vld [vmem:[#allocation2 + $0x8] sm:$0xff]   ;;  %v10401_v27 = vld [vmem:[#allocation2 + $0x18] sm:$0xff]   ;;  %v10402_v28 = vld [vmem:[#allocation2 + $0x20] sm:$0xff]   ;;  %s805_s11 = ssub.s32 2, %s10800_s8  ;;  %s844_s12 = ssub.s32 18, %s10800_s8 }
  0x26   : > { %v553_v23 = vand.u32 %v10396_v21, %v551_v20  ;;  %v10403_v29 = vld [vmem:[#allocation2 + $0x28] sm:$0xff]   ;;  %v10404_v30 = vld [vmem:[#allocation2 + $0x30] sm:$0xff]   ;;  %v10405_v31 = vld [vmem:[#allocation2 + $0x38] sm:$0xff]   ;;  %v10857_v43 = vshrl.u32 %v768_v42, 7  ;;  %s806_s13 = smul.u32 24, %s805_s11  ;;  %vm1144_vm14 = vcmask 519168  }
  0x27   : > { %v10406_v32 = vld [vmem:[#allocation2 + $0x40] sm:$0xff]   ;;  %v10407_v33 = vld [vmem:[#allocation2 + $0x48] sm:$0xff]   ;;  %v10408_v34 = vld [vmem:[#allocation2 + $0x50] sm:$0xff]   ;;  %s845_s14 = smul.u32 24, %s844_s12  ;;  %s10728_s17 = smov 64  }
  0x28   : > { %10176 = vmatprep.subr.bf16.mxu0 %v553_v23  ;;  %v10409_v35 = vld [vmem:[#allocation2 + $0x58] sm:$0xff]   ;;  %v10410_v36 = vld [vmem:[#allocation2 + $0x60] sm:$0xff]   ;;  %v10411_v37 = vld [vmem:[#allocation2 + $0x68] sm:$0xff]   ;;  %16184 = vst [vmem:[#allocation10_spill] sm:$0xff] %v10857_v43  ;;  %v10860_v44 = vadd.s32 16, %v10857_v43  ;;  %v10862_v45 = vstv %s806_s13  ;;  %v10871_v47 = vadd.s32 24, %v10857_v43 }
  0x29   : > { %10177 = vmatpush3.bf16.msra.mxu0 %v553_v23  ;;  %v10412_v38 = vld [vmem:[#allocation2 + $0x70] sm:$0xff]   ;;  %v10413_v39 = vld [vmem:[#allocation2 + $0x78] sm:$0xff]   ;;  %v10414_v40 = vld [vmem:[#allocation2 + $0x80] sm:$0xff]   ;;  %v10864_v46 = vstv %s845_s14  ;;  %vm808_vm5 = vcmp.ge.s32.totalorder %v10857_v43, %v10862_v45  ;;  %v10883_v49 = vadd.s32 8, %v10857_v43  ;;  %v10887_v50 = vadd.s32 48, %v10857_v43  ;;  %s4850_s13 = ssub.s32 1, %s10800_s8 }
  0x2a   : > { %10178 = vmatprep.subr.bf16.mxu0 %v10397_v22  ;;  %v10415_v41 = vld [vmem:[#allocation2 + $0x88] sm:$0xff]   ;;  %16185 = vst [vmem:[#allocation11_spill] sm:$0xff] %v10860_v44  ;;  %vm810_vm3 = vcmp.ge.s32.totalorder %v10860_v44, %v10862_v45  ;;  %vm849_vm4 = vcmp.lt.s32.totalorder %v10860_v44, %v10864_v46  ;;  %16186 = vst [vmem:[#allocation12_spill] sm:$0xff] %v10871_v47  ;;  %v10876_v48 = vld [vmem:[%s16076_s2] ss:$0 sm:$0xff]  ;;  %vm847_vm6 = vcmp.lt.s32.totalorder %v10857_v43, %v10864_v46  ;;  %s4883_s14 = ssub.s32 17, %s10800_s8 }
  0x2b   : > { %16187 = vst [vmem:[#allocation13_spill] sm:$0xff] %v10883_v49  ;;  %vm885_vm7 = vmand %vm810_vm3, %vm849_vm4  ;;  %vm16082_vm8 = vcmp.lt.s32.totalorder %v10860_v44, 18  ;;  %vm811_vm9 = vcmp.ge.s32.totalorder %v10871_v47, %v10862_v45  ;;  %vm850_vm10 = vcmp.lt.s32.totalorder %v10871_v47, %v10864_v46  ;;  %v10894_v52 = vadd.s32 32, %v10857_v43  ;;  %s4851_s15 = smul.u32 24, %s4850_s13 }
  0x2c   : > { %16188 = vst [vmem:[#allocation14_spill] sm:$0xff] %v10887_v50  ;;  %v10897_v53 = vadd.s32 56, %v10857_v43  ;;  %vm883_vm11 = vmand %vm808_vm5, %vm847_vm6  ;;  %vm16083_vm12 = vcmp.ge.s32.totalorder %v10857_v43, 2  ;;  %vm809_vm15 = vcmp.ge.s32.totalorder %v10883_v49, %v10862_v45  ;;  %vm848_vm0 = vcmp.lt.s32.totalorder %v10883_v49, %v10864_v46  ;;  %s4884_s16 = smul.u32 24, %s4883_s14 }
  0x2d   : > { %10179 = vmatpush3.bf16.msra.mxu0 %v10397_v22  ;;  %16189 = vst [vmem:[#allocation15_spill] sm:$0xff] %v10894_v52  ;;  %vm10903_vm13 = vmand %vm885_vm7, %vm16082_vm8  ;;  %v10912_v57 = vadd.s32 40, %v10857_v43  ;;  %vm853_vm3 = vcmp.lt.s32.totalorder %v10887_v50, %v10864_v46  ;;  %vm812_vm5 = vcmp.ge.s32.totalorder %v10894_v52, %v10862_v45  ;;  %vm851_vm6 = vcmp.lt.s32.totalorder %v10894_v52, %v10864_v46 }
  0x2e   : > { %16190 = vst [vmem:[#allocation16_spill] sm:$0xff] %v10897_v53  ;;  %vm886_vm1 = vmand %vm811_vm9, %vm850_vm10  ;;  %v10935_v62 = vadd.s32 64, %v10857_v43  ;;  %vm854_vm9 = vcmp.lt.s32.totalorder %v10897_v53, %v10864_v46  ;;  %v10953_v5 = vadd.s32 80, %v10857_v43  ;;  %v10969_v10 = vadd.s32 88, %v10857_v43 }
  0x2f   : > { %16193 = vst [vmem:[#allocation17_spill] sm:$0xff] %v10912_v57  ;;  %vm10924_vm4 = vmand %vm883_vm11, %vm16083_vm12  ;;  %vm813_vm11 = vcmp.ge.s32.totalorder %v10912_v57, %v10862_v45  ;;  %vm1764_vm8 = vcmask 1046532   ;;  %v10999_v19 = vadd.s32 72, %v10857_v43 }
  0x30   : > { %10181 = vmatmul.mubr.msk.bf16.vlgmr.msra.gmra.mxu0 %vm493_vm2, %v10399_v25  ;;  %16196 = vst [vmem:[#allocation18_spill] sm:$0xff] %v10935_v62  ;;  %vm10944_vm10 = vmand %vm886_vm1, %vm16083_vm12 }
  0x31   : > { %10184 = vmatprep.mubr.msk.bf16.mxu0 %vm493_vm2, %v10400_v26  ;;  %16199 = vst [vmem:[#allocation19_spill] sm:$0xff] %v10953_v5  ;;  %16202 = vst [vmem:[#allocation20_spill] sm:$0xff] %v10969_v10 }
  0x32   : > { %vm884_vm7 = vmand %vm809_vm15, %vm848_vm0  ;;  %vm818_vm0 = vcmp.ge.s32.totalorder %v10953_v5, %v10862_v45  ;;  %16205 = vst [vmem:[#allocation21_spill] sm:$0xff] %v10999_v19 }
  0x38   : > { %10185 = vmatmul.mubr.msk.bf16.gmra.mxu0 %vm493_vm2, %v10401_v27  ;;  %v11028_v27 = vadd.s32 112, %v10857_v43 }
  0x39   : > { %10188 = vmatprep.mubr.msk.bf16.mxu0 %vm493_vm2, %v10402_v28  ;;  %v11031_v28 = vadd.s32 96, %v10857_v43 }
  0x3a   : > { %16210 = vst [vmem:[#allocation22_spill] sm:$0xff] %v11028_v27 }
  0x3b   : > { %16211 = vst [vmem:[#allocation23_spill] sm:$0xff] %v11031_v28 }
  0x40   : > { %10189 = vmatmul.mubr.msk.bf16.gmra.mxu0 %vm493_vm2, %v10403_v29 }
  0x41   : > { %10192 = vmatprep.mubr.msk.bf16.mxu0 %vm493_vm2, %v10404_v30 }
  0x48   : > { %10193 = vmatmul.mubr.msk.bf16.gmra.mxu0 %vm493_vm2, %v10405_v31 }
  0x49   : > { %10196 = vmatprep.mubr.msk.bf16.mxu0 %vm493_vm2, %v10406_v32  ;;  %v11037_v32 = vadd.s32 120, %v10857_v43 }
  0x4b   : > { %16212 = vst [vmem:[#allocation24_spill] sm:$0xff] %v11037_v32 }
  0x50   : > { %10197 = vmatmul.mubr.msk.bf16.gmra.mxu0 %vm493_vm2, %v10407_v33 }
  0x51   : > { %10200 = vmatprep.mubr.msk.bf16.mxu0 %vm493_vm2, %v10408_v34 }
  0x58   : > { %10201 = vmatmul.mubr.msk.bf16.gmra.mxu0 %vm493_vm2, %v10409_v35 }
  0x59   : > { %10204 = vmatprep.mubr.msk.bf16.mxu0 %vm493_vm2, %v10410_v36  ;;  %v11051_v36 = vadd.s32 104, %v10857_v43 }
  0x5b   : > { %16216 = vst [vmem:[#allocation25_spill] sm:$0xff] %v11051_v36 }
  0x60   : > { %10205 = vmatmul.mubr.msk.bf16.gmra.mxu0 %vm493_vm2, %v10411_v37  ;;  %v11054_v37 = vadd.s32 144, %v10857_v43 }
  0x61   : > { %10208 = vmatprep.mubr.msk.bf16.mxu0 %vm493_vm2, %v10412_v38  ;;  %v11057_v38 = vadd.s32 128, %v10857_v43 }
  0x62   : > { %16217 = vst [vmem:[#allocation26_spill] sm:$0xff] %v11054_v37 }
  0x63   : > { %16218 = vst [vmem:[#allocation27_spill] sm:$0xff] %v11057_v38 }
  0x68   : > { %10209 = vmatmul.mubr.msk.bf16.gmra.mxu0 %vm493_vm2, %v10413_v39 }
  0x69   : > { %10212 = vmatprep.mubr.msk.bf16.mxu0 %vm493_vm2, %v10414_v40 }
  0x70   : > { %10213 = vmatmul.mubr.msk.bf16.gmra.mxu0 %vm493_vm2, %v10415_v41  ;;  %vm814_vm2 = vcmp.ge.s32.totalorder %v10887_v50, %v10862_v45 }
  0x71   : > { %vm10964_vm1 = vmand %vm814_vm2, %vm853_vm3  ;;  %vm816_vm2 = vcmp.ge.s32.totalorder %v10935_v62, %v10862_v45  ;;  %vm855_vm3 = vcmp.lt.s32.totalorder %v10935_v62, %v10864_v46 }
  0x72   : > { %vm10990_vm15 = vmand %vm10964_vm1, %vm16083_vm12 }
  0x73   : > { %vm11008_vm1 = vmand %vm812_vm5, %vm851_vm6  ;;  %vm858_vm5 = vcmp.lt.s32.totalorder %v10969_v10, %v10864_v46  ;;  %vm1273_vm6 = vsmask.f32 3328 }
  0xf0   : > { %v10182_v51 = vpop.f32.mrf.mxu0 }
  0xf1   : > { %v598_v54 = vadd.f32 %v10182_v51, %v10876_v48 }
  0xf2   : > { %v589_v56 = vpop.f32.mrf.mxu0 }
  0xf3   : > { %v734_v58 = vmax.f32 %v598_v54, 0.0  ;;  %v590_v59 = vadd.f32 %v10876_v48, %v589_v56  ;;  %v10597_v56 = vld [vmem:[%s16079_s5 + $0x60] sm:$0xff]  }
  0xf4   : > { %v10183_v61 = vpop.f32.mrf.mxu0 }
  0xf5   : > { %v966_v63 = vsel %vm10903_vm13, %v734_v58, 0.0  ;;  %v732_v0 = vmax.f32 %v590_v59, 0.0  ;;  %v601_v1 = vadd.f32 %v10183_v61, %v10876_v48  ;;  %vm852_vm13 = vcmp.lt.s32.totalorder %v10912_v57, %v10864_v46 }
  0xf6   : > { %v9679_v2 = vpack.c.bf16 %v966_v63, %v966_v63  ;;  %v592_v4 = vpop.f32.mrf.mxu0 }
  0xf7   : > { %v964_v6 = vsel %vm10924_vm4, %v732_v0, 0.0  ;;  %v735_v7 = vmax.f32 %v601_v1, 0.0  ;;  %v593_v8 = vadd.f32 %v10876_v48, %v592_v4  ;;  %vm1763_vm4 = vcmask 1042432  }
  0xf8   : > { %1147 = vst.msk [vmem:[#allocation3 + $0x8] sm:$0xf] %vm1144_vm14, %v9679_v2  ;;  %v9677_v11 = vpack.c.bf16 %v964_v6, %v964_v6  ;;  %v10186_v12 = vpop.f32.mrf.mxu0  ;;  %v11096_v4 = vadd.s32 152, %v10857_v43 }
  0xf9   : > { %v967_v13 = vsel %vm10944_vm10, %v735_v7, 0.0  ;;  %v733_v14 = vmax.f32 %v593_v8, 0.0  ;;  %v614_v15 = vadd.f32 %v10186_v12, %v10876_v48  ;;  %vm857_vm10 = vcmp.lt.s32.totalorder %v10953_v5, %v10864_v46 }
  0xfa   : > { %1145 = vst.msk [vmem:[#allocation3] sm:$0xf] %vm1144_vm14, %v9677_v11  ;;  %v9680_v16 = vpack.c.bf16 %v967_v13, %v967_v13  ;;  %v605_v18 = vpop.f32.mrf.mxu0  ;;  %16226 = vst [vmem:[#allocation28_spill] sm:$0xff] %v11096_v4  ;;  %v11115_v12 = vadd.s32 136, %v10857_v43 }
  0xfb   : > { %v965_v20 = vsel %vm884_vm7, %v733_v14, 0.0  ;;  %v738_v21 = vmax.f32 %v614_v15, 0.0  ;;  %v606_v22 = vadd.f32 %v10876_v48, %v605_v18  ;;  %vm11021_vm7 = vmand %vm813_vm11, %vm852_vm13  ;;  %vm1274_vm11 = vsmask.f32 7440 }
  0xfc   : > { %1148 = vst.msk [vmem:[#allocation3 + $0xc] sm:$0xf] %vm1144_vm14, %v9680_v16  ;;  %v9678_v24 = vpack.c.bf16 %v965_v20, %v965_v20  ;;  %v10187_v25 = vpop.f32.mrf.mxu0  ;;  %vm16213_vm13 = vcmp.ge.s32.totalorder %v10897_v53, %v10862_v45  ;;  %16229 = vst [vmem:[#allocation29_spill] sm:$0xff] %v11115_v12 }
  0xfd   : > { %v970_v29 = vsel %vm10990_vm15, %v738_v21, 0.0  ;;  %v736_v30 = vmax.f32 %v606_v22, 0.0  ;;  %v617_v31 = vadd.f32 %v10187_v25, %v10876_v48  ;;  %vm11046_vm12 = vmand %vm16213_vm13, %vm854_vm9  ;;  %vm16219_vm9 = vcmp.lt.s32.totalorder %v10860_v44, 18 }
  0xfe   : > { %1146 = vst.msk [vmem:[#allocation3 + $0x4] sm:$0xf] %vm1144_vm14, %v9678_v24  ;;  %v9683_v33 = vpack.c.bf16 %v970_v29, %v970_v29  ;;  %v608_v35 = vpop.f32.mrf.mxu0  ;;  %vm11068_vm15 = vmand %vm11021_vm7, %vm16219_vm9  ;;  %vm817_vm13 = vcmp.ge.s32.totalorder %v10999_v19, %v10862_v45 }
  0xff   : > { %v11059_v39 = vld [vmem:[#allocation3 + $0x8] sm:$0xf]  ;;  %v968_v40 = vsel %vm11008_vm1, %v736_v30, 0.0  ;;  %v739_v41 = vmax.f32 %v617_v31, 0.0  ;;  %v609_v42 = vadd.f32 %v10876_v48, %v608_v35  ;;  %vm11077_vm1 = vmor %vm1763_vm4, %vm1764_vm8  ;;  %vm856_vm4 = vcmp.lt.s32.totalorder %v10999_v19, %v10864_v46 }
 0x100   : > { %v1244_v54 = vld [vmem:[#allocation3 + $0x8] sm:$0xf]  ;;  %v1771_v55 = vrot.slane %v11059_v39, 5  ;;  %1151 = vst.msk [vmem:[#allocation3 + $0x18] sm:$0xf] %vm1144_vm14, %v9683_v33  ;;  %v9681_v58 = vpack.c.bf16 %v968_v40, %v968_v40  ;;  %v10190_v59 = vpop.f32.mrf.mxu0  ;;  %vm11091_vm8 = vmand %vm816_vm2, %vm855_vm3  ;;  %vm16230_vm2 = vcmp.ge.s32.totalorder %v10969_v10, %v10862_v45 }
 0x101   : > { %v1296_v60 = vshll.u32 %v1244_v54, 16  ;;  %v1300_v61 = vshrl.u32 %v1244_v54, 16  ;;  %v1184_v63 = vld [vmem:[#allocation3 + $0x8] sm:$0xf]  ;;  %v971_v0 = vsel %vm11046_vm12, %v739_v41, 0.0  ;;  %v737_v1 = vmax.f32 %v609_v42, 0.0  ;;  %vm11106_vm12 = vmand %vm818_vm0, %vm857_vm10 }
 0x102   : > { %v630_v2 = vadd.f32 %v10190_v59, %v10876_v48  ;;  %1214 = vst.msk [vmem:[#allocation4 + $0x10] sm:$0xf] %vm1144_vm14, %v1184_v63  ;;  %v1701_v6 = vld [vmem:[#allocation3] sm:$0xe]  ;;  %1149 = vst.msk [vmem:[#allocation3 + $0x10] sm:$0xf] %vm1144_vm14, %v9681_v58  ;;  %v9684_v7 = vpack.c.bf16 %v971_v0, %v971_v0  ;;  %v621_v9 = vpop.f32.mrf.mxu0  ;;  %vm822_vm0 = vcmp.ge.s32.totalorder %v11028_v27, %v10862_v45 }
 0x103   : > { %v11110_v11 = vrot.slane %v1296_v60, 5  ;;  %v1182_v13 = vld [vmem:[#allocation3] sm:$0xf]  ;;  %v1704_v14 = vld [vmem:[#allocation3 + $0xc] sm:$0xf]  ;;  %v969_v15 = vsel %vm11068_vm15, %v737_v1, 0.0  ;;  %v622_v17 = vadd.f32 %v10876_v48, %v621_v9  ;;  %vm11126_vm3 = vmand %vm16230_vm2, %vm858_vm5  ;;  %vm861_vm10 = vcmp.lt.s32.totalorder %v11028_v27, %v10864_v46 }
 0x104   : > { %v742_v16 = vmax.f32 %v630_v2, 0.0  ;;  %v11130_v20 = vld [vmem:[#allocation3 + $0xc] sm:$0xf]  ;;  %1212 = vst.msk [vmem:[#allocation4] sm:$0xf] %vm1144_vm14, %v1182_v13  ;;  %v1773_v21 = vrot.slane %v1771_v55, 4  ;;  %v9682_v23 = vpack.c.bf16 %v969_v15, %v969_v15  ;;  %vm16233_vm7 = vmmov %vm16219_vm9  ;;  %v10191_v25 = vpop.f32.mrf.mxu0  ;;  %vm820_vm9 = vcmp.ge.s32.totalorder %v11031_v28, %v10862_v45 }
 0x105   : > { %v1774_v22 = vrot.slane %v1704_v14, 5  ;;  %1152 = vst.msk [vmem:[#allocation3 + $0x1c] sm:$0xf] %vm1144_vm14, %v9684_v7  ;;  %vm11144_vm5 = vmand %vm11091_vm8, %vm16233_vm7  ;;  %v1302_v26 = vrot.slane %v1300_v61, 4  ;;  %v1702_v29 = vld [vmem:[#allocation3 + $0x4] sm:$0xf]  ;;  %v633_v33 = vadd.f32 %v10191_v25, %v10876_v48  ;;  %vm859_vm15 = vcmp.lt.s32.totalorder %v11031_v28, %v10864_v46 }
 0x106   : > { %v974_v30 = vsel %vm11106_vm12, %v742_v16, 0.0  ;;  %v740_v31 = vmax.f32 %v622_v17, 0.0  ;;  %v1306_v34 = vshll.u32 %v11130_v20, 16  ;;  %v9141_v35 = vrot.slane %v1701_v6, 9  ;;  %1150 = vst.msk [vmem:[#allocation3 + $0x14] sm:$0xf] %vm1144_vm14, %v9682_v23  ;;  %vm16236_vm8 = vmmov %vm16233_vm7  ;;  %v624_v54 = vpop.f32.mrf.mxu0 }
 0x107   : > { %v1775_v40 = vsel %vm11077_vm1, %v1773_v21, %v1774_v22  ;;  %v1768_v41 = vrot.slane %v1702_v29, 5  ;;  %v9687_v42 = vpack.c.bf16 %v974_v30, %v974_v30  ;;  %vm11163_vm12 = vmand %vm11126_vm3, %vm16236_vm8  ;;  %v11168_v58 = vld [vmem:[#allocation3 + $0x18] sm:$0xf]  ;;  %v743_v60 = vmax.f32 %v633_v33, 0.0  ;;  %v1242_v24 = vld [vmem:[#allocation3] sm:$0xf] }
 0x108   : > { %1889 = vst.msk [vmem:[#allocation4 + $0x14] sm:$0xf] %vm1144_vm14, %v1775_v40  ;;  %v972_v59 = vsel %vm11144_vm5, %v740_v31, 0.0  ;;  %v1303_v61 = vor.u32 %v1302_v26, %v11110_v11  ;;  %v625_v63 = vadd.f32 %v10876_v48, %v624_v54  ;;  %vm11180_vm2 = vmand %vm817_vm13, %vm856_vm4  ;;  %v1783_v3 = vrot.slane %v11168_v58, 5  ;;  %v1243_v26 = vld [vmem:[#allocation3 + $0x4] sm:$0xf]  ;;  %v10194_v29 = vpop.f32.mrf.mxu0 }
 0x109   : > { %v1769_v1 = vsel %vm11077_vm1, %v9141_v35, %v1768_v41  ;;  %v1770_v2 = vrot.slane %v1768_v41, 4  ;;  %1155 = vst.msk [vmem:[#allocation3 + $0x28] sm:$0xf] %vm1144_vm14, %v9687_v42  ;;  %vm11190_vm3 = vmor %vm1273_vm6, %vm1274_vm11  ;;  %v11195_v7 = vadd.s32 176, %v10857_v43  ;;  %v1705_v8 = vld [vmem:[#allocation3 + $0x10] sm:$0xf]  ;;  %v9685_v9 = vpack.c.bf16 %v972_v59, %v972_v59 }
 0x10a   : > { %1887 = vst.msk [vmem:[#allocation4 + $0x4] sm:$0xf] %vm1144_vm14, %v1769_v1  ;;  %v975_v13 = vsel %vm11163_vm12, %v743_v60, 0.0  ;;  %v1304_v14 = vrot.slane %v1303_v61, 4  ;;  %v11200_v15 = vrot.slane %v1306_v34, 5  ;;  %v1776_v16 = vrot.slane %v1774_v22, 4  ;;  %vm11246_vm13 = vmand %vm822_vm0, %vm861_vm10 }
 0x10b   : > { %16243 = vst [vmem:[#allocation30_spill] sm:$0xff] %v11195_v7  ;;  %v1772_v17 = vsel %vm11077_vm1, %v1770_v2, %v1771_v55  ;;  %v1785_v18 = vrot.slane %v1783_v3, 4  ;;  %v1777_v21 = vrot.slane %v1705_v8, 5  ;;  %vm16244_vm6 = vcmp.ge.s32.totalorder %v10857_v43, 2  ;;  %1153 = vst.msk [vmem:[#allocation3 + $0x20] sm:$0xf] %vm1144_vm14, %v9685_v9 }
 0x10c   : > { %vm11212_vm11 = vmand %vm11180_vm2, %vm16244_vm6  ;;  %1888 = vst.msk [vmem:[#allocation4 + $0xc] sm:$0xf] %vm1144_vm14, %v1772_v17  ;;  %v1708_v22 = vld [vmem:[#allocation3 + $0x1c] sm:$0xf]  ;;  %v9688_v39 = vpack.c.bf16 %v975_v13, %v975_v13  ;;  %v1309_v55 = vsel %vm11190_vm3, %v1304_v14, %v11200_v15  ;;  %v741_v25 = vmax.f32 %v625_v63, 0.0  ;;  %v11222_v30 = vadd.s32 160, %v10857_v43  ;;  %v637_v13 = vpop.f32.mrf.mxu0 }
 0x10d   : > { %v1778_v31 = vsel %vm11077_vm1, %v1776_v16, %v1777_v21  ;;  %v1779_v33 = vrot.slane %v1777_v21, 4  ;;  %v1786_v34 = vrot.slane %v1708_v22, 5  ;;  %1584 = vrot.lane.b32.xlu1 %v1309_v55, %s10728_s17  ;;  %v11228_v35 = vadd.s32 184, %v10857_v43  ;;  %v1706_v40 = vld [vmem:[#allocation3 + $0x14] sm:$0xf]  ;;  %vm11263_vm4 = vmand %vm820_vm9, %vm859_vm15 }
 0x10e   : > { %16247 = vst [vmem:[#allocation31_spill] sm:$0xff] %v11222_v30  ;;  %1890 = vst.msk [vmem:[#allocation4 + $0x1c] sm:$0xf] %vm1144_vm14, %v1778_v31  ;;  %v973_v41 = vsel %vm11212_vm11, %v741_v25, 0.0  ;;  %v1277_v42 = vshrl.u32 %v1242_v24, 16  ;;  %v1280_v51 = vshll.u32 %v1242_v24, 16  ;;  %vm862_vm15 = vcmp.lt.s32.totalorder %v11037_v32, %v10864_v46 }
 0x10f   : > { %16248 = vst [vmem:[#allocation32_spill] sm:$0xff] %v11228_v35  ;;  %1156 = vst.msk [vmem:[#allocation3 + $0x2c] sm:$0xf] %vm1144_vm14, %v9688_v39  ;;  %v11235_v54 = vadd.s32 168, %v10857_v43  ;;  %v1787_v59 = vsel %vm11077_vm1, %v1785_v18, %v1786_v34  ;;  %v1780_v60 = vrot.slane %v1706_v40, 5  ;;  %v1310_v61 = vshrl.u32 %v11130_v20, 16  ;;  %v10195_v18 = vpop.f32.mrf.mxu0 }
 0x110   : > { %v1286_v63 = vshll.u32 %v1243_v26, 16  ;;  %1893 = vst.msk [vmem:[#allocation4 + $0x34] sm:$0xf] %vm1144_vm14, %v1787_v59  ;;  %v11251_v1 = vld [vmem:[#allocation3 + $0x28] sm:$0xf]  ;;  %v9686_v2 = vpack.c.bf16 %v973_v41, %v973_v41  ;;  %v1279_v8 = vrot.slane %v1277_v42, 4  ;;  %v646_v20 = vadd.f32 %v10194_v29, %v10876_v48  ;;  %vm16255_vm0 = vmmov %vm16233_vm7 }
 0x111   : > { %16249 = vst [vmem:[#allocation33_spill] sm:$0xff] %v11235_v54  ;;  %v1282_v9 = vrot.slane %v1280_v51, 5  ;;  %v1781_v14 = vsel %vm11077_vm1, %v1779_v33, %v1780_v60  ;;  %v1782_v16 = vrot.slane %v1780_v60, 4  ;;  %v1795_v17 = vrot.slane %v11251_v1, 5  ;;  %vm11276_vm10 = vmand %vm11246_vm13, %vm16255_vm0  ;;  %v2034_v5 = vld [vmem:[#allocation3 + $0x18] sm:$0xf] }
 0x112   : > { %v11268_v21 = vadd.s32 208, %v10857_v43  ;;  %1891 = vst.msk [vmem:[#allocation4 + $0x24] sm:$0xf] %vm1144_vm14, %v1781_v14  ;;  %1154 = vst.msk [vmem:[#allocation3 + $0x24] sm:$0xf] %vm1144_vm14, %v9686_v2  ;;  %v1290_v24 = vshrl.u32 %v1243_v26, 16  ;;  %vm823_vm7 = vcmp.ge.s32.totalorder %v11037_v32, %v10862_v45  ;;  %v638_v33 = vadd.f32 %v10876_v48, %v637_v13 }
 0x113   : > { %v1283_v23 = vor.u32 %v1282_v9, %v1279_v8  ;;  %v746_v22 = vmax.f32 %v646_v20, 0.0  ;;  %v11283_v55 = vadd.s32 192, %v10857_v43  ;;  %v1784_v25 = vsel %vm11077_vm1, %v1782_v16, %v1783_v3  ;;  %v1709_v26 = vld [vmem:[#allocation3 + $0x20] sm:$0xf]  ;;  %vm16259_vm5 = vmmov %vm16244_vm6  ;;  %v11309_v2 = vld [vmem:[#allocation3 + $0x10] sm:$0xf] }
 0x114   : > { %16254 = vst [vmem:[#allocation34_spill] sm:$0xff] %v11268_v21  ;;  %v1312_v29 = vrot.slane %v1310_v61, 4  ;;  %v1288_v31 = vrot.slane %v1286_v63, 5  ;;  %v1788_v40 = vrot.slane %v1786_v34, 4  ;;  %1892 = vst.msk [vmem:[#allocation4 + $0x2c] sm:$0xf] %vm1144_vm14, %v1784_v25  ;;  %vm821_vm8 = vcmp.ge.s32.totalorder %v11051_v36, %v10862_v45 }
 0x115   : > { %16258 = vst [vmem:[#allocation35_spill] sm:$0xff] %v11283_v55  ;;  %v1797_v41 = vrot.slane %v1795_v17, 4  ;;  %v1789_v42 = vrot.slane %v1709_v26, 5  ;;  %v1284_v51 = vrot.slane %v1283_v23, 4  ;;  %vm940_vm9 = vmand %vm11263_vm4, %vm16259_vm5  ;;  %v1292_v3 = vrot.slane %v1290_v24, 4 }
 0x116   : > { %v11297_v58 = vld [vmem:[#allocation3 + $0x2c] sm:$0xf]  ;;  %v978_v59 = vsel %vm11276_vm10, %v746_v22, 0.0  ;;  %v744_v60 = vmax.f32 %v638_v33, 0.0  ;;  %v11302_v34 = vadd.s32 216, %v10857_v43  ;;  %v11314_v8 = vadd.s32 200, %v10857_v43  ;;  %vm11373_vm11 = vmand %vm823_vm7, %vm862_vm15 }
 0x117   : > { %v11304_v61 = vld [vmem:[#allocation3 + $0x18] sm:$0xf]  ;;  %v1790_v63 = vsel %vm11077_vm1, %v1788_v40, %v1789_v42  ;;  %v16084_v0 = vrot.slane %v11297_v58, 5  ;;  %v1289_v9 = vsel %vm11190_vm3, %v1284_v51, %v1288_v31  ;;  %v9691_v20 = vpack.c.bf16 %v978_v59, %v978_v59  ;;  %v2032_v16 = vld [vmem:[#allocation3 + $0x10] sm:$0xf]  ;;  %vm16266_vm0 = vmmov %vm16259_vm5 }
 0x118   : > { %16260 = vst [vmem:[#allocation36_spill] sm:$0xff] %v11302_v34  ;;  %16261 = vst [vmem:[#allocation37_spill] sm:$0xff] %v11314_v8  ;;  %v976_v13 = vsel %vm940_vm9, %v744_v60, 0.0  ;;  %v1313_v14 = vor.u32 %v1312_v29, %v11200_v15  ;;  %v1791_v23 = vrot.slane %v1789_v42, 4  ;;  %1580 = vrot.lane.b32.xlu0 %v1289_v9, %s10728_s17  ;;  %v11326_v39 = vadd.s32 240, %v10857_v43 }
 0x119   : > { %1894 = vst.msk [vmem:[#allocation4 + $0x3c] sm:$0xf] %vm1144_vm14, %v1790_v63  ;;  %v1799_v24 = vsel %vm11077_vm1, %v1797_v41, %v16084_v0  ;;  %v9689_v22 = vpack.c.bf16 %v976_v13, %v976_v13  ;;  %v16085_v25 = vrot.slane %v11304_v61, 5  ;;  %v1710_v26 = vld [vmem:[#allocation3 + $0x24] sm:$0xf]  ;;  %v1316_v15 = vshll.u32 %v11309_v2, 16  ;;  %vm943_vm10 = vmand %vm11373_vm11, %vm16266_vm0 }
 0x11a   : > { %1897 = vst.msk [vmem:[#allocation4 + $0x54] sm:$0xf] %vm1144_vm14, %v1799_v24  ;;  %1159 = vst.msk [vmem:[#allocation3 + $0x38] sm:$0xf] %vm1144_vm14, %v9691_v20  ;;  %v1293_v29 = vor.u32 %v1292_v3, %v1288_v31  ;;  %v11332_v33 = vld [vmem:[#allocation3 + $0x14] sm:$0xf]  ;;  %vm860_vm12 = vcmp.lt.s32.totalorder %v11051_v36, %v10864_v46  ;;  %v649_v51 = vadd.f32 %v10195_v18, %v10876_v48  ;;  %v640_v20 = vpop.f32.mrf.mxu0 }
 0x11b   : > { %v1792_v40 = vrot.slane %v1710_v26, 5  ;;  %1157 = vst.msk [vmem:[#allocation3 + $0x30] sm:$0xf] %vm1144_vm14, %v9689_v22  ;;  %v2072_v41 = vshll.u32 %v2032_v16, 16  ;;  %v2031_v42 = vld [vmem:[#allocation3 + $0xc] sm:$0xf]  ;;  %vm826_vm2 = vcmp.ge.s32.totalorder %v11054_v37, %v10862_v45  ;;  %vm865_vm6 = vcmp.lt.s32.totalorder %v11054_v37, %v10864_v46  ;;  %vm11427_vm7 = vmand %vm821_vm8, %vm860_vm12 }
 0x11c   : > { %v11345_v31 = vadd.s32 224, %v10857_v43  ;;  %v11347_v3 = vld [vmem:[#allocation3 + $0x1c] sm:$0xf]  ;;  %v1314_v59 = vrot.slane %v1313_v14, 4  ;;  %v11349_v60 = vrot.slane %v1316_v15, 5  ;;  %v1294_v63 = vrot.slane %v1293_v29, 4  ;;  %v10198_v29 = vpop.f32.mrf.mxu0  ;;  %vm11447_vm5 = vmand %vm826_vm2, %vm865_vm6 }
 0x11d   : > { %v2076_v9 = vshrl.u32 %v2032_v16, 16  ;;  %v1793_v13 = vsel %vm11077_vm1, %v1791_v23, %v1792_v40  ;;  %v1794_v18 = vrot.slane %v1792_v40, 4  ;;  %v11353_v24 = vrot.slane %v2072_v41, 5  ;;  %v1247_v26 = vld [vmem:[#allocation3 + $0x14] sm:$0xf]  ;;  %vm16272_vm9 = vmmov %vm16266_vm0 }
 0x11e   : > { %16262 = vst [vmem:[#allocation38_spill] sm:$0xff] %v11345_v31  ;;  %v2082_v22 = vshll.u32 %v11332_v33, 16  ;;  %v11358_v0 = vrot.slane %v16085_v25, 4  ;;  %1895 = vst.msk [vmem:[#allocation4 + $0x44] sm:$0xf] %vm1144_vm14, %v1793_v13  ;;  %v1319_v14 = vsel %vm11190_vm3, %v1314_v59, %v11349_v60  ;;  %v1299_v16 = vsel %vm11190_vm3, %v1294_v63, %v11110_v11 }
 0x11f   : > { %v2078_v23 = vrot.slane %v2076_v9, 4  ;;  %v1796_v41 = vsel %vm11077_vm1, %v1794_v18, %v1795_v17  ;;  %1586 = vrot.lane.b32.xlu1 %v1319_v14, %s10728_s17  ;;  %1582 = vrot.lane.b32.xlu0 %v1299_v16, %s10728_s17  ;;  %v2063_v11 = vshrl.u32 %v2031_v42, 16  ;;  %v2066_v59 = vshll.u32 %v2031_v42, 16  ;;  %v11384_v63 = vld [vmem:[#allocation3 + $0x18] sm:$0xf]  ;;  %vm11468_vm15 = vmand %vm11447_vm5, %vm16272_vm9 }
 0x120   : > { %vm824_vm13 = vcmp.ge.s32.totalorder %v11057_v38, %v10862_v45  ;;  %v11388_v9 = vld [vmem:[#allocation3 + $0x28] sm:$0xf]  ;;  %1896 = vst.msk [vmem:[#allocation4 + $0x4c] sm:$0xf] %vm1144_vm14, %v1796_v41  ;;  %v747_v13 = vmax.f32 %v649_v51, 0.0  ;;  %v1326_v25 = vshll.u32 %v1247_v26, 16  ;;  %vm863_vm4 = vcmp.lt.s32.totalorder %v11057_v38, %v10864_v46 }
 0x121   : > { %v2079_v1 = vor.u32 %v2078_v23, %v11353_v24  ;;  %v1185_v17 = vld [vmem:[#allocation3 + $0xc] sm:$0xf]  ;;  %v16265_v18 = vrot.slane %v11297_v58, 5  ;;  %v11396_v14 = vld [vmem:[#allocation3 + $0x38] sm:$0xf]  ;;  %v11398_v16 = vrot.slane %v2082_v22, 5  ;;  %v653_v22 = vpop.f32.mrf.mxu0  ;;  %vm899_vm8 = vmand %vm824_vm13, %vm863_vm4  ;;  %vm827_vm12 = vcmp.ge.s32.totalorder %v11096_v4, %v10862_v45 }
 0x122   : > { %v2065_v40 = vrot.slane %v2063_v11, 4  ;;  %v2068_v32 = vrot.slane %v2066_v59, 5  ;;  %1215 = vst.msk [vmem:[#allocation4 + $0x18] sm:$0xf] %vm1144_vm14, %v1185_v17  ;;  %v11406_v23 = vld [vmem:[#allocation3 + $0x30] sm:$0xf]  ;;  %vm866_vm2 = vcmp.lt.s32.totalorder %v11096_v4, %v10864_v46  ;;  %vm825_vm6 = vcmp.ge.s32.totalorder %v11115_v12, %v10862_v45 }
 0x123   : > { %v1800_v42 = vrot.slane %v16265_v18, 4  ;;  %v1320_v58 = vshrl.u32 %v11309_v2, 16  ;;  %v1330_v41 = vshrl.u32 %v1247_v26, 16  ;;  %v641_v18 = vadd.f32 %v10876_v48, %v640_v20 }
 0x124   : > { %v16096_v11 = vrot.slane %v11406_v23, 5  ;;  %v2080_v59 = vrot.slane %v2079_v1, 4  ;;  %v2069_v27 = vor.u32 %v2068_v32, %v2065_v40  ;;  %v1336_v28 = vshll.u32 %v11384_v63, 16 }
 0x125   : > { %v2086_v17 = vshrl.u32 %v11332_v33, 16  ;;  %v979_v10 = vsel %vm943_vm10, %v747_v13, 0.0  ;;  %v1328_v51 = vrot.slane %v1326_v25, 5  ;;  %v11431_v25 = vld [vmem:[#allocation3 + $0x1c] sm:$0xf]  ;;  %v662_v33 = vadd.f32 %v10198_v29, %v10876_v48 }
 0x126   : > { %v1802_v2 = vsel %vm11077_vm1, %v1800_v42, %v16096_v11  ;;  %v2085_v20 = vsel %vm11190_vm3, %v2080_v59, %v11398_v16  ;;  %v654_v26 = vadd.f32 %v10876_v48, %v653_v22  ;;  %v16269_v40 = vrot.slane %v11396_v14, 5  ;;  %v1183_v11 = vld [vmem:[#allocation3 + $0x4] sm:$0xf] }
 0x127   : > { %1898 = vst.msk [vmem:[#allocation4 + $0x5c] sm:$0xf] %vm1144_vm14, %v1802_v2  ;;  %2368 = vrot.lane.b32.xlu1 %v2085_v20, %s10728_s17  ;;  %v2070_v13 = vrot.slane %v2069_v27, 4  ;;  %v9692_v42 = vpack.c.bf16 %v979_v10, %v979_v10  ;;  %v1332_v59 = vrot.slane %v1330_v41, 4  ;;  %v11451_v22 = vrot.slane %v1336_v28, 5 }
 0x128   : > { %v11437_v1 = vrot.slane %v16269_v40, 4  ;;  %v1322_v40 = vrot.slane %v1320_v58, 4  ;;  %v745_v15 = vmax.f32 %v641_v18, 0.0  ;;  %v2092_v2 = vshll.u32 %v2034_v5, 16  ;;  %1213 = vst.msk [vmem:[#allocation4 + $0x8] sm:$0xf] %vm1144_vm14, %v1183_v11 }
 0x129   : > { %v2075_v10 = vsel %vm11190_vm3, %v2070_v13, %v11353_v24  ;;  %1160 = vst.msk [vmem:[#allocation3 + $0x3c] sm:$0xf] %vm1144_vm14, %v9692_v42  ;;  %v1333_v27 = vor.u32 %v1332_v59, %v1328_v51  ;;  %v2096_v41 = vshrl.u32 %v2034_v5, 16  ;;  %v2102_v20 = vshll.u32 %v11431_v25, 16  ;;  %v1249_v24 = vld [vmem:[#allocation3 + $0x1c] sm:$0xf] }
 0x12a   : > { %2366 = vrot.lane.b32.xlu0 %v2075_v10, %s10728_s17  ;;  %v1340_v28 = vshrl.u32 %v11384_v63, 16  ;;  %v1323_v58 = vor.u32 %v1322_v40, %v11349_v60  ;;  %v977_v18 = vsel %vm11427_vm7, %v745_v15, 0.0  ;;  %v2094_v37 = vrot.slane %v2092_v2, 5  ;;  %vm11583_vm7 = vmand %vm827_vm12, %vm866_vm2 }
 0x12b   : > { %v1334_v11 = vrot.slane %v1333_v27, 4  ;;  %v9690_v13 = vpack.c.bf16 %v977_v18, %v977_v18  ;;  %v2098_v42 = vrot.slane %v2096_v41, 4  ;;  %v11472_v59 = vrot.slane %v2102_v20, 5  ;;  %v11484_v27 = vld [vmem:[#allocation3 + $0x2c] sm:$0xf] }
 0x12c   : > { %v1324_v60 = vrot.slane %v1323_v58, 4  ;;  %v2088_v63 = vrot.slane %v2086_v17, 4  ;;  %v750_v15 = vmax.f32 %v662_v33, 0.0  ;;  %v748_v32 = vmax.f32 %v654_v26, 0.0  ;;  %v11492_v20 = vld [vmem:[#allocation3 + $0x20] sm:$0xf]  ;;  %v10199_v58 = vpop.f32.mrf.mxu0 }
 0x12d   : > { %v1339_v29 = vsel %vm11190_vm3, %v1334_v11, %v11451_v22  ;;  %1158 = vst.msk [vmem:[#allocation3 + $0x34] sm:$0xf] %vm1144_vm14, %v9690_v13  ;;  %v2099_v40 = vor.u32 %v2098_v42, %v2094_v37  ;;  %v1346_v2 = vshll.u32 %v1249_v24, 16  ;;  %v1350_v10 = vshrl.u32 %v1249_v24, 16 }
 0x12e   : > { %1590 = vrot.lane.b32.xlu1 %v1339_v29, %s10728_s17  ;;  %v1329_v41 = vsel %vm11190_vm3, %v1324_v60, %v1328_v51  ;;  %v2089_v17 = vor.u32 %v2088_v63, %v11398_v16  ;;  %v982_v33 = vsel %vm11468_vm15, %v750_v15, 0.0  ;;  %v980_v26 = vsel %vm899_vm8, %v748_v32, 0.0  ;;  %v11499_v16 = vld [vmem:[#allocation3 + $0x20] sm:$0xf] }
 0x12f   : > { %1588 = vrot.lane.b32.xlu0 %v1329_v41, %s10728_s17  ;;  %v2100_v18 = vrot.slane %v2099_v40, 4  ;;  %v9695_v24 = vpack.c.bf16 %v982_v33, %v982_v33  ;;  %v9693_v51 = vpack.c.bf16 %v980_v26, %v980_v26  ;;  %v1348_v11 = vrot.slane %v1346_v2, 5  ;;  %v2036_v29 = vld [vmem:[#allocation3 + $0x20] sm:$0xf]  ;;  %v656_v33 = vpop.f32.mrf.mxu0 }
 0x130   : > { %v1716_v5 = vld [vmem:[#allocation3 + $0x3c] sm:$0xf]  ;;  %v2090_v13 = vrot.slane %v2089_v17, 4  ;;  %v1352_v42 = vrot.slane %v1350_v10, 4  ;;  %vm864_vm11 = vcmp.lt.s32.totalorder %v11115_v12, %v10864_v46  ;;  %v16100_v60 = vrot.slane %v11484_v27, 5 }
 0x131   : > { %v1810_v63 = vrot.slane %v1716_v5, 5  ;;  %v2105_v15 = vsel %vm11190_vm3, %v2100_v18, %v11472_v59  ;;  %1163 = vst.msk [vmem:[#allocation3 + $0x48] sm:$0xf] %vm1144_vm14, %v9695_v24  ;;  %1161 = vst.msk [vmem:[#allocation3 + $0x40] sm:$0xf] %vm1144_vm14, %v9693_v51  ;;  %v1356_v32 = vshll.u32 %v11492_v20, 16  ;;  %vm828_vm13 = vcmp.ge.s32.totalorder %v11222_v30, %v10862_v45 }
 0x132   : > { %v16275_v40 = vrot.slane %v11347_v3, 5  ;;  %2372 = vrot.lane.b32.xlu1 %v2105_v15, %s10728_s17  ;;  %v2095_v10 = vsel %vm11190_vm3, %v2090_v13, %v2094_v37  ;;  %v1353_v41 = vor.u32 %v1352_v42, %v1348_v11  ;;  %v1342_v17 = vrot.slane %v1340_v28, 4  ;;  %v10202_v42 = vpop.f32.mrf.mxu0  ;;  %vm11603_vm5 = vmand %vm825_vm6, %vm864_vm11 }
 0x133   : > { %v16099_v26 = vrot.slane %v11499_v16, 5  ;;  %v16276_v18 = vrot.slane %v11406_v23, 5  ;;  %v1811_v51 = vsel %vm11077_vm1, %v11437_v1, %v1810_v63  ;;  %2370 = vrot.lane.b32.xlu0 %v2095_v10, %s10728_s17  ;;  %v11526_v5 = vrot.slane %v1356_v32, 5  ;;  %v11542_v10 = vld [vmem:[#allocation3 + $0x24] sm:$0xf] }
 0x134   : > { %v11514_v2 = vrot.slane %v16275_v40, 4  ;;  %v16277_v15 = vrot.slane %v11388_v9, 5  ;;  %1901 = vst.msk [vmem:[#allocation4 + $0x74] sm:$0xf] %vm1144_vm14, %v1811_v51  ;;  %v1714_v37 = vld [vmem:[#allocation3 + $0x34] sm:$0xf]  ;;  %v1343_v13 = vor.u32 %v1342_v17, %v11451_v22  ;;  %vm830_vm4 = vcmp.ge.s32.totalorder %v11195_v7, %v10862_v45 }
 0x135   : > { %v1803_v24 = vrot.slane %v16276_v18, 4  ;;  %v1354_v28 = vrot.slane %v1353_v41, 4  ;;  %v2112_v23 = vshll.u32 %v2036_v29, 16  ;;  %v11536_v18 = vrot.slane %v16099_v26, 4  ;;  %v11546_v41 = vld [vmem:[#allocation3 + $0x38] sm:$0xf] }
 0x136   : > { %v11530_v40 = vrot.slane %v16277_v15, 4  ;;  %v11540_v1 = vrot.slane %v16100_v60, 4  ;;  %v1804_v32 = vrot.slane %v1714_v37, 5  ;;  %v2116_v15 = vshrl.u32 %v2036_v29, 16  ;;  %v1255_v53 = vld [vmem:[#allocation3 + $0x34] sm:$0xf] }
 0x137   : > { %v2106_v22 = vshrl.u32 %v11431_v25, 16  ;;  %v1359_v17 = vsel %vm11190_vm3, %v1354_v28, %v11526_v5  ;;  %v1344_v51 = vrot.slane %v1343_v13, 4  ;;  %v665_v26 = vadd.f32 %v10199_v58, %v10876_v48  ;;  %v669_v13 = vpop.f32.mrf.mxu0 }
 0x138   : > { %v1812_v60 = vrot.slane %v1810_v63, 4  ;;  %v1805_v37 = vsel %vm11077_vm1, %v1803_v24, %v1804_v32  ;;  %v1806_v38 = vrot.slane %v1804_v32, 4  ;;  %1594 = vrot.lane.b32.xlu1 %v1359_v17, %s10728_s17  ;;  %v2118_v29 = vrot.slane %v2116_v15, 4  ;;  %v11561_v25 = vld [vmem:[#allocation3 + $0x48] sm:$0xf] }
 0x139   : > { %vm869_vm0 = vcmp.lt.s32.totalorder %v11195_v7, %v10864_v46  ;;  %1899 = vst.msk [vmem:[#allocation4 + $0x64] sm:$0xf] %vm1144_vm14, %v1805_v37  ;;  %v11563_v28 = vld [vmem:[#allocation3 + $0x40] sm:$0xf]  ;;  %v1349_v58 = vsel %vm11190_vm3, %v1344_v51, %v1348_v11  ;;  %v2114_v63 = vrot.slane %v2112_v23, 5  ;;  %v2122_v24 = vshll.u32 %v11542_v10, 16 }
 0x13a   : > { %vm867_vm10 = vcmp.lt.s32.totalorder %v11222_v30, %v10864_v46  ;;  %v16278_v15 = vrot.slane %v11396_v14, 5  ;;  %1592 = vrot.lane.b32.xlu0 %v1349_v58, %s10728_s17  ;;  %v11587_v23 = vld [vmem:[#allocation3 + $0x28] sm:$0xf]  ;;  %v657_v14 = vadd.f32 %v10876_v48, %v656_v33  ;;  %v2108_v58 = vrot.slane %v2106_v22, 4  ;;  %v1251_v32 = vld [vmem:[#allocation3 + $0x24] sm:$0xf]  ;;  %vm11664_vm12 = vmand %vm830_vm4, %vm869_vm0 }
 0x13b   : > { %v2119_v51 = vor.u32 %v2118_v29, %v2114_v63  ;;  %v16281_v4 = vrot.slane %v11563_v28, 5  ;;  %v11612_v29 = vrot.slane %v2122_v24, 5  ;;  %v1366_v12 = vshll.u32 %v1251_v32, 16  ;;  %vm11648_vm8 = vmand %vm828_vm13, %vm867_vm10  ;;  %v11786_v50 = vld [vmem:[#allocation3 + $0x48] sm:$0xf] }
 0x13c   : > { %v1808_v17 = vsel %vm11077_vm1, %v1806_v38, %v16278_v15  ;;  %v1360_v38 = vshrl.u32 %v11492_v20, 16  ;;  %v751_v15 = vmax.f32 %v665_v26, 0.0  ;;  %v678_v20 = vadd.f32 %v10202_v42, %v10876_v48  ;;  %v11618_v42 = vld [vmem:[#allocation3 + $0x2c] sm:$0xf]  ;;  %16299 = vst [vmem:[#allocation39_spill] sm:$0xff] %v11786_v50 }
 0x13d   : > { %1900 = vst.msk [vmem:[#allocation4 + $0x6c] sm:$0xf] %vm1144_vm14, %v1808_v17  ;;  %v1814_v36 = vsel %vm11077_vm1, %v1812_v60, %v16281_v4  ;;  %v11609_v26 = vadd.f32 %v10876_v48, %v669_v13  ;;  %v2120_v22 = vrot.slane %v2119_v51, 4  ;;  %v2109_v4 = vor.u32 %v2108_v58, %v11472_v59  ;;  %v2038_v17 = vld [vmem:[#allocation3 + $0x28] sm:$0xf] }
 0x13e   : > { %1902 = vst.msk [vmem:[#allocation4 + $0x7c] sm:$0xf] %vm1144_vm14, %v1814_v36  ;;  %v983_v60 = vsel %vm11583_vm7, %v751_v15, 0.0  ;;  %v1370_v19 = vshrl.u32 %v1251_v32, 16  ;;  %v1376_v62 = vshll.u32 %v11587_v23, 16  ;;  %v2126_v36 = vshrl.u32 %v11542_v10, 16 }
 0x13f   : > { %v9696_v37 = vpack.c.bf16 %v983_v60, %v983_v60  ;;  %v2125_v48 = vsel %vm11190_vm3, %v2120_v22, %v11612_v29  ;;  %v2110_v24 = vrot.slane %v2109_v4, 4  ;;  %v1362_v13 = vrot.slane %v1360_v38, 4  ;;  %v1187_v32 = vld [vmem:[#allocation3 + $0x14] sm:$0xf]  ;;  %v1186_v60 = vld [vmem:[#allocation3 + $0x10] sm:$0xf] }
 0x140   : > { %vm16284_vm9 = vcmp.lt.s32.totalorder %v10860_v44, 18  ;;  %v16287_v11 = vrot.slane %v11561_v25, 5  ;;  %2376 = vrot.lane.b32.xlu1 %v2125_v48, %s10728_s17  ;;  %v1368_v10 = vrot.slane %v1366_v12, 5  ;;  %v1372_v58 = vrot.slane %v1370_v19, 4  ;;  %1217 = vst.msk [vmem:[#allocation4 + $0x28] sm:$0xf] %vm1144_vm14, %v1187_v32 }
 0x141   : > { %vm11628_vm15 = vmand %vm11603_vm5, %vm16284_vm9  ;;  %1164 = vst.msk [vmem:[#allocation3 + $0x4c] sm:$0xf] %vm1144_vm14, %v9696_v37  ;;  %v749_v38 = vmax.f32 %v657_v14, 0.0  ;;  %v2115_v15 = vsel %vm11190_vm3, %v2110_v24, %v2114_v63  ;;  %v1363_v33 = vor.u32 %v1362_v13, %v11526_v5  ;;  %v2132_v22 = vshll.u32 %v2038_v17, 16  ;;  %v1253_v19 = vld [vmem:[#allocation3 + $0x2c] sm:$0xf] }
 0x142   : > { %v11634_v51 = vrot.slane %v16287_v11, 4  ;;  %v2136_v4 = vshrl.u32 %v2038_v17, 16  ;;  %2374 = vrot.lane.b32.xlu0 %v2115_v15, %s10728_s17  ;;  %v1373_v12 = vor.u32 %v1372_v58, %v1368_v10  ;;  %v11653_v14 = vrot.slane %v1376_v62, 5  ;;  %1216 = vst.msk [vmem:[#allocation4 + $0x20] sm:$0xf] %vm1144_vm14, %v1186_v60  ;;  %vm16292_vm11 = vmmov %vm16284_vm9  ;;  %v10203_v60 = vpop.f32.mrf.mxu0 }
 0x143   : > { %v981_v5 = vsel %vm11628_vm15, %v749_v38, 0.0  ;;  %v2142_v63 = vshll.u32 %v11618_v42, 16  ;;  %v1364_v17 = vrot.slane %v1363_v33, 4  ;;  %v2134_v24 = vrot.slane %v2132_v22, 5  ;;  %vm11679_vm13 = vmand %vm11648_vm8, %vm16292_vm11  ;;  %v11683_v15 = vld [vmem:[#allocation3 + $0x24] sm:$0xf] }
 0x144   : > { %v9694_v48 = vpack.c.bf16 %v981_v5, %v981_v5  ;;  %v2138_v13 = vrot.slane %v2136_v4, 4  ;;  %vm831_vm2 = vcmp.ge.s32.totalorder %v11228_v35, %v10862_v45  ;;  %vm870_vm6 = vcmp.lt.s32.totalorder %v11228_v35, %v10864_v46  ;;  %v11685_v33 = vld [vmem:[#allocation3 + $0x30] sm:$0xf]  ;;  %vm16301_vm8 = vmmov %vm16292_vm11 }
 0x145   : > { %v1374_v62 = vrot.slane %v1373_v12, 4  ;;  %v11673_v59 = vrot.slane %v2142_v63, 5  ;;  %v2128_v11 = vrot.slane %v2126_v36, 4  ;;  %v754_v58 = vmax.f32 %v678_v20, 0.0  ;;  %v11698_v63 = vld [vmem:[#allocation3 + $0x30] sm:$0xf]  ;;  %vm11770_vm15 = vmand %vm831_vm2, %vm870_vm6 }
 0x146   : > { %v1369_v22 = vsel %vm11190_vm3, %v1364_v17, %v1368_v10  ;;  %1162 = vst.msk [vmem:[#allocation3 + $0x44] sm:$0xf] %vm1144_vm14, %v9694_v48  ;;  %v2139_v4 = vor.u32 %v2138_v13, %v2134_v24  ;;  %v752_v20 = vmax.f32 %v11609_v26, 0.0  ;;  %v1386_v36 = vshll.u32 %v1253_v19, 16  ;;  %v1189_v17 = vld [vmem:[#allocation3 + $0x1c] sm:$0xf] }
 0x147   : > { %v1379_v37 = vsel %vm11190_vm3, %v1374_v62, %v11653_v14  ;;  %1596 = vrot.lane.b32.xlu0 %v1369_v22, %s10728_s17  ;;  %v2129_v12 = vor.u32 %v2128_v11, %v11612_v29  ;;  %v986_v5 = vsel %vm11664_vm12, %v754_v58, 0.0  ;;  %v1390_v10 = vshrl.u32 %v1253_v19, 16  ;;  %1219 = vst.msk [vmem:[#allocation4 + $0x38] sm:$0xf] %vm1144_vm14, %v1189_v17  ;;  %vm11804_vm12 = vmand %vm11770_vm15, %vm16301_vm8 }
 0x148   : > { %v1720_v48 = vld [vmem:[#allocation3 + $0x4c] sm:$0xf]  ;;  %v1380_v26 = vshrl.u32 %v11587_v23, 16  ;;  %1598 = vrot.lane.b32.xlu1 %v1379_v37, %s10728_s17  ;;  %v2140_v13 = vrot.slane %v2139_v4, 4  ;;  %v9699_v7 = vpack.c.bf16 %v986_v5, %v986_v5  ;;  %v984_v62 = vsel %vm11679_vm13, %v752_v20, 0.0 }
 0x149   : > { %vm829_vm4 = vcmp.ge.s32.totalorder %v11235_v54, %v10862_v45  ;;  %vm868_vm0 = vcmp.lt.s32.totalorder %v11235_v54, %v10864_v46  ;;  %v1822_v19 = vrot.slane %v1720_v48, 5  ;;  %v2130_v32 = vrot.slane %v2129_v12, 4  ;;  %v2040_v4 = vld [vmem:[#allocation3 + $0x30] sm:$0xf]  ;;  %v11719_v5 = vld [vmem:[#allocation3 + $0x3c] sm:$0xf] }
 0x14a   : > { %v9697_v23 = vpack.c.bf16 %v984_v62, %v984_v62  ;;  %v16115_v11 = vrot.slane %v11685_v33, 5  ;;  %1167 = vst.msk [vmem:[#allocation3 + $0x58] sm:$0xf] %vm1144_vm14, %v9699_v7  ;;  %v11712_v58 = vrot.slane %v1386_v36, 5  ;;  %v1392_v38 = vrot.slane %v1390_v10, 4  ;;  %v672_v10 = vpop.f32.mrf.mxu0  ;;  %vm11819_vm2 = vmand %vm829_vm4, %vm868_vm0 }
 0x14b   : > { %v1396_v22 = vshll.u32 %v11698_v63, 16  ;;  %v16295_v20 = vrot.slane %v11546_v41, 5  ;;  %v1823_v12 = vsel %vm11077_vm1, %v11634_v51, %v1822_v19  ;;  %v2145_v7 = vsel %vm11190_vm3, %v2140_v13, %v11673_v59  ;;  %vm16313_vm0 = vmmov %vm16301_vm8 }
 0x14c   : > { %v2135_v36 = vsel %vm11190_vm3, %v2130_v32, %v2134_v24  ;;  %1165 = vst.msk [vmem:[#allocation3 + $0x50] sm:$0xf] %vm1144_vm14, %v9697_v23  ;;  %v16296_v17 = vrot.slane %v11563_v28, 5  ;;  %1905 = vst.msk [vmem:[#allocation4 + $0x94] sm:$0xf] %vm1144_vm14, %v1823_v12  ;;  %2380 = vrot.lane.b32.xlu1 %v2145_v7, %s10728_s17  ;;  %v1393_v51 = vor.u32 %v1392_v38, %v11712_v58  ;;  %v1382_v13 = vrot.slane %v1380_v26, 4 }
 0x14d   : > { %v11717_v37 = vrot.slane %v16295_v20, 4  ;;  %2378 = vrot.lane.b32.xlu0 %v2135_v36, %s10728_s17  ;;  %v11736_v62 = vrot.slane %v1396_v22, 5  ;;  %v11738_v20 = vld [vmem:[#allocation3 + $0x34] sm:$0xf]  ;;  %vm834_vm10 = vcmp.ge.s32.totalorder %v11268_v21, %v10862_v45  ;;  %vm873_vm7 = vcmp.lt.s32.totalorder %v11268_v21, %v10864_v46  ;;  %v1718_v24 = vld [vmem:[#allocation3 + $0x44] sm:$0xf]  ;;  %v10206_v22 = vpop.f32.mrf.mxu0 }
 0x14e   : > { %v1815_v48 = vrot.slane %v16296_v17, 4  ;;  %v11746_v28 = vrot.slane %v16115_v11, 4  ;;  %v2146_v32 = vshrl.u32 %v11618_v42, 16  ;;  %v2152_v23 = vshll.u32 %v2040_v4, 16  ;;  %vm11861_vm13 = vmand %vm834_vm10, %vm873_vm7 }
 0x14f   : > { %v2156_v38 = vshrl.u32 %v2040_v4, 16  ;;  %vm832_vm5 = vcmp.ge.s32.totalorder %v11283_v55, %v10862_v45  ;;  %vm871_vm9 = vcmp.lt.s32.totalorder %v11283_v55, %v10864_v46  ;;  %v1816_v12 = vrot.slane %v1718_v24, 5  ;;  %v11761_v4 = vld [vmem:[%s16076_s2] ss:$0 sm:$0xff]  ;;  %vm11891_vm10 = vmand %vm11861_vm13, %vm16313_vm0 }
 0x150   : > { %v1394_v7 = vrot.slane %v1393_v51, 4  ;;  %v1383_v36 = vor.u32 %v1382_v13, %v11653_v14  ;;  %v11755_v17 = vrot.slane %v2152_v23, 5  ;;  %v2162_v42 = vshll.u32 %v11738_v20, 16  ;;  %vm11874_vm4 = vmand %vm832_vm5, %vm871_vm9 }
 0x151   : > { %v2158_v11 = vrot.slane %v2156_v38, 4  ;;  %v681_v29 = vadd.f32 %v11761_v4, %v10203_v60  ;;  %v1817_v51 = vsel %vm11077_vm1, %v1815_v48, %v1816_v12  ;;  %v1818_v13 = vrot.slane %v1816_v12, 4  ;;  %v1188_v60 = vld [vmem:[#allocation3 + $0x18] sm:$0xf]  ;;  %v685_v12 = vpop.f32.mrf.mxu0 }
 0x152   : > { %v1399_v24 = vsel %vm11190_vm3, %v1394_v7, %v11736_v62  ;;  %v1384_v23 = vrot.slane %v1383_v36, 4  ;;  %v1824_v38 = vrot.slane %v1822_v19, 4  ;;  %1903 = vst.msk [vmem:[#allocation4 + $0x84] sm:$0xf] %vm1144_vm14, %v1817_v51  ;;  %v11780_v26 = vld [vmem:[#allocation3 + $0x58] sm:$0xf]  ;;  %v673_v48 = vadd.f32 %v11761_v4, %v672_v10 }
 0x153   : > { %1602 = vrot.lane.b32.xlu1 %v1399_v24, %s10728_s17  ;;  %v2159_v35 = vor.u32 %v2158_v11, %v11755_v17  ;;  %v2148_v30 = vrot.slane %v2146_v32, 4  ;;  %1218 = vst.msk [vmem:[#allocation4 + $0x30] sm:$0xf] %vm1144_vm14, %v1188_v60  ;;  %v16300_v7 = vrot.slane %v11561_v25, 5  ;;  %v11792_v36 = vld [vmem:[#allocation3 + $0x50] sm:$0xf]  ;;  %v694_v60 = vadd.f32 %v11761_v4, %v10206_v22 }
 0x154   : > { %v1400_v51 = vshrl.u32 %v11698_v63, 16  ;;  %v1389_v11 = vsel %vm11190_vm3, %v1384_v23, %v11712_v58  ;;  %v11798_v32 = vrot.slane %v2162_v42, 5  ;;  %v16124_v25 = vrot.slane %v11780_v26, 5  ;;  %v11823_v24 = vld [vmem:[#allocation3 + $0x38] sm:$0xf] }
 0x155   : > { %v1820_v19 = vsel %vm11077_vm1, %v1818_v13, %v16300_v7  ;;  %v16125_v63 = vrot.slane %v11792_v36, 5  ;;  %1600 = vrot.lane.b32.xlu0 %v1389_v11, %s10728_s17  ;;  %v2160_v13 = vrot.slane %v2159_v35, 4  ;;  %v2149_v58 = vor.u32 %v2148_v30, %v11673_v59 }
 0x156   : > { %1904 = vst.msk [vmem:[#allocation4 + $0x8c] sm:$0xf] %vm1144_vm14, %v1820_v19  ;;  %v755_v14 = vmax.f32 %v681_v29, 0.0  ;;  %v1406_v23 = vshll.u32 %v1255_v53, 16  ;;  %v686_v35 = vadd.f32 %v11761_v4, %v685_v12  ;;  %v2166_v29 = vshrl.u32 %v11738_v20, 16 }
 0x157   : > { %v1826_v59 = vsel %vm11077_vm1, %v1824_v38, %v16125_v63  ;;  %v2165_v7 = vsel %vm11190_vm3, %v2160_v13, %v11798_v32  ;;  %v2042_v19 = vld [vmem:[#allocation3 + $0x38] sm:$0xf]  ;;  %v2150_v22 = vrot.slane %v2149_v58, 4  ;;  %v1410_v30 = vshrl.u32 %v1255_v53, 16  ;;  %v11848_v20 = vld [vmem:[#allocation3 + $0x3c] sm:$0xf] }
 0x158   : > { %1906 = vst.msk [vmem:[#allocation4 + $0x9c] sm:$0xf] %vm1144_vm14, %v1826_v59  ;;  %2384 = vrot.lane.b32.xlu1 %v2165_v7, %s10728_s17  ;;  %v987_v12 = vsel %vm11804_vm12, %v755_v14, 0.0  ;;  %v1408_v11 = vrot.slane %v1406_v23, 5  ;;  %vm16306_vm6 = vcmp.ge.s32.totalorder %v10857_v43, 2  ;;  %v11852_v13 = vrot.slane %v16124_v25, 4 }
 0x159   : > { %vm11844_vm11 = vmand %vm11819_vm2, %vm16306_vm6  ;;  %v9700_v58 = vpack.c.bf16 %v987_v12, %v987_v12  ;;  %v1416_v10 = vshll.u32 %v11823_v24, 16  ;;  %v1402_v14 = vrot.slane %v1400_v51, 4  ;;  %v2155_v42 = vsel %vm11190_vm3, %v2150_v22, %v11755_v17  ;;  %v10207_v51 = vpop.f32.mrf.mxu0 }
 0x15a   : > { %v1412_v23 = vrot.slane %v1410_v30, 4  ;;  %v753_v59 = vmax.f32 %v673_v48, 0.0  ;;  %v2172_v7 = vshll.u32 %v2042_v19, 16  ;;  %2382 = vrot.lane.b32.xlu0 %v2155_v42, %s10728_s17  ;;  %v1420_v12 = vshrl.u32 %v11823_v24, 16  ;;  %v1257_v24 = vld [vmem:[#allocation3 + $0x3c] sm:$0xf]  ;;  %vm16316_vm7 = vmmov %vm16306_vm6 }
 0x15b   : > { %1168 = vst.msk [vmem:[#allocation3 + $0x5c] sm:$0xf] %vm1144_vm14, %v9700_v58  ;;  %v1403_v17 = vor.u32 %v1402_v14, %v11736_v62  ;;  %v2176_v48 = vshrl.u32 %v2042_v19, 16  ;;  %v2182_v30 = vshll.u32 %v11848_v20, 16  ;;  %v11883_v25 = vrot.slane %v1416_v10, 5  ;;  %vm952_vm5 = vmand %vm11874_vm4, %vm16316_vm7 }
 0x15c   : > { %v1413_v22 = vor.u32 %v1412_v23, %v1408_v11  ;;  %v985_v63 = vsel %vm11844_vm11, %v753_v59, 0.0  ;;  %v2174_v21 = vrot.slane %v2172_v7, 5  ;;  %v2168_v10 = vrot.slane %v2166_v29, 4  ;;  %vm16325_vm0 = vmmov %vm16316_vm7 }
 0x15d   : > { %v1404_v62 = vrot.slane %v1403_v17, 4  ;;  %v9698_v19 = vpack.c.bf16 %v985_v63, %v985_v63  ;;  %v2178_v14 = vrot.slane %v2176_v48, 4  ;;  %v11895_v42 = vrot.slane %v2182_v30, 5  ;;  %v11904_v48 = vld [vmem:[#allocation3 + $0x34] sm:$0xf] }
 0x15e   : > { %v1414_v38 = vrot.slane %v1413_v22, 4  ;;  %v758_v23 = vmax.f32 %v694_v60, 0.0  ;;  %v756_v59 = vmax.f32 %v686_v35, 0.0  ;;  %v1426_v17 = vshll.u32 %v1257_v24, 16 }
 0x15f   : > { %v1409_v53 = vsel %vm11190_vm3, %v1404_v62, %v1408_v11  ;;  %1166 = vst.msk [vmem:[#allocation3 + $0x54] sm:$0xf] %vm1144_vm14, %v9698_v19  ;;  %v2179_v7 = vor.u32 %v2178_v14, %v2174_v21  ;;  %v1430_v63 = vshrl.u32 %v1257_v24, 16  ;;  %v2169_v29 = vor.u32 %v2168_v10, %v11798_v32  ;;  %v11913_v11 = vld [vmem:[#allocation3 + $0x40] sm:$0xf] }
 0x160   : > { %v1419_v30 = vsel %vm11190_vm3, %v1414_v38, %v11883_v25  ;;  %1604 = vrot.lane.b32.xlu0 %v1409_v53, %s10728_s17  ;;  %v990_v60 = vsel %vm11891_vm10, %v758_v23, 0.0  ;;  %v988_v35 = vsel %vm952_vm5, %v756_v59, 0.0  ;;  %v11916_v19 = vrot.slane %v1426_v17, 5  ;;  %v11918_v14 = vld [vmem:[#allocation3 + $0x40] sm:$0xf] }
 0x161   : > { %1606 = vrot.lane.b32.xlu1 %v1419_v30, %s10728_s17  ;;  %v2180_v22 = vrot.slane %v2179_v7, 4  ;;  %v9703_v24 = vpack.c.bf16 %v990_v60, %v990_v60  ;;  %v9701_v62 = vpack.c.bf16 %v988_v35, %v988_v35  ;;  %v2170_v53 = vrot.slane %v2169_v29, 4  ;;  %v2044_v7 = vld [vmem:[#allocation3 + $0x40] sm:$0xf]  ;;  %v11932_v17 = vld [vmem:[#allocation3 + $0x4c] sm:$0xf]  ;;  %v688_v35 = vpop.f32.mrf.mxu0 }
 0x162   : > { %v1724_v38 = vld [vmem:[#allocation3 + $0x5c] sm:$0xf]  ;;  %v1432_v55 = vrot.slane %v1430_v63, 4  ;;  %vm835_vm9 = vcmp.ge.s32.totalorder %v11302_v34, %v10862_v45  ;;  %vm874_vm15 = vcmp.lt.s32.totalorder %v11302_v34, %v10864_v46  ;;  %v16317_v32 = vrot.slane %v11719_v5, 5 }
 0x163   : > { %v1834_v23 = vrot.slane %v1724_v38, 5  ;;  %1171 = vst.msk [vmem:[#allocation3 + $0x68] sm:$0xf] %vm1144_vm14, %v9703_v24  ;;  %1169 = vst.msk [vmem:[#allocation3 + $0x60] sm:$0xf] %vm1144_vm14, %v9701_v62  ;;  %v1436_v59 = vshll.u32 %v11913_v11, 16  ;;  %v2185_v63 = vsel %vm11190_vm3, %v2180_v22, %v11895_v42  ;;  %v2175_v30 = vsel %vm11190_vm3, %v2170_v53, %v2174_v21 }
 0x164   : > { %v11926_v58 = vrot.slane %v16317_v32, 4  ;;  %v1433_v29 = vor.u32 %v1432_v55, %v11916_v19  ;;  %v1422_v60 = vrot.slane %v1420_v12, 4  ;;  %v1191_v38 = vld [vmem:[#allocation3 + $0x24] sm:$0xf]  ;;  %v16130_v24 = vrot.slane %v11918_v14, 5  ;;  %2386 = vrot.lane.b32.xlu0 %v2175_v30, %s10728_s17  ;;  %vm11983_vm11 = vmand %vm835_vm9, %vm874_vm15 }
 0x165   : > { %v16318_v62 = vrot.slane %v11792_v36, 5  ;;  %v1835_v10 = vsel %vm11077_vm1, %v11852_v13, %v1834_v23  ;;  %2388 = vrot.lane.b32.xlu1 %v2185_v63, %s10728_s17  ;;  %v11948_v22 = vrot.slane %v1436_v59, 5  ;;  %vm833_vm8 = vcmp.ge.s32.totalorder %v11314_v8, %v10862_v45  ;;  %1221 = vst.msk [vmem:[#allocation4 + $0x48] sm:$0xf] %vm1144_vm14, %v1191_v38  ;;  %v10210_v59 = vpop.f32.mrf.mxu0  ;;  %vm12018_vm10 = vmand %vm11983_vm11, %vm16325_vm0 }
 0x166   : > { %vm872_vm12 = vcmp.lt.s32.totalorder %v11314_v8, %v10864_v46  ;;  %v16319_v21 = vrot.slane %v11786_v50, 5  ;;  %1909 = vst.msk [vmem:[#allocation4 + $0xb4] sm:$0xf] %vm1144_vm14, %v1835_v10  ;;  %v1722_v36 = vld [vmem:[#allocation3 + $0x54] sm:$0xf]  ;;  %v1434_v13 = vrot.slane %v1433_v29, 4  ;;  %v1423_v12 = vor.u32 %v1422_v60, %v11883_v25  ;;  %vm16333_vm9 = vmmov %vm16325_vm0 }
 0x167   : > { %v1827_v32 = vrot.slane %v16318_v62, 4  ;;  %v2192_v53 = vshll.u32 %v2044_v7, 16  ;;  %vm838_vm2 = vcmp.ge.s32.totalorder %v11326_v39, %v10862_v45  ;;  %vm877_vm6 = vcmp.lt.s32.totalorder %v11326_v39, %v10864_v46  ;;  %v11970_v10 = vld [vmem:[#allocation3 + $0x44] sm:$0xf]  ;;  %v701_v52 = vpop.f32.mrf.mxu0  ;;  %vm12053_vm7 = vmand %vm833_vm8, %vm872_vm12 }
 0x168   : > { %v11957_v55 = vrot.slane %v16319_v21, 4  ;;  %v11967_v63 = vrot.slane %v16130_v24, 4  ;;  %v1828_v38 = vrot.slane %v1722_v36, 5  ;;  %v2196_v29 = vshrl.u32 %v2044_v7, 16  ;;  %vm12071_vm5 = vmand %vm838_vm2, %vm877_vm6 }
 0x169   : > { %v2186_v25 = vshrl.u32 %v11848_v20, 16  ;;  %v1439_v60 = vsel %vm11190_vm3, %v1434_v13, %v11948_v22  ;;  %v1424_v62 = vrot.slane %v1423_v12, 4  ;;  %v697_v21 = vadd.f32 %v11761_v4, %v10207_v51  ;;  %v1190_v12 = vld [vmem:[#allocation3 + $0x20] sm:$0xf]  ;;  %vm12090_vm15 = vmand %vm12071_vm5, %vm16333_vm9 }
 0x16a   : > { %v1836_v7 = vrot.slane %v1834_v23, 4  ;;  %v1829_v20 = vsel %vm11077_vm1, %v1827_v32, %v1828_v38  ;;  %v1830_v24 = vrot.slane %v1828_v38, 4  ;;  %1610 = vrot.lane.b32.xlu1 %v1439_v60, %s10728_s17  ;;  %v2198_v13 = vrot.slane %v2196_v29, 4  ;;  %v11991_v51 = vld [vmem:[#allocation3 + $0x68] sm:$0xf] }
 0x16b   : > { %1907 = vst.msk [vmem:[#allocation4 + $0xa4] sm:$0xf] %vm1144_vm14, %v1829_v20  ;;  %v11993_v30 = vld [vmem:[#allocation3 + $0x60] sm:$0xf]  ;;  %v1429_v34 = vsel %vm11190_vm3, %v1424_v62, %v11916_v19  ;;  %v2194_v54 = vrot.slane %v2192_v53, 5  ;;  %v2202_v23 = vshll.u32 %v11970_v10, 16  ;;  %vm836_vm13 = vcmp.ge.s32.totalorder %v11345_v31, %v10862_v45 }
 0x16c   : > { %vm875_vm4 = vcmp.lt.s32.totalorder %v11345_v31, %v10864_v46  ;;  %1220 = vst.msk [vmem:[#allocation4 + $0x40] sm:$0xf] %vm1144_vm14, %v1190_v12  ;;  %v16322_v32 = vrot.slane %v11932_v17, 5  ;;  %v16324_v29 = vrot.slane %v11780_v26, 5  ;;  %v16141_v53 = vrot.slane %v11993_v30, 5  ;;  %1608 = vrot.lane.b32.xlu0 %v1429_v34, %s10728_s17 }
 0x16d   : > { %v12022_v62 = vld [vmem:[#allocation3 + $0x48] sm:$0xf]  ;;  %v689_v20 = vadd.f32 %v11761_v4, %v688_v35  ;;  %v1440_v26 = vshrl.u32 %v11913_v11, 16  ;;  %v2188_v12 = vrot.slane %v2186_v25, 4  ;;  %v1259_v34 = vld [vmem:[#allocation3 + $0x44] sm:$0xf]  ;;  %v710_v57 = vadd.f32 %v11761_v4, %v10210_v59  ;;  %vm12106_vm8 = vmand %vm836_vm13, %vm875_vm4 }
 0x16e   : > { %v12006_v38 = vrot.slane %v16322_v32, 4  ;;  %v1832_v19 = vsel %vm11077_vm1, %v1830_v24, %v16324_v29  ;;  %v2199_v24 = vor.u32 %v2198_v13, %v2194_v54  ;;  %v759_v32 = vmax.f32 %v697_v21, 0.0  ;;  %v12057_v60 = vld [vmem:[#allocation3 + $0x4c] sm:$0xf] }
 0x16f   : > { %1908 = vst.msk [vmem:[#allocation4 + $0xac] sm:$0xf] %vm1144_vm14, %v1832_v19  ;;  %v1838_v36 = vsel %vm11077_vm1, %v1836_v7, %v16141_v53  ;;  %v12034_v47 = vadd.f32 %v11761_v4, %v701_v52  ;;  %v12037_v11 = vrot.slane %v2202_v23, 5  ;;  %v2189_v25 = vor.u32 %v2188_v12, %v11895_v42  ;;  %v2046_v53 = vld [vmem:[#allocation3 + $0x48] sm:$0xf] }
 0x170   : > { %16323 = vst [vmem:[#allocation40_spill] sm:$0xff] %v12006_v38  ;;  %1910 = vst.msk [vmem:[#allocation4 + $0xbc] sm:$0xf] %vm1144_vm14, %v1838_v36  ;;  %v2200_v35 = vrot.slane %v2199_v24, 4  ;;  %v991_v21 = vsel %vm12018_vm10, %v759_v32, 0.0  ;;  %v1446_v19 = vshll.u32 %v1259_v34, 16 }
 0x171   : > { %v9704_v13 = vpack.c.bf16 %v991_v21, %v991_v21  ;;  %v1450_v29 = vshrl.u32 %v1259_v34, 16  ;;  %v1456_v7 = vshll.u32 %v12022_v62, 16  ;;  %v2206_v59 = vshrl.u32 %v11970_v10, 16 }
 0x172   : > { %v2205_v52 = vsel %vm11190_vm3, %v2200_v35, %v12037_v11  ;;  %v2190_v24 = vrot.slane %v2189_v25, 4  ;;  %v1442_v23 = vrot.slane %v1440_v26, 4  ;;  %v16330_v12 = vrot.slane %v11991_v51, 5 }
 0x173   : > { %2392 = vrot.lane.b32.xlu1 %v2205_v52, %s10728_s17  ;;  %1172 = vst.msk [vmem:[#allocation3 + $0x6c] sm:$0xf] %vm1144_vm14, %v9704_v13  ;;  %v1448_v10 = vrot.slane %v1446_v19, 5  ;;  %v1452_v26 = vrot.slane %v1450_v29, 4  ;;  %v757_v34 = vmax.f32 %v689_v20, 0.0  ;;  %v2212_v21 = vshll.u32 %v2046_v53, 16  ;;  %v12078_v19 = vpop.f32.mrf.mxu0 }
 0x174   : > { %v12061_v32 = vrot.slane %v16330_v12, 4  ;;  %v2195_v35 = vsel %vm11190_vm3, %v2190_v24, %v2194_v54  ;;  %v1443_v25 = vor.u32 %v1442_v23, %v11948_v22  ;;  %v2216_v13 = vshrl.u32 %v2046_v53, 16  ;;  %v1261_v12 = vld [vmem:[#allocation3 + $0x4c] sm:$0xf]  ;;  %v12094_v53 = vld [vmem:[#allocation3 + $0x44] sm:$0xf] }
 0x175   : > { %2390 = vrot.lane.b32.xlu0 %v2195_v35, %s10728_s17  ;;  %v1453_v20 = vor.u32 %v1452_v26, %v1448_v10  ;;  %v12081_v29 = vrot.slane %v1456_v7, 5  ;;  %v989_v39 = vsel %vm12053_vm7, %v757_v34, 0.0  ;;  %v2222_v52 = vshll.u32 %v12057_v60, 16  ;;  %v12096_v7 = vld [vmem:[#allocation3 + $0x58] sm:$0xf] }
 0x176   : > { %v1444_v8 = vrot.slane %v1443_v25, 4  ;;  %v9702_v49 = vpack.c.bf16 %v989_v39, %v989_v39  ;;  %v2214_v54 = vrot.slane %v2212_v21, 5  ;;  %v2218_v24 = vrot.slane %v2216_v13, 4  ;;  %16336 = vst [vmem:[#allocation41_spill] sm:$0xff] %v12096_v7  ;;  %v12110_v35 = vld [vmem:[#allocation3 + $0x50] sm:$0xf]  ;;  %v12116_v13 = vpop.f32.mrf.mxu0 }
 0x177   : > { %v1454_v23 = vrot.slane %v1453_v20, 4  ;;  %v12098_v42 = vrot.slane %v2222_v52, 5  ;;  %v2208_v26 = vrot.slane %v2206_v59, 4  ;;  %v762_v34 = vmax.f32 %v710_v57, 0.0  ;;  %v1193_v20 = vld [vmem:[#allocation3 + $0x2c] sm:$0xf] }
 0x178   : > { %v1449_v25 = vsel %vm11190_vm3, %v1444_v8, %v1448_v10  ;;  %1170 = vst.msk [vmem:[#allocation3 + $0x64] sm:$0xf] %vm1144_vm14, %v9702_v49  ;;  %v2219_v21 = vor.u32 %v2218_v24, %v2214_v54  ;;  %v760_v57 = vmax.f32 %v12034_v47, 0.0  ;;  %v1466_v59 = vshll.u32 %v1261_v12, 16  ;;  %v12125_v10 = vld [vmem:[#allocation3 + $0x50] sm:$0xf] }
 0x179   : > { %v1459_v39 = vsel %vm11190_vm3, %v1454_v23, %v12081_v29  ;;  %1612 = vrot.lane.b32.xlu0 %v1449_v25, %s10728_s17  ;;  %v2209_v52 = vor.u32 %v2208_v26, %v12037_v11  ;;  %v994_v8 = vsel %vm12090_vm15, %v762_v34, 0.0  ;;  %v1470_v49 = vshrl.u32 %v1261_v12, 16  ;;  %1223 = vst.msk [vmem:[#allocation4 + $0x58] sm:$0xf] %vm1144_vm14, %v1193_v20  ;;  %v1192_v47 = vld [vmem:[#allocation3 + $0x28] sm:$0xf]  ;;  %v10214_v11 = vpop.f32.mrf.mxu0 }
 0x17a   : > { %v1728_v24 = vld [vmem:[#allocation3 + $0x6c] sm:$0xf]  ;;  %v1460_v31 = vshrl.u32 %v12022_v62, 16  ;;  %1614 = vrot.lane.b32.xlu1 %v1459_v39, %s10728_s17  ;;  %v2220_v38 = vrot.slane %v2219_v21, 4  ;;  %v9707_v23 = vpack.c.bf16 %v994_v8, %v994_v8  ;;  %v992_v25 = vsel %vm12106_vm8, %v760_v57, 0.0 }
 0x17b   : > { %1222 = vst.msk [vmem:[#allocation4 + $0x50] sm:$0xf] %vm1144_vm14, %v1192_v47  ;;  %v16149_v22 = vrot.slane %v12096_v7, 5  ;;  %v1846_v26 = vrot.slane %v1728_v24, 5  ;;  %v2210_v12 = vrot.slane %v2209_v52, 4  ;;  %v9705_v34 = vpack.c.bf16 %v992_v25, %v992_v25 }
 0x17c   : > { %1175 = vst.msk [vmem:[#allocation3 + $0x78] sm:$0xf] %vm1144_vm14, %v9707_v23  ;;  %v1468_v62 = vrot.slane %v1466_v59, 5  ;;  %v1472_v50 = vrot.slane %v1470_v49, 4  ;;  %v1476_v21 = vshll.u32 %v12125_v10, 16  ;;  %v16150_v36 = vrot.slane %v12110_v35, 5 }
 0x17d   : > { %v2048_v39 = vld [vmem:[#allocation3 + $0x50] sm:$0xf]  ;;  %v1847_v57 = vsel %vm11077_vm1, %v12061_v32, %v1846_v26  ;;  %v2225_v52 = vsel %vm11190_vm3, %v2220_v38, %v12098_v42  ;;  %v2215_v8 = vsel %vm11190_vm3, %v2210_v12, %v2214_v54  ;;  %1173 = vst.msk [vmem:[#allocation3 + $0x70] sm:$0xf] %vm1144_vm14, %v9705_v34  ;;  %v16339_v59 = vrot.slane %v11993_v30, 5  ;;  %v717_v38 = vpop.f32.mrf.mxu0 }
 0x17e   : > { %1913 = vst.msk [vmem:[#allocation4 + $0xd4] sm:$0xf] %vm1144_vm14, %v1847_v57  ;;  %2396 = vrot.lane.b32.xlu1 %v2225_v52, %s10728_s17  ;;  %2394 = vrot.lane.b32.xlu0 %v2215_v8, %s10728_s17  ;;  %v1473_v47 = vor.u32 %v1472_v50, %v1468_v62  ;;  %v12152_v32 = vrot.slane %v1476_v21, 5  ;;  %v1462_v24 = vrot.slane %v1460_v31, 4  ;;  %v12154_v23 = vld [vmem:[#allocation3 + $0x54] sm:$0xf] }
 0x17f   : > { %v1839_v49 = vrot.slane %v16339_v59, 4  ;;  %v12158_v54 = vrot.slane %v16149_v22, 4  ;;  %v1726_v25 = vld [vmem:[#allocation3 + $0x64] sm:$0xf]  ;;  %v2226_v30 = vshrl.u32 %v12057_v60, 16  ;;  %v2232_v12 = vshll.u32 %v2048_v39, 16  ;;  %v10215_v52 = vpop.f32.mrf.mxu0 }
 0x180   : > { %v2236_v34 = vshrl.u32 %v2048_v39, 16  ;;  %v12163_v57 = vrot.slane %v16150_v36, 4  ;;  %v1840_v50 = vrot.slane %v1726_v25, 5  ;;  %v1474_v21 = vrot.slane %v1473_v47, 4 }
 0x181   : > { %16340 = vst [vmem:[#allocation42_spill] sm:$0xff] %v12158_v54  ;;  %v1463_v31 = vor.u32 %v1462_v24, %v12081_v29  ;;  %v2234_v8 = vrot.slane %v2232_v12, 5  ;;  %v2242_v20 = vshll.u32 %v12154_v23, 16  ;;  %v713_v22 = vadd.f32 %v11761_v4, %v12078_v19  ;;  %v1263_v12 = vld [vmem:[#allocation3 + $0x54] sm:$0xf] }
 0x182   : > { %16341 = vst [vmem:[#allocation43_spill] sm:$0xff] %v12163_v57  ;;  %v2238_v59 = vrot.slane %v2236_v34, 4  ;;  %v1841_v60 = vsel %vm11077_vm1, %v1839_v49, %v1840_v50  ;;  %v1842_v39 = vrot.slane %v1840_v50, 4  ;;  %v1479_v36 = vsel %vm11190_vm3, %v1474_v21, %v12152_v32 }
 0x183   : > { %v1464_v25 = vrot.slane %v1463_v31, 4  ;;  %v1848_v47 = vrot.slane %v1846_v26, 4  ;;  %1911 = vst.msk [vmem:[#allocation4 + $0xc4] sm:$0xf] %vm1144_vm14, %v1841_v60  ;;  %1618 = vrot.lane.b32.xlu1 %v1479_v36, %s10728_s17  ;;  %v2228_v24 = vrot.slane %v2226_v30, 4  ;;  %v12178_v19 = vadd.f32 %v11761_v4, %v12116_v13  ;;  %v720_v30 = vpop.f32.mrf.mxu0 }
 0x184   : > { %v2239_v29 = vor.u32 %v2238_v59, %v2234_v8  ;;  %v16342_v49 = vrot.slane %v11991_v51, 5  ;;  %v12184_v50 = vld [vmem:[#allocation3 + $0x70] sm:$0xf]  ;;  %v1480_v26 = vshrl.u32 %v12125_v10, 16  ;;  %v12190_v36 = vadd.f32 %v11761_v4, %v10214_v11 }
 0x185   : > { %v1469_v21 = vsel %vm11190_vm3, %v1464_v25, %v1468_v62  ;;  %v1849_v13 = vrot.slane %v12184_v50, 5  ;;  %v12195_v31 = vrot.slane %v2242_v20, 5  ;;  %v2229_v59 = vor.u32 %v2228_v24, %v12098_v42  ;;  %v1195_v24 = vld [vmem:[#allocation3 + $0x34] sm:$0xf]  ;;  %v10423_v50 = vld [vmem:[%s16077_s3 + $0x88] sm:$0xff]  }
 0x186   : > { %v1844_v34 = vsel %vm11077_vm1, %v1842_v39, %v16342_v49  ;;  %1616 = vrot.lane.b32.xlu0 %v1469_v21, %s10728_s17  ;;  %v2240_v51 = vrot.slane %v2239_v29, 4  ;;  %v763_v60 = vmax.f32 %v713_v22, 0.0  ;;  %v800_v10 = vadd.s32 248, %v10857_v43  ;;  %v12199_v39 = vld [vmem:[#allocation3 + $0x58] sm:$0xf] }
 0x187   : > { %1912 = vst.msk [vmem:[#allocation4 + $0xcc] sm:$0xf] %vm1144_vm14, %v1844_v34  ;;  %v1486_v62 = vshll.u32 %v1263_v12, 16  ;;  %v12202_v11 = vadd.f32 %v11761_v4, %v717_v38  ;;  %v1850_v25 = vsel %vm11077_vm1, %v1848_v47, %v1849_v13  ;;  %v12212_v42 = vadd.f32 %v11761_v4, %v10215_v52  ;;  %v2050_v47 = vld [vmem:[#allocation3 + $0x58] sm:$0xf] }
 0x188   : > { %v2245_v20 = vsel %vm11190_vm3, %v2240_v51, %v12195_v31  ;;  %v12215_v22 = vadd.f32 %v11761_v4, %v720_v30  ;;  %1914 = vst.msk [vmem:[#allocation4 + $0xdc] sm:$0xf] %vm1144_vm14, %v1850_v25  ;;  %v2246_v38 = vshrl.u32 %v12154_v23, 16  ;;  %v2230_v29 = vrot.slane %v2229_v59, 4  ;;  %v12223_v21 = vld [vmem:[#allocation3 + $0x5c] sm:$0xf] }
 0x189   : > { %2400 = vrot.lane.b32.xlu1 %v2245_v20, %s10728_s17  ;;  %vm839_vm12 = vcmp.ge.s32.totalorder %v800_v10, %v10862_v45  ;;  %vm878_vm2 = vcmp.lt.s32.totalorder %v800_v10, %v10864_v46  ;;  %v1488_v49 = vrot.slane %v1486_v62, 5  ;;  %v1490_v52 = vshrl.u32 %v1263_v12, 16  ;;  %1225 = vst.msk [vmem:[#allocation4 + $0x68] sm:$0xf] %vm1144_vm14, %v1195_v24  ;;  %v1194_v10 = vld [vmem:[#allocation3 + $0x30] sm:$0xf] }
 0x18a   : > { %vm914_vm6 = vmand %vm839_vm12, %vm878_vm2  ;;  %v1496_v34 = vshll.u32 %v12199_v39, 16  ;;  %v1482_v4 = vrot.slane %v1480_v26, 4  ;;  %v2235_v23 = vsel %vm11190_vm3, %v2230_v29, %v2234_v8  ;;  %v1500_v51 = vshrl.u32 %v12199_v39, 16  ;;  %1224 = vst.msk [vmem:[#allocation4 + $0x60] sm:$0xf] %vm1144_vm14, %v1194_v10 }
 0x18b   : > { %v995_v30 = vsel %vm914_vm6, %v763_v60, 0.0  ;;  %v12230_v59 = vadd.s32 232, %v10857_v43  ;;  %2398 = vrot.lane.b32.xlu0 %v2235_v23, %s10728_s17  ;;  %v1492_v62 = vrot.slane %v1490_v52, 4  ;;  %v761_v25 = vmax.f32 %v12178_v19, 0.0 }
 0x18c   : > { %v9708_v12 = vpack.c.bf16 %v995_v30, %v995_v30  ;;  %v1483_v26 = vor.u32 %v1482_v4, %v12152_v32  ;;  %v2252_v8 = vshll.u32 %v2050_v47, 16  ;;  %v2256_v60 = vshrl.u32 %v2050_v47, 16 }
 0x18d   : > { %16343 = vst [vmem:[#allocation44_spill] sm:$0xff] %v12230_v59  ;;  %vm837_vm11 = vcmp.ge.s32.totalorder %v12230_v59, %v10862_v45  ;;  %vm876_vm13 = vcmp.lt.s32.totalorder %v12230_v59, %v10864_v46  ;;  %v1493_v20 = vor.u32 %v1492_v62, %v1488_v49  ;;  %v12241_v29 = vrot.slane %v1496_v34, 5  ;;  %v10416_v34 = vld [vmem:[%s16077_s3 + $0x38] sm:$0xff]   ;;  %v1197_v62 = vld [vmem:[#allocation3 + $0x3c] sm:$0xf] }
 0x18e   : > { %1176 = vst.msk [vmem:[#allocation3 + $0x7c] sm:$0xf] %vm1144_vm14, %v9708_v12  ;;  %v1484_v24 = vrot.slane %v1483_v26, 4  ;;  %vm912_vm4 = vmand %vm837_vm11, %vm876_vm13  ;;  %v2262_v32 = vshll.u32 %v12223_v21, 16  ;;  %vm16344_vm0 = vcmp.lt.s32.totalorder %v10860_v44, 18  ;;  %v2254_v19 = vrot.slane %v2252_v8, 5 }
 0x18f   : > { %vm957_vm10 = vmand %vm912_vm4, %vm16344_vm0  ;;  %v2258_v52 = vrot.slane %v2256_v60, 4  ;;  %v2248_v4 = vrot.slane %v2246_v38, 4  ;;  %v766_v23 = vmax.f32 %v12190_v36, 0.0  ;;  %v1494_v30 = vrot.slane %v1493_v20, 4  ;;  %v1265_v60 = vld [vmem:[#allocation3 + $0x5c] sm:$0xf] }
 0x190   : > { %v1489_v47 = vsel %vm11190_vm3, %v1484_v24, %v1488_v49  ;;  %v993_v10 = vsel %vm957_vm10, %v761_v25, 0.0  ;;  %v12249_v12 = vrot.slane %v2262_v32, 5  ;;  %v803_v36 = vadd.s32 272, %v10857_v43  ;;  %v10419_v49 = vld [vmem:[%s16077_s3 + $0x98] sm:$0xff]   ;;  %1227 = vst.msk [vmem:[#allocation4 + $0x78] sm:$0xf] %vm1144_vm14, %v1197_v62  ;;  %vm16346_vm2 = vmmov %vm16344_vm0 }
 0x191   : > { %1620 = vrot.lane.b32.xlu0 %v1489_v47, %s10728_s17  ;;  %v9706_v26 = vpack.c.bf16 %v993_v10, %v993_v10  ;;  %v2259_v8 = vor.u32 %v2258_v52, %v2254_v19  ;;  %v2249_v38 = vor.u32 %v2248_v4, %v12195_v31  ;;  %v1196_v25 = vld [vmem:[#allocation3 + $0x38] sm:$0xf]  ;;  %v1499_v20 = vsel %vm11190_vm3, %v1494_v30, %v12241_v29  ;;  %v12266_v52 = vld [vmem:[#allocation3 + $0x60] sm:$0xf]  ;;  %v1199_v62 = vld [vmem:[#allocation3 + $0x44] sm:$0xf] }
 0x192   : > { %v764_v24 = vmax.f32 %v12202_v11, 0.0  ;;  %v801_v32 = vadd.s32 256, %v10857_v43  ;;  %1226 = vst.msk [vmem:[#allocation4 + $0x70] sm:$0xf] %vm1144_vm14, %v1196_v25  ;;  %1622 = vrot.lane.b32.xlu1 %v1499_v20, %s10728_s17  ;;  %vm842_vm7 = vcmp.ge.s32.totalorder %v803_v36, %v10862_v45  ;;  %vm881_vm5 = vcmp.lt.s32.totalorder %v803_v36, %v10864_v46  ;;  %v10417_v10 = vld [vmem:[%s16077_s3 + $0x30] sm:$0xff]  }
 0x193   : > { %1174 = vst.msk [vmem:[#allocation3 + $0x74] sm:$0xf] %vm1144_vm14, %v9706_v26  ;;  %v2260_v31 = vrot.slane %v2259_v8, 4  ;;  %v2250_v4 = vrot.slane %v2249_v38, 4  ;;  %v16151_v47 = vmov 0   ;;  %vm917_vm9 = vmand %vm842_vm7, %vm881_vm5  ;;  %v1506_v11 = vshll.u32 %v1265_v60, 16 }
 0x194   : > { %3412 = vmatprep.subr.bf16.mxu0 %v16151_v47  ;;  %1181 = vst.msk [vmem:[#allocation3 + $0x90] sm:$0xf] %vm1144_vm14, %v16151_v47  ;;  %5165 = vst [vmem:[#allocation5 + $0x78] sm:$0xf] %v16151_v47  ;;  %vm840_vm15 = vcmp.ge.s32.totalorder %v801_v32, %v10862_v45  ;;  %vm879_vm8 = vcmp.lt.s32.totalorder %v801_v32, %v10864_v46  ;;  %v1510_v30 = vshrl.u32 %v1265_v60, 16  ;;  %3007 = vmatprep.subr.bf16.mxu1 %v16151_v47  ;;  %v10421_v36 = vld [vmem:[%s16077_s3 + $0x90] sm:$0xff]  }
 0x195   : > { %3413 = vmatpush1.bf16.msra.mxu0 %v10416_v34  ;;  %v2255_v26 = vsel %vm11190_vm3, %v2250_v4, %v2254_v19  ;;  %v998_v8 = vsel %vm917_vm9, %v766_v23, 0.0  ;;  %vm915_vm12 = vmand %vm840_vm15, %vm879_vm8  ;;  %v1516_v34 = vshll.u32 %v12266_v52, 16  ;;  %v2052_v38 = vld [vmem:[#allocation3 + $0x60] sm:$0xf]  ;;  %3008 = vmatpush1.bf16.msra.mxu1 %v10419_v49  ;;  %v16345_v60 = vrot.slane %v11347_v3, 5 }
 0x196   : > { %3414 = vmatprep.subr.bf16.mxu0 %v16151_v47  ;;  %1229 = vst.msk [vmem:[#allocation4 + $0x88] sm:$0xf] %vm1144_vm14, %v1199_v62  ;;  %v12298_v19 = vld [vmem:[#allocation3 + $0x78] sm:$0x1]  ;;  %v2265_v23 = vsel %vm11190_vm3, %v2260_v31, %v12249_v12  ;;  %2402 = vrot.lane.b32.xlu0 %v2255_v26, %s10728_s17  ;;  %v9711_v49 = vpack.c.bf16 %v998_v8, %v998_v8  ;;  %vm960_vm6 = vmand %vm915_vm12, %vm16346_vm2  ;;  %v1508_v3 = vrot.slane %v1506_v11, 5  ;;  %v1512_v20 = vrot.slane %v1510_v30, 4  ;;  %v12313_v62 = vpop.permute.xlu1 %1584  ;;  %v12315_v26 = vpop.permute.xlu0 %1580 }
 0x197   : > { %v12295_v25 = vsel %vm11077_vm1, %v11358_v0, %v16345_v60  ;;  %v12306_v32 = vld [vmem:[#allocation3 + $0x64] sm:$0xf]  ;;  %3009 = vmatprep.subr.bf16.mxu1 %v16151_v47  ;;  %v2266_v0 = vshrl.u32 %v12223_v21, 16  ;;  %2404 = vrot.lane.b32.xlu1 %v2265_v23, %s10728_s17  ;;  %v996_v4 = vsel %vm960_vm6, %v764_v24, 0.0  ;;  %v1502_v31 = vrot.slane %v1500_v51, 4  ;;  %v10418_v51 = vld [vmem:[%s16077_s3 + $0x28] sm:$0xff]  }
 0x198   : > { %v16347_v8 = vrot.slane %v11499_v16, 5  ;;  %v1198_v30 = vld [vmem:[#allocation3 + $0x40] sm:$0xf]  ;;  %1179 = vst.msk [vmem:[#allocation3 + $0x88] sm:$0xf] %vm1144_vm14, %v9711_v49  ;;  %v9709_v21 = vpack.c.bf16 %v996_v4, %v996_v4  ;;  %v1513_v60 = vor.u32 %v1512_v20, %v1508_v3  ;;  %v12325_v24 = vrot.slane %v1516_v34, 5 }
 0x199   : > { %3415 = vmatpush1.bf16.msra.mxu0 %v10417_v10  ;;  %v2272_v39 = vshll.u32 %v2052_v38, 16  ;;  %1228 = vst.msk [vmem:[#allocation4 + $0x80] sm:$0xf] %vm1144_vm14, %v1198_v30  ;;  %v1851_v16 = vrot.slane %v1849_v13, 4  ;;  %v2276_v23 = vshrl.u32 %v2052_v38, 16  ;;  %v2282_v49 = vshll.u32 %v12306_v32, 16  ;;  %3010 = vmatpush1.bf16.msra.mxu1 %v10421_v36 }
 0x19a   : > { %v12322_v11 = vsel %vm11077_vm1, %v11514_v2, %v16347_v8  ;;  %v1503_v2 = vor.u32 %v1502_v31, %v12241_v29  ;;  %3416 = vmatprep.subr.bf16.mxu0 %v16151_v47  ;;  %v1855_v10 = vrot.slane %v12298_v19, 5  ;;  %v1730_v34 = vld [vmem:[#allocation3 + $0x74] sm:$0xf]  ;;  %1177 = vst.msk [vmem:[#allocation3 + $0x80] sm:$0xf] %vm1144_vm14, %v9709_v21  ;;  %v1514_v20 = vrot.slane %v1513_v60, 4  ;;  %3011 = vmatprep.subr.bf16.mxu1 %v16151_v47  ;;  %v12356_v21 = vpop.permute.xlu1 %1586 }
 0x19b   : > { %v16348_v13 = vrot.slane %v11683_v15, 5  ;;  %v16349_v38 = vrot.slane %v11484_v27, 5  ;;  %v1852_v19 = vrot.slane %v1730_v34, 5  ;;  %v2274_v31 = vrot.slane %v2272_v39, 5  ;;  %v1267_v30 = vld [vmem:[#allocation3 + $0x64] sm:$0xf] }
 0x19c   : > { %v1504_v4 = vrot.slane %v1503_v2, 4  ;;  %v2278_v8 = vrot.slane %v2276_v23, 4  ;;  %v1519_v60 = vsel %vm11190_vm3, %v1514_v20, %v12325_v24  ;;  %v2268_v27 = vrot.slane %v2266_v0, 4  ;;  %v12364_v47 = vld [vmem:[#allocation3 + $0x68] sm:$0xf]  ;;  %v12375_v0 = vpop.permute.xlu0 %1582 }
 0x19d   : > { %v12347_v29 = vsel %vm11077_vm1, %v11536_v18, %v16348_v13  ;;  %v12354_v36 = vsel %vm11077_vm1, %v11530_v40, %v16349_v38  ;;  %v1520_v18 = vshrl.u32 %v12266_v52, 16  ;;  %v12362_v13 = vrot.slane %v2282_v49, 5  ;;  %3417 = vmatpush1.bf16.msra.mxu0 %v10418_v51  ;;  %v10420_v40 = vld [vmem:[%s16077_s3 + $0x20] sm:$0xff]   ;;  %1626 = vrot.lane.b32.xlu1 %v1519_v60, %s10728_s17  ;;  %v1201_v38 = vld [vmem:[#allocation3 + $0x4c] sm:$0xf] }
 0x19e   : > { %v1853_v39 = vsel %vm11077_vm1, %v1851_v16, %v1852_v19  ;;  %v1854_v2 = vrot.slane %v1852_v19, 4  ;;  %v1509_v23 = vsel %vm11190_vm3, %v1504_v4, %v1508_v3  ;;  %v2279_v52 = vor.u32 %v2278_v8, %v2274_v31  ;;  %3012 = vmatpush1.bf16.msra.mxu1 %v10423_v50  ;;  %v10425_v3 = vld [vmem:[%s16077_s3 + $0x80] sm:$0xff]   ;;  %1231 = vst.msk [vmem:[#allocation4 + $0x98] sm:$0xf] %vm1144_vm14, %v1201_v38  ;;  %v12423_v38 = vld [vmem:[#allocation3 + $0x6c] sm:$0xf] }
 0x19f   : > { %v16350_v49 = vmov 0   ;;  %1915 = vst.msk [vmem:[#allocation4 + $0xe4] sm:$0xf] %vm1144_vm14, %v1853_v39  ;;  %1624 = vrot.lane.b32.xlu0 %v1509_v23, %s10728_s17  ;;  %v2269_v51 = vor.u32 %v2268_v27, %v12249_v12  ;;  %v804_v34 = vadd.s32 280, %v10857_v43  ;;  %v1526_v16 = vshll.u32 %v1267_v30, 16  ;;  %v10422_v12 = vld [vmem:[%s16077_s3 + $0x18] sm:$0xff]  }
 0x1a0   : > { %3418 = vmatprep.subr.bf16.mxu0 %v16350_v49  ;;  %v1530_v20 = vshrl.u32 %v1267_v30, 16  ;;  %v1856_v19 = vsel %vm11077_vm1, %v1854_v2, %v1855_v10  ;;  %v2280_v4 = vrot.slane %v2279_v52, 4  ;;  %v767_v8 = vmax.f32 %v12212_v42, 0.0  ;;  %3013 = vmatprep.subr.bf16.mxu1 %v16350_v49  ;;  %v2054_v42 = vld [vmem:[#allocation3 + $0x68] sm:$0xf]  ;;  %v12401_v52 = vpop.permute.xlu1 %2368 }
 0x1a1   : > { %v1536_v60 = vshll.u32 %v12364_v47, 16  ;;  %1916 = vst.msk [vmem:[#allocation4 + $0xec] sm:$0xf] %vm1144_vm14, %v1856_v19  ;;  %v2270_v50 = vrot.slane %v2269_v51, 4  ;;  %vm843_vm11 = vcmp.ge.s32.totalorder %v804_v34, %v10862_v45  ;;  %vm882_vm13 = vcmp.lt.s32.totalorder %v804_v34, %v10864_v46  ;;  %3419 = vmatpush1.bf16.msra.mxu0 %v10420_v40  ;;  %v1200_v30 = vld [vmem:[#allocation3 + $0x48] sm:$0xf] }
 0x1a2   : > { %v1528_v10 = vrot.slane %v1526_v16, 5  ;;  %v2285_v27 = vsel %vm11190_vm3, %v2280_v4, %v12362_v13  ;;  %v2286_v39 = vshrl.u32 %v12306_v32, 16  ;;  %vm918_vm4 = vmand %vm843_vm11, %vm882_vm13  ;;  %v1532_v2 = vrot.slane %v1530_v20, 4  ;;  %3420 = vmatprep.subr.bf16.mxu0 %v16350_v49  ;;  %1230 = vst.msk [vmem:[#allocation4 + $0x90] sm:$0xf] %vm1144_vm14, %v1200_v30  ;;  %3014 = vmatpush1.bf16.msra.mxu1 %v10425_v3  ;;  %v12426_v4 = vpop.permute.xlu0 %2366 }
 0x1a3   : > { %v1522_v23 = vrot.slane %v1520_v18, 4  ;;  %2408 = vrot.lane.b32.xlu1 %v2285_v27, %s10728_s17  ;;  %v2275_v40 = vsel %vm11190_vm3, %v2270_v50, %v2274_v31  ;;  %vm963_vm10 = vmand %vm918_vm4, %vm16344_vm0  ;;  %v765_v51 = vmax.f32 %v12215_v22, 0.0  ;;  %v802_v32 = vadd.s32 264, %v10857_v43  ;;  %v10427_v18 = vld [vmem:[%s16077_s3 + $0x78] sm:$0xff]   ;;  %3015 = vmatprep.subr.bf16.mxu1 %v16350_v49 }
 0x1a4   : > { %v16351_v34 = vrot.slane %v11685_v33, 5  ;;  %2406 = vrot.lane.b32.xlu0 %v2275_v40, %s10728_s17  ;;  %v999_v31 = vsel %vm963_vm10, %v767_v8, 0.0  ;;  %v1533_v20 = vor.u32 %v1532_v2, %v1528_v10  ;;  %v2292_v3 = vshll.u32 %v2054_v42, 16  ;;  %v1269_v19 = vld [vmem:[#allocation3 + $0x6c] sm:$0xf] }
 0x1a5   : > { %v1523_v22 = vor.u32 %v1522_v23, %v12325_v24  ;;  %v9712_v33 = vpack.c.bf16 %v999_v31, %v999_v31  ;;  %v12428_v50 = vrot.slane %v1536_v60, 5  ;;  %vm841_vm7 = vcmp.ge.s32.totalorder %v802_v32, %v10862_v45  ;;  %3421 = vmatpush1.bf16.msra.mxu0 %v10422_v12  ;;  %v10429_v24 = vld [vmem:[%s16077_s3 + $0x70] sm:$0xff]   ;;  %v1203_v60 = vld [vmem:[#allocation3 + $0x54] sm:$0xf]  ;;  %v12444_v23 = vld [vmem:[#allocation3 + $0x70] sm:$0xf] }
 0x1a6   : > { %v12419_v16 = vsel %vm11077_vm1, %v11540_v1, %v16351_v34  ;;  %vm880_vm5 = vcmp.lt.s32.totalorder %v802_v32, %v10864_v46  ;;  %v10424_v1 = vld [vmem:[%s16077_s3 + $0x10] sm:$0xff]   ;;  %v1534_v8 = vrot.slane %v1533_v20, 4  ;;  %v2294_v27 = vrot.slane %v2292_v3, 5  ;;  %3422 = vmatprep.subr.bf16.mxu0 %v16350_v49  ;;  %3016 = vmatpush1.bf16.msra.mxu1 %v10427_v18  ;;  %1233 = vst.msk [vmem:[#allocation4 + $0xa8] sm:$0xf] %vm1144_vm14, %v1203_v60  ;;  %v12453_v20 = vpop.permute.xlu1 %1590 }
 0x1a7   : > { %v1524_v30 = vrot.slane %v1523_v22, 4  ;;  %vm916_vm9 = vmand %vm841_vm7, %vm880_vm5  ;;  %v2296_v2 = vshrl.u32 %v2054_v42, 16  ;;  %1180 = vst.msk [vmem:[#allocation3 + $0x8c] sm:$0xf] %vm1144_vm14, %v9712_v33  ;;  %v1540_v45 = vshrl.u32 %v12364_v47, 16  ;;  %vm16352_vm15 = vcmp.ge.s32.totalorder %v10857_v43, 2  ;;  %3017 = vmatprep.subr.bf16.mxu1 %v16350_v49 }
 0x1a8   : > { %vm961_vm8 = vmand %vm916_vm9, %vm16352_vm15  ;;  %v2302_v46 = vshll.u32 %v12423_v38, 16  ;;  %v2288_v12 = vrot.slane %v2286_v39, 4  ;;  %v1546_v40 = vshll.u32 %v1269_v19, 16  ;;  %v1539_v42 = vsel %vm11190_vm3, %v1534_v8, %v12428_v50  ;;  %v2056_v31 = vld [vmem:[#allocation3 + $0x70] sm:$0xf]  ;;  %v12466_v8 = vpop.permute.xlu0 %1588 }
 0x1a9   : > { %v1529_v32 = vsel %vm11190_vm3, %v1524_v30, %v1528_v10  ;;  %v997_v47 = vsel %vm961_vm8, %v765_v51, 0.0  ;;  %v2298_v34 = vrot.slane %v2296_v2, 4  ;;  %v1202_v39 = vld [vmem:[#allocation3 + $0x50] sm:$0xf]  ;;  %1630 = vrot.lane.b32.xlu1 %v1539_v42, %s10728_s17  ;;  %v2306_v3 = vshrl.u32 %v12423_v38, 16  ;;  %v10426_v51 = vld [vmem:[%s16077_s3 + $0x8] sm:$0xff]   ;;  %3423 = vmatpush1.bf16.msra.mxu0 %v10424_v1 }
 0x1aa   : > { %1628 = vrot.lane.b32.xlu0 %v1529_v32, %s10728_s17  ;;  %v9710_v18 = vpack.c.bf16 %v997_v47, %v997_v47  ;;  %v12457_v22 = vrot.slane %v2302_v46, 5  ;;  %v2289_v33 = vor.u32 %v2288_v12, %v12362_v13  ;;  %v12461_v10 = vld [vmem:[#allocation3 + $0x74] sm:$0xf]  ;;  %1232 = vst.msk [vmem:[#allocation4 + $0xa0] sm:$0xf] %vm1144_vm14, %v1202_v39  ;;  %v1548_v2 = vrot.slane %v1546_v40, 5  ;;  %3424 = vmatprep.subr.bf16.mxu0 %v16350_v49  ;;  %v12479_v59 = vpop.permute.xlu1 %2372 }
 0x1ab   : > { %v2299_v30 = vor.u32 %v2298_v34, %v2294_v27  ;;  %v1550_v60 = vshrl.u32 %v1269_v19, 16  ;;  %v1556_v46 = vshll.u32 %v12444_v23, 16  ;;  %v10431_v13 = vld [vmem:[%s16077_s3 + $0x68] sm:$0xff]   ;;  %v1542_v42 = vrot.slane %v1540_v45, 4  ;;  %v1271_v39 = vld [vmem:[#allocation3 + $0x74] sm:$0xf]  ;;  %3018 = vmatpush1.bf16.msra.mxu1 %v10429_v24 }
 0x1ac   : > { %v1205_v38 = vld [vmem:[#allocation3 + $0x5c] sm:$0xf]  ;;  %1178 = vst.msk [vmem:[#allocation3 + $0x84] sm:$0xf] %vm1144_vm14, %v9710_v18  ;;  %v2290_v12 = vrot.slane %v2289_v33, 4  ;;  %v2312_v32 = vshll.u32 %v2056_v31, 16  ;;  %3019 = vmatprep.subr.bf16.mxu1 %v16350_v49 }
 0x1ad   : > { %v2316_v47 = vshrl.u32 %v2056_v31, 16  ;;  %1235 = vst.msk [vmem:[#allocation4 + $0xb8] sm:$0xf] %vm1144_vm14, %v1205_v38  ;;  %v2300_v19 = vrot.slane %v2299_v30, 4  ;;  %v1552_v40 = vrot.slane %v1550_v60, 4  ;;  %v1560_v1 = vshrl.u32 %v12444_v23, 16  ;;  %v12486_v38 = vpop.permute.xlu0 %2370  ;;  %3425 = vmatpush1.bf16.msra.mxu0 %v10426_v51 }
 0x1ae   : > { %v2322_v34 = vshll.u32 %v12461_v10, 16  ;;  %v1204_v18 = vld [vmem:[#allocation3 + $0x58] sm:$0xf]  ;;  %v2295_v45 = vsel %vm11190_vm3, %v2290_v12, %v2294_v27  ;;  %v1543_v31 = vor.u32 %v1542_v42, %v12428_v50  ;;  %v12484_v33 = vrot.slane %v2312_v32, 5  ;;  %v10428_v50 = vld [vmem:[%s16077_s3] sm:$0xff]   ;;  %3426 = vmatprep.subr.bf16.mxu0 %v16350_v49 }
 0x1af   : > { %v2318_v24 = vrot.slane %v2316_v47, 4  ;;  %1234 = vst.msk [vmem:[#allocation4 + $0xb0] sm:$0xf] %vm1144_vm14, %v1204_v18  ;;  %v2305_v23 = vsel %vm11190_vm3, %v2300_v19, %v12457_v22  ;;  %2410 = vrot.lane.b32.xlu0 %v2295_v45, %s10728_s17  ;;  %v1553_v30 = vor.u32 %v1552_v40, %v1548_v2  ;;  %v1558_v60 = vrot.slane %v1556_v46, 5  ;;  %v12495_v27 = vld [vmem:[#allocation3 + $0x78] sm:$0x1]  ;;  %3020 = vmatpush1.bf16.msra.mxu1 %v10431_v13 }
 0x1b0   : > { %v12493_v44 = vrot.slane %v2322_v34, 5  ;;  %2412 = vrot.lane.b32.xlu1 %v2305_v23, %s10728_s17  ;;  %v1544_v12 = vrot.slane %v1543_v31, 4  ;;  %v2308_v32 = vrot.slane %v2306_v3, 4  ;;  %v1566_v47 = vshll.u32 %v1271_v39, 16  ;;  %v1207_v19 = vld [vmem:[#allocation3 + $0x64] sm:$0xf]  ;;  %3021 = vmatprep.subr.bf16.mxu1 %v16350_v49 }
 0x1b1   : > { %v2319_v42 = vor.u32 %v2318_v24, %v12484_v33  ;;  %v1554_v46 = vrot.slane %v1553_v30, 4  ;;  %v2326_v40 = vshrl.u32 %v12461_v10, 16  ;;  %v1570_v51 = vshrl.u32 %v1271_v39, 16  ;;  %v10433_v18 = vld [vmem:[%s16077_s3 + $0x60] sm:$0xff]   ;;  %1237 = vst.msk [vmem:[#allocation4 + $0xc8] sm:$0xf] %vm1144_vm14, %v1207_v19  ;;  %v1595_v10 = vpop.permute.xlu1 %1594  ;;  %3427 = vmatpush1.bf16.msra.mxu0 %v10428_v50 }
 0x1b2   : > { %v1562_v34 = vrot.slane %v1560_v1, 4  ;;  %v1549_v45 = vsel %vm11190_vm3, %v1544_v12, %v1548_v2  ;;  %v2309_v31 = vor.u32 %v2308_v32, %v12457_v22  ;;  %v12511_v24 = vrot.slane %v1566_v47, 5  ;;  %v2058_v23 = vld [vmem:[#allocation3 + $0x78] sm:$0xf]  ;;  %v1206_v39 = vld [vmem:[#allocation3 + $0x60] sm:$0xf]  ;;  %3436 = vmatprep.subr.bf16.mxu0 %v16350_v49 }
 0x1b3   : > { %v2320_v3 = vrot.slane %v2319_v42, 4  ;;  %v1559_v13 = vsel %vm11190_vm3, %v1554_v46, %v1558_v60  ;;  %1632 = vrot.lane.b32.xlu0 %v1549_v45, %s10728_s17  ;;  %v1572_v1 = vrot.slane %v1570_v51, 4  ;;  %v1576_v30 = vshll.u32 %v12495_v27, 16  ;;  %v2059_v2 = vld [vmem:[#allocation3 + $0x7c] sm:$0xf]  ;;  %v10430_v22 = vld [vmem:[%s16077_s3 + $0x58] sm:$0xff]   ;;  %v1593_v27 = vpop.permute.xlu0 %1592  ;;  %3022 = vmatpush1.bf16.msra.mxu1 %v10433_v18 }
 0x1b4   : > { %v1563_v19 = vor.u32 %v1562_v34, %v1558_v60  ;;  %1236 = vst.msk [vmem:[#allocation4 + $0xc0] sm:$0xf] %vm1144_vm14, %v1206_v39  ;;  %1634 = vrot.lane.b32.xlu1 %v1559_v13, %s10728_s17  ;;  %v2310_v42 = vrot.slane %v2309_v31, 4  ;;  %vm1670_vm12 = vcmask 1043968   ;;  %v16353_v60 = vrot.slane %v11904_v48, 5  ;;  %v10435_v45 = vld [vmem:[%s16077_s3 + $0xb8] sm:$0xff]   ;;  %3031 = vmatprep.subr.bf16.mxu1 %v16350_v49 }
 0x1b5   : > { %v2325_v12 = vsel %vm11190_vm3, %v2320_v3, %v12493_v44  ;;  %v1573_v32 = vor.u32 %v1572_v1, %v12511_v24  ;;  %1673 = vst.msk [vmem:[#allocation4 + $0x10] sm:$0xf] %vm1670_vm12, %v12313_v62  ;;  %v2332_v46 = vshll.u32 %v2058_v23, 16  ;;  %v2336_v51 = vshrl.u32 %v2058_v23, 16  ;;  %1671 = vst.msk [vmem:[#allocation4] sm:$0xf] %vm1670_vm12, %v12315_v26  ;;  %3437 = vmatpush2.bf16.msra.mxu0 %v10430_v22 }
 0x1b6   : > { %v12532_v50 = vsel %vm11077_vm1, %v11746_v28, %v16353_v60  ;;  %v1564_v47 = vrot.slane %v1563_v19, 4  ;;  %v2060_v34 = vld [vmem:[#allocation3 + $0x80] sm:$0xf]  ;;  %1674 = vst.msk [vmem:[#allocation4 + $0x18] sm:$0xf] %vm1670_vm12, %v12356_v21  ;;  %v2315_v62 = vsel %vm11190_vm3, %v2310_v42, %v12484_v33  ;;  %v2342_v26 = vshll.u32 %v2059_v2, 16  ;;  %3438 = vmatprep.subr.bf16.mxu0 %v16350_v49 }
 0x1b7   : > { %1672 = vst.msk [vmem:[#allocation4 + $0x8] sm:$0xf] %vm1670_vm12, %v12375_v0  ;;  %v12543_v28 = vld [vmem:[#allocation3 + $0x1c] sm:$0xf]  ;;  %1676 = vst.msk [vmem:[#allocation4 + $0x28] sm:$0xf] %vm1670_vm12, %v12453_v20  ;;  %2414 = vrot.lane.b32.xlu0 %v2315_v62, %s10728_s17  ;;  %3032 = vmatpush2.bf16.msra.mxu1 %v10435_v45  ;;  %v2375_v7 = vpop.permute.xlu0 %2374 }
 0x1b8   : > { %1675 = vst.msk [vmem:[#allocation4 + $0x20] sm:$0xf] %vm1670_vm12, %v12466_v8  ;;  %1678 = vst.msk [vmem:[#allocation4 + $0x38] sm:$0xf] %vm1670_vm12, %v1595_v10  ;;  %v2346_v21 = vshrl.u32 %v2059_v2, 16  ;;  %v2328_v0 = vrot.slane %v2326_v40, 4  ;;  %2416 = vrot.lane.b32.xlu1 %v2325_v12, %s10728_s17  ;;  %3033 = vmatprep.subr.bf16.mxu1 %v16350_v49 }
 0x1b9   : > { %1677 = vst.msk [vmem:[#allocation4 + $0x30] sm:$0xf] %vm1670_vm12, %v1593_v27  ;;  %v2061_v18 = vld [vmem:[#allocation3 + $0x84] sm:$0x1]  ;;  %v1574_v20 = vrot.slane %v1573_v32, 4  ;;  %v1578_v8 = vrot.slane %v1576_v30, 5  ;;  %v1569_v30 = vsel %vm11190_vm3, %v1564_v47, %v12511_v24 }
 0x1ba   : > { %v10432_v3 = vld [vmem:[%s16077_s3 + $0x50] sm:$0xff]   ;;  %v12562_v31 = vrot.slane %v2332_v46, 5  ;;  %v2338_v23 = vrot.slane %v2336_v51, 4  ;;  %v1209_v10 = vld [vmem:[#allocation3 + $0x6c] sm:$0xf]  ;;  %v12565_v33 = vrot.slane %v2342_v26, 5  ;;  %v2329_v40 = vor.u32 %v2328_v0, %v12493_v44 }
 0x1bb   : > { %v2352_v39 = vshll.u32 %v2060_v34, 16  ;;  %v2356_v13 = vshrl.u32 %v2060_v34, 16  ;;  %v12569_v1 = vld [vmem:[#allocation3 + $0x20] sm:$0xf]  ;;  %1239 = vst.msk [vmem:[#allocation4 + $0xd8] sm:$0xf] %vm1144_vm14, %v1209_v10  ;;  %v1579_v45 = vsel %vm11190_vm3, %v1574_v20, %v1578_v8  ;;  %1636 = vrot.lane.b32.xlu0 %v1569_v30, %s10728_s17  ;;  %3439 = vmatpush2.bf16.msra.mxu0 %v10432_v3  ;;  %v2377_v8 = vpop.permute.xlu1 %2376 }
 0x1bc   : > { %v2339_v19 = vor.u32 %v2338_v23, %v12562_v31  ;;  %v2362_v2 = vshll.u32 %v2061_v18, 16  ;;  %v2348_v22 = vrot.slane %v2346_v21, 4  ;;  %v12576_v12 = vld [vmem:[#allocation3 + $0x18] sm:$0xf]  ;;  %v10437_v44 = vld [vmem:[%s16077_s3 + $0xb0] sm:$0xff]   ;;  %v12581_v60 = vrot.slane %v2329_v40, 4  ;;  %1638 = vrot.lane.b32.xlu1 %v1579_v45, %s10728_s17  ;;  %3440 = vmatprep.subr.bf16.mxu0 %v16350_v49 }
 0x1bd   : > { %v1208_v42 = vld [vmem:[#allocation3 + $0x68] sm:$0xf]  ;;  %v1973_v27 = vld [vmem:[#allocation3 + $0x14] sm:$0xf]  ;;  %v1971_v32 = vld [vmem:[#allocation3 + $0xc] sm:$0xf]  ;;  %3034 = vmatpush2.bf16.msra.mxu1 %v10437_v44 }
 0x1be   : > { %v12583_v46 = vrot.slane %v2352_v39, 5  ;;  %v2358_v51 = vrot.slane %v2356_v13, 4  ;;  %v1974_v24 = vld [vmem:[#allocation3 + $0x18] sm:$0xf]  ;;  %v3666_v47 = vshll.u32 %v12543_v28, 16  ;;  %v12593_v62 = vrot.slane %v2339_v19, 4  ;;  %3035 = vmatprep.subr.bf16.mxu1 %v16350_v49 }
 0x1bf   : > { %v12586_v34 = vld [vmem:[#allocation3 + $0x24] sm:$0xf]  ;;  %1238 = vst.msk [vmem:[#allocation4 + $0xd0] sm:$0xf] %vm1144_vm14, %v1208_v42  ;;  %v2349_v26 = vor.u32 %v2348_v22, %v12565_v33  ;;  %v1972_v21 = vld [vmem:[#allocation3 + $0x10] sm:$0xf] }
 0x1c0   : > { %v3670_v0 = vshrl.u32 %v12543_v28, 16  ;;  %v10434_v18 = vld [vmem:[%s16077_s3 + $0x48] sm:$0xff]   ;;  %v12600_v23 = vld [vmem:[#allocation3 + $0x28] sm:$0xf]  ;;  %v1976_v10 = vld [vmem:[#allocation3 + $0x20] sm:$0xf]  ;;  %v2359_v28 = vor.u32 %v2358_v51, %v12583_v46  ;;  %v2345_v51 = vsel %vm11190_vm3, %v12593_v62, %v12565_v33 }
 0x1c1   : > { %v1975_v40 = vld [vmem:[#allocation3 + $0x1c] sm:$0xf]  ;;  %v12608_v39 = vld [vmem:[#allocation4 + $0x10] sm:$0xff]  ;;  %v12610_v3 = vld [vmem:[#allocation4] sm:$0xff]  ;;  %v12613_v13 = vrot.slane %v2362_v2, 5  ;;  %v12617_v19 = vrot.slane %v3666_v47, 5  ;;  %v2335_v2 = vsel %vm11190_vm3, %v12581_v60, %v12562_v31  ;;  %3441 = vmatpush2.bf16.msra.mxu0 %v10434_v18  ;;  %2420 = vrot.lane.b32.xlu1 %v2345_v51, %s10728_s17 }
 0x1c2   : > { %v12605_v20 = vld [vmem:[%s16077_s3 + $0xa8] sm:$0xff]   ;;  %v12615_v30 = vld [vmem:[#allocation4 + $0x18] sm:$0xff]  ;;  %v3676_v22 = vshll.u32 %v12569_v1, 16  ;;  %v1978_v42 = vld [vmem:[#allocation3 + $0x28] sm:$0xf]  ;;  %v12631_v47 = vrot.slane %v2349_v26, 4  ;;  %2418 = vrot.lane.b32.xlu0 %v2335_v2, %s10728_s17  ;;  %3442 = vmatprep.subr.bf16.mxu0 %v16350_v49 }
 0x1c3   : > { %v1977_v43 = vld [vmem:[#allocation3 + $0x24] sm:$0xf]  ;;  %2003 = vst.msk [vmem:[#allocation4 + $0x10] sm:$0xf] %vm1144_vm14, %v1973_v27  ;;  %2001 = vst.msk [vmem:[#allocation4] sm:$0xf] %vm1144_vm14, %v1971_v32  ;;  %3036 = vmatpush2.bf16.msra.mxu1 %v12605_v20 }
 0x1c4   : > { %2004 = vst.msk [vmem:[#allocation4 + $0x18] sm:$0xf] %vm1144_vm14, %v1974_v24  ;;  %v12634_v45 = vld [vmem:[#allocation4 + $0x8] sm:$0xff]  ;;  %v3672_v54 = vrot.slane %v3670_v0, 4  ;;  %v12638_v57 = vld [vmem:[#allocation4 + $0x20] sm:$0xff]  ;;  %v2360_v31 = vrot.slane %v2359_v28, 4  ;;  %3037 = vmatprep.subr.bf16.mxu1 %v16350_v49 }
 0x1c5   : > { %v12636_v27 = vld [vmem:[#allocation4 + $0x28] sm:$0xff]  ;;  %v12640_v33 = vld [vmem:[#allocation3 + $0x2c] sm:$0xf]  ;;  %2672 = vst.msk [vmem:[#allocation4 + $0x1c] sm:$0xf] %vm1144_vm14, %v12295_v25  ;;  %v3680_v60 = vshrl.u32 %v12569_v1, 16 }
 0x1c6   : > { %2002 = vst.msk [vmem:[#allocation4 + $0x8] sm:$0xf] %vm1144_vm14, %v1972_v21  ;;  %v3657_v32 = vshrl.u32 %v12576_v12, 16  ;;  %v3660_v24 = vshll.u32 %v12576_v12, 16  ;;  %2006 = vst.msk [vmem:[#allocation4 + $0x28] sm:$0xf] %vm1144_vm14, %v1976_v10  ;;  %v1599_v10 = vpop.permute.xlu1 %1598 }
 0x1c7   : > { %2456 = vst.msk [vmem:[#allocation4] sm:$0xf] %vm1670_vm12, %v12426_v4  ;;  %v12652_v44 = vld [vmem:[#allocation3 + $0x30] sm:$0xf]  ;;  %2459 = vst.msk [vmem:[#allocation4 + $0x18] sm:$0xf] %vm1670_vm12, %v12479_v59  ;;  %v3673_v4 = vor.u32 %v3672_v54, %v12617_v19 }
 0x1c8   : > { %2005 = vst.msk [vmem:[#allocation4 + $0x20] sm:$0xf] %vm1144_vm14, %v1975_v40  ;;  %v12659_v25 = vld [vmem:[#allocation4 + $0x38] sm:$0xff]  ;;  %v12661_v1 = vld [vmem:[#allocation4 + $0x30] sm:$0xff]  ;;  %2673 = vst.msk [vmem:[#allocation4 + $0x24] sm:$0xf] %vm1144_vm14, %v12322_v11  ;;  %v2355_v40 = vsel %vm11190_vm3, %v12631_v47, %v12583_v46 }
 0x1c9   : > { %2458 = vst.msk [vmem:[#allocation4 + $0x10] sm:$0xf] %vm1670_vm12, %v12486_v38  ;;  %v12669_v59 = vrot.slane %v3676_v22, 5  ;;  %2457 = vst.msk [vmem:[#allocation4 + $0x8] sm:$0xf] %vm1670_vm12, %v12401_v52  ;;  %v3686_v38 = vshll.u32 %v12586_v34, 16  ;;  %2422 = vrot.lane.b32.xlu0 %v2355_v40, %s10728_s17 }
 0x1ca   : > { %2674 = vst.msk [vmem:[#allocation4 + $0x2c] sm:$0xf] %vm1144_vm14, %v12347_v29  ;;  %v3690_v12 = vshrl.u32 %v12586_v34, 16  ;;  %v10436_v11 = vld [vmem:[%s16077_s3 + $0x40] sm:$0xff]   ;;  %2008 = vst.msk [vmem:[#allocation4 + $0x38] sm:$0xf] %vm1144_vm14, %v1978_v42  ;;  %v2365_v29 = vsel %vm11190_vm3, %v2360_v31, %v12613_v13 }
 0x1cb   : > { %2007 = vst.msk [vmem:[#allocation4 + $0x30] sm:$0xf] %vm1144_vm14, %v1977_v43  ;;  %2676 = vst.msk [vmem:[#allocation4 + $0x3c] sm:$0xf] %vm1144_vm14, %v12354_v36  ;;  %v1211_v54 = vld [vmem:[#allocation3 + $0x74] sm:$0xf]  ;;  %v1597_v43 = vpop.permute.xlu0 %1596  ;;  %3443 = vmatpush2.bf16.msra.mxu0 %v10436_v11  ;;  %2424 = vrot.lane.b32.xlu1 %v2365_v29, %s10728_s17 }
 0x1cc   : > { %2461 = vst.msk [vmem:[#allocation4 + $0x28] sm:$0xf] %vm1670_vm12, %v2377_v8  ;;  %2460 = vst.msk [vmem:[#allocation4 + $0x20] sm:$0xf] %vm1670_vm12, %v2375_v7  ;;  %v3659_v52 = vrot.slane %v3657_v32, 4  ;;  %v3662_v34 = vrot.slane %v3660_v24, 5 }
 0x1cd   : > { %v3696_v62 = vshll.u32 %v12600_v23, 16  ;;  %1241 = vst.msk [vmem:[#allocation4 + $0xe8] sm:$0xf] %vm1144_vm14, %v1211_v54  ;;  %v1210_v7 = vld [vmem:[#allocation3 + $0x70] sm:$0xf]  ;;  %v3674_v26 = vrot.slane %v3673_v4, 4 }
 0x1ce   : > { %v12691_v21 = vrot.slane %v3686_v38, 5  ;;  %v3692_v36 = vrot.slane %v3690_v12, 4  ;;  %v3700_v0 = vshrl.u32 %v12600_v23, 16  ;;  %v10439_v18 = vld [vmem:[%s16077_s3 + $0xa0] sm:$0xff]   ;;  %1679 = vst.msk [vmem:[#allocation4 + $0x40] sm:$0xf] %vm1670_vm12, %v1597_v43  ;;  %v3663_v8 = vor.u32 %v3662_v34, %v3659_v52  ;;  %v2381_v38 = vpop.permute.xlu1 %2380 }
 0x1cf   : > { %1240 = vst.msk [vmem:[#allocation4 + $0xe0] sm:$0xf] %vm1144_vm14, %v1210_v7  ;;  %v3682_v28 = vrot.slane %v3680_v60, 4  ;;  %v3706_v23 = vshll.u32 %v12640_v33, 16  ;;  %v12709_v13 = vrot.slane %v3696_v62, 5  ;;  %v3710_v22 = vshrl.u32 %v12640_v33, 16  ;;  %3038 = vmatpush2.bf16.msra.mxu1 %v10439_v18  ;;  %v2379_v12 = vpop.permute.xlu0 %2378 }
 0x1d0   : > { %1680 = vst.msk [vmem:[#allocation4 + $0x48] sm:$0xf] %vm1670_vm12, %v1599_v10  ;;  %v3693_v20 = vor.u32 %v3692_v36, %v12691_v21  ;;  %v3716_v42 = vshll.u32 %v12652_v44, 16  ;;  %v3679_v46 = vsel %vm11190_vm3, %v3674_v26, %v12669_v59  ;;  %v3664_v51 = vrot.slane %v3663_v8, 4  ;;  %v3632_v31 = vld [vmem:[#allocation3 + $0x34] sm:$0xf]  ;;  %4600 = vmatprep.subr.bf16.mxu1 %v16350_v49 }
 0x1d1   : > { %v3683_v2 = vor.u32 %v3682_v28, %v12669_v59  ;;  %v12718_v47 = vrot.slane %v3706_v23, 5  ;;  %v3712_v32 = vrot.slane %v3710_v22, 4  ;;  %v3720_v24 = vshrl.u32 %v12652_v44, 16  ;;  %v12721_v33 = vld [vmem:[#allocation3 + $0x38] sm:$0xf]  ;;  %3962 = vrot.lane.b32.xlu1 %v3679_v46, %s10728_s17 }
 0x1d2   : > { %v3694_v60 = vrot.slane %v3693_v20, 4  ;;  %v3702_v4 = vrot.slane %v3700_v0, 4  ;;  %v3669_v11 = vsel %vm11190_vm3, %v3664_v51, %v12617_v19  ;;  %vm2961_vm2 = vcmask 523264   ;;  %v3634_v29 = vld [vmem:[#allocation3 + $0x3c] sm:$0xf] }
 0x1d3   : > { %v3684_v54 = vrot.slane %v3683_v2, 4  ;;  %v9225_v59 = vcombine.high %v12610_v3, %v12634_v45  ;;  %2463 = vst.msk [vmem:[#allocation4 + $0x38] sm:$0xf] %vm1670_vm12, %v2381_v38  ;;  %2462 = vst.msk [vmem:[#allocation4 + $0x30] sm:$0xf] %vm1670_vm12, %v2379_v12  ;;  %3960 = vrot.lane.b32.xlu0 %v3669_v11, %s10728_s17  ;;  %v3713_v52 = vor.u32 %v3712_v32, %v12718_v47  ;;  %v12735_v34 = vrot.slane %v3716_v42, 5  ;;  %v1603_v2 = vpop.permute.xlu1 %1602  ;;  %v1601_v11 = vpop.permute.xlu0 %1600 }
 0x1d4   : > { %v12731_v44 = vld [vmem:[#allocation4 + $0x24] ss:$8 sps:$4 sm:$0xff]   ;;  %v3703_v19 = vor.u32 %v3702_v4, %v12709_v13  ;;  %v9224_v62 = vcombine.low %v12610_v3, %v12634_v45  ;;  %v1980_v7 = vld [vmem:[#allocation3 + $0x30] sm:$0xf]  ;;  %v1979_v26 = vld [vmem:[#allocation3 + $0x2c] sm:$0xf]  ;;  %v9227_v18 = vcombine.high %v12608_v39, %v12615_v30 }
 0x1d5   : > { %v12740_v43 = vld [vmem:[#allocation3 + $0x40] sm:$0xf]  ;;  %v3570_v36 = vld [vmem:[#allocation3 + $0x2c] sm:$0xf]  ;;  %v3689_v0 = vsel %vm11190_vm3, %v3684_v54, %v12691_v21  ;;  %9266 = vmatprep.mubr.msk.bf16.mxu0 %vm2961_vm2, %v9225_v59  ;;  %v3726_v10 = vshll.u32 %v3632_v31, 16  ;;  %v3730_v40 = vshrl.u32 %v3632_v31, 16  ;;  %v3699_v31 = vsel %vm11190_vm3, %v3694_v60, %v12709_v13 }
 0x1d6   : > { %v12749_v8 = vld [vmem:[#allocation4 + $0x40] sm:$0xff]  ;;  %3600 = vst.msk [vmem:[#allocation4 + $0x28] sm:$0xf] %vm1144_vm14, %v3570_v36  ;;  %v3569_v3 = vld [vmem:[#allocation3 + $0x28] sm:$0xf]  ;;  %v3714_v45 = vrot.slane %v3713_v52, 4  ;;  %3445 = vmatmul.mubr.bf16.vlgmr.msra.gmra.mxu0 %v9224_v62  ;;  %3966 = vrot.lane.b32.xlu1 %v3699_v31, %s10728_s17 }
 0x1d7   : > { %v3704_v28 = vrot.slane %v3703_v19, 4  ;;  %v3736_v23 = vshll.u32 %v12721_v33, 16  ;;  %v3740_v20 = vshrl.u32 %v12721_v33, 16  ;;  %v12754_v21 = vld [vmem:[#allocation4 + $0x48] sm:$0xff]  ;;  %2009 = vst.msk [vmem:[#allocation4 + $0x40] sm:$0xf] %vm1144_vm14, %v1979_v26  ;;  %9267 = vmatprep.mubr.msk.bf16.mxu0 %vm2961_vm2, %v9227_v18  ;;  %3964 = vrot.lane.b32.xlu0 %v3689_v0, %s10728_s17 }
 0x1d8   : > { %2677 = vst.msk [vmem:[#allocation4 + $0x44] sm:$0xf] %vm1144_vm14, %v12419_v16  ;;  %3599 = vst.msk [vmem:[#allocation4 + $0x20] sm:$0xf] %vm1144_vm14, %v3569_v3  ;;  %v3728_v22 = vrot.slane %v3726_v10, 5  ;;  %v3732_v42 = vrot.slane %v3730_v40, 4  ;;  %v3719_v16 = vsel %vm11190_vm3, %v3714_v45, %v12735_v34  ;;  %v2385_v3 = vpop.permute.xlu1 %2384 }
 0x1d9   : > { %v3722_v46 = vrot.slane %v3720_v24, 4  ;;  %v3746_v51 = vshll.u32 %v3634_v29, 16  ;;  %2010 = vst.msk [vmem:[#allocation4 + $0x48] sm:$0xf] %vm1144_vm14, %v1980_v7  ;;  %2678 = vst.msk [vmem:[#allocation4 + $0x4c] sm:$0xf] %vm1144_vm14, %v12532_v50  ;;  %v3709_v54 = vsel %vm11190_vm3, %v3704_v28, %v12718_v47 }
 0x1da   : > { %v3738_v32 = vrot.slane %v3736_v23, 5  ;;  %v3750_v4 = vshrl.u32 %v3634_v29, 16  ;;  %v2486_v24 = vld [vmem:[#allocation3 + $0xc] sm:$0xe]  ;;  %v2487_v33 = vld [vmem:[#allocation3 + $0x10] sm:$0xf]  ;;  %v3733_v38 = vor.u32 %v3732_v42, %v3728_v22  ;;  %3970 = vrot.lane.b32.xlu1 %v3719_v16, %s10728_s17 }
 0x1db   : > { %1682 = vst.msk [vmem:[#allocation4 + $0x58] sm:$0xf] %vm1670_vm12, %v1603_v2  ;;  %v3723_v50 = vor.u32 %v3722_v46, %v12735_v34  ;;  %v12774_v12 = vrot.slane %v3746_v51, 5  ;;  %v3756_v13 = vshll.u32 %v12740_v43, 16  ;;  %v2488_v60 = vld [vmem:[#allocation3 + $0x14] sm:$0xf]  ;;  %3968 = vrot.lane.b32.xlu0 %v3709_v54, %s10728_s17 }
 0x1dc   : > { %v3752_v59 = vrot.slane %v3750_v4, 4  ;;  %v3760_v29 = vshrl.u32 %v12740_v43, 16  ;;  %v3742_v52 = vrot.slane %v3740_v20, 4  ;;  %v4080_v19 = vld [vmem:[#allocation3 + $0x18] sm:$0xe]  ;;  %v3734_v62 = vrot.slane %v3733_v38, 4 }
 0x1dd   : > { %1681 = vst.msk [vmem:[#allocation4 + $0x50] sm:$0xf] %vm1670_vm12, %v1601_v11  ;;  %v3724_v7 = vrot.slane %v3723_v50, 4  ;;  %v9142_v34 = vrot.slane %v2486_v24, 9  ;;  %v2550_v26 = vrot.slane %v2487_v33, 5  ;;  %v12784_v18 = vrot.slane %v3756_v13, 5  ;;  %v2383_v50 = vpop.permute.xlu0 %2382 }
 0x1de   : > { %v4081_v36 = vld [vmem:[#allocation3 + $0x1c] sm:$0xf]  ;;  %v3753_v0 = vor.u32 %v3752_v59, %v12774_v12  ;;  %v3743_v10 = vor.u32 %v3742_v52, %v3738_v32  ;;  %v2553_v47 = vrot.slane %v2488_v60, 5  ;;  %v4082_v40 = vld [vmem:[#allocation3 + $0x20] sm:$0xf]  ;;  %v3739_v43 = vsel %vm11190_vm3, %v3734_v62, %v3738_v32 }
 0x1df   : > { %v2551_v45 = vsel %vm11077_vm1, %v9142_v34, %v2550_v26  ;;  %v2552_v28 = vrot.slane %v2550_v26, 4  ;;  %v9281_v23 = vrot.slane %v4080_v19, 9  ;;  %v3636_v20 = vld [vmem:[#allocation3 + $0x44] sm:$0xf]  ;;  %2465 = vst.msk [vmem:[#allocation4 + $0x48] sm:$0xf] %vm1670_vm12, %v2385_v3  ;;  %v3729_v16 = vsel %vm11190_vm3, %v3724_v7, %v3728_v22  ;;  %3974 = vrot.lane.b32.xlu1 %v3739_v43, %s10728_s17 }
 0x1e0   : > { %v3754_v42 = vrot.slane %v3753_v0, 4  ;;  %v3744_v46 = vrot.slane %v3743_v10, 4  ;;  %v2555_v51 = vrot.slane %v2553_v47, 4  ;;  %2669 = vst.msk [vmem:[#allocation4 + $0x4] sm:$0xf] %vm1144_vm14, %v2551_v45  ;;  %v4144_v2 = vrot.slane %v4081_v36, 5  ;;  %3972 = vrot.lane.b32.xlu0 %v3729_v16, %s10728_s17 }
 0x1e1   : > { %v12793_v31 = vld [vmem:[#allocation3 + $0x48] sm:$0xf]  ;;  %v2554_v32 = vsel %vm11077_vm1, %v2552_v28, %v2553_v47  ;;  %v4147_v4 = vrot.slane %v4082_v40, 5  ;;  %v9226_v24 = vcombine.low %v12608_v39, %v12615_v30  ;;  %v1982_v33 = vld [vmem:[#allocation3 + $0x38] sm:$0xf]  ;;  %v9229_v39 = vcombine.high %v12638_v57, %v12636_v27 }
 0x1e2   : > { %v12801_v38 = vld [vmem:[#allocation4 + $0x58] sm:$0xff]  ;;  %v3759_v13 = vsel %vm11190_vm3, %v3754_v42, %v12784_v18  ;;  %v3749_v22 = vsel %vm11190_vm3, %v3744_v46, %v12774_v12  ;;  %2670 = vst.msk [vmem:[#allocation4 + $0xc] sm:$0xf] %vm1144_vm14, %v2554_v32  ;;  %v4146_v60 = vrot.slane %v4144_v2, 4  ;;  %v4083_v30 = vld [vmem:[#allocation3 + $0x24] sm:$0xf]  ;;  %v4145_v54 = vsel %vm11077_vm1, %v9281_v23, %v4144_v2  ;;  %v1605_v42 = vpop.permute.xlu0 %1604 }
 0x1e3   : > { %v3638_v11 = vld [vmem:[#allocation3 + $0x4c] sm:$0xf]  ;;  %2012 = vst.msk [vmem:[#allocation4 + $0x58] sm:$0xf] %vm1144_vm14, %v1982_v33  ;;  %3453 = vmatmul.mubr.bf16.gmra.mxu0 %v9226_v24  ;;  %v3766_v59 = vshll.u32 %v3636_v20, 16  ;;  %v3770_v12 = vshrl.u32 %v3636_v20, 16  ;;  %3978 = vrot.lane.b32.xlu1 %v3759_v13, %s10728_s17  ;;  %v1607_v24 = vpop.permute.xlu1 %1606 }
 0x1e4   : > { %2464 = vst.msk [vmem:[#allocation4 + $0x40] sm:$0xf] %vm1670_vm12, %v2383_v50  ;;  %v3776_v52 = vshll.u32 %v12793_v31, 16  ;;  %v1981_v19 = vld [vmem:[#allocation3 + $0x34] sm:$0xf]  ;;  %v12819_v62 = vld [vmem:[#allocation4 + $0x50] sm:$0xff]  ;;  %v4148_v7 = vsel %vm11077_vm1, %v4146_v60, %v4147_v4  ;;  %9268 = vmatprep.mubr.msk.bf16.mxu0 %vm2961_vm2, %v9229_v39  ;;  %3976 = vrot.lane.b32.xlu0 %v3749_v22, %s10728_s17 }
 0x1e5   : > { %v4149_v34 = vrot.slane %v4147_v4, 4  ;;  %v3762_v26 = vrot.slane %v3760_v29, 4  ;;  %v16354_v36 = vrot.slane %v11304_v61, 5  ;;  %v12828_v10 = vld [vmem:[#allocation3 + $0x28] sm:$0xf]  ;;  %v3768_v40 = vrot.slane %v3766_v59, 5 }
 0x1e6   : > { %v12830_v47 = vld [vmem:[#allocation3 + $0x50] sm:$0xf]  ;;  %2011 = vst.msk [vmem:[#allocation4 + $0x50] sm:$0xf] %vm1144_vm14, %v1981_v19  ;;  %v3772_v3 = vrot.slane %v3770_v12, 4  ;;  %v3780_v43 = vshrl.u32 %v12793_v31, 16 }
 0x1e7   : > { %v2557_v0 = vsel %vm11077_vm1, %v2555_v51, %v16354_v36  ;;  %v4150_v45 = vrot.slane %v4083_v30, 5  ;;  %v12836_v29 = vrot.slane %v3776_v52, 5  ;;  %v3763_v61 = vor.u32 %v3762_v26, %v12784_v18  ;;  %v12839_v20 = vld [vmem:[#allocation3 + $0x54] sm:$0xf]  ;;  %v3565_v46 = vld [vmem:[#allocation3 + $0x18] sm:$0xf] }
 0x1e8   : > { %2671 = vst.msk [vmem:[#allocation4 + $0x14] sm:$0xf] %vm1144_vm14, %v2557_v0  ;;  %v3786_v28 = vshll.u32 %v3638_v11, 16  ;;  %v3790_v23 = vshrl.u32 %v3638_v11, 16  ;;  %v3566_v51 = vld [vmem:[#allocation3 + $0x1c] sm:$0xf]  ;;  %v3773_v2 = vor.u32 %v3772_v3, %v3768_v40 }
 0x1e9   : > { %v10442_v31 = vld [vmem:[%s16077_s3 + $0xf8] sm:$0xff]   ;;  %v4152_v16 = vrot.slane %v4150_v45, 4  ;;  %v4153_v32 = vrot.slane %v12828_v10, 5  ;;  %v3796_v4 = vshll.u32 %v12830_v47, 16  ;;  %v12847_v18 = vld [vmem:[#allocation3 + $0x58] sm:$0xf]  ;;  %v4151_v13 = vsel %vm11077_vm1, %v4149_v34, %v4150_v45 }
 0x1ea   : > { %1683 = vst.msk [vmem:[#allocation4 + $0x60] sm:$0xf] %vm1670_vm12, %v1605_v42  ;;  %v2699_v33 = vld [vmem:[#allocation4] sm:$0xff]  ;;  %v3764_v50 = vrot.slane %v3763_v61, 4  ;;  %v12852_v22 = vrot.slane %v3786_v28, 5  ;;  %v3792_v60 = vrot.slane %v3790_v23, 4  ;;  %v2389_v42 = vpop.permute.xlu1 %2388 }
 0x1eb   : > { %1684 = vst.msk [vmem:[#allocation4 + $0x68] sm:$0xf] %vm1670_vm12, %v1607_v24  ;;  %v3574_v39 = vld [vmem:[#allocation3 + $0x3c] sm:$0xf]  ;;  %v10440_v11 = vld [vmem:[#allocation4 + $0x4] ss:$8 sps:$4 sm:$0xff]   ;;  %v4154_v12 = vsel %vm11077_vm1, %v4152_v16, %v4153_v32 }
 0x1ec   : > { %v2700_v30 = vld [vmem:[#allocation4 + $0x8] sm:$0xff]  ;;  %v3774_v59 = vrot.slane %v3773_v2, 4  ;;  %v3800_v52 = vshrl.u32 %v12830_v47, 16  ;;  %v3782_v19 = vrot.slane %v3780_v43, 4  ;;  %3595 = vst.msk [vmem:[#allocation4] sm:$0xf] %vm1144_vm14, %v3565_v46  ;;  %v3769_v26 = vsel %vm11190_vm3, %v3764_v50, %v3768_v40  ;;  %9209 = vmatprep.mubr.msk.bf16.mxu1 %vm2961_vm2, %v10440_v11  ;;  %v2387_v46 = vpop.permute.xlu0 %2386 }
 0x1ed   : > { %3596 = vst.msk [vmem:[#allocation4 + $0x8] sm:$0xf] %vm1144_vm14, %v3566_v51  ;;  %4263 = vst.msk [vmem:[#allocation4 + $0x4] sm:$0xf] %vm1144_vm14, %v4145_v54  ;;  %v9167_v34 = vcombine.low %v2699_v33, %v2700_v30  ;;  %v12866_v36 = vld [vmem:[#allocation4 + $0x18] sm:$0xff]  ;;  %v3793_v0 = vor.u32 %v3792_v60, %v12852_v22  ;;  %v12869_v3 = vrot.slane %v3796_v4, 5  ;;  %3980 = vrot.lane.b32.xlu0 %v3769_v26, %s10728_s17 }
 0x1ee   : > { %4264 = vst.msk [vmem:[#allocation4 + $0xc] sm:$0xf] %vm1144_vm14, %v4148_v7  ;;  %v12871_v47 = vld [vmem:[#allocation3 + $0x2c] sm:$0xf]  ;;  %v12873_v43 = vld [vmem:[#allocation3 + $0x30] sm:$0xf]  ;;  %v3779_v54 = vsel %vm11190_vm3, %v3774_v59, %v12836_v29  ;;  %v3783_v7 = vor.u32 %v3782_v19, %v12836_v29  ;;  %v9228_v40 = vcombine.low %v12638_v57, %v12636_v27  ;;  %v9231_v57 = vcombine.high %v12661_v1, %v12659_v25 }
 0x1ef   : > { %v12875_v45 = vld [vmem:[#allocation4 + $0x44] ss:$8 sps:$4 sm:$0xff]   ;;  %v3806_v28 = vshll.u32 %v12839_v20, 16  ;;  %v12886_v23 = vld [vmem:[#allocation3 + $0x5c] sm:$0xf]  ;;  %3040 = vmatmul.mubr.bf16.vlgmr.msra.gmra.mxu1 %v9167_v34  ;;  %3982 = vrot.lane.b32.xlu1 %v3779_v54, %s10728_s17  ;;  %v12891_v16 = vld [vmem:[#allocation4 + $0x10] sm:$0xff] }
 0x1f0   : > { %v3573_v61 = vld [vmem:[#allocation3 + $0x38] sm:$0xf]  ;;  %v3568_v51 = vld [vmem:[#allocation3 + $0x24] sm:$0xf]  ;;  %v3567_v2 = vld [vmem:[#allocation3 + $0x20] sm:$0xf]  ;;  %4601 = vmatpush1.bf16.msra.mxu1 %v10442_v31  ;;  %3461 = vmatmul.mubr.bf16.gmra.mxu0 %v9228_v40  ;;  %v9169_v50 = vcombine.low %v12891_v16, %v12866_v36 }
 0x1f1   : > { %3604 = vst.msk [vmem:[#allocation4 + $0x48] sm:$0xf] %vm1144_vm14, %v3574_v39  ;;  %3603 = vst.msk [vmem:[#allocation4 + $0x40] sm:$0xf] %vm1144_vm14, %v3573_v61  ;;  %v10443_v29 = vld [vmem:[#allocation4 + $0x14] ss:$8 sps:$4 sm:$0xff]   ;;  %9269 = vmatprep.mubr.msk.bf16.mxu0 %vm2961_vm2, %v9231_v57  ;;  %4602 = vmatprep.subr.bf16.mxu1 %v16350_v49 }
 0x1f2   : > { %v3794_v4 = vrot.slane %v3793_v0, 4  ;;  %v3810_v27 = vshrl.u32 %v12839_v20, 16  ;;  %v3816_v24 = vshll.u32 %v12847_v18, 16  ;;  %2467 = vst.msk [vmem:[#allocation4 + $0x58] sm:$0xf] %vm1670_vm12, %v2389_v42  ;;  %v3784_v33 = vrot.slane %v3783_v7, 4  ;;  %9210 = vmatprep.mubr.msk.bf16.mxu1 %vm2961_vm2, %v10443_v29 }
 0x1f3   : > { %2466 = vst.msk [vmem:[#allocation4 + $0x50] sm:$0xf] %vm1670_vm12, %v2387_v46  ;;  %v3808_v60 = vrot.slane %v3806_v28, 5  ;;  %v3820_v39 = vshrl.u32 %v12847_v18, 16  ;;  %v10447_v20 = vld [vmem:[%s16077_s3 + $0xf0] sm:$0xff]   ;;  %v3802_v11 = vrot.slane %v3800_v52, 4  ;;  %v1611_v52 = vpop.permute.xlu1 %1610 }
 0x1f4   : > { %4265 = vst.msk [vmem:[#allocation4 + $0x14] sm:$0xf] %vm1144_vm14, %v4151_v13  ;;  %4266 = vst.msk [vmem:[#allocation4 + $0x1c] sm:$0xf] %vm1144_vm14, %v4154_v12  ;;  %v12907_v30 = vld [vmem:[#allocation3 + $0x60] sm:$0xf]  ;;  %v3799_v31 = vsel %vm11190_vm3, %v3794_v4, %v12869_v3  ;;  %v3789_v19 = vsel %vm11190_vm3, %v3784_v33, %v12852_v22  ;;  %4603 = vmatpush1.bf16.msra.mxu1 %v10447_v20  ;;  %v9230_v33 = vcombine.low %v12661_v1, %v12659_v25 }
 0x1f5   : > { %3598 = vst.msk [vmem:[#allocation4 + $0x18] sm:$0xf] %vm1144_vm14, %v3568_v51  ;;  %3597 = vst.msk [vmem:[#allocation4 + $0x10] sm:$0xf] %vm1144_vm14, %v3567_v2  ;;  %v3812_v13 = vrot.slane %v3810_v27, 4  ;;  %v12916_v18 = vrot.slane %v3816_v24, 5  ;;  %3986 = vrot.lane.b32.xlu1 %v3799_v31, %s10728_s17  ;;  %3984 = vrot.lane.b32.xlu0 %v3789_v19, %s10728_s17  ;;  %v3803_v10 = vor.u32 %v3802_v11, %v12869_v3  ;;  %v1609_v3 = vpop.permute.xlu0 %1608 }
 0x1f6   : > { %v1983_v59 = vld [vmem:[#allocation3 + $0x3c] sm:$0xf]  ;;  %v12918_v12 = vld [vmem:[#allocation4 + $0x60] sm:$0xff]  ;;  %v4155_v34 = vrot.slane %v4153_v32, 4  ;;  %v4156_v26 = vrot.slane %v12871_v47, 5  ;;  %v4159_v36 = vrot.slane %v12873_v43, 5  ;;  %4604 = vmatprep.subr.bf16.mxu1 %v16350_v49 }
 0x1f7   : > { %v1984_v0 = vld [vmem:[#allocation3 + $0x40] sm:$0xf]  ;;  %2013 = vst.msk [vmem:[#allocation4 + $0x60] sm:$0xf] %vm1144_vm14, %v1983_v59  ;;  %v3813_v22 = vor.u32 %v3812_v13, %v3808_v60  ;;  %v3826_v32 = vshll.u32 %v12886_v23, 16  ;;  %v3830_v47 = vshrl.u32 %v12886_v23, 16  ;;  %3048 = vmatmul.mubr.bf16.gmra.mxu1 %v9169_v50 }
 0x1f8   : > { %v12928_v61 = vld [vmem:[#allocation4 + $0x68] sm:$0xff]  ;;  %1686 = vst.msk [vmem:[#allocation4 + $0x78] sm:$0xf] %vm1670_vm12, %v1611_v52  ;;  %v4157_v54 = vsel %vm11077_vm1, %v4155_v34, %v4156_v26  ;;  %v4158_v7 = vrot.slane %v4156_v26, 4  ;;  %v3836_v40 = vshll.u32 %v12907_v30, 16  ;;  %v3840_v28 = vshrl.u32 %v12907_v30, 16  ;;  %9211 = vmatprep.mubr.msk.bf16.mxu1 %vm2961_vm2, %v12731_v44  ;;  %3469 = vmatmul.mubr.bf16.gmra.mxu0 %v9230_v33  ;;  %v2393_v44 = vpop.permute.xlu1 %2392 }
 0x1f9   : > { %2014 = vst.msk [vmem:[#allocation4 + $0x68] sm:$0xf] %vm1144_vm14, %v1984_v0  ;;  %v12942_v42 = vld [vmem:[#allocation3 + $0x68] sm:$0xf]  ;;  %v3814_v46 = vrot.slane %v3813_v22, 4  ;;  %v3804_v51 = vrot.slane %v3803_v10, 4 }
 0x1fa   : > { %4267 = vst.msk [vmem:[#allocation4 + $0x24] sm:$0xf] %vm1144_vm14, %v4157_v54  ;;  %v3828_v23 = vrot.slane %v3826_v32, 5  ;;  %v3832_v2 = vrot.slane %v3830_v47, 4  ;;  %v3644_v16 = vld [vmem:[#allocation3 + $0x64] sm:$0xf]  ;;  %v4160_v57 = vsel %vm11077_vm1, %v4158_v7, %v4159_v36 }
 0x1fb   : > { %1685 = vst.msk [vmem:[#allocation4 + $0x70] sm:$0xf] %vm1670_vm12, %v1609_v3  ;;  %v12949_v4 = vld [vmem:[#allocation4 + $0x28] sm:$0xff]  ;;  %v3838_v27 = vrot.slane %v3836_v40, 5  ;;  %v3822_v24 = vrot.slane %v3820_v39, 4  ;;  %v3819_v30 = vsel %vm11190_vm3, %v3814_v46, %v12916_v18  ;;  %v3809_v31 = vsel %vm11190_vm3, %v3804_v51, %v3808_v60  ;;  %v10453_v40 = vld [vmem:[%s16077_s3 + $0xe0] sm:$0xff]  }
 0x1fc   : > { %v10450_v20 = vld [vmem:[%s16077_s3 + $0xe8] sm:$0xff]   ;;  %4268 = vst.msk [vmem:[#allocation4 + $0x2c] sm:$0xf] %vm1144_vm14, %v4160_v57  ;;  %v3833_v13 = vor.u32 %v3832_v2, %v3828_v23  ;;  %v9233_v39 = vcombine.high %v12749_v8, %v12754_v21  ;;  %v4087_v11 = vld [vmem:[#allocation3 + $0x34] sm:$0xf]  ;;  %3990 = vrot.lane.b32.xlu1 %v3819_v30, %s10728_s17  ;;  %3988 = vrot.lane.b32.xlu0 %v3809_v31, %s10728_s17  ;;  %v3846_v1 = vshll.u32 %v3644_v16, 16 }
 0x1fd   : > { %v3823_v25 = vor.u32 %v3822_v24, %v12916_v18  ;;  %v3850_v50 = vshrl.u32 %v3644_v16, 16  ;;  %v3856_v59 = vshll.u32 %v12942_v42, 16  ;;  %v3646_v19 = vld [vmem:[#allocation3 + $0x6c] sm:$0xf]  ;;  %v12972_v34 = vld [vmem:[#allocation3 + $0x70] sm:$0xf]  ;;  %4605 = vmatpush1.bf16.msra.mxu1 %v10450_v20 }
 0x1fe   : > { %v3834_v60 = vrot.slane %v3833_v13, 4  ;;  %v3842_v0 = vrot.slane %v3840_v28, 4  ;;  %v16355_v52 = vrot.slane %v11683_v15, 5  ;;  %v1986_v18 = vld [vmem:[#allocation3 + $0x48] sm:$0xf]  ;;  %9270 = vmatprep.mubr.msk.bf16.mxu0 %vm2961_vm2, %v9233_v39  ;;  %v3848_v32 = vrot.slane %v3846_v1, 5  ;;  %4606 = vmatprep.subr.bf16.mxu1 %v16350_v49 }
 0x1ff   : > { %v3824_v10 = vrot.slane %v3823_v25, 4  ;;  %v3852_v47 = vrot.slane %v3850_v50, 4  ;;  %v3860_v54 = vshrl.u32 %v12942_v42, 16  ;;  %v12982_v7 = vld [vmem:[#allocation4 + $0x78] sm:$0xff]  ;;  %v16356_v3 = vrot.slane %v11388_v9, 5 }
 0x200   : > { %v2567_v22 = vrot.slane %v16355_v52, 4  ;;  %v3839_v15 = vsel %vm11190_vm3, %v3834_v60, %v3838_v27  ;;  %v3843_v28 = vor.u32 %v3842_v0, %v3838_v27  ;;  %v12993_v51 = vld [vmem:[#allocation3 + $0x38] sm:$0xf]  ;;  %v4161_v42 = vrot.slane %v4159_v36, 4  ;;  %2016 = vst.msk [vmem:[#allocation4 + $0x78] sm:$0xf] %vm1144_vm14, %v1986_v18  ;;  %v2391_v36 = vpop.permute.xlu0 %2390 }
 0x201   : > { %v12947_v29 = vld [vmem:[#allocation4 + $0x20] sm:$0xff]  ;;  %2469 = vst.msk [vmem:[#allocation4 + $0x68] sm:$0xf] %vm1670_vm12, %v2393_v44  ;;  %3994 = vrot.lane.b32.xlu1 %v3839_v15, %s10728_s17  ;;  %v3829_v2 = vsel %vm11190_vm3, %v3824_v10, %v3828_v23  ;;  %v3853_v9 = vor.u32 %v3852_v47, %v3848_v32  ;;  %v13003_v16 = vrot.slane %v3856_v59, 5  ;;  %v3866_v27 = vshll.u32 %v3646_v19, 16  ;;  %4607 = vmatpush1.bf16.msra.mxu1 %v10453_v40  ;;  %v10456_v39 = vld [vmem:[%s16077_s3 + $0xd8] sm:$0xff]   ;;  %v1615_v40 = vpop.permute.xlu1 %1614 }
 0x202   : > { %v9171_v26 = vcombine.low %v12947_v29, %v12949_v4  ;;  %v2569_v46 = vsel %vm11077_vm1, %v2567_v22, %v16356_v3  ;;  %v4162_v29 = vrot.slane %v4087_v11, 5  ;;  %v1985_v4 = vld [vmem:[#allocation3 + $0x44] sm:$0xf]  ;;  %3992 = vrot.lane.b32.xlu0 %v3829_v2, %s10728_s17  ;;  %v3844_v57 = vrot.slane %v3843_v28, 4  ;;  %2468 = vst.msk [vmem:[#allocation4 + $0x60] sm:$0xf] %vm1670_vm12, %v2391_v36  ;;  %4608 = vmatprep.subr.bf16.mxu1 %v16350_v49 }
 0x203   : > { %2675 = vst.msk [vmem:[#allocation4 + $0x34] sm:$0xf] %vm1144_vm14, %v2569_v46  ;;  %v13006_v43 = vld [vmem:[#allocation4 + $0x70] sm:$0xff]  ;;  %v3870_v24 = vshrl.u32 %v3646_v19, 16  ;;  %v3876_v33 = vshll.u32 %v12972_v34, 16  ;;  %v3854_v23 = vrot.slane %v3853_v9, 4  ;;  %v9235_v10 = vcombine.high %v12819_v62, %v12801_v38 }
 0x204   : > { %2015 = vst.msk [vmem:[#allocation4 + $0x70] sm:$0xf] %vm1144_vm14, %v1985_v4  ;;  %v4163_v20 = vsel %vm11077_vm1, %v4161_v42, %v4162_v29  ;;  %v4165_v30 = vrot.slane %v12993_v51, 5  ;;  %v3880_v31 = vshrl.u32 %v12972_v34, 16  ;;  %v3648_v13 = vld [vmem:[#allocation3 + $0x74] sm:$0xf]  ;;  %3056 = vmatmul.mubr.bf16.gmra.mxu1 %v9171_v26  ;;  %v3849_v11 = vsel %vm11190_vm3, %v3844_v57, %v3848_v32  ;;  %v1613_v52 = vpop.permute.xlu0 %1612 }
 0x205   : > { %v4164_v25 = vrot.slane %v4162_v29, 4  ;;  %v13021_v1 = vrot.slane %v3866_v27, 5  ;;  %v3872_v50 = vrot.slane %v3870_v24, 4  ;;  %v13023_v59 = vld [vmem:[#allocation3 + $0x78] sm:$0xf]  ;;  %v3859_v19 = vsel %vm11190_vm3, %v3854_v23, %v13003_v16  ;;  %v2706_v22 = vld [vmem:[#allocation4 + $0x38] sm:$0xff]  ;;  %4609 = vmatpush1.bf16.msra.mxu1 %v10456_v39  ;;  %v2397_v39 = vpop.permute.xlu1 %2396 }
 0x206   : > { %v3878_v34 = vrot.slane %v3876_v33, 5  ;;  %v3862_v60 = vrot.slane %v3860_v54, 4  ;;  %v9232_v26 = vcombine.low %v12749_v8, %v12754_v21  ;;  %v4089_v0 = vld [vmem:[#allocation3 + $0x3c] sm:$0xf]  ;;  %3998 = vrot.lane.b32.xlu1 %v3859_v19, %s10728_s17  ;;  %3996 = vrot.lane.b32.xlu0 %v3849_v11, %s10728_s17  ;;  %v3886_v32 = vshll.u32 %v3648_v13, 16  ;;  %v10461_v46 = vld [vmem:[%s16077_s3 + $0xd0] sm:$0xff]  }
 0x207   : > { %v3873_v18 = vor.u32 %v3872_v50, %v13021_v1  ;;  %v3890_v47 = vshrl.u32 %v3648_v13, 16  ;;  %v13036_v44 = vld [vmem:[#allocation3 + $0x40] sm:$0xf]  ;;  %v13038_v54 = vld [vmem:[#allocation3 + $0x7c] sm:$0xf]  ;;  %v3896_v15 = vshll.u32 %v13023_v59, 16  ;;  %v4166_v9 = vsel %vm11077_vm1, %v4164_v25, %v4165_v30  ;;  %4610 = vmatprep.subr.bf16.mxu1 %v16350_v49 }
 0x208   : > { %1687 = vst.msk [vmem:[#allocation4 + $0x80] sm:$0xf] %vm1670_vm12, %v1613_v52  ;;  %v3572_v8 = vld [vmem:[#allocation3 + $0x34] sm:$0xf]  ;;  %v3863_v21 = vor.u32 %v3862_v60, %v13003_v16  ;;  %3477 = vmatmul.mubr.bf16.gmra.mxu0 %v9232_v26  ;;  %v3900_v28 = vshrl.u32 %v13023_v59, 16  ;;  %v3882_v3 = vrot.slane %v3880_v31, 4  ;;  %v2395_v11 = vpop.permute.xlu0 %2394 }
 0x209   : > { %1688 = vst.msk [vmem:[#allocation4 + $0x88] sm:$0xf] %vm1670_vm12, %v1615_v40  ;;  %v3571_v51 = vld [vmem:[#allocation3 + $0x30] sm:$0xf]  ;;  %v3874_v16 = vrot.slane %v3873_v18, 4  ;;  %9271 = vmatprep.mubr.msk.bf16.mxu0 %vm2961_vm2, %v9235_v10  ;;  %v13051_v29 = vrot.slane %v3886_v32, 5  ;;  %4611 = vmatpush1.bf16.msra.mxu1 %v10461_v46 }
 0x20a   : > { %v2705_v42 = vld [vmem:[#allocation4 + $0x30] sm:$0xff]  ;;  %v3892_v4 = vrot.slane %v3890_v47, 4  ;;  %v3864_v36 = vrot.slane %v3863_v21, 4  ;;  %v13056_v27 = vrot.slane %v3896_v15, 5  ;;  %v3883_v24 = vor.u32 %v3882_v3, %v3878_v34  ;;  %3602 = vst.msk [vmem:[#allocation4 + $0x38] sm:$0xf] %vm1144_vm14, %v3572_v8  ;;  %4612 = vmatprep.subr.bf16.mxu1 %v16350_v49 }
 0x20b   : > { %v10448_v2 = vld [vmem:[#allocation4 + $0x34] ss:$8 sps:$4 sm:$0xff]   ;;  %v9173_v57 = vcombine.low %v2705_v42, %v2706_v22  ;;  %3601 = vst.msk [vmem:[#allocation4 + $0x30] sm:$0xf] %vm1144_vm14, %v3571_v51  ;;  %v3879_v33 = vsel %vm11190_vm3, %v3874_v16, %v3878_v34  ;;  %v4167_v31 = vrot.slane %v4165_v30, 4  ;;  %v4171_v19 = vrot.slane %v13036_v44, 5 }
 0x20c   : > { %4269 = vst.msk [vmem:[#allocation4 + $0x34] sm:$0xf] %vm1144_vm14, %v4163_v20  ;;  %4270 = vst.msk [vmem:[#allocation4 + $0x3c] sm:$0xf] %vm1144_vm14, %v4166_v9  ;;  %9212 = vmatprep.mubr.msk.bf16.mxu1 %vm2961_vm2, %v10448_v2  ;;  %v3893_v23 = vor.u32 %v3892_v4, %v13051_v29  ;;  %v4168_v20 = vrot.slane %v4089_v0, 5  ;;  %4002 = vrot.lane.b32.xlu1 %v3879_v33, %s10728_s17  ;;  %v3869_v50 = vsel %vm11190_vm3, %v3864_v36, %v13021_v1  ;;  %v10464_v22 = vld [vmem:[%s16077_s3 + $0xc8] sm:$0xff]   ;;  %v1619_v9 = vpop.permute.xlu1 %1618 }
 0x20d   : > { %v3651_v13 = vld [vmem:[#allocation3 + $0x80] sm:$0xf]  ;;  %v13064_v25 = vld [vmem:[#allocation3 + $0x5c] sm:$0xf]  ;;  %v3884_v59 = vrot.slane %v3883_v24, 4  ;;  %v3906_v34 = vshll.u32 %v13038_v54, 16  ;;  %4000 = vrot.lane.b32.xlu0 %v3869_v50, %s10728_s17  ;;  %3064 = vmatmul.mubr.bf16.gmra.mxu1 %v9173_v57  ;;  %v9234_v47 = vcombine.low %v12819_v62, %v12801_v38 }
 0x20e   : > { %2471 = vst.msk [vmem:[#allocation4 + $0x78] sm:$0xf] %vm1670_vm12, %v2397_v39  ;;  %2470 = vst.msk [vmem:[#allocation4 + $0x70] sm:$0xf] %vm1670_vm12, %v2395_v11  ;;  %v3894_v30 = vrot.slane %v3893_v23, 4  ;;  %v4169_v60 = vsel %vm11077_vm1, %v4167_v31, %v4168_v20  ;;  %v4170_v26 = vrot.slane %v4168_v20, 4  ;;  %9213 = vmatprep.mubr.msk.bf16.mxu1 %vm2961_vm2, %v12875_v45  ;;  %4613 = vmatpush1.bf16.msra.mxu1 %v10464_v22 }
 0x20f   : > { %v3910_v1 = vshrl.u32 %v13038_v54, 16  ;;  %v3652_v0 = vld [vmem:[#allocation3 + $0x84] sm:$0xf]  ;;  %v1988_v52 = vld [vmem:[#allocation3 + $0x50] sm:$0xf]  ;;  %v13084_v18 = vrot.slane %v3906_v34, 5  ;;  %v3889_v62 = vsel %vm11190_vm3, %v3884_v59, %v13051_v29  ;;  %4614 = vmatprep.subr.bf16.mxu1 %v16350_v49 }
 0x210   : > { %4271 = vst.msk [vmem:[#allocation4 + $0x44] sm:$0xf] %vm1144_vm14, %v4169_v60  ;;  %v3916_v10 = vshll.u32 %v3651_v13, 16  ;;  %v3920_v32 = vshrl.u32 %v3651_v13, 16  ;;  %v1987_v40 = vld [vmem:[#allocation3 + $0x4c] sm:$0xf]  ;;  %v3899_v8 = vsel %vm11190_vm3, %v3894_v30, %v13056_v27  ;;  %v4172_v45 = vsel %vm11077_vm1, %v4170_v26, %v4171_v19  ;;  %3485 = vmatmul.mubr.bf16.gmra.mxu0 %v9234_v47  ;;  %v1617_v13 = vpop.permute.xlu0 %1616  ;;  %v2401_v47 = vpop.permute.xlu1 %2400 }
 0x211   : > { %v13088_v54 = vld [vmem:[#allocation4 + $0x80] sm:$0xff]  ;;  %v3912_v21 = vrot.slane %v3910_v1, 4  ;;  %v3902_v15 = vrot.slane %v3900_v28, 4  ;;  %v13098_v3 = vld [vmem:[#allocation3 + $0x88] sm:$0xf]  ;;  %v13100_v46 = vld [vmem:[#allocation4 + $0x88] sm:$0xff]  ;;  %4006 = vrot.lane.b32.xlu1 %v3899_v8, %s10728_s17  ;;  %v9237_v28 = vcombine.high %v12918_v12, %v12928_v61  ;;  %4004 = vrot.lane.b32.xlu0 %v3889_v62, %s10728_s17 }
 0x212   : > { %2017 = vst.msk [vmem:[#allocation4 + $0x80] sm:$0xf] %vm1144_vm14, %v1987_v40  ;;  %v2607_v38 = vrot.slane %v13064_v25, 5  ;;  %v2708_v42 = vld [vmem:[#allocation4 + $0x48] sm:$0xff]  ;;  %v3926_v2 = vshll.u32 %v3652_v0, 16  ;;  %v3918_v4 = vrot.slane %v3916_v10, 5 }
 0x213   : > { %4272 = vst.msk [vmem:[#allocation4 + $0x4c] sm:$0xf] %vm1144_vm14, %v4172_v45  ;;  %2018 = vst.msk [vmem:[#allocation4 + $0x88] sm:$0xf] %vm1144_vm14, %v1988_v52  ;;  %v3913_v16 = vor.u32 %v3912_v21, %v13084_v18  ;;  %v3903_v36 = vor.u32 %v3902_v15, %v13056_v27  ;;  %v3930_v29 = vshrl.u32 %v3652_v0, 16  ;;  %9272 = vmatprep.mubr.msk.bf16.mxu0 %vm2961_vm2, %v9237_v28  ;;  %v3936_v24 = vshll.u32 %v13098_v3, 16 }
 0x214   : > { %1690 = vst.msk [vmem:[#allocation4 + $0x98] sm:$0xf] %vm1670_vm12, %v1619_v9  ;;  %v3928_v57 = vrot.slane %v3926_v2, 5  ;;  %v3922_v33 = vrot.slane %v3920_v32, 4  ;;  %v16357_v23 = vrot.slane %v11904_v48, 5  ;;  %v10467_v34 = vld [vmem:[%s16077_s3 + $0xc0] sm:$0xff]  }
 0x215   : > { %v13120_v20 = vld [vmem:[#allocation3 + $0x44] sm:$0xf]  ;;  %v3914_v39 = vrot.slane %v3913_v16, 4  ;;  %v3904_v27 = vrot.slane %v3903_v36, 4  ;;  %v3932_v50 = vrot.slane %v3930_v29, 4  ;;  %v3940_v30 = vshrl.u32 %v13098_v3, 16  ;;  %4615 = vmatpush1.bf16.msra.mxu1 %v10467_v34  ;;  %v2399_v29 = vpop.permute.xlu0 %2398 }
 0x216   : > { %v2579_v31 = vrot.slane %v16357_v23, 4  ;;  %v3654_v59 = vld [vmem:[#allocation3 + $0x8c] sm:$0xf]  ;;  %1689 = vst.msk [vmem:[#allocation4 + $0x90] sm:$0xf] %vm1670_vm12, %v1617_v13  ;;  %v3923_v48 = vor.u32 %v3922_v33, %v3918_v4  ;;  %v16358_v60 = vrot.slane %v11546_v41, 5  ;;  %4624 = vmatprep.subr.bf16.mxu1 %v16350_v49  ;;  %v9236_v33 = vcombine.low %v12918_v12, %v12928_v61 }
 0x217   : > { %v2707_v51 = vld [vmem:[#allocation4 + $0x40] sm:$0xff]  ;;  %v16359_v1 = vrot.slane %v11719_v5, 5  ;;  %v3655_v52 = vld [vmem:[#allocation3 + $0x90] sm:$0x1]  ;;  %v3919_v22 = vsel %vm11190_vm3, %v3914_v39, %v3918_v4  ;;  %v3909_v10 = vsel %vm11190_vm3, %v3904_v27, %v13084_v18  ;;  %v3933_v32 = vor.u32 %v3932_v50, %v3928_v57  ;;  %v13144_v41 = vld [vmem:[#allocation3 + $0x48] sm:$0xf] }
 0x218   : > { %v9175_v11 = vcombine.low %v2707_v51, %v2708_v42  ;;  %v2581_v26 = vsel %vm11077_vm1, %v2579_v31, %v16358_v60  ;;  %v4174_v5 = vrot.slane %v13120_v20, 5  ;;  %4010 = vrot.lane.b32.xlu1 %v3919_v22, %s10728_s17  ;;  %4008 = vrot.lane.b32.xlu0 %v3909_v10, %s10728_s17  ;;  %v3938_v40 = vrot.slane %v3936_v24, 5  ;;  %v13151_v21 = vld [vmem:[#allocation3 + $0x4c] sm:$0xf]  ;;  %2473 = vst.msk [vmem:[#allocation4 + $0x88] sm:$0xf] %vm1670_vm12, %v2401_v47 }
 0x219   : > { %v2584_v0 = vsel %vm11077_vm1, %v11717_v37, %v16359_v1  ;;  %2679 = vst.msk [vmem:[#allocation4 + $0x54] sm:$0xf] %vm1144_vm14, %v2581_v26  ;;  %v13147_v37 = vld [vmem:[#allocation3 + $0x54] sm:$0xf]  ;;  %v3924_v8 = vrot.slane %v3923_v48, 4  ;;  %v3946_v18 = vshll.u32 %v3654_v59, 16  ;;  %3493 = vmatmul.mubr.bf16.gmra.mxu0 %v9236_v33 }
 0x21a   : > { %3072 = vmatmul.mubr.bf16.gmra.mxu1 %v9175_v11  ;;  %2680 = vst.msk [vmem:[#allocation4 + $0x5c] sm:$0xf] %vm1144_vm14, %v2584_v0  ;;  %v3950_v45 = vshrl.u32 %v3654_v59, 16  ;;  %v3934_v15 = vrot.slane %v3933_v32, 4  ;;  %v4173_v3 = vrot.slane %v4171_v19, 4  ;;  %v3956_v62 = vshll.u32 %v3655_v52, 16 }
 0x21b   : > { %v1990_v51 = vld [vmem:[#allocation3 + $0x58] sm:$0xf]  ;;  %v10470_v42 = vld [vmem:[%s16077_s3 + $0x118] sm:$0xff]   ;;  %v13159_v28 = vld [vmem:[#allocation3 + $0x60] sm:$0xf]  ;;  %v4176_v2 = vrot.slane %v4174_v5, 4  ;;  %v3929_v19 = vsel %vm11190_vm3, %v3924_v8, %v3928_v57  ;;  %v9239_v57 = vcombine.high %v13006_v43, %v12982_v7 }
 0x21c   : > { %v3948_v9 = vrot.slane %v3946_v18, 5  ;;  %v3952_v16 = vrot.slane %v3950_v45, 4  ;;  %v3942_v4 = vrot.slane %v3940_v30, 4  ;;  %v13161_v36 = vld [vmem:[#allocation4 + $0x98] sm:$0xff]  ;;  %v3939_v44 = vsel %vm11190_vm3, %v3934_v15, %v3938_v40  ;;  %v1989_v31 = vld [vmem:[#allocation3 + $0x54] sm:$0xf]  ;;  %4012 = vrot.lane.b32.xlu0 %v3929_v19, %s10728_s17  ;;  %4625 = vmatpush2.bf16.msra.mxu1 %v10470_v42 }
 0x21d   : > { %v4177_v24 = vrot.slane %v13144_v41, 5  ;;  %v13171_v23 = vld [vmem:[#allocation3 + $0x50] sm:$0xf]  ;;  %2020 = vst.msk [vmem:[#allocation4 + $0x98] sm:$0xf] %vm1144_vm14, %v1990_v51  ;;  %4014 = vrot.lane.b32.xlu1 %v3939_v44, %s10728_s17  ;;  %v3958_v13 = vrot.slane %v3956_v62, 5  ;;  %v4175_v52 = vsel %vm11077_vm1, %v4173_v3, %v4174_v5  ;;  %9273 = vmatprep.mubr.msk.bf16.mxu0 %vm2961_vm2, %v9239_v57 }
 0x21e   : > { %2472 = vst.msk [vmem:[#allocation4 + $0x80] sm:$0xf] %vm1670_vm12, %v2399_v29  ;;  %v3953_v20 = vor.u32 %v3952_v16, %v3948_v9  ;;  %v3943_v39 = vor.u32 %v3942_v4, %v3938_v40  ;;  %v13179_v27 = vld [vmem:[#allocation4 + $0x90] sm:$0xff]  ;;  %v13181_v12 = vld [vmem:[#allocation3 + $0x54] sm:$0xf]  ;;  %v2601_v11 = vrot.slane %v13147_v37, 5  ;;  %4626 = vmatprep.subr.bf16.mxu1 %v16350_v49  ;;  %v1621_v40 = vpop.permute.xlu0 %1620  ;;  %v1623_v16 = vpop.permute.xlu1 %1622 }
 0x21f   : > { %v13183_v61 = vld [vmem:[#allocation3 + $0x58] sm:$0xf]  ;;  %v16360_v50 = vrot.slane %v11918_v14, 5  ;;  %v16361_v34 = vrot.slane %v12094_v53, 5  ;;  %v4180_v48 = vrot.slane %v13151_v21, 5  ;;  %v4179_v32 = vrot.slane %v4177_v24, 4 }
 0x220   : > { %2019 = vst.msk [vmem:[#allocation4 + $0x90] sm:$0xf] %vm1144_vm14, %v1989_v31  ;;  %v3576_v60 = vld [vmem:[#allocation3 + $0x44] sm:$0xf]  ;;  %v3575_v26 = vld [vmem:[#allocation3 + $0x40] sm:$0xf] }
 0x221   : > { %v2587_v59 = vsel %vm11077_vm1, %v11926_v58, %v16360_v50  ;;  %v2590_v30 = vsel %vm11077_vm1, %v11967_v63, %v16361_v34  ;;  %v2709_v1 = vld [vmem:[#allocation4 + $0x50] sm:$0xff]  ;;  %v2710_v0 = vld [vmem:[#allocation4 + $0x58] sm:$0xff]  ;;  %v4178_v58 = vsel %vm11077_vm1, %v4176_v2, %v4177_v24  ;;  %v3954_v22 = vrot.slane %v3953_v20, 4  ;;  %1691 = vst.msk [vmem:[#allocation4 + $0xa0] sm:$0xf] %vm1670_vm12, %v1621_v40  ;;  %v10478_v57 = vld [vmem:[%s16077_s3 + $0x108] sm:$0xff]  }
 0x222   : > { %v10454_v14 = vld [vmem:[#allocation4 + $0x54] ss:$8 sps:$4 sm:$0xff]   ;;  %v3944_v10 = vrot.slane %v3943_v39, 4  ;;  %2681 = vst.msk [vmem:[#allocation4 + $0x64] sm:$0xf] %vm1144_vm14, %v2587_v59  ;;  %v2610_v63 = vrot.slane %v13159_v28, 5  ;;  %v16362_v5 = vmov %v16361_v34  ;;  %v9177_v15 = vcombine.low %v2709_v1, %v2710_v0 }
 0x223   : > { %2682 = vst.msk [vmem:[#allocation4 + $0x6c] sm:$0xf] %vm1144_vm14, %v2590_v30  ;;  %4273 = vst.msk [vmem:[#allocation4 + $0x54] sm:$0xf] %vm1144_vm14, %v4175_v52  ;;  %v4183_v41 = vrot.slane %v13171_v23, 5  ;;  %v2591_v47 = vrot.slane %v16362_v5, 4  ;;  %9214 = vmatprep.mubr.msk.bf16.mxu1 %vm2961_vm2, %v10454_v14  ;;  %v3959_v18 = vsel %vm11190_vm3, %v3954_v22, %v3958_v13  ;;  %v9238_v20 = vcombine.low %v13006_v43, %v12982_v7  ;;  %v2403_v7 = vpop.permute.xlu0 %2402 }
 0x224   : > { %4274 = vst.msk [vmem:[#allocation4 + $0x5c] sm:$0xf] %vm1144_vm14, %v4178_v58  ;;  %v10475_v8 = vld [vmem:[%s16077_s3 + $0x110] sm:$0xff]   ;;  %3606 = vst.msk [vmem:[#allocation4 + $0x58] sm:$0xf] %vm1144_vm14, %v3576_v60  ;;  %v3949_v45 = vsel %vm11190_vm3, %v3944_v10, %v3948_v9  ;;  %v16363_v53 = vrot.slane %v11932_v17, 5  ;;  %4018 = vrot.lane.b32.xlu1 %v3959_v18, %s10728_s17  ;;  %3080 = vmatmul.mubr.bf16.gmra.mxu1 %v9177_v15  ;;  %v9241_v50 = vcombine.high %v13088_v54, %v13100_v46 }
 0x225   : > { %3605 = vst.msk [vmem:[#allocation4 + $0x50] sm:$0xf] %vm1144_vm14, %v3575_v26  ;;  %v13228_v62 = vld [vmem:[#allocation3 + $0x5c] sm:$0xf]  ;;  %4016 = vrot.lane.b32.xlu0 %v3949_v45, %s10728_s17  ;;  %v4182_v51 = vrot.slane %v4180_v48, 4  ;;  %v16364_v42 = vld [vmem:[#allocation39_spill] sm:$0xff]  ;;  %4627 = vmatpush2.bf16.msra.mxu1 %v10475_v8  ;;  %v4181_v52 = vsel %vm11077_vm1, %v4179_v32, %v4180_v48 }
 0x226   : > { %v2596_v3 = vsel %vm11077_vm1, %v11957_v55, %v16363_v53  ;;  %v16365_v2 = vrot.slane %v16364_v42, 5  ;;  %v4186_v55 = vrot.slane %v13181_v12, 5  ;;  %v4189_v9 = vrot.slane %v13183_v61, 5  ;;  %v13247_v44 = vld [vmem:[#allocation3 + $0x64] sm:$0xf]  ;;  %v16367_v24 = vld [vmem:[#allocation40_spill] sm:$0xff]  ;;  %4628 = vmatprep.subr.bf16.mxu1 %v16350_v49  ;;  %3501 = vmatmul.mubr.bf16.gmra.mxu0 %v9238_v20 }
 0x227   : > { %2684 = vst.msk [vmem:[#allocation4 + $0x7c] sm:$0xf] %vm1144_vm14, %v2596_v3  ;;  %v2609_v4 = vrot.slane %v2607_v38, 4  ;;  %v13245_v29 = vrot.slane %v2610_v63, 4  ;;  %v16366_v19 = vrot.slane %v12110_v35, 5  ;;  %v16368_v23 = vld [vmem:[#allocation43_spill] sm:$0xff]  ;;  %v4184_v37 = vsel %vm11077_vm1, %v4182_v51, %v4183_v41  ;;  %9274 = vmatprep.mubr.msk.bf16.mxu0 %vm2961_vm2, %v9241_v50 }
 0x228   : > { %v2593_v17 = vsel %vm11077_vm1, %v2591_v47, %v16365_v2  ;;  %1692 = vst.msk [vmem:[#allocation4 + $0xa8] sm:$0xf] %vm1670_vm12, %v1623_v16  ;;  %v2602_v31 = vsel %vm11077_vm1, %v16368_v23, %v2601_v11  ;;  %v13265_v13 = vld [vmem:[#allocation3 + $0x60] sm:$0xf]  ;;  %v4192_v35 = vrot.slane %v13228_v62, 5  ;;  %v4185_v59 = vrot.slane %v4183_v41, 4  ;;  %v1625_v23 = vpop.permute.xlu0 %1624 }
 0x229   : > { %2683 = vst.msk [vmem:[#allocation4 + $0x74] sm:$0xf] %vm1144_vm14, %v2593_v17  ;;  %v2599_v33 = vsel %vm11077_vm1, %v16367_v24, %v16366_v19  ;;  %2686 = vst.msk [vmem:[#allocation4 + $0x8c] sm:$0xf] %vm1144_vm14, %v2602_v31  ;;  %v13268_v39 = vld [vmem:[#allocation3 + $0x64] sm:$0xf]  ;;  %v2611_v18 = vsel %vm11077_vm1, %v2609_v4, %v2610_v63  ;;  %4629 = vmatpush2.bf16.msra.mxu1 %v10478_v57 }
 0x22a   : > { %2685 = vst.msk [vmem:[#allocation4 + $0x84] sm:$0xf] %vm1144_vm14, %v2599_v33  ;;  %v2603_v43 = vrot.slane %v2601_v11, 4  ;;  %v16369_v34 = vld [vmem:[#allocation42_spill] sm:$0xff]  ;;  %v3578_v60 = vld [vmem:[#allocation3 + $0x4c] sm:$0xf]  ;;  %4630 = vmatprep.subr.bf16.mxu1 %v16350_v49  ;;  %v4187_v63 = vsel %vm11077_vm1, %v4185_v59, %v4186_v55  ;;  %v9243_v33 = vcombine.high %v13179_v27, %v13161_v36 }
 0x22b   : > { %v2608_v30 = vsel %vm11077_vm1, %v16369_v34, %v2607_v38  ;;  %v3577_v26 = vld [vmem:[#allocation3 + $0x48] sm:$0xf]  ;;  %v2711_v1 = vld [vmem:[#allocation4 + $0x60] sm:$0xff]  ;;  %v2712_v0 = vld [vmem:[#allocation4 + $0x68] sm:$0xff]  ;;  %v4188_v25 = vrot.slane %v4186_v55, 4  ;;  %v2405_v38 = vpop.permute.xlu1 %2404  ;;  %v4191_v11 = vrot.slane %v4189_v9, 4 }
 0x22c   : > { %v10457_v14 = vld [vmem:[#allocation4 + $0x64] ss:$8 sps:$4 sm:$0xff]   ;;  %2474 = vst.msk [vmem:[#allocation4 + $0x90] sm:$0xf] %vm1670_vm12, %v2403_v7  ;;  %v13295_v58 = vld [vmem:[#allocation3 + $0x68] sm:$0xf]  ;;  %v9179_v15 = vcombine.low %v2711_v1, %v2712_v0 }
 0x22d   : > { %2688 = vst.msk [vmem:[#allocation4 + $0x9c] sm:$0xf] %vm1144_vm14, %v2608_v30  ;;  %4275 = vst.msk [vmem:[#allocation4 + $0x64] sm:$0xf] %vm1144_vm14, %v4181_v52  ;;  %v4194_v21 = vrot.slane %v4192_v35, 4  ;;  %v4195_v48 = vrot.slane %v13265_v13, 5  ;;  %9215 = vmatprep.mubr.msk.bf16.mxu1 %vm2961_vm2, %v10457_v14  ;;  %v4190_v51 = vsel %vm11077_vm1, %v4188_v25, %v4189_v9  ;;  %v4193_v61 = vsel %vm11077_vm1, %v4191_v11, %v4192_v35 }
 0x22e   : > { %4276 = vst.msk [vmem:[#allocation4 + $0x6c] sm:$0xf] %vm1144_vm14, %v4184_v37  ;;  %v16370_v22 = vld [vmem:[#allocation41_spill] sm:$0xff]  ;;  %v4198_v41 = vrot.slane %v13268_v39, 5  ;;  %3608 = vst.msk [vmem:[#allocation4 + $0x68] sm:$0xf] %vm1144_vm14, %v3578_v60  ;;  %3088 = vmatmul.mubr.bf16.gmra.mxu1 %v9179_v15  ;;  %v2407_v60 = vpop.permute.xlu0 %2406  ;;  %v9242_v52 = vcombine.low %v13179_v27, %v13161_v36 }
 0x22f   : > { %2475 = vst.msk [vmem:[#allocation4 + $0x98] sm:$0xf] %vm1670_vm12, %v2405_v38  ;;  %v16371_v10 = vrot.slane %v16370_v22, 5  ;;  %v2613_v5 = vrot.slane %v13247_v44, 5  ;;  %v1992_v47 = vld [vmem:[#allocation3 + $0x60] sm:$0xf]  ;;  %v4196_v17 = vsel %vm11077_vm1, %v4194_v21, %v4195_v48  ;;  %v1627_v19 = vpop.permute.xlu1 %1626 }
 0x230   : > { %3607 = vst.msk [vmem:[#allocation4 + $0x60] sm:$0xf] %vm1144_vm14, %v3577_v26  ;;  %v1991_v40 = vld [vmem:[#allocation3 + $0x5c] sm:$0xf]  ;;  %v13311_v8 = vld [vmem:[#allocation4 + $0xa0] sm:$0xff]  ;;  %v4197_v55 = vrot.slane %v4195_v48, 4 }
 0x231   : > { %v2605_v32 = vsel %vm11077_vm1, %v2603_v43, %v16371_v10  ;;  %v10481_v45 = vld [vmem:[%s16077_s3 + $0x100] sm:$0xff]   ;;  %2021 = vst.msk [vmem:[#allocation4 + $0xa0] sm:$0xf] %vm1144_vm14, %v1991_v40  ;;  %v13322_v53 = vld [vmem:[#allocation3 + $0x68] sm:$0xf]  ;;  %v13334_v42 = vld [vmem:[#allocation4 + $0xa8] sm:$0xff]  ;;  %v2614_v49 = vsel %vm11077_vm1, %v13245_v29, %v2613_v5  ;;  %v9240_v29 = vcombine.low %v13088_v54, %v13100_v46 }
 0x232   : > { %2687 = vst.msk [vmem:[#allocation4 + $0x94] sm:$0xf] %vm1144_vm14, %v2605_v32  ;;  %2689 = vst.msk [vmem:[#allocation4 + $0xa4] sm:$0xf] %vm1144_vm14, %v2611_v18  ;;  %v3580_v3 = vld [vmem:[#allocation3 + $0x54] sm:$0xf]  ;;  %4631 = vmatpush2.bf16.msra.mxu1 %v10481_v45  ;;  %v4199_v35 = vsel %vm11077_vm1, %v4197_v55, %v4198_v41  ;;  %v9245_v11 = vcombine.high %v13311_v8, %v13334_v42  ;;  %v1629_v32 = vpop.permute.xlu0 %1628 }
 0x233   : > { %v3579_v62 = vld [vmem:[#allocation3 + $0x50] sm:$0xf]  ;;  %v3582_v2 = vld [vmem:[#allocation3 + $0x5c] sm:$0xf]  ;;  %2022 = vst.msk [vmem:[#allocation4 + $0xa8] sm:$0xf] %vm1144_vm14, %v1992_v47  ;;  %3509 = vmatmul.mubr.bf16.gmra.mxu0 %v9240_v29  ;;  %v2409_v34 = vpop.permute.xlu1 %2408 }
 0x234   : > { %v10459_v28 = vld [vmem:[#allocation4 + $0x74] ss:$8 sps:$4 sm:$0xff]   ;;  %v10462_v12 = vld [vmem:[#allocation4 + $0x84] ss:$8 sps:$4 sm:$0xff]   ;;  %v4200_v9 = vrot.slane %v4198_v41, 4  ;;  %v2616_v4 = vrot.slane %v13295_v58, 5  ;;  %9275 = vmatprep.mubr.msk.bf16.mxu0 %vm2961_vm2, %v9243_v33 }
 0x235   : > { %4277 = vst.msk [vmem:[#allocation4 + $0x74] sm:$0xf] %vm1144_vm14, %v4187_v63  ;;  %4278 = vst.msk [vmem:[#allocation4 + $0x7c] sm:$0xf] %vm1144_vm14, %v4190_v51  ;;  %v3581_v16 = vld [vmem:[#allocation3 + $0x58] sm:$0xf]  ;;  %9216 = vmatprep.mubr.msk.bf16.mxu1 %vm2961_vm2, %v10459_v28 }
 0x236   : > { %2690 = vst.msk [vmem:[#allocation4 + $0xac] sm:$0xf] %vm1144_vm14, %v2614_v49  ;;  %3610 = vst.msk [vmem:[#allocation4 + $0x78] sm:$0xf] %vm1144_vm14, %v3580_v3  ;;  %v13359_v24 = vld [vmem:[#allocation3 + $0x6c] sm:$0xf]  ;;  %v2411_v51 = vpop.permute.xlu0 %2410  ;;  %v9244_v49 = vcombine.low %v13311_v8, %v13334_v42 }
 0x237   : > { %3609 = vst.msk [vmem:[#allocation4 + $0x70] sm:$0xf] %vm1144_vm14, %v3579_v62  ;;  %4279 = vst.msk [vmem:[#allocation4 + $0x84] sm:$0xf] %vm1144_vm14, %v4193_v61  ;;  %v4201_v54 = vrot.slane %v13322_v53, 5  ;;  %v2618_v59 = vrot.slane %v2616_v4, 4  ;;  %v1631_v10 = vpop.permute.xlu1 %1630 }
 0x238   : > { %4280 = vst.msk [vmem:[#allocation4 + $0x8c] sm:$0xf] %vm1144_vm14, %v4196_v17  ;;  %3612 = vst.msk [vmem:[#allocation4 + $0x88] sm:$0xf] %vm1144_vm14, %v3582_v2  ;;  %v4101_v20 = vld [vmem:[#allocation3 + $0x6c] sm:$0xf] }
 0x239   : > { %3611 = vst.msk [vmem:[#allocation4 + $0x80] sm:$0xf] %vm1144_vm14, %v3581_v16  ;;  %v10465_v13 = vld [vmem:[#allocation4 + $0x94] ss:$8 sps:$4 sm:$0xff]   ;;  %v4202_v39 = vsel %vm11077_vm1, %v4200_v9, %v4201_v54  ;;  %v3584_v57 = vld [vmem:[#allocation3 + $0x64] sm:$0xf] }
 0x23a   : > { %1694 = vst.msk [vmem:[#allocation4 + $0xb8] sm:$0xf] %vm1670_vm12, %v1627_v19  ;;  %1693 = vst.msk [vmem:[#allocation4 + $0xb0] sm:$0xf] %vm1670_vm12, %v1625_v23  ;;  %v3583_v50 = vld [vmem:[#allocation3 + $0x60] sm:$0xf]  ;;  %v1633_v33 = vpop.permute.xlu0 %1632 }
 0x23b   : > { %v2619_v7 = vrot.slane %v13359_v24, 5  ;;  %4281 = vst.msk [vmem:[#allocation4 + $0x94] sm:$0xf] %vm1144_vm14, %v4199_v35  ;;  %4282 = vst.msk [vmem:[#allocation4 + $0x9c] sm:$0xf] %vm1144_vm14, %v4202_v39  ;;  %v2615_v30 = vrot.slane %v2613_v5, 4  ;;  %3517 = vmatmul.mubr.bf16.gmra.mxu0 %v9242_v52 }
 0x23c   : > { %3614 = vst.msk [vmem:[#allocation4 + $0x98] sm:$0xf] %vm1144_vm14, %v3584_v57  ;;  %3613 = vst.msk [vmem:[#allocation4 + $0x90] sm:$0xf] %vm1144_vm14, %v3583_v50  ;;  %v4204_v26 = vrot.slane %v4101_v20, 5  ;;  %v4203_v36 = vrot.slane %v4201_v54, 4  ;;  %9276 = vmatprep.mubr.msk.bf16.mxu0 %vm2961_vm2, %v9245_v11 }
 0x23d   : > { %v2714_v31 = vld [vmem:[#allocation4 + $0x78] sm:$0xff]  ;;  %2477 = vst.msk [vmem:[#allocation4 + $0xa8] sm:$0xf] %vm1670_vm12, %v2409_v34  ;;  %2476 = vst.msk [vmem:[#allocation4 + $0xa0] sm:$0xf] %vm1670_vm12, %v2407_v60  ;;  %v2620_v44 = vsel %vm11077_vm1, %v2618_v59, %v2619_v7  ;;  %v2617_v58 = vsel %vm11077_vm1, %v2615_v30, %v2616_v4  ;;  %v2621_v62 = vrot.slane %v2619_v7, 4 }
 0x23e   : > { %v2713_v46 = vld [vmem:[#allocation4 + $0x70] sm:$0xff]  ;;  %v13380_v1 = vld [vmem:[#allocation3 + $0x70] sm:$0xf]  ;;  %v4206_v27 = vrot.slane %v4204_v26, 4  ;;  %1696 = vst.msk [vmem:[#allocation4 + $0xc8] sm:$0xf] %vm1670_vm12, %v1631_v10  ;;  %v4205_v45 = vsel %vm11077_vm1, %v4203_v36, %v4204_v26  ;;  %v2415_v59 = vpop.permute.xlu0 %2414 }
 0x23f   : > { %v9181_v43 = vcombine.low %v2713_v46, %v2714_v31  ;;  %v1994_v0 = vld [vmem:[#allocation3 + $0x68] sm:$0xf]  ;;  %v2511_v37 = vld [vmem:[#allocation3 + $0x70] sm:$0xf]  ;;  %v1993_v25 = vld [vmem:[#allocation3 + $0x64] sm:$0xf] }
 0x240   : > { %v2715_v21 = vld [vmem:[#allocation4 + $0x80] sm:$0xff]  ;;  %v2716_v48 = vld [vmem:[#allocation4 + $0x88] sm:$0xff]  ;;  %v4207_v22 = vrot.slane %v13380_v1, 5  ;;  %1695 = vst.msk [vmem:[#allocation4 + $0xc0] sm:$0xf] %vm1670_vm12, %v1629_v32  ;;  %v2622_v41 = vrot.slane %v2511_v37, 5 }
 0x241   : > { %3096 = vmatmul.mubr.bf16.gmra.mxu1 %v9181_v43  ;;  %v13383_v14 = vld [vmem:[#allocation4 + $0xb8] sm:$0xff]  ;;  %v13390_v38 = vld [vmem:[#allocation4 + $0xb0] sm:$0xff]  ;;  %v2512_v5 = vld [vmem:[#allocation3 + $0x74] sm:$0xf]  ;;  %v9183_v47 = vcombine.low %v2715_v21, %v2716_v48  ;;  %1697 = vst.msk [vmem:[#allocation4 + $0xd0] sm:$0xf] %vm1670_vm12, %v1633_v33 }
 0x242   : > { %9217 = vmatprep.mubr.msk.bf16.mxu1 %vm2961_vm2, %v10462_v12  ;;  %2024 = vst.msk [vmem:[#allocation4 + $0xb8] sm:$0xf] %vm1144_vm14, %v1994_v0  ;;  %2692 = vst.msk [vmem:[#allocation4 + $0xbc] sm:$0xf] %vm1144_vm14, %v2620_v44  ;;  %v13403_v40 = vld [vmem:[#allocation3 + $0x74] sm:$0xf]  ;;  %v4208_v15 = vsel %vm11077_vm1, %v4206_v27, %v4207_v22  ;;  %v2413_v12 = vpop.permute.xlu1 %2412  ;;  %v9247_v61 = vcombine.high %v13390_v38, %v13383_v14  ;;  %v2623_v19 = vsel %vm11077_vm1, %v2621_v62, %v2622_v41  ;;  %v1637_v48 = vpop.permute.xlu0 %1636 }
 0x243   : > { %2023 = vst.msk [vmem:[#allocation4 + $0xb0] sm:$0xf] %vm1144_vm14, %v1993_v25  ;;  %2691 = vst.msk [vmem:[#allocation4 + $0xb4] sm:$0xf] %vm1144_vm14, %v2617_v58  ;;  %v10468_v18 = vld [vmem:[#allocation4 + $0xa4] ss:$8 sps:$4 sm:$0xff]   ;;  %3525 = vmatmul.mubr.bf16.gmra.mxu0 %v9244_v49  ;;  %v9246_v7 = vcombine.low %v13390_v38, %v13383_v14 }
 0x244   : > { %v3586_v53 = vld [vmem:[#allocation3 + $0x6c] sm:$0xf]  ;;  %v3585_v3 = vld [vmem:[#allocation3 + $0x68] sm:$0xf]  ;;  %v2624_v28 = vrot.slane %v2622_v41, 4  ;;  %v2625_v2 = vrot.slane %v2512_v5, 5  ;;  %9277 = vmatprep.mubr.msk.bf16.mxu0 %vm2961_vm2, %v9247_v61 }
 0x245   : > { %4283 = vst.msk [vmem:[#allocation4 + $0xa4] sm:$0xf] %vm1144_vm14, %v4205_v45  ;;  %4284 = vst.msk [vmem:[#allocation4 + $0xac] sm:$0xf] %vm1144_vm14, %v4208_v15  ;;  %v13413_v63 = vld [vmem:[#allocation3 + $0x78] sm:$0xf] }
 0x246   : > { %3616 = vst.msk [vmem:[#allocation4 + $0xa8] sm:$0xf] %vm1144_vm14, %v3586_v53  ;;  %3615 = vst.msk [vmem:[#allocation4 + $0xa0] sm:$0xf] %vm1144_vm14, %v3585_v3  ;;  %v4210_v17 = vrot.slane %v13403_v40, 5  ;;  %v2717_v55 = vld [vmem:[#allocation4 + $0x90] sm:$0xff]  ;;  %v2626_v24 = vsel %vm11077_vm1, %v2624_v28, %v2625_v2  ;;  %v1635_v31 = vpop.permute.xlu1 %1634  ;;  %v2419_v62 = vpop.permute.xlu0 %2418 }
 0x247   : > { %2478 = vst.msk [vmem:[#allocation4 + $0xb0] sm:$0xf] %vm1670_vm12, %v2411_v51  ;;  %v2718_v9 = vld [vmem:[#allocation4 + $0x98] sm:$0xff]  ;;  %2479 = vst.msk [vmem:[#allocation4 + $0xb8] sm:$0xf] %vm1670_vm12, %v2413_v12  ;;  %v2628_v4 = vrot.slane %v13413_v63, 5 }
 0x248   : > { %v1996_v16 = vld [vmem:[#allocation3 + $0x70] sm:$0xf]  ;;  %v13424_v29 = vld [vmem:[#allocation4 + $0xc8] sm:$0xff]  ;;  %v1995_v8 = vld [vmem:[#allocation3 + $0x6c] sm:$0xf]  ;;  %v9185_v46 = vcombine.low %v2717_v55, %v2718_v9  ;;  %v4209_v20 = vrot.slane %v4207_v22, 4 }
 0x249   : > { %3104 = vmatmul.mubr.bf16.gmra.mxu1 %v9183_v47  ;;  %v13426_v42 = vld [vmem:[#allocation4 + $0xc0] sm:$0xff]  ;;  %2026 = vst.msk [vmem:[#allocation4 + $0xc8] sm:$0xf] %vm1144_vm14, %v1996_v16  ;;  %2694 = vst.msk [vmem:[#allocation4 + $0xcc] sm:$0xf] %vm1144_vm14, %v2626_v24  ;;  %v2630_v39 = vrot.slane %v2628_v4, 4 }
 0x24a   : > { %9218 = vmatprep.mubr.msk.bf16.mxu1 %vm2961_vm2, %v10465_v13  ;;  %2025 = vst.msk [vmem:[#allocation4 + $0xc0] sm:$0xf] %vm1144_vm14, %v1995_v8  ;;  %v4104_v23 = vld [vmem:[#allocation3 + $0x78] sm:$0xf]  ;;  %2693 = vst.msk [vmem:[#allocation4 + $0xc4] sm:$0xf] %vm1144_vm14, %v2623_v19  ;;  %v2417_v60 = vpop.permute.xlu1 %2416  ;;  %v9249_v26 = vcombine.high %v13426_v42, %v13424_v29  ;;  %v4211_v0 = vsel %vm11077_vm1, %v4209_v20, %v4210_v17  ;;  %v9248_v28 = vcombine.low %v13426_v42, %v13424_v29  ;;  %v2423_v19 = vpop.permute.xlu0 %2422 }
 0x24b   : > { %v2514_v54 = vld [vmem:[#allocation3 + $0x7c] sm:$0xf]  ;;  %v4212_v13 = vrot.slane %v4210_v17, 4  ;;  %1698 = vst.msk [vmem:[#allocation4 + $0xd8] sm:$0xf] %vm1670_vm12, %v1635_v31  ;;  %v4213_v57 = vrot.slane %v4104_v23, 5  ;;  %3533 = vmatmul.mubr.bf16.gmra.mxu0 %v9246_v7 }
 0x24c   : > { %v13439_v35 = vld [vmem:[#allocation3 + $0x7c] sm:$0xf]  ;;  %v2631_v50 = vrot.slane %v2514_v54, 5  ;;  %v13444_v43 = vld [vmem:[#allocation3 + $0x80] sm:$0xf]  ;;  %v2627_v34 = vrot.slane %v2625_v2, 4  ;;  %9278 = vmatprep.mubr.msk.bf16.mxu0 %vm2961_vm2, %v9249_v26 }
 0x24d   : > { %v3588_v30 = vld [vmem:[#allocation3 + $0x74] sm:$0xf]  ;;  %2480 = vst.msk [vmem:[#allocation4 + $0xc0] sm:$0xf] %vm1670_vm12, %v2415_v59  ;;  %v10471_v1 = vld [vmem:[#allocation4 + $0xb4] ss:$8 sps:$4 sm:$0xff]   ;;  %v4214_v52 = vsel %vm11077_vm1, %v4212_v13, %v4213_v57 }
 0x24e   : > { %v4216_v44 = vrot.slane %v13439_v35, 5  ;;  %v3587_v14 = vld [vmem:[#allocation3 + $0x70] sm:$0xf]  ;;  %v2719_v37 = vld [vmem:[#allocation4 + $0xa0] sm:$0xff]  ;;  %v2720_v25 = vld [vmem:[#allocation4 + $0xa8] sm:$0xff]  ;;  %v4219_v36 = vrot.slane %v13444_v43, 5  ;;  %v2629_v27 = vsel %vm11077_vm1, %v2627_v34, %v2628_v4  ;;  %v1639_v41 = vpop.permute.xlu1 %1638  ;;  %v2632_v40 = vsel %vm11077_vm1, %v2630_v39, %v2631_v50 }
 0x24f   : > { %2481 = vst.msk [vmem:[#allocation4 + $0xc8] sm:$0xf] %vm1670_vm12, %v2417_v60  ;;  %v2515_v38 = vld [vmem:[#allocation3 + $0x80] sm:$0xf]  ;;  %v2516_v11 = vld [vmem:[#allocation3 + $0x84] sm:$0x1]  ;;  %v9187_v32 = vcombine.low %v2719_v37, %v2720_v25 }
 0x250   : > { %4285 = vst.msk [vmem:[#allocation4 + $0xb4] sm:$0xf] %vm1144_vm14, %v4211_v0  ;;  %4286 = vst.msk [vmem:[#allocation4 + $0xbc] sm:$0xf] %vm1144_vm14, %v4214_v52  ;;  %v1997_v58 = vld [vmem:[#allocation3 + $0x74] sm:$0xf] }
 0x251   : > { %3112 = vmatmul.mubr.bf16.gmra.mxu1 %v9185_v46  ;;  %3618 = vst.msk [vmem:[#allocation4 + $0xb8] sm:$0xf] %vm1144_vm14, %v3588_v30  ;;  %3617 = vst.msk [vmem:[#allocation4 + $0xb0] sm:$0xf] %vm1144_vm14, %v3587_v14  ;;  %v13460_v21 = vld [vmem:[#allocation4 + $0xd0] sm:$0xff]  ;;  %v4215_v5 = vrot.slane %v4213_v57, 4 }
 0x252   : > { %9219 = vmatprep.mubr.msk.bf16.mxu1 %vm2961_vm2, %v10468_v18  ;;  %v1998_v22 = vld [vmem:[#allocation3 + $0x78] sm:$0xf]  ;;  %v13465_v10 = vld [vmem:[#allocation4 + $0xd8] sm:$0xff]  ;;  %2027 = vst.msk [vmem:[#allocation4 + $0xd0] sm:$0xf] %vm1144_vm14, %v1997_v58  ;;  %v4218_v47 = vrot.slane %v4216_v44, 4  ;;  %v2421_v51 = vpop.permute.xlu1 %2420 }
 0x253   : > { %1699 = vst.msk [vmem:[#allocation4 + $0xe0] sm:$0xf] %vm1670_vm12, %v1637_v48  ;;  %v2634_v18 = vrot.slane %v2515_v38, 5  ;;  %1700 = vst.msk [vmem:[#allocation4 + $0xe8] sm:$0xf] %vm1670_vm12, %v1639_v41  ;;  %v2633_v15 = vrot.slane %v2631_v50, 4  ;;  %v9251_v49 = vcombine.high %v13460_v21, %v13465_v10  ;;  %v4217_v12 = vsel %vm11077_vm1, %v4215_v5, %v4216_v44  ;;  %3541 = vmatmul.mubr.bf16.gmra.mxu0 %v9248_v28  ;;  %v3961_v50 = vpop.permute.xlu0 %3960 }
 0x254   : > { %2695 = vst.msk [vmem:[#allocation4 + $0xd4] sm:$0xf] %vm1144_vm14, %v2629_v27  ;;  %2028 = vst.msk [vmem:[#allocation4 + $0xd8] sm:$0xf] %vm1144_vm14, %v1998_v22  ;;  %v4107_v45 = vld [vmem:[#allocation3 + $0x84] sm:$0xf]  ;;  %v4220_v61 = vsel %vm11077_vm1, %v4218_v47, %v4219_v36  ;;  %v9250_v59 = vcombine.low %v13460_v21, %v13465_v10 }
 0x255   : > { %2696 = vst.msk [vmem:[#allocation4 + $0xdc] sm:$0xf] %vm1144_vm14, %v2632_v40  ;;  %v2636_v53 = vrot.slane %v2634_v18, 4  ;;  %v2637_v3 = vrot.slane %v2516_v11, 5  ;;  %v3590_v63 = vld [vmem:[#allocation3 + $0x7c] sm:$0xf]  ;;  %9279 = vmatprep.mubr.msk.bf16.mxu0 %vm2961_vm2, %v9251_v49  ;;  %v2635_v24 = vsel %vm11077_vm1, %v2633_v15, %v2634_v18 }
 0x256   : > { %2482 = vst.msk [vmem:[#allocation4 + $0xd0] sm:$0xf] %vm1670_vm12, %v2419_v62  ;;  %v10473_v2 = vld [vmem:[#allocation4 + $0xc4] ss:$8 sps:$4 sm:$0xff]   ;;  %v4222_v17 = vrot.slane %v4107_v45, 5  ;;  %v2425_v46 = vpop.permute.xlu1 %2424  ;;  %v4221_v31 = vrot.slane %v4219_v36, 4 }
 0x257   : > { %v3589_v55 = vld [vmem:[#allocation3 + $0x78] sm:$0xf]  ;;  %2483 = vst.msk [vmem:[#allocation4 + $0xd8] sm:$0xf] %vm1670_vm12, %v2421_v51  ;;  %v4108_v4 = vld [vmem:[#allocation3 + $0x88] sm:$0xf]  ;;  %v2638_v13 = vsel %vm11077_vm1, %v2636_v53, %v2637_v3  ;;  %v3965_v25 = vpop.permute.xlu0 %3964 }
 0x258   : > { %v2721_v9 = vld [vmem:[#allocation4 + $0xb0] sm:$0xff]  ;;  %v2722_v16 = vld [vmem:[#allocation4 + $0xb8] sm:$0xff]  ;;  %4287 = vst.msk [vmem:[#allocation4 + $0xc4] sm:$0xf] %vm1144_vm14, %v4217_v12  ;;  %4288 = vst.msk [vmem:[#allocation4 + $0xcc] sm:$0xf] %vm1144_vm14, %v4220_v61  ;;  %v4223_v30 = vsel %vm11077_vm1, %v4221_v31, %v4222_v17 }
 0x259   : > { %3120 = vmatmul.mubr.bf16.gmra.mxu1 %v9187_v32  ;;  %3620 = vst.msk [vmem:[#allocation4 + $0xc8] sm:$0xf] %vm1144_vm14, %v3590_v63  ;;  %3619 = vst.msk [vmem:[#allocation4 + $0xc0] sm:$0xf] %vm1144_vm14, %v3589_v55  ;;  %v4109_v29 = vld [vmem:[#allocation3 + $0x8c] sm:$0xf]  ;;  %v9189_v54 = vcombine.low %v2721_v9, %v2722_v16 }
 0x25a   : > { %9220 = vmatprep.mubr.msk.bf16.mxu1 %vm2961_vm2, %v10471_v1  ;;  %v1999_v8 = vld [vmem:[#allocation3 + $0x7c] sm:$0xf]  ;;  %v13491_v42 = vld [vmem:[#allocation4 + $0xe0] sm:$0xff]  ;;  %v2000_v33 = vld [vmem:[#allocation3 + $0x80] sm:$0xf]  ;;  %v4224_v20 = vrot.slane %v4222_v17, 4  ;;  %v3963_v7 = vpop.permute.xlu1 %3962 }
 0x25b   : > { %v1946_v23 = vld [vmem:[#allocation4 + $0xe8] sm:$0xff]  ;;  %2029 = vst.msk [vmem:[#allocation4 + $0xe0] sm:$0xf] %vm1144_vm14, %v1999_v8  ;;  %2697 = vst.msk [vmem:[#allocation4 + $0xe4] sm:$0xf] %vm1144_vm14, %v2635_v24  ;;  %v4225_v35 = vrot.slane %v4108_v4, 5  ;;  %3549 = vmatmul.mubr.bf16.gmra.mxu0 %v9250_v59  ;;  %v3969_v22 = vpop.permute.xlu0 %3968 }
 0x25c   : > { %2030 = vst.msk [vmem:[#allocation4 + $0xe8] sm:$0xf] %vm1144_vm14, %v2000_v33  ;;  %2698 = vst.msk [vmem:[#allocation4 + $0xec] sm:$0xf] %vm1144_vm14, %v2638_v13  ;;  %v4228_v39 = vrot.slane %v4109_v29, 5  ;;  %v9253_v43 = vcombine.high %v13491_v42, %v1946_v23  ;;  %v9252_v10 = vcombine.low %v13491_v42, %v1946_v23  ;;  %v10523_v16 = vld [vmem:[%s16079_s5 + $0x138] sm:$0xff]  }
 0x25d   : > { %2484 = vst.msk [vmem:[#allocation4 + $0xe0] sm:$0xf] %vm1670_vm12, %v2423_v19  ;;  %2485 = vst.msk [vmem:[#allocation4 + $0xe8] sm:$0xf] %vm1670_vm12, %v2425_v46  ;;  %v4110_v57 = vld [vmem:[#allocation3 + $0x90] sm:$0x1]  ;;  %v4226_v60 = vsel %vm11077_vm1, %v4224_v20, %v4225_v35  ;;  %9852 = vmatprep.subr.bf16.mxu0 %v10523_v16 }
 0x25e   : > { %4050 = vst.msk [vmem:[#allocation4] sm:$0xf] %vm1670_vm12, %v3961_v50  ;;  %v10476_v34 = vld [vmem:[#allocation4 + $0xd4] ss:$8 sps:$4 sm:$0xff]   ;;  %v3592_v26 = vld [vmem:[#allocation3 + $0x84] sm:$0xf]  ;;  %9280 = vmatprep.mubr.msk.bf16.mxu0 %vm2961_vm2, %v9253_v43  ;;  %v3967_v11 = vpop.permute.xlu1 %3966 }
 0x25f   : > { %v3591_v1 = vld [vmem:[#allocation3 + $0x80] sm:$0xf]  ;;  %4051 = vst.msk [vmem:[#allocation4 + $0x8] sm:$0xf] %vm1670_vm12, %v3963_v7  ;;  %v4227_v44 = vrot.slane %v4225_v35, 4  ;;  %v4230_v14 = vrot.slane %v4228_v39, 4  ;;  %v3973_v47 = vpop.permute.xlu0 %3972 }
 0x260   : > { %v2723_v0 = vld [vmem:[#allocation4 + $0xc0] sm:$0xff]  ;;  %v2724_v52 = vld [vmem:[#allocation4 + $0xc8] sm:$0xff]  ;;  %4289 = vst.msk [vmem:[#allocation4 + $0xd4] sm:$0xf] %vm1144_vm14, %v4223_v30  ;;  %4290 = vst.msk [vmem:[#allocation4 + $0xdc] sm:$0xf] %vm1144_vm14, %v4226_v60 }
 0x261   : > { %3128 = vmatmul.mubr.bf16.gmra.mxu1 %v9189_v54  ;;  %v4231_v37 = vrot.slane %v4110_v57, 5  ;;  %3622 = vst.msk [vmem:[#allocation4 + $0xd8] sm:$0xf] %vm1144_vm14, %v3592_v26  ;;  %3621 = vst.msk [vmem:[#allocation4 + $0xd0] sm:$0xf] %vm1144_vm14, %v3591_v1  ;;  %v9191_v38 = vcombine.low %v2723_v0, %v2724_v52  ;;  %v4229_v21 = vsel %vm11077_vm1, %v4227_v44, %v4228_v39  ;;  %v10524_v4 = vld [vmem:[%s16079_s5 + $0xf8] sm:$0xff]  }
 0x262   : > { %9221 = vmatprep.mubr.msk.bf16.mxu1 %vm2961_vm2, %v10473_v2  ;;  %4052 = vst.msk [vmem:[#allocation4 + $0x10] sm:$0xf] %vm1670_vm12, %v3965_v25  ;;  %4053 = vst.msk [vmem:[#allocation4 + $0x18] sm:$0xf] %vm1670_vm12, %v3967_v11  ;;  %v3594_v36 = vld [vmem:[#allocation3 + $0x8c] sm:$0xf]  ;;  %v3971_v32 = vpop.permute.xlu1 %3970  ;;  %9853 = vmatpush3.bf16.msra.mxu0 %v10524_v4 }
 0x263   : > { %v10479_v58 = vld [vmem:[#allocation4 + $0xe4] ss:$8 sps:$4 sm:$0xff]   ;;  %v4232_v48 = vsel %vm11077_vm1, %v4230_v14, %v4231_v37  ;;  %v3593_v27 = vld [vmem:[#allocation3 + $0x88] sm:$0xf]  ;;  %3624 = vst.msk [vmem:[#allocation4 + $0xe8] sm:$0xf] %vm1144_vm14, %v3594_v36  ;;  %3557 = vmatmul.mubr.bf16.gmra.mxu0 %v9252_v10  ;;  %v3977_v45 = vpop.permute.xlu0 %3976 }
 0x264   : > { %4291 = vst.msk [vmem:[#allocation4 + $0xe4] sm:$0xf] %vm1144_vm14, %v4229_v21  ;;  %4292 = vst.msk [vmem:[#allocation4 + $0xec] sm:$0xf] %vm1144_vm14, %v4232_v48  ;;  %v10484_v63 = vld [vmem:[#allocation4 + $0x4] ss:$8 sps:$4 sm:$0xff]  }
 0x265   : > { %3623 = vst.msk [vmem:[#allocation4 + $0xe0] sm:$0xf] %vm1144_vm14, %v3593_v27  ;;  %v10485_v61 = vld [vmem:[#allocation4 + $0x14] ss:$8 sps:$4 sm:$0xff]   ;;  %v10487_v24 = vld [vmem:[#allocation4 + $0x24] ss:$8 sps:$4 sm:$0xff]  }
 0x266   : > { %4054 = vst.msk [vmem:[#allocation4 + $0x20] sm:$0xf] %vm1670_vm12, %v3969_v22  ;;  %4055 = vst.msk [vmem:[#allocation4 + $0x28] sm:$0xf] %vm1670_vm12, %v3971_v32  ;;  %v3975_v18 = vpop.permute.xlu1 %3974  ;;  %v10482_v12 = vld [vmem:[#allocation4] ss:$8 sps:$4 sm:$0xff]  }
 0x267   : > { %4056 = vst.msk [vmem:[#allocation4 + $0x30] sm:$0xf] %vm1670_vm12, %v3973_v47  ;;  %4057 = vst.msk [vmem:[#allocation4 + $0x38] sm:$0xf] %vm1670_vm12, %v3975_v18  ;;  %v3981_v28 = vpop.permute.xlu0 %3980  ;;  %v10489_v35 = vld [vmem:[#allocation4 + $0x34] ss:$8 sps:$4 sm:$0xff]  }
 0x268   : > { %v2725_v41 = vld [vmem:[#allocation4 + $0xd0] sm:$0xff]  ;;  %v2726_v5 = vld [vmem:[#allocation4 + $0xd8] sm:$0xff]  ;;  %4058 = vst.msk [vmem:[#allocation4 + $0x40] sm:$0xf] %vm1670_vm12, %v3977_v45  ;;  %4060 = vst.msk [vmem:[#allocation4 + $0x50] sm:$0xf] %vm1670_vm12, %v3981_v28 }
 0x269   : > { %3136 = vmatmul.mubr.bf16.gmra.mxu1 %v9191_v38  ;;  %v9193_v40 = vcombine.low %v2725_v41, %v2726_v5  ;;  %v4295_v9 = vld [vmem:[#allocation4 + $0x10] sm:$0xff]  ;;  %v4296_v29 = vld [vmem:[#allocation4 + $0x18] sm:$0xff]  ;;  %v10491_v30 = vld [vmem:[#allocation4 + $0x44] ss:$8 sps:$4 sm:$0xff]  }
 0x26a   : > { %9222 = vmatprep.mubr.msk.bf16.mxu1 %vm2961_vm2, %v10476_v34  ;;  %v3979_v15 = vpop.permute.xlu1 %3978  ;;  %v9308_v19 = vcombine.low %v4295_v9, %v4296_v29  ;;  %v10525_v57 = vld [vmem:[%s16079_s5 + $0x130] sm:$0xff]   ;;  %v10493_v37 = vld [vmem:[#allocation4 + $0x54] ss:$8 sps:$4 sm:$0xff]   ;;  %v10527_v11 = vld [vmem:[%s16079_s5 + $0x128] sm:$0xff]  }
 0x26b   : > { %v2728_v3 = vld [vmem:[#allocation4 + $0xe8] sm:$0xff]  ;;  %4059 = vst.msk [vmem:[#allocation4 + $0x48] sm:$0xf] %vm1670_vm12, %v3979_v15  ;;  %v3985_v2 = vpop.permute.xlu0 %3984  ;;  %9854 = vmatprep.subr.bf16.mxu0 %v10525_v57  ;;  %v10529_v27 = vld [vmem:[%s16079_s5 + $0x120] sm:$0xff]  }
 0x26c   : > { %v2727_v53 = vld [vmem:[#allocation4 + $0xe0] sm:$0xff]  ;;  %4062 = vst.msk [vmem:[#allocation4 + $0x60] sm:$0xf] %vm1670_vm12, %v3985_v2  ;;  %v10526_v50 = vld [vmem:[%s16079_s5 + $0xf0] sm:$0xff]   ;;  %v10499_v22 = vld [vmem:[#allocation4 + $0x74] ss:$8 sps:$4 sm:$0xff]  }
 0x26d   : > { %v9195_v62 = vcombine.low %v2727_v53, %v2728_v3  ;;  %v4297_v54 = vld [vmem:[#allocation4 + $0x20] sm:$0xff]  ;;  %v4298_v46 = vld [vmem:[#allocation4 + $0x28] sm:$0xff]  ;;  %9855 = vmatpush3.bf16.msra.mxu0 %v10526_v50  ;;  %v10531_v3 = vld [vmem:[%s16079_s5 + $0x118] sm:$0xff]  }
 0x26e   : > { %v3983_v51 = vpop.permute.xlu1 %3982  ;;  %v9310_v20 = vcombine.low %v4297_v54, %v4298_v46  ;;  %v4299_v59 = vld [vmem:[#allocation4 + $0x30] sm:$0xff]  ;;  %v4300_v7 = vld [vmem:[#allocation4 + $0x38] sm:$0xff]  ;;  %9856 = vmatprep.subr.bf16.mxu0 %v10527_v11  ;;  %v10496_v48 = vld [vmem:[#allocation4 + $0x64] ss:$8 sps:$4 sm:$0xff]  }
 0x26f   : > { %4061 = vst.msk [vmem:[#allocation4 + $0x58] sm:$0xf] %vm1670_vm12, %v3983_v51  ;;  %v3989_v55 = vpop.permute.xlu0 %3988  ;;  %v9312_v34 = vcombine.low %v4299_v59, %v4300_v7  ;;  %v4301_v1 = vld [vmem:[#allocation4 + $0x40] sm:$0xff]  ;;  %v10505_v28 = vld [vmem:[#allocation4 + $0x94] ss:$8 sps:$4 sm:$0xff]  }
 0x270   : > { %4064 = vst.msk [vmem:[#allocation4 + $0x70] sm:$0xf] %vm1670_vm12, %v3989_v55  ;;  %v10530_v32 = vld [vmem:[%s16079_s5 + $0xe0] sm:$0xff]  }
 0x271   : > { %3144 = vmatmul.mubr.bf16.gmra.mxu1 %v9193_v40  ;;  %v10502_v40 = vld [vmem:[#allocation4 + $0x84] ss:$8 sps:$4 sm:$0xff]  }
 0x272   : > { %9223 = vmatprep.mubr.msk.bf16.mxu1 %vm2961_vm2, %v10479_v58  ;;  %v3987_v49 = vpop.permute.xlu1 %3986  ;;  %v4302_v0 = vld [vmem:[#allocation4 + $0x48] sm:$0xff] }
 0x273   : > { %4063 = vst.msk [vmem:[#allocation4 + $0x68] sm:$0xf] %vm1670_vm12, %v3987_v49  ;;  %v9314_v14 = vcombine.low %v4301_v1, %v4302_v0  ;;  %v10528_v58 = vld [vmem:[%s16079_s5 + $0xe8] sm:$0xff]  }
 0x274   : > { %v3993_v42 = vpop.permute.xlu0 %3992  ;;  %9857 = vmatpush3.bf16.msra.mxu0 %v10528_v58  ;;  %v10517_v58 = vld [vmem:[#allocation4 + $0xd4] ss:$8 sps:$4 sm:$0xff]  }
 0x275   : > { %4066 = vst.msk [vmem:[#allocation4 + $0x80] sm:$0xf] %vm1670_vm12, %v3993_v42  ;;  %9858 = vmatprep.subr.bf16.mxu0 %v10529_v27 }
 0x276   : > { %v3991_v17 = vpop.permute.xlu1 %3990  ;;  %v10495_v21 = vld [vmem:[#allocation4 + $0x50] ss:$8 sps:$4 sm:$0xff]  }
 0x277   : > { %4065 = vst.msk [vmem:[#allocation4 + $0x78] sm:$0xf] %vm1670_vm12, %v3991_v17  ;;  %v10508_v17 = vld [vmem:[#allocation4 + $0xa4] ss:$8 sps:$4 sm:$0xff]  }
 0x278   : > { %v3997_v23 = vpop.permute.xlu0 %3996  ;;  %9859 = vmatpush3.bf16.msra.mxu0 %v10530_v32 }
 0x279   : > { %3152 = vmatmul.mubr.bf16.gmra.mxu1 %v9195_v62  ;;  %4068 = vst.msk [vmem:[#allocation4 + $0x90] sm:$0xf] %vm1670_vm12, %v3997_v23  ;;  %v10532_v62 = vld [vmem:[%s16079_s5 + $0xd8] sm:$0xff]   ;;  %9860 = vmatprep.subr.bf16.mxu0 %v10531_v3 }
 0x27a   : > { %9348 = vmatprep.mubr.msk.bf16.mxu1 %vm2961_vm2, %v10484_v63  ;;  %v3995_v8 = vpop.permute.xlu1 %3994  ;;  %v10498_v36 = vld [vmem:[#allocation4 + $0x60] ss:$8 sps:$4 sm:$0xff]   ;;  %v10511_v23 = vld [vmem:[#allocation4 + $0xb4] ss:$8 sps:$4 sm:$0xff]  }
 0x27b   : > { %4067 = vst.msk [vmem:[#allocation4 + $0x88] sm:$0xf] %vm1670_vm12, %v3995_v8 }
 0x27c   : > { %9861 = vmatpush3.bf16.msra.mxu0 %v10532_v62 }
 0x27e   : > { %v3999_v33 = vpop.permute.xlu1 %3998  ;;  %v10501_v47 = vld [vmem:[#allocation4 + $0x70] ss:$8 sps:$4 sm:$0xff]  }
 0x27f   : > { %4069 = vst.msk [vmem:[#allocation4 + $0x98] sm:$0xf] %vm1670_vm12, %v3999_v33  ;;  %v4001_v13 = vpop.permute.xlu0 %4000 }
 0x280   : > { %4070 = vst.msk [vmem:[#allocation4 + $0xa0] sm:$0xf] %vm1670_vm12, %v4001_v13 }
 0x281   : > { %4633 = vmatmul.mubr.bf16.vlgmr.msra.gmra.mxu1 %v10482_v12 }
 0x282   : > { %9349 = vmatprep.mubr.msk.bf16.mxu1 %vm2961_vm2, %v10485_v61  ;;  %v4003_v31 = vpop.permute.xlu1 %4002  ;;  %v10504_v15 = vld [vmem:[#allocation4 + $0x80] ss:$8 sps:$4 sm:$0xff]  }
 0x283   : > { %4071 = vst.msk [vmem:[#allocation4 + $0xa8] sm:$0xf] %vm1670_vm12, %v4003_v31  ;;  %v4005_v43 = vpop.permute.xlu0 %4004 }
 0x284   : > { %4072 = vst.msk [vmem:[#allocation4 + $0xb0] sm:$0xf] %vm1670_vm12, %v4005_v43  ;;  %v10533_v43 = vld [vmem:[%s16079_s5 + $0x110] sm:$0xff]  }
 0x285   : > { %9862 = vmatprep.subr.bf16.mxu0 %v10533_v43 }
 0x286   : > { %v4007_v39 = vpop.permute.xlu1 %4006  ;;  %v10507_v12 = vld [vmem:[#allocation4 + $0x90] ss:$8 sps:$4 sm:$0xff]  }
 0x287   : > { %4073 = vst.msk [vmem:[#allocation4 + $0xb8] sm:$0xf] %vm1670_vm12, %v4007_v39 }
 0x289   : > { %4641 = vmatmul.mubr.bf16.gmra.mxu1 %v9308_v19 }
 0x28a   : > { %9350 = vmatprep.mubr.msk.bf16.mxu1 %vm2961_vm2, %v10487_v24  ;;  %v4011_v60 = vpop.permute.xlu1 %4010  ;;  %v4009_v26 = vpop.permute.xlu0 %4008  ;;  %v10510_v33 = vld [vmem:[#allocation4 + $0xa0] ss:$8 sps:$4 sm:$0xff]  }
 0x28b   : > { %4075 = vst.msk [vmem:[#allocation4 + $0xc8] sm:$0xf] %vm1670_vm12, %v4011_v60  ;;  %4074 = vst.msk [vmem:[#allocation4 + $0xc0] sm:$0xf] %vm1670_vm12, %v4009_v26 }
 0x28e   : > { %v4013_v44 = vpop.permute.xlu0 %4012  ;;  %v10513_v7 = vld [vmem:[#allocation4 + $0xb0] ss:$8 sps:$4 sm:$0xff]  }
 0x28f   : > { %v4015_v52 = vpop.permute.xlu1 %4014  ;;  %4076 = vst.msk [vmem:[#allocation4 + $0xd0] sm:$0xf] %vm1670_vm12, %v4013_v44 }
 0x290   : > { %4077 = vst.msk [vmem:[#allocation4 + $0xd8] sm:$0xf] %vm1670_vm12, %v4015_v52 }
 0x291   : > { %4649 = vmatmul.mubr.bf16.gmra.mxu1 %v9310_v20 }
 0x292   : > { %9351 = vmatprep.mubr.msk.bf16.mxu1 %vm2961_vm2, %v10489_v35 }
 0x296   : > { %v4019_v25 = vpop.permute.xlu1 %4018  ;;  %v3446_v10 = vpop.f32.mrf.mxu0 }
 0x297   : > { %v4017_v38 = vpop.permute.xlu0 %4016  ;;  %4079 = vst.msk [vmem:[#allocation4 + $0xe8] sm:$0xf] %vm1670_vm12, %v4019_v25 }
 0x298   : > { %4078 = vst.msk [vmem:[#allocation4 + $0xe0] sm:$0xf] %vm1670_vm12, %v4017_v38  ;;  %v3448_v41 = vpop.f32.mrf.mxu0  ;;  %v10516_v38 = vld [vmem:[#allocation4 + $0xc0] ss:$8 sps:$4 sm:$0xff]  }
 0x299   : > { %4657 = vmatmul.mubr.bf16.gmra.mxu1 %v9312_v34  ;;  %v10534_v34 = vld [vmem:[%s16079_s5 + $0xd0] sm:$0xff]  }
 0x29a   : > { %9352 = vmatprep.mubr.msk.bf16.mxu1 %vm2961_vm2, %v10491_v30  ;;  %v3449_v5 = vpop.f32.mrf.mxu0  ;;  %v10514_v30 = vld [vmem:[#allocation4 + $0xc4] ss:$8 sps:$4 sm:$0xff]   ;;  %9863 = vmatpush3.bf16.msra.mxu0 %v10534_v34 }
 0x29c   : > { %v3451_v18 = vpop.f32.mrf.mxu0 }
 0x29d   : > { %v10535_v18 = vld [vmem:[%s16079_s5 + $0x108] sm:$0xff]  }
 0x29e   : > { %9864 = vmatprep.subr.bf16.mxu0 %v10535_v18  ;;  %v13667_v18 = vld [vmem:[%s16079_s5 + $0x170] sm:$0xff]  }
 0x2a1   : > { %4665 = vmatmul.mubr.bf16.gmra.mxu1 %v9314_v14 }
 0x2a2   : > { %9353 = vmatprep.mubr.msk.bf16.mxu1 %vm2961_vm2, %v10493_v37 }
 0x2a3   : > { %v3454_v45 = vpop.f32.mrf.mxu0 }
 0x2a5   : > { %v3456_v53 = vpop.f32.mrf.mxu0 }
 0x2a7   : > { %v3457_v63 = vpop.f32.mrf.mxu0 }
 0x2a9   : > { %4673 = vmatmul.mubr.bf16.gmra.mxu1 %v10495_v21  ;;  %v3459_v51 = vpop.f32.mrf.mxu0 }
 0x2aa   : > { %9354 = vmatprep.mubr.msk.bf16.mxu1 %vm2961_vm2, %v10496_v48 }
 0x2af   : > { %v3041_v49 = vpop.f32.mrf.mxu1 }
 0x2b0   : > { %v13597_v2 = vadd.f32 %v3446_v10, %v3041_v49  ;;  %v3462_v61 = vpop.f32.mrf.mxu0  ;;  %v10522_v49 = vld [vmem:[#allocation4 + $0xe0] ss:$8 sps:$4 sm:$0xff]  }
 0x2b1   : > { %4681 = vmatmul.mubr.bf16.gmra.mxu1 %v10498_v36  ;;  %v3043_v55 = vpop.f32.mrf.mxu1 }
 0x2b2   : > { %9355 = vmatprep.mubr.msk.bf16.mxu1 %vm2961_vm2, %v10499_v22  ;;  %v3464_v9 = vpop.f32.mrf.mxu0 }
 0x2b3   : > { %v3044_v16 = vpop.f32.mrf.mxu1 }
 0x2b4   : > { %v13600_v4 = vadd.f32 %v3449_v5, %v3044_v16  ;;  %v3465_v29 = vpop.f32.mrf.mxu0 }
 0x2b5   : > { %v3046_v8 = vpop.f32.mrf.mxu1 }
 0x2b6   : > { %v3467_v42 = vpop.f32.mrf.mxu0 }
 0x2b7   : > { %v3049_v19 = vpop.f32.mrf.mxu1 }
 0x2b8   : > { %v13602_v24 = vadd.f32 %v3454_v45, %v3049_v19  ;;  %v3470_v46 = vpop.f32.mrf.mxu0  ;;  %v10536_v45 = vld [vmem:[%s16079_s5 + $0xc8] sm:$0xff]  }
 0x2b9   : > { %4689 = vmatmul.mubr.bf16.gmra.mxu1 %v10501_v47  ;;  %v3051_v54 = vpop.f32.mrf.mxu1  ;;  %v10519_v47 = vld [vmem:[#allocation4 + $0xd0] ss:$8 sps:$4 sm:$0xff]   ;;  %9865 = vmatpush3.bf16.msra.mxu0 %v10536_v45  ;;  %v13672_v45 = vld [vmem:[%s16079_s5 + $0x168] sm:$0xff]  }
 0x2ba   : > { %9356 = vmatprep.mubr.msk.bf16.mxu1 %vm2961_vm2, %v10502_v40  ;;  %v3472_v20 = vpop.f32.mrf.mxu0  ;;  %v13647_v54 = vld [vmem:[%s16079_s5 + $0x178] sm:$0xff]  }
 0x2bb   : > { %v3052_v31 = vpop.f32.mrf.mxu1  ;;  %10336 = vmatprep.subr.bf16.mxu1 %v13647_v54 }
 0x2bc   : > { %v13605_v13 = vadd.f32 %v3457_v63, %v3052_v31  ;;  %v3473_v39 = vpop.f32.mrf.mxu0  ;;  %10344 = vmatpush3.bf16.msra.mxu1 %v13647_v54 }
 0x2bd   : > { %v3054_v35 = vpop.f32.mrf.mxu1  ;;  %10337 = vmatprep.subr.bf16.mxu1 %v13667_v18 }
 0x2be   : > { %v3475_v50 = vpop.f32.mrf.mxu0 }
 0x2c0   : > { %10345 = vmatpush3.bf16.msra.mxu1 %v13667_v18 }
 0x2c1   : > { %4697 = vmatmul.mubr.bf16.gmra.mxu1 %v10504_v15  ;;  %v10520_v15 = vld [vmem:[#allocation4 + $0xe4] ss:$8 sps:$4 sm:$0xff]   ;;  %10338 = vmatprep.subr.bf16.mxu1 %v13672_v45 }
 0x2c2   : > { %9357 = vmatprep.mubr.msk.bf16.mxu1 %vm2961_vm2, %v10505_v28 }
 0x2c4   : > { %v3057_v57 = vpop.f32.mrf.mxu1  ;;  %10346 = vmatpush3.bf16.msra.mxu1 %v13672_v45 }
 0x2c5   : > { %v13607_v59 = vadd.f32 %v3462_v61, %v3057_v57  ;;  %v10537_v61 = vld [vmem:[%s16079_s5 + $0x100] sm:$0xff]  }
 0x2c6   : > { %v3059_v60 = vpop.f32.mrf.mxu1  ;;  %9866 = vmatprep.subr.bf16.mxu0 %v10537_v61 }
 0x2c8   : > { %v3478_v26 = vpop.f32.mrf.mxu0  ;;  %v3060_v1 = vpop.f32.mrf.mxu1 }
 0x2c9   : > { %4705 = vmatmul.mubr.bf16.gmra.mxu1 %v10507_v12  ;;  %v13616_v0 = vadd.f32 %v3465_v29, %v3060_v1 }
 0x2ca   : > { %9358 = vmatprep.mubr.msk.bf16.mxu1 %vm2961_vm2, %v10508_v17  ;;  %v3480_v52 = vpop.f32.mrf.mxu0  ;;  %v3062_v44 = vpop.f32.mrf.mxu1 }
 0x2cc   : > { %v3481_v14 = vpop.f32.mrf.mxu0 }
 0x2cd   : > { %v3065_v37 = vpop.f32.mrf.mxu1 }
 0x2ce   : > { %v13618_v25 = vadd.f32 %v3470_v46, %v3065_v37  ;;  %v3483_v11 = vpop.f32.mrf.mxu0 }
 0x2cf   : > { %v3067_v21 = vpop.f32.mrf.mxu1 }
 0x2d0   : > { %v3486_v48 = vpop.f32.mrf.mxu0 }
 0x2d1   : > { %4713 = vmatmul.mubr.bf16.gmra.mxu1 %v10510_v33  ;;  %v3068_v36 = vpop.f32.mrf.mxu1 }
 0x2d2   : > { %9359 = vmatprep.mubr.msk.bf16.mxu1 %vm2961_vm2, %v10511_v23  ;;  %v13621_v27 = vadd.f32 %v3473_v39, %v3068_v36  ;;  %v3488_v22 = vpop.f32.mrf.mxu0  ;;  %v10538_v23 = vld [vmem:[%s16079_s5 + $0xc0] sm:$0xff]  }
 0x2d3   : > { %v3070_v10 = vpop.f32.mrf.mxu1  ;;  %9867 = vmatpush3.bf16.msra.mxu0 %v10538_v23 }
 0x2d4   : > { %v3489_v32 = vpop.f32.mrf.mxu0  ;;  %10216 = vmatprep.subr.bf16.mxu0 %v13647_v54 }
 0x2d6   : > { %v3491_v40 = vpop.f32.mrf.mxu0 }
 0x2d9   : > { %4721 = vmatmul.mubr.bf16.gmra.mxu1 %v10513_v7  ;;  %v3494_v63 = vpop.f32.mrf.mxu0 }
 0x2da   : > { %9360 = vmatprep.mubr.msk.bf16.mxu1 %vm2961_vm2, %v10514_v30  ;;  %v3073_v41 = vpop.f32.mrf.mxu1 }
 0x2db   : > { %v13623_v5 = vadd.f32 %v3478_v26, %v3073_v41  ;;  %v3496_v51 = vpop.f32.mrf.mxu0 }
 0x2dc   : > { %v3075_v53 = vpop.f32.mrf.mxu1 }
 0x2dd   : > { %v3497_v12 = vpop.f32.mrf.mxu0 }
 0x2de   : > { %v3076_v3 = vpop.f32.mrf.mxu1 }
 0x2df   : > { %v13632_v62 = vadd.f32 %v3481_v14, %v3076_v3  ;;  %v3499_v9 = vpop.f32.mrf.mxu0 }
 0x2e0   : > { %v3078_v28 = vpop.f32.mrf.mxu1 }
 0x2e1   : > { %4729 = vmatmul.mubr.bf16.gmra.mxu1 %v10516_v38 }
 0x2e2   : > { %9361 = vmatprep.mubr.msk.bf16.mxu1 %vm2961_vm2, %v10517_v58 }
 0x2e4   : > { %v3081_v17 = vpop.f32.mrf.mxu1 }
 0x2e5   : > { %v13637_v55 = vadd.f32 %v3486_v48, %v3081_v17 }
 0x2e6   : > { %v3083_v16 = vpop.f32.mrf.mxu1  ;;  %v3502_v29 = vpop.f32.mrf.mxu0 }
 0x2e7   : > { %v13685_v16 = vld [vmem:[%s16079_s5 + $0x160] sm:$0xff]  }
 0x2e8   : > { %v3084_v8 = vpop.f32.mrf.mxu1  ;;  %v3504_v19 = vpop.f32.mrf.mxu0  ;;  %10339 = vmatprep.subr.bf16.mxu1 %v13685_v16 }
 0x2e9   : > { %4737 = vmatmul.mubr.bf16.gmra.mxu1 %v10519_v47  ;;  %v13639_v42 = vadd.f32 %v3489_v32, %v3084_v8  ;;  %v13690_v8 = vld [vmem:[%s16079_s5 + $0x158] sm:$0xff]  }
 0x2ea   : > { %9362 = vmatprep.mubr.msk.bf16.mxu1 %vm2961_vm2, %v10520_v15  ;;  %v3086_v33 = vpop.f32.mrf.mxu1  ;;  %v3505_v46 = vpop.f32.mrf.mxu0  ;;  %10347 = vmatpush3.bf16.msra.mxu1 %v13685_v16 }
 0x2eb   : > { %10340 = vmatprep.subr.bf16.mxu1 %v13690_v8 }
 0x2ec   : > { %v3507_v35 = vpop.f32.mrf.mxu0 }
 0x2ee   : > { %v3089_v31 = vpop.f32.mrf.mxu1  ;;  %10348 = vmatpush3.bf16.msra.mxu1 %v13690_v8 }
 0x2ef   : > { %v13650_v20 = vadd.f32 %v3494_v63, %v3089_v31 }
 0x2f0   : > { %v3091_v39 = vpop.f32.mrf.mxu1 }
 0x2f1   : > { %4745 = vmatmul.mubr.bf16.gmra.mxu1 %v10522_v49 }
 0x2f2   : > { %v3092_v50 = vpop.f32.mrf.mxu1 }
 0x2f3   : > { %v3510_v57 = vpop.f32.mrf.mxu0  ;;  %v13654_v7 = vadd.f32 %v3497_v12, %v3092_v50 }
 0x2f4   : > { %v3094_v34 = vpop.f32.mrf.mxu1 }
 0x2f5   : > { %v3512_v43 = vpop.f32.mrf.mxu0 }
 0x2f7   : > { %v3513_v30 = vpop.f32.mrf.mxu0 }
 0x2f9   : > { %v3515_v1 = vpop.f32.mrf.mxu0 }
 0x2fb   : > { %v3518_v44 = vpop.f32.mrf.mxu0 }
 0x2fd   : > { %v3520_v38 = vpop.f32.mrf.mxu0 }
 0x2ff   : > { %v3521_v58 = vpop.f32.mrf.mxu0 }
 0x301   : > { %v3097_v60 = vpop.f32.mrf.mxu1  ;;  %v3523_v36 = vpop.f32.mrf.mxu0 }
 0x302   : > { %v13656_v26 = vadd.f32 %v3502_v29, %v3097_v60 }
 0x303   : > { %v3099_v52 = vpop.f32.mrf.mxu1  ;;  %v3526_v10 = vpop.f32.mrf.mxu0 }
 0x305   : > { %v3100_v14 = vpop.f32.mrf.mxu1  ;;  %v3528_v47 = vpop.f32.mrf.mxu0 }
 0x306   : > { %v13658_v37 = vadd.f32 %v3505_v46, %v3100_v14 }
 0x307   : > { %v3102_v11 = vpop.f32.mrf.mxu1  ;;  %v3529_v15 = vpop.f32.mrf.mxu0 }
 0x308   : > { %v13707_v11 = vld [vmem:[%s16079_s5 + $0x150] sm:$0xff]  }
 0x309   : > { %v3105_v21 = vpop.f32.mrf.mxu1  ;;  %v3531_v28 = vpop.f32.mrf.mxu0  ;;  %10341 = vmatprep.subr.bf16.mxu1 %v13707_v11 }
 0x30a   : > { %v13660_v48 = vadd.f32 %v3510_v57, %v3105_v21  ;;  %v10553_v21 = vld [vmem:[%s16079_s5 + $0x148] sm:$0xff]   ;;  %10349 = vmatpush3.bf16.msra.mxu1 %v13707_v11 }
 0x30b   : > { %v3107_v22 = vpop.f32.mrf.mxu1  ;;  %v3534_v51 = vpop.f32.mrf.mxu0  ;;  %10342 = vmatprep.subr.bf16.mxu1 %v10553_v21 }
 0x30d   : > { %v3108_v32 = vpop.f32.mrf.mxu1  ;;  %v3536_v61 = vpop.f32.mrf.mxu0 }
 0x30e   : > { %v13662_v41 = vadd.f32 %v3513_v30, %v3108_v32  ;;  %10350 = vmatpush3.bf16.msra.mxu1 %v10553_v21 }
 0x30f   : > { %v3110_v40 = vpop.f32.mrf.mxu1  ;;  %v3537_v9 = vpop.f32.mrf.mxu0 }
 0x311   : > { %v3113_v53 = vpop.f32.mrf.mxu1  ;;  %v3539_v33 = vpop.f32.mrf.mxu0 }
 0x312   : > { %v13675_v3 = vadd.f32 %v3518_v44, %v3113_v53 }
 0x313   : > { %v3115_v63 = vpop.f32.mrf.mxu1  ;;  %v3542_v46 = vpop.f32.mrf.mxu0 }
 0x315   : > { %v3116_v49 = vpop.f32.mrf.mxu1  ;;  %v3544_v39 = vpop.f32.mrf.mxu0 }
 0x316   : > { %v13679_v12 = vadd.f32 %v3521_v58, %v3116_v49 }
 0x317   : > { %v3118_v17 = vpop.f32.mrf.mxu1  ;;  %v3545_v50 = vpop.f32.mrf.mxu0 }
 0x319   : > { %v3121_v29 = vpop.f32.mrf.mxu1  ;;  %v3547_v30 = vpop.f32.mrf.mxu0 }
 0x31a   : > { %v13692_v19 = vadd.f32 %v3526_v10, %v3121_v29  ;;  %v13730_v30 = vstv %s4884_s16 }
 0x31b   : > { %v3123_v23 = vpop.f32.mrf.mxu1  ;;  %v3550_v1 = vpop.f32.mrf.mxu0 }
 0x31d   : > { %v3124_v31 = vpop.f32.mrf.mxu1  ;;  %v3552_v14 = vpop.f32.mrf.mxu0 }
 0x31e   : > { %v13697_v35 = vadd.f32 %v3529_v15, %v3124_v31 }
 0x31f   : > { %v3126_v57 = vpop.f32.mrf.mxu1  ;;  %v3553_v58 = vpop.f32.mrf.mxu0 }
 0x321   : > { %v3129_v43 = vpop.f32.mrf.mxu1  ;;  %v3555_v10 = vpop.f32.mrf.mxu0 }
 0x322   : > { %v13700_v34 = vadd.f32 %v3534_v51, %v3129_v43  ;;  %v13728_v43 = vstv %s4851_s15 }
 0x323   : > { %v3131_v60 = vpop.f32.mrf.mxu1  ;;  %v3558_v47 = vpop.f32.mrf.mxu0 }
 0x324   : > { %v10557_v60 = vld [vmem:[%s16079_s5 + $0x140] sm:$0xff]  }
 0x325   : > { %v3132_v52 = vpop.f32.mrf.mxu1  ;;  %v3560_v53 = vpop.f32.mrf.mxu0  ;;  %10343 = vmatprep.subr.bf16.mxu1 %v10557_v60 }
 0x326   : > { %v13702_v44 = vadd.f32 %v3537_v9, %v3132_v52  ;;  %v13738_v52 = vld [vmem:[%s16078_s4] ss:$0 sm:$0xff]  ;;  %10351 = vmatpush3.bf16.msra.mxu1 %v10557_v60 }
 0x327   : > { %v3134_v38 = vpop.f32.mrf.mxu1  ;;  %v3561_v63 = vpop.f32.mrf.mxu0 }
 0x328   : > { %v16372_v38 = vld [vmem:[#allocation10_spill] sm:$0xff] }
 0x329   : > { %v3137_v36 = vpop.f32.mrf.mxu1  ;;  %v3563_v61 = vpop.f32.mrf.mxu0  ;;  %vm4853_vm14 = vcmp.ge.s32.totalorder %v16372_v38, %v13728_v43  ;;  %vm4886_vm6 = vcmp.lt.s32.totalorder %v16372_v38, %v13730_v30  ;;  %vm4946_vm13 = vcmp.ge.s32.totalorder %v16372_v38, 1 }
 0x32a   : > { %v13713_v22 = vadd.f32 %v3542_v46, %v3137_v36  ;;  %vm4916_vm11 = vmand %vm4853_vm14, %vm4886_vm6  ;;  %v16375_v61 = vld [vmem:[#allocation12_spill] sm:$0xff] }
 0x32b   : > { %v3139_v32 = vpop.f32.mrf.mxu1  ;;  %vm4955_vm10 = vmand %vm4916_vm11, %vm4946_vm13  ;;  %vm4856_vm15 = vcmp.ge.s32.totalorder %v16375_v61, %v13728_v43  ;;  %vm4889_vm8 = vcmp.lt.s32.totalorder %v16375_v61, %v13730_v30 }
 0x32c   : > { %v16373_v32 = vld [vmem:[#allocation13_spill] sm:$0xff]  ;;  %vm4919_vm6 = vmand %vm4856_vm15, %vm4889_vm8 }
 0x32d   : > { %v3140_v40 = vpop.f32.mrf.mxu1  ;;  %vm4854_vm4 = vcmp.ge.s32.totalorder %v16373_v32, %v13728_v43  ;;  %vm4887_vm0 = vcmp.lt.s32.totalorder %v16373_v32, %v13730_v30 }
 0x32e   : > { %v13716_v15 = vadd.f32 %v3545_v50, %v3140_v40  ;;  %vm4917_vm7 = vmand %vm4854_vm4, %vm4887_vm0 }
 0x32f   : > { %v3142_v28 = vpop.f32.mrf.mxu1  ;;  %vm4958_vm4 = vmand %vm4919_vm6, %vm4946_vm13 }
 0x331   : > { %v3145_v51 = vpop.f32.mrf.mxu1 }
 0x332   : > { %v13718_v49 = vadd.f32 %v3550_v1, %v3145_v51 }
 0x333   : > { %v3147_v17 = vpop.f32.mrf.mxu1 }
 0x335   : > { %v3148_v9 = vpop.f32.mrf.mxu1 }
 0x336   : > { %v13720_v29 = vadd.f32 %v3553_v58, %v3148_v9 }
 0x337   : > { %v3150_v33 = vpop.f32.mrf.mxu1 }
 0x339   : > { %v3153_v23 = vpop.f32.mrf.mxu1 }
 0x33a   : > { %v13724_v46 = vadd.f32 %v3558_v47, %v3153_v23 }
 0x33b   : > { %v3155_v31 = vpop.f32.mrf.mxu1 }
 0x33d   : > { %v3156_v39 = vpop.f32.mrf.mxu1 }
 0x33e   : > { %v13726_v57 = vadd.f32 %v3561_v63, %v3156_v39 }
 0x33f   : > { %v3158_v50 = vpop.f32.mrf.mxu1 }
 0x341   : > { %v4634_v1 = vpop.f32.mrf.mxu1 }
 0x342   : > { %v4753_v14 = vadd.f32 %v4634_v1, %v13597_v2 }
 0x343   : > { %v4636_v58 = vpop.f32.mrf.mxu1 }
 0x344   : > { %v4790_v21 = vadd.f32 %v13738_v52, %v4753_v14 }
 0x345   : > { %v4637_v36 = vpop.f32.mrf.mxu1 }
 0x346   : > { %v4754_v10 = vadd.f32 %v4637_v36, %v13600_v4  ;;  %v4820_v47 = vmax.f32 %v4790_v21, 0.0  ;;  %v16374_v4 = vld [vmem:[#allocation11_spill] sm:$0xff]  ;;  %v16376_v36 = vld [vmem:[#allocation17_spill] sm:$0xff] }
 0x347   : > { %v4639_v2 = vpop.f32.mrf.mxu1  ;;  %vm4855_vm5 = vcmp.ge.s32.totalorder %v16374_v4, %v13728_v43  ;;  %vm4888_vm9 = vcmp.lt.s32.totalorder %v16374_v4, %v13730_v30  ;;  %vm4951_vm14 = vcmp.lt.s32.totalorder %v16374_v4, 17  ;;  %vm4858_vm0 = vcmp.ge.s32.totalorder %v16376_v36, %v13728_v43 }
 0x348   : > { %v4791_v40 = vadd.f32 %v13738_v52, %v4754_v10  ;;  %v4985_v17 = vsel %vm4955_vm10, %v4820_v47, 0.0  ;;  %vm4918_vm12 = vmand %vm4855_vm5, %vm4888_vm9  ;;  %vm4891_vm10 = vcmp.lt.s32.totalorder %v16376_v36, %v13730_v30  ;;  %v16377_v47 = vld [vmem:[#allocation15_spill] sm:$0xff] }
 0x349   : > { %v4642_v53 = vpop.f32.mrf.mxu1  ;;  %vm4957_vm11 = vmand %vm4918_vm12, %vm4951_vm14  ;;  %vm4890_vm5 = vcmp.lt.s32.totalorder %v16377_v47, %v13730_v30 }
 0x34a   : > { %v4821_v28 = vmax.f32 %v4791_v40, 0.0  ;;  %v4755_v63 = vadd.f32 %v4642_v53, %v13602_v24  ;;  %vm4921_vm9 = vmand %vm4858_vm0, %vm4891_vm10 }
 0x34b   : > { %v4644_v51 = vpop.f32.mrf.mxu1  ;;  %vm4960_vm8 = vmand %vm4921_vm9, %vm4951_vm14 }
 0x34c   : > { %v4986_v9 = vsel %vm4917_vm7, %v4821_v28, 0.0  ;;  %v4792_v33 = vadd.f32 %v13738_v52, %v4755_v63  ;;  %vm4857_vm7 = vcmp.ge.s32.totalorder %v16377_v47, %v13728_v43 }
 0x34d   : > { %v9746_v23 = vpack.c.bf16 %v4986_v9, %v4985_v17  ;;  %v4645_v24 = vpop.f32.mrf.mxu1  ;;  %vm13783_vm15 = vmand %vm4857_vm7, %vm4890_vm5 }
 0x34e   : > { %v4756_v31 = vadd.f32 %v4645_v24, %v13605_v13  ;;  %v4822_v50 = vmax.f32 %v4792_v33, 0.0 }
 0x34f   : > { %9747 = vst [vmem:[#allocation5] sm:$0xff] %v9746_v23   ;;  %v4647_v39 = vpop.f32.mrf.mxu1 }
 0x350   : > { %v4793_v60 = vadd.f32 %v13738_v52, %v4756_v31  ;;  %v4987_v13 = vsel %vm4957_vm11, %v4822_v50, 0.0  ;;  %v16380_v31 = vld [vmem:[#allocation14_spill] sm:$0xff] }
 0x351   : > { %v4650_v1 = vpop.f32.mrf.mxu1  ;;  %vm4859_vm12 = vcmp.ge.s32.totalorder %v16380_v31, %v13728_v43  ;;  %vm4892_vm6 = vcmp.lt.s32.totalorder %v16380_v31, %v13730_v30 }
 0x352   : > { %v4823_v14 = vmax.f32 %v4793_v60, 0.0  ;;  %v4757_v58 = vadd.f32 %v4650_v1, %v13607_v59  ;;  %vm13804_vm11 = vmand %vm4859_vm12, %vm4892_vm6 }
 0x353   : > { %v4652_v21 = vpop.f32.mrf.mxu1 }
 0x354   : > { %v4988_v10 = vsel %vm4958_vm4, %v4823_v14, 0.0  ;;  %v4794_v32 = vadd.f32 %v13738_v52, %v4757_v58 }
 0x355   : > { %v9751_v2 = vpack.c.bf16 %v4988_v10, %v4987_v13  ;;  %v4653_v40 = vpop.f32.mrf.mxu1 }
 0x356   : > { %v4758_v59 = vadd.f32 %v4653_v40, %v13616_v0  ;;  %v5166_v53 = vld [vmem:[#allocation5] sm:$0xf]  ;;  %v5167_v28 = vld [vmem:[#allocation5 + $0x4] sm:$0xf]  ;;  %v4824_v17 = vmax.f32 %v4794_v32, 0.0 }
 0x357   : > { %9818 = vst [vmem:[#allocation5 + $0x8] sm:$0xff] %v9751_v2   ;;  %v4655_v63 = vpop.f32.mrf.mxu1  ;;  %5190 = vst [vmem:[#allocation6] sm:$0xf] %v5166_v53  ;;  %v5214_v51 = vld [vmem:[#allocation5] sm:$0xf]  ;;  %v16383_v53 = vld [vmem:[#allocation16_spill] sm:$0xff] }
 0x358   : > { %5191 = vst [vmem:[#allocation6 + $0xc] sm:$0xf] %v5167_v28  ;;  %v5215_v61 = vld [vmem:[#allocation5 + $0x4] sm:$0xf]  ;;  %v4795_v33 = vadd.f32 %v13738_v52, %v4758_v59  ;;  %v5240_v23 = vshrl.u32 %v5214_v51, 16  ;;  %v5243_v24 = vshll.u32 %v5214_v51, 16  ;;  %vm4860_vm4 = vcmp.ge.s32.totalorder %v16383_v53, %v13728_v43 }
 0x359   : > { %v4658_v0 = vpop.f32.mrf.mxu1  ;;  %v5249_v39 = vshll.u32 %v5215_v61, 16  ;;  %v5253_v50 = vshrl.u32 %v5215_v61, 16  ;;  %v4989_v10 = vsel %vm13783_vm15, %v4824_v17, 0.0  ;;  %vm4893_vm0 = vcmp.lt.s32.totalorder %v16383_v53, %v13730_v30  ;;  %v16384_v51 = vld [vmem:[#allocation18_spill] sm:$0xff]  ;;  %vm13825_vm15 = vmand %vm13804_vm11, %vm4946_vm13  ;;  %v16393_v53 = vld [vmem:[#allocation20_spill] sm:$0xff] }
 0x35a   : > { %v4825_v60 = vmax.f32 %v4795_v33, 0.0  ;;  %v4759_v1 = vadd.f32 %v4658_v0, %v13618_v25  ;;  %v5242_v14 = vrot.slane %v5240_v23, 4  ;;  %v5245_v58 = vrot.slane %v5243_v24, 5  ;;  %v16385_v33 = vld [vmem:[#allocation21_spill] sm:$0xff] }
 0x35b   : > { %v4660_v21 = vpop.f32.mrf.mxu1  ;;  %v5251_v36 = vrot.slane %v5249_v39, 5  ;;  %v5255_v13 = vrot.slane %v5253_v50, 4  ;;  %vm4861_vm10 = vcmp.ge.s32.totalorder %v16384_v51, %v13728_v43  ;;  %vm4894_vm7 = vcmp.lt.s32.totalorder %v16384_v51, %v13730_v30 }
 0x35c   : > { %v4990_v32 = vsel %vm4960_vm8, %v4825_v60, 0.0  ;;  %v4796_v2 = vadd.f32 %v13738_v52, %v4759_v1  ;;  %v5246_v47 = vor.u32 %v5245_v58, %v5242_v14  ;;  %vm4862_vm5 = vcmp.ge.s32.totalorder %v16385_v33, %v13728_v43  ;;  %vm13838_vm8 = vmand %vm4860_vm4, %vm4893_vm0 }
 0x35d   : > { %v9756_v40 = vpack.c.bf16 %v4990_v32, %v4989_v10  ;;  %v4661_v59 = vpop.f32.mrf.mxu1  ;;  %v5256_v28 = vor.u32 %v5255_v13, %v5251_v36  ;;  %vm4895_vm9 = vcmp.lt.s32.totalorder %v16385_v33, %v13730_v30  ;;  %v16390_v13 = vld [vmem:[#allocation19_spill] sm:$0xff]  ;;  %vm13853_vm11 = vmand %vm4861_vm10, %vm4894_vm7  ;;  %vm4864_vm4 = vcmp.ge.s32.totalorder %v16393_v53, %v13728_v43 }
 0x35e   : > { %v4760_v63 = vadd.f32 %v4661_v59, %v13621_v27  ;;  %v5216_v61 = vld [vmem:[#allocation5 + $0x8] sm:$0xf]  ;;  %v5247_v17 = vrot.slane %v5246_v47, 4  ;;  %v5846_v0 = vld [vmem:[#allocation5 + $0xc] sm:$0xf]  ;;  %v4826_v27 = vmax.f32 %v4796_v2, 0.0  ;;  %vm4863_vm12 = vcmp.ge.s32.totalorder %v16390_v13, %v13728_v43  ;;  %vm13870_vm0 = vmand %vm13853_vm11, %vm4951_vm14 }
 0x35f   : > { %9819 = vst [vmem:[#allocation5 + $0x10] sm:$0xff] %v9756_v40   ;;  %v4663_v9 = vpop.f32.mrf.mxu1  ;;  %v5259_v23 = vshll.u32 %v5216_v61, 16  ;;  %v5263_v24 = vshrl.u32 %v5216_v61, 16  ;;  %v5872_v60 = vshrl.u32 %v5846_v0, 16  ;;  %v5168_v1 = vld [vmem:[#allocation5 + $0x8] sm:$0xf]  ;;  %vm4896_vm6 = vcmp.lt.s32.totalorder %v16390_v13, %v13730_v30  ;;  %vm13881_vm10 = vmand %vm4862_vm5, %vm4895_vm9 }
 0x360   : > { %v4797_v39 = vadd.f32 %v13738_v52, %v4760_v63  ;;  %v5252_v50 = vsel %vm11190_vm3, %v5247_v17, %v5251_v36  ;;  %v5169_v14 = vld [vmem:[#allocation5 + $0xc] sm:$0xf]  ;;  %v5257_v36 = vrot.slane %v5256_v28, 4  ;;  %v5875_v32 = vshll.u32 %v5846_v0, 16  ;;  %5192 = vst [vmem:[#allocation6 + $0x18] sm:$0xf] %v5168_v1  ;;  %vm13902_vm5 = vmand %vm13881_vm10, %vm4946_vm13 }
 0x361   : > { %v4666_v21 = vpop.f32.mrf.mxu1  ;;  %v5261_v10 = vrot.slane %v5259_v23, 5  ;;  %5507 = vst [vmem:[#allocation6 + $0x4] sm:$0xf] %v5252_v50  ;;  %5193 = vst [vmem:[#allocation6 + $0x24] sm:$0xf] %v5169_v14  ;;  %v5265_v47 = vrot.slane %v5263_v24, 4  ;;  %vm4897_vm7 = vcmp.lt.s32.totalorder %v16393_v53, %v13730_v30 }
 0x362   : > { %v5217_v2 = vld [vmem:[#allocation5 + $0xc] sm:$0xf]  ;;  %v4827_v40 = vmax.f32 %v4797_v39, 0.0  ;;  %v4761_v25 = vadd.f32 %v4666_v21, %v13623_v5  ;;  %v5874_v28 = vrot.slane %v5872_v60, 4  ;;  %v5877_v5 = vrot.slane %v5875_v32, 5  ;;  %vm13920_vm9 = vmand %vm4863_vm12, %vm4896_vm6 }
 0x363   : > { %v5269_v63 = vshll.u32 %v5217_v2, 16  ;;  %v4668_v61 = vpop.f32.mrf.mxu1  ;;  %v5262_v17 = vsel %vm11190_vm3, %v5257_v36, %v5261_v10  ;;  %v5266_v9 = vor.u32 %v5265_v47, %v5261_v10  ;;  %v5273_v23 = vshrl.u32 %v5217_v2, 16  ;;  %v16398_v10 = vld [vmem:[#allocation23_spill] sm:$0xff]  ;;  %v5798_v32 = vld [vmem:[#allocation5 + $0xc] sm:$0xf]  ;;  %vm13932_vm11 = vmand %vm4864_vm4, %vm4897_vm7 }
 0x364   : > { %v4991_v24 = vsel %vm13825_vm15, %v4826_v27, 0.0  ;;  %v4992_v51 = vsel %vm13838_vm8, %v4827_v40, 0.0  ;;  %v4798_v0 = vadd.f32 %v13738_v52, %v4761_v25  ;;  %5508 = vst [vmem:[#allocation6 + $0x10] sm:$0xf] %v5262_v17  ;;  %v5878_v14 = vor.u32 %v5877_v5, %v5874_v28  ;;  %vm13961_vm10 = vmand %vm13932_vm11, %vm4951_vm14 }
 0x365   : > { %v5271_v39 = vrot.slane %v5269_v63, 5  ;;  %v9761_v50 = vpack.c.bf16 %v4992_v51, %v4991_v24  ;;  %v4669_v1 = vpop.f32.mrf.mxu1  ;;  %v5267_v31 = vrot.slane %v5266_v9, 4  ;;  %v5275_v27 = vrot.slane %v5273_v23, 4 }
 0x366   : > { %v4828_v21 = vmax.f32 %v4798_v0, 0.0  ;;  %v4762_v58 = vadd.f32 %v4669_v1, %v13632_v62  ;;  %vm4865_vm15 = vcmp.ge.s32.totalorder %v16398_v10, %v13728_v43  ;;  %vm4898_vm8 = vcmp.lt.s32.totalorder %v16398_v10, %v13730_v30  ;;  %v5847_v62 = vld [vmem:[#allocation5 + $0x10] sm:$0xf]  ;;  %v5848_v47 = vld [vmem:[#allocation5 + $0x14] sm:$0xf] }
 0x367   : > { %9820 = vst [vmem:[#allocation5 + $0x18] sm:$0xff] %v9761_v50   ;;  %v4671_v2 = vpop.f32.mrf.mxu1  ;;  %v5879_v40 = vrot.slane %v5878_v14, 4  ;;  %v5272_v33 = vsel %vm11190_vm3, %v5267_v31, %v5271_v39  ;;  %v5276_v25 = vor.u32 %v5275_v27, %v5271_v39  ;;  %v5881_v61 = vshll.u32 %v5847_v62, 16  ;;  %v5218_v5 = vld [vmem:[#allocation5 + $0x10] sm:$0xf]  ;;  %vm13973_vm7 = vmand %vm4865_vm15, %vm4898_vm8 }
 0x368   : > { %v4993_v59 = vsel %vm13870_vm0, %v4828_v21, 0.0  ;;  %v4799_v28 = vadd.f32 %v13738_v52, %v4762_v58  ;;  %v13896_v63 = vld [vmem:[#allocation6] sm:$0xff]  ;;  %v5885_v17 = vshrl.u32 %v5847_v62, 16  ;;  %5509 = vst [vmem:[#allocation6 + $0x1c] sm:$0xf] %v5272_v33  ;;  %v5891_v51 = vshll.u32 %v5848_v47, 16 }
 0x369   : > { %16399 = vst [vmem:[#allocation39_spill] sm:$0xff] %v13896_v63  ;;  %v4674_v23 = vpop.f32.mrf.mxu1  ;;  %v5799_v24 = vld [vmem:[#allocation5 + $0x10] sm:$0xf]  ;;  %5822 = vst [vmem:[#allocation6] sm:$0xf] %v5798_v32  ;;  %v5895_v0 = vshrl.u32 %v5848_v47, 16 }
 0x36a   : > { %v5277_v39 = vrot.slane %v5276_v25, 4  ;;  %v5279_v50 = vshll.u32 %v5218_v5, 16  ;;  %v4829_v60 = vmax.f32 %v4799_v28, 0.0  ;;  %v4763_v1 = vadd.f32 %v4674_v23, %v13637_v55  ;;  %v5170_v27 = vld [vmem:[#allocation5 + $0x10] sm:$0xf] }
 0x36b   : > { %v5883_v14 = vrot.slane %v5881_v61, 5  ;;  %v5887_v31 = vrot.slane %v5885_v17, 4  ;;  %v4676_v21 = vpop.f32.mrf.mxu1  ;;  %v13907_v58 = vld [vmem:[#allocation6 + $0xc] sm:$0xff]  ;;  %v5893_v36 = vrot.slane %v5891_v51, 5  ;;  %v5283_v62 = vshrl.u32 %v5218_v5, 16  ;;  %v16407_v51 = vld [vmem:[#allocation25_spill] sm:$0xff] }
 0x36c   : > { %16402 = vst [vmem:[#allocation40_spill] sm:$0xff] %v13907_v58  ;;  %v13909_v2 = vrot.slane %v5279_v50, 5  ;;  %v5897_v33 = vrot.slane %v5895_v0, 4  ;;  %5194 = vst [vmem:[#allocation6 + $0x30] sm:$0xf] %v5170_v27  ;;  %v4994_v32 = vsel %vm13902_vm5, %v4829_v60, 0.0  ;;  %v4800_v47 = vadd.f32 %v13738_v52, %v4763_v1 }
 0x36d   : > { %5823 = vst [vmem:[#allocation6 + $0xc] sm:$0xf] %v5799_v24  ;;  %v5884_v25 = vsel %vm11190_vm3, %v5879_v40, %v5883_v14  ;;  %v5888_v28 = vor.u32 %v5887_v31, %v5883_v14  ;;  %v5171_v61 = vld [vmem:[#allocation5 + $0x14] sm:$0xf]  ;;  %v9766_v17 = vpack.c.bf16 %v4994_v32, %v4993_v59  ;;  %v4677_v5 = vpop.f32.mrf.mxu1  ;;  %v13939_v23 = vrot.slane %v5283_v62, 4  ;;  %vm13991_vm5 = vmand %vm13973_vm7, %vm4946_vm13 }
 0x36e   : > { %6139 = vst [vmem:[#allocation6 + $0x4] sm:$0xf] %v5884_v25  ;;  %v5282_v9 = vsel %vm11190_vm3, %v5277_v39, %v13909_v2  ;;  %v5898_v40 = vor.u32 %v5897_v33, %v5893_v36  ;;  %5195 = vst [vmem:[#allocation6 + $0x3c] sm:$0xf] %v5171_v61  ;;  %v4830_v59 = vmax.f32 %v4800_v47, 0.0  ;;  %v4764_v24 = vadd.f32 %v4677_v5, %v13639_v42  ;;  %v16408_v39 = vld [vmem:[#allocation22_spill] sm:$0xff] }
 0x36f   : > { %vm4866_vm12 = vcmp.ge.s32.totalorder %v16407_v51, %v13728_v43  ;;  %vm4899_vm6 = vcmp.lt.s32.totalorder %v16407_v51, %v13730_v30  ;;  %v5889_v53 = vrot.slane %v5888_v28, 4  ;;  %5510 = vst [vmem:[#allocation6 + $0x28] sm:$0xf] %v5282_v9  ;;  %v5800_v0 = vld [vmem:[#allocation5 + $0x14] sm:$0xf]  ;;  %9821 = vst [vmem:[#allocation5 + $0x20] sm:$0xff] %v9766_v17   ;;  %v4679_v50 = vpop.f32.mrf.mxu1  ;;  %vm4867_vm4 = vcmp.ge.s32.totalorder %v16408_v39, %v13728_v43 }
 0x370   : > { %vm4900_vm0 = vcmp.lt.s32.totalorder %v16408_v39, %v13730_v30  ;;  %v7667_v60 = vld [vmem:[#allocation5 + $0x18] sm:$0xf]  ;;  %v7668_v1 = vld [vmem:[#allocation5 + $0x1c] sm:$0xf]  ;;  %v5899_v14 = vrot.slane %v5898_v40, 4  ;;  %v4995_v27 = vsel %vm13920_vm9, %v4830_v59, 0.0  ;;  %v4801_v21 = vadd.f32 %v13738_v52, %v4764_v24  ;;  %vm14013_vm9 = vmand %vm4866_vm12, %vm4899_vm6 }
 0x371   : > { %v13950_v42 = vld [vmem:[#allocation6 + $0x18] sm:$0xff]  ;;  %v5894_v33 = vsel %vm11190_vm3, %v5889_v53, %v5893_v36  ;;  %v7693_v32 = vshrl.u32 %v7667_v60, 16  ;;  %v4682_v25 = vpop.f32.mrf.mxu1  ;;  %v7696_v28 = vshll.u32 %v7667_v60, 16  ;;  %v7702_v61 = vshll.u32 %v7668_v1, 16  ;;  %v13977_v5 = vld [vmem:[#allocation5 + $0x1c] sm:$0xf]  ;;  %vm14026_vm11 = vmand %vm4867_vm4, %vm4900_vm0 }
 0x372   : > { %16409 = vst [vmem:[#allocation43_spill] sm:$0xff] %v13950_v42  ;;  %5824 = vst [vmem:[#allocation6 + $0x18] sm:$0xf] %v5800_v0  ;;  %v5849_v47 = vld [vmem:[#allocation5 + $0x18] sm:$0xf]  ;;  %v7706_v17 = vshrl.u32 %v7668_v1, 16  ;;  %v4765_v9 = vadd.f32 %v4682_v25, %v13650_v20 }
 0x373   : > { %6140 = vst [vmem:[#allocation6 + $0x10] sm:$0xf] %v5894_v33  ;;  %v5901_v36 = vshll.u32 %v5849_v47, 16  ;;  %v4831_v13 = vmax.f32 %v4801_v21, 0.0  ;;  %v7695_v40 = vrot.slane %v7693_v32, 4  ;;  %v5905_v59 = vshrl.u32 %v5849_v47, 16  ;;  %v4684_v24 = vpop.f32.mrf.mxu1  ;;  %vm14059_vm0 = vmand %vm14026_vm11, %vm4951_vm14 }
 0x374   : > { %v7698_v53 = vrot.slane %v7696_v28, 5  ;;  %v7704_v0 = vrot.slane %v7702_v61, 5  ;;  %v7708_v10 = vrot.slane %v7706_v17, 4  ;;  %v16414_v50 = vld [vmem:[#allocation24_spill] sm:$0xff]  ;;  %v4802_v21 = vadd.f32 %v13738_v52, %v4765_v9  ;;  %v5172_v47 = vld [vmem:[#allocation5 + $0x18] sm:$0xf] }
 0x375   : > { %vm4868_vm15 = vcmp.ge.s32.totalorder %v16414_v50, %v13728_v43  ;;  %vm4901_vm8 = vcmp.lt.s32.totalorder %v16414_v50, %v13730_v30  ;;  %v5903_v60 = vrot.slane %v5901_v36, 5  ;;  %v4996_v1 = vsel %vm13961_vm10, %v4831_v13, 0.0  ;;  %v4685_v28 = vpop.f32.mrf.mxu1  ;;  %v5801_v36 = vld [vmem:[#allocation5 + $0x18] sm:$0xf]  ;;  %v5173_v9 = vld [vmem:[#allocation5 + $0x1c] sm:$0xf] }
 0x376   : > { %v5907_v33 = vrot.slane %v5905_v59, 4  ;;  %v5911_v32 = vshll.u32 %v13977_v5, 16  ;;  %v9771_v25 = vpack.c.bf16 %v4996_v1, %v4995_v27  ;;  %v7699_v61 = vor.u32 %v7698_v53, %v7695_v40  ;;  %v13996_v62 = vld [vmem:[#allocation6 + $0x24] sm:$0xff]  ;;  %5196 = vst [vmem:[#allocation6 + $0x48] sm:$0xf] %v5172_v47  ;;  %v16422_v39 = vld [vmem:[#allocation29_spill] sm:$0xff]  ;;  %vm14071_vm10 = vmand %vm4868_vm15, %vm4901_vm8 }
 0x377   : > { %v7709_v17 = vor.u32 %v7708_v10, %v7704_v0  ;;  %16417 = vst [vmem:[#allocation42_spill] sm:$0xff] %v13996_v62  ;;  %v5904_v13 = vsel %vm11190_vm3, %v5899_v14, %v5903_v60  ;;  %v4832_v55 = vmax.f32 %v4802_v21, 0.0  ;;  %v4766_v24 = vadd.f32 %v4685_v28, %v13654_v7  ;;  %v7619_v31 = vld [vmem:[#allocation5 + $0x18] sm:$0xf]  ;;  %v7620_v59 = vld [vmem:[#allocation5 + $0x1c] sm:$0xf]  ;;  %v4687_v40 = vpop.f32.mrf.mxu1  ;;  %vm14095_vm15 = vmand %vm14071_vm10, %vm4946_vm13 }
 0x378   : > { %v7669_v42 = vld [vmem:[#allocation5 + $0x20] sm:$0xf]  ;;  %5825 = vst [vmem:[#allocation6 + $0x24] sm:$0xf] %v5801_v36  ;;  %v5908_v63 = vor.u32 %v5907_v33, %v5903_v60  ;;  %v14001_v27 = vrot.slane %v5911_v32, 5  ;;  %9822 = vst [vmem:[#allocation5 + $0x28] sm:$0xff] %v9771_v25   ;;  %vm4870_vm12 = vcmp.ge.s32.totalorder %v16422_v39, %v13728_v43  ;;  %v16423_v40 = vor.u32 %v13939_v23, %v13909_v2 }
 0x379   : > { %6141 = vst [vmem:[#allocation6 + $0x1c] sm:$0xf] %v5904_v13  ;;  %5197 = vst [vmem:[#allocation6 + $0x54] sm:$0xf] %v5173_v9  ;;  %v6334_v53 = vld [vmem:[#allocation6] sm:$0xff]  ;;  %v7700_v10 = vrot.slane %v7699_v61, 4  ;;  %v4803_v7 = vadd.f32 %v13738_v52, %v4766_v24  ;;  %vm4903_vm7 = vcmp.lt.s32.totalorder %v16422_v39, %v13730_v30 }
 0x37a   : > { %v7710_v1 = vrot.slane %v7709_v17, 4  ;;  %v7712_v14 = vshll.u32 %v7669_v42, 16  ;;  %v7716_v62 = vshrl.u32 %v7669_v42, 16  ;;  %v4997_v21 = vsel %vm13991_vm5, %v4832_v55, 0.0  ;;  %v6336_v47 = vld [vmem:[#allocation6 + $0xc] sm:$0xff]  ;;  %v4690_v42 = vpop.f32.mrf.mxu1  ;;  %v16441_v39 = vld [vmem:[#allocation33_spill] sm:$0xff] }
 0x37b   : > { %v10540_v28 = vld [vmem:[#allocation6 + $0x4] ss:$12 sps:$4 sm:$0xff]   ;;  %v5909_v36 = vrot.slane %v5908_v63, 4  ;;  %v5915_v60 = vshrl.u32 %v13977_v5, 16  ;;  %7643 = vst [vmem:[#allocation6] sm:$0xf] %v7619_v31  ;;  %v7705_v20 = vsel %vm11190_vm3, %v7700_v10, %v7704_v0  ;;  %v9444_v63 = vcombine.low %v6334_v53, %v6336_v47 }
 0x37c   : > { %7644 = vst [vmem:[#allocation6 + $0xc] sm:$0xf] %v7620_v59  ;;  %v7714_v32 = vrot.slane %v7712_v14, 5  ;;  %v7670_v25 = vld [vmem:[#allocation5 + $0x24] sm:$0xf]  ;;  %v7718_v61 = vrot.slane %v7716_v62, 4  ;;  %v4767_v9 = vadd.f32 %v4690_v42, %v13656_v26  ;;  %6799 = vmatprep.mubr.bf16.mxu0 %v10540_v28  ;;  %v4692_v62 = vpop.f32.mrf.mxu1 }
 0x37d   : > { %v5219_v17 = vld [vmem:[#allocation5 + $0x14] sm:$0xf]  ;;  %v4833_v13 = vmax.f32 %v4803_v7, 0.0  ;;  %7960 = vst [vmem:[#allocation6 + $0x4] sm:$0xf] %v7705_v20  ;;  %v5914_v31 = vsel %vm11190_vm3, %v5909_v36, %v14001_v27  ;;  %v7722_v0 = vshll.u32 %v7670_v25, 16  ;;  %6800 = vmatmul.mubr.bf16.vlgmr.msra.gmra.mxu0 %v9444_v63 }
 0x37e   : > { %v7715_v26 = vsel %vm11190_vm3, %v7710_v1, %v7714_v32  ;;  %6142 = vst [vmem:[#allocation6 + $0x28] sm:$0xf] %v5914_v31  ;;  %v7719_v55 = vor.u32 %v7718_v61, %v7714_v32  ;;  %v7726_v24 = vshrl.u32 %v7670_v25, 16  ;;  %v14037_v59 = vld [vmem:[#allocation5 + $0x18] sm:$0xf]  ;;  %v5287_v53 = vrot.slane %v16423_v40, 4  ;;  %10217 = vmatpush3.bf16.msra.mxu0 %v13647_v54  ;;  %v4693_v28 = vpop.f32.mrf.mxu1 }
 0x37f   : > { %v4998_v10 = vsel %vm14013_vm9, %v4833_v13, 0.0  ;;  %v4804_v14 = vadd.f32 %v13738_v52, %v4767_v9  ;;  %7961 = vst [vmem:[#allocation6 + $0x10] sm:$0xf] %v7715_v26  ;;  %v16424_v1 = vld [vmem:[#allocation27_spill] sm:$0xff]  ;;  %v7724_v7 = vrot.slane %v7722_v0, 5  ;;  %v5289_v47 = vshll.u32 %v5219_v17, 16  ;;  %10218 = vmatprep.subr.bf16.mxu0 %v13667_v18  ;;  %vm14134_vm9 = vmand %vm4870_vm12, %vm4903_vm7 }
 0x380   : > { %vm4869_vm6 = vcmp.ge.s32.totalorder %v16424_v1, %v13728_v43  ;;  %vm4902_vm4 = vcmp.lt.s32.totalorder %v16424_v1, %v13730_v30  ;;  %v14053_v2 = vld [vmem:[%s16079_s5 + $0xb8] sm:$0xff]   ;;  %v9776_v23 = vpack.c.bf16 %v4998_v10, %v4997_v21  ;;  %v7720_v36 = vrot.slane %v7719_v55, 4  ;;  %v7621_v51 = vld [vmem:[#allocation5 + $0x20] sm:$0xf]  ;;  %v6338_v54 = vld [vmem:[#allocation6 + $0x18] sm:$0xff] }
 0x381   : > { %v7728_v33 = vrot.slane %v7726_v24, 4  ;;  %v5293_v42 = vshrl.u32 %v5219_v17, 16  ;;  %v4834_v20 = vmax.f32 %v4804_v14, 0.0  ;;  %v4768_v32 = vadd.f32 %v4693_v28, %v13658_v37  ;;  %v14075_v63 = vld [vmem:[#allocation5 + $0x28] sm:$0xf]  ;;  %10256 = vmatprep.subr.bf16.mxu1 %v14053_v2  ;;  %v4695_v17 = vpop.f32.mrf.mxu1  ;;  %vm14152_vm12 = vmand %vm4869_vm6, %vm4902_vm4 }
 0x382   : > { %v5291_v25 = vrot.slane %v5289_v47, 5  ;;  %v5299_v61 = vshll.u32 %v14037_v59, 16  ;;  %9823 = vst [vmem:[#allocation5 + $0x30] sm:$0xff] %v9776_v23   ;;  %v7725_v37 = vsel %vm11190_vm3, %v7720_v36, %v7724_v7  ;;  %v7732_v9 = vshll.u32 %v14075_v63, 16  ;;  %v7622_v31 = vld [vmem:[#allocation5 + $0x24] sm:$0xf]  ;;  %10219 = vmatpush3.bf16.msra.mxu0 %v13667_v18  ;;  %vm14174_vm6 = vmand %vm14134_vm9, %vm4951_vm14 }
 0x383   : > { %v7729_v13 = vor.u32 %v7728_v33, %v7724_v7  ;;  %v4805_v50 = vadd.f32 %v13738_v52, %v4768_v32  ;;  %v7736_v0 = vshrl.u32 %v14075_v63, 16  ;;  %v5295_v62 = vrot.slane %v5293_v42, 4  ;;  %v5851_v55 = vld [vmem:[#allocation5 + $0x20] sm:$0xf]  ;;  %v4698_v10 = vpop.f32.mrf.mxu1  ;;  %10220 = vmatprep.subr.bf16.mxu0 %v13672_v45  ;;  %7645 = vst [vmem:[#allocation6 + $0x18] sm:$0xf] %v7621_v51 }
 0x384   : > { %v5292_v26 = vsel %vm11190_vm3, %v5287_v53, %v5291_v25  ;;  %v4999_v24 = vsel %vm14059_vm0, %v4834_v20, 0.0  ;;  %v14099_v7 = vrot.slane %v7732_v9, 5  ;;  %v14101_v18 = vrot.slane %v5299_v61, 5  ;;  %v14103_v53 = vld [vmem:[#allocation5 + $0x24] sm:$0xf]  ;;  %v16431_v33 = vld [vmem:[#allocation26_spill] sm:$0xff] }
 0x385   : > { %v7730_v14 = vrot.slane %v7729_v13, 4  ;;  %5511 = vst [vmem:[#allocation6 + $0x34] sm:$0xf] %v5292_v26  ;;  %v4835_v47 = vmax.f32 %v4805_v50, 0.0  ;;  %v4769_v23 = vadd.f32 %v4698_v10, %v13660_v48  ;;  %v6340_v28 = vld [vmem:[#allocation6 + $0x24] sm:$0xff]  ;;  %vm4871_vm8 = vcmp.ge.s32.totalorder %v16431_v33, %v13728_v43  ;;  %v4700_v48 = vpop.f32.mrf.mxu1 }
 0x386   : > { %v10543_v36 = vld [vmem:[#allocation6 + $0x1c] ss:$12 sps:$4 sm:$0xff]   ;;  %vm4904_vm5 = vcmp.lt.s32.totalorder %v16431_v33, %v13730_v30  ;;  %v5296_v42 = vor.u32 %v5295_v62, %v5291_v25  ;;  %v5917_v20 = vrot.slane %v5915_v60, 4  ;;  %7646 = vst [vmem:[#allocation6 + $0x24] sm:$0xf] %v7622_v31  ;;  %v9447_v21 = vcombine.low %v6338_v54, %v6340_v28  ;;  %10221 = vmatpush3.bf16.msra.mxu0 %v13672_v45 }
 0x387   : > { %v7735_v32 = vsel %vm11190_vm3, %v7730_v14, %v14099_v7  ;;  %7962 = vst [vmem:[#allocation6 + $0x1c] sm:$0xf] %v7725_v37  ;;  %v5921_v61 = vshll.u32 %v5851_v55, 16  ;;  %v5925_v17 = vshrl.u32 %v5851_v55, 16  ;;  %v14116_v13 = vld [vmem:[#allocation5 + $0x10] sm:$0xf]  ;;  %v4806_v25 = vadd.f32 %v13738_v52, %v4769_v23  ;;  %6807 = vmatprep.mubr.bf16.mxu0 %v10543_v36  ;;  %v4701_v51 = vpop.f32.mrf.mxu1  ;;  %10222 = vmatprep.subr.bf16.mxu0 %v13685_v16  ;;  %vm14212_vm9 = vmand %vm4871_vm8, %vm4904_vm5 }
 0x388   : > { %v5000_v9 = vsel %vm14095_vm15, %v4835_v47, 0.0  ;;  %7963 = vst [vmem:[#allocation6 + $0x28] sm:$0xf] %v7735_v32  ;;  %v5297_v5 = vrot.slane %v5296_v42, 4  ;;  %v5918_v60 = vor.u32 %v5917_v20, %v14001_v27  ;;  %v14123_v50 = vld [vmem:[#allocation5] sm:$0xe]  ;;  %6808 = vmatmul.mubr.bf16.gmra.mxu0 %v9447_v21  ;;  %v4770_v10 = vadd.f32 %v4701_v51, %v13662_v41  ;;  %vm14234_vm8 = vmand %vm14212_vm9, %vm4946_vm13 }
 0x389   : > { %v9781_v37 = vpack.c.bf16 %v5000_v9, %v4999_v24  ;;  %v5923_v31 = vrot.slane %v5921_v61, 5  ;;  %v5927_v26 = vrot.slane %v5925_v17, 4  ;;  %v5931_v62 = vshll.u32 %v14103_v53, 16  ;;  %v5174_v55 = vld [vmem:[#allocation5 + $0x20] sm:$0xf]  ;;  %v16434_v47 = vld [vmem:[#allocation28_spill] sm:$0xff]  ;;  %v4703_v23 = vpop.f32.mrf.mxu1 }
 0x38a   : > { %v4836_v40 = vmax.f32 %v4806_v25, 0.0  ;;  %v5302_v27 = vsel %vm11190_vm3, %v5297_v5, %v14101_v18  ;;  %v5919_v24 = vrot.slane %v5918_v60, 4  ;;  %v7672_v14 = vld [vmem:[#allocation5 + $0x2c] sm:$0xf]  ;;  %vm4872_vm11 = vcmp.ge.s32.totalorder %v16434_v47, %v13728_v43  ;;  %5198 = vst [vmem:[#allocation6 + $0x60] sm:$0xf] %v5174_v55  ;;  %10223 = vmatpush3.bf16.msra.mxu0 %v13685_v16 }
 0x38b   : > { %vm4905_vm0 = vcmp.lt.s32.totalorder %v16434_v47, %v13730_v30  ;;  %9824 = vst [vmem:[#allocation5 + $0x38] sm:$0xff] %v9781_v37   ;;  %v5303_v54 = vshrl.u32 %v14037_v59, 16  ;;  %5512 = vst [vmem:[#allocation6 + $0x40] sm:$0xf] %v5302_v27  ;;  %v5802_v28 = vld [vmem:[#allocation5 + $0x1c] sm:$0xf]  ;;  %v5928_v36 = vor.u32 %v5927_v26, %v5923_v31  ;;  %v4807_v20 = vadd.f32 %v13738_v52, %v4770_v10  ;;  %v4706_v17 = vpop.f32.mrf.mxu1 }
 0x38c   : > { %v14159_v32 = vld [vmem:[#allocation6 + $0x30] sm:$0xff]  ;;  %v5924_v48 = vsel %vm11190_vm3, %v5919_v24, %v5923_v31  ;;  %v14163_v1 = vrot.slane %v5931_v62, 5  ;;  %v7738_v61 = vrot.slane %v7736_v0, 4  ;;  %v5935_v25 = vshrl.u32 %v14103_v53, 16  ;;  %10224 = vmatprep.subr.bf16.mxu0 %v13690_v8  ;;  %v16440_v31 = vld [vmem:[#allocation31_spill] sm:$0xff]  ;;  %vm14254_vm5 = vmand %vm4872_vm11, %vm4905_vm0 }
 0x38d   : > { %16437 = vst [vmem:[#allocation41_spill] sm:$0xff] %v14159_v32  ;;  %v14165_v21 = vld [vmem:[#allocation5 + $0x30] sm:$0xf]  ;;  %5826 = vst [vmem:[#allocation6 + $0x30] sm:$0xf] %v5802_v28  ;;  %v5929_v9 = vrot.slane %v5928_v36, 4  ;;  %v4771_v37 = vadd.f32 %v4706_v17, %v13675_v3  ;;  %vm4873_vm4 = vcmp.ge.s32.totalorder %v16440_v31, %v13728_v43  ;;  %vm4906_vm10 = vcmp.lt.s32.totalorder %v16440_v31, %v13730_v30  ;;  %v4708_v45 = vpop.f32.mrf.mxu1 }
 0x38e   : > { %6143 = vst [vmem:[#allocation6 + $0x34] sm:$0xf] %v5924_v48  ;;  %v7742_v5 = vshll.u32 %v7672_v14, 16  ;;  %v7746_v60 = vshrl.u32 %v7672_v14, 16  ;;  %v14180_v63 = vld [vmem:[#allocation5 + $0x30] sm:$0xf]  ;;  %v7739_v51 = vor.u32 %v7738_v61, %v14099_v7  ;;  %vm4874_vm7 = vcmp.ge.s32.totalorder %v16441_v39, %v13728_v43  ;;  %10225 = vmatpush3.bf16.msra.mxu0 %v13690_v8  ;;  %vm14287_vm11 = vmand %vm4873_vm4, %vm4906_vm10 }
 0x38f   : > { %v5001_v16 = vsel %vm14152_vm12, %v4836_v40, 0.0  ;;  %v4837_v0 = vmax.f32 %v4807_v20, 0.0  ;;  %v5221_v26 = vld [vmem:[#allocation5 + $0x1c] sm:$0xf]  ;;  %v5934_v62 = vsel %vm11190_vm3, %v5929_v9, %v14163_v1  ;;  %v7752_v40 = vshll.u32 %v14165_v21, 16  ;;  %v4709_v20 = vpop.f32.mrf.mxu1  ;;  %10226 = vmatprep.subr.bf16.mxu0 %v13707_v11  ;;  %vm14318_vm12 = vmand %vm14287_vm11, %vm4951_vm14 }
 0x390   : > { %v14193_v55 = vrot.slane %v7742_v5, 5  ;;  %v7748_v10 = vrot.slane %v7746_v60, 4  ;;  %v5175_v3 = vld [vmem:[#allocation5 + $0x24] sm:$0xf]  ;;  %v4808_v27 = vadd.f32 %v13738_v52, %v4771_v37  ;;  %v14199_v24 = vrot.slane %v7739_v51, 4  ;;  %v10680_v45 = vld [vmem:[%s16079_s5 + $0x150] sm:$0xff]  }
 0x391   : > { %v5002_v7 = vsel %vm14174_vm6, %v4837_v0, 0.0  ;;  %v5305_v14 = vrot.slane %v5303_v54, 4  ;;  %vm4907_vm15 = vcmp.lt.s32.totalorder %v16441_v39, %v13730_v30  ;;  %5199 = vst [vmem:[#allocation6 + $0x6c] sm:$0xf] %v5175_v3  ;;  %v5803_v54 = vld [vmem:[#allocation5 + $0x20] sm:$0xf]  ;;  %v4772_v5 = vadd.f32 %v4709_v20, %v13679_v12  ;;  %v4711_v37 = vpop.f32.mrf.mxu1 }
 0x392   : > { %v9786_v23 = vpack.c.bf16 %v5002_v7, %v5001_v16  ;;  %v7749_v36 = vor.u32 %v7748_v10, %v14193_v55  ;;  %v14217_v48 = vld [vmem:[#allocation5 + $0x20] sm:$0xf]  ;;  %v5309_v61 = vshll.u32 %v5221_v26, 16  ;;  %v5313_v59 = vshrl.u32 %v5221_v26, 16  ;;  %v14221_v17 = vld [vmem:[#allocation5 + $0x3c] sm:$0xf]  ;;  %10227 = vmatpush3.bf16.msra.mxu0 %v10680_v45  ;;  %vm14310_vm0 = vmand %vm4874_vm7, %vm4907_vm15 }
 0x393   : > { %v16164_v8 = vrot.slane %v14180_v63, 5  ;;  %v14223_v9 = vld [vmem:[#allocation6 + $0x3c] sm:$0xff]  ;;  %v7756_v33 = vshrl.u32 %v14165_v21, 16  ;;  %v5306_v60 = vor.u32 %v5305_v14, %v14101_v18  ;;  %v4838_v16 = vmax.f32 %v4808_v27, 0.0  ;;  %v4714_v27 = vpop.f32.mrf.mxu1  ;;  %v14268_v20 = vld [vmem:[#allocation5 + $0x2c] sm:$0xf]  ;;  %vm14345_vm6 = vmand %vm14310_vm0, %vm4946_vm13 }
 0x394   : > { %16444 = vst [vmem:[#allocation10_spill] sm:$0xff] %v14223_v9  ;;  %9825 = vst [vmem:[#allocation5 + $0x40] sm:$0xff] %v9786_v23   ;;  %v14228_v0 = vrot.slane %v7752_v40, 5  ;;  %v5311_v11 = vrot.slane %v5309_v61, 5  ;;  %v5315_v51 = vrot.slane %v5313_v59, 4  ;;  %v7745_v12 = vsel %vm11190_vm3, %v14199_v24, %v14193_v55  ;;  %v10681_v23 = vld [vmem:[%s16079_s5 + $0x148] sm:$0xff]  }
 0x395   : > { %5827 = vst [vmem:[#allocation6 + $0x3c] sm:$0xf] %v5803_v54  ;;  %6144 = vst [vmem:[#allocation6 + $0x40] sm:$0xf] %v5934_v62  ;;  %v4809_v18 = vadd.f32 %v13738_v52, %v4772_v5  ;;  %v5307_v62 = vrot.slane %v5306_v60, 4  ;;  %v5319_v10 = vshll.u32 %v14217_v48, 16  ;;  %10228 = vmatprep.subr.bf16.mxu0 %v10681_v23  ;;  %v4773_v54 = vadd.f32 %v4714_v27, %v13692_v19  ;;  %v4716_v5 = vpop.f32.mrf.mxu1 }
 0x396   : > { %v5853_v40 = vld [vmem:[#allocation5 + $0x28] sm:$0xf]  ;;  %v7750_v7 = vrot.slane %v7749_v36, 4  ;;  %v5316_v24 = vor.u32 %v5315_v51, %v5311_v11  ;;  %v5937_v14 = vrot.slane %v5935_v25, 4  ;;  %v5003_v60 = vsel %vm14234_vm8, %v4838_v16, 0.0  ;;  %10229 = vmatpush3.bf16.msra.mxu0 %v10681_v23 }
 0x397   : > { %v4839_v28 = vmax.f32 %v4809_v18, 0.0  ;;  %v5312_v47 = vsel %vm11190_vm3, %v5307_v62, %v5311_v11  ;;  %v14266_v36 = vrot.slane %v5319_v10, 5  ;;  %v5941_v25 = vshll.u32 %v5853_v40, 16  ;;  %v7623_v37 = vld [vmem:[#allocation5 + $0x28] sm:$0xf] }
 0x398   : > { %v5317_v61 = vrot.slane %v5316_v24, 4  ;;  %5513 = vst [vmem:[#allocation6 + $0x4c] sm:$0xf] %v5312_v47  ;;  %v5938_v53 = vor.u32 %v5937_v14, %v14163_v1  ;;  %v5945_v59 = vshrl.u32 %v5853_v40, 16  ;;  %v7624_v51 = vld [vmem:[#allocation5 + $0x2c] sm:$0xf]  ;;  %v7755_v19 = vsel %vm11190_vm3, %v7750_v7, %v14228_v0  ;;  %v4717_v7 = vpop.f32.mrf.mxu1 }
 0x399   : > { %v5004_v11 = vsel %vm14254_vm5, %v4839_v28, 0.0  ;;  %v4810_v18 = vadd.f32 %v13738_v52, %v4773_v54  ;;  %v7674_v62 = vld [vmem:[#allocation5 + $0x34] sm:$0xf]  ;;  %v14279_v10 = vld [vmem:[#allocation5 + $0x38] sm:$0xf]  ;;  %v6342_v1 = vld [vmem:[#allocation6 + $0x30] sm:$0xff]  ;;  %v4774_v47 = vadd.f32 %v4717_v7, %v13697_v35 }
 0x39a   : > { %v9791_v40 = vpack.c.bf16 %v5004_v11, %v5003_v60  ;;  %v5322_v52 = vsel %vm11190_vm3, %v5317_v61, %v14266_v36  ;;  %v5943_v26 = vrot.slane %v5941_v25, 5  ;;  %v5951_v45 = vshll.u32 %v14268_v20, 16  ;;  %v14295_v55 = vld [vmem:[#allocation5 + $0x20] sm:$0xf]  ;;  %v5176_v27 = vld [vmem:[#allocation5 + $0x28] sm:$0xf] }
 0x39b   : > { %v10682_v24 = vld [vmem:[%s16079_s5 + $0x140] sm:$0xff]   ;;  %5514 = vst [vmem:[#allocation6 + $0x58] sm:$0xf] %v5322_v52  ;;  %v5939_v28 = vrot.slane %v5938_v53, 4  ;;  %v5947_v54 = vrot.slane %v5945_v59, 4  ;;  %v4840_v25 = vmax.f32 %v4810_v18, 0.0 }
 0x39c   : > { %10230 = vmatprep.subr.bf16.mxu0 %v10682_v24  ;;  %v6344_v31 = vld [vmem:[#allocation6 + $0x3c] sm:$0xff]  ;;  %5200 = vst [vmem:[#allocation6 + $0x78] sm:$0xf] %v5176_v27  ;;  %7647 = vst [vmem:[#allocation6 + $0x30] sm:$0xf] %v7623_v37  ;;  %v7758_v5 = vrot.slane %v7756_v33, 4 }
 0x39d   : > { %v10546_v14 = vld [vmem:[#allocation6 + $0x34] ss:$12 sps:$4 sm:$0xff]   ;;  %7648 = vst [vmem:[#allocation6 + $0x3c] sm:$0xf] %v7624_v51  ;;  %v9450_v61 = vcombine.low %v6342_v1, %v6344_v31  ;;  %9826 = vst [vmem:[#allocation5 + $0x48] sm:$0xff] %v9791_v40   ;;  %v7762_v60 = vshll.u32 %v7674_v62, 16  ;;  %v5944_v59 = vsel %vm11190_vm3, %v5939_v28, %v5943_v26  ;;  %v5948_v39 = vor.u32 %v5947_v54, %v5943_v26 }
 0x39e   : > { %7964 = vst [vmem:[#allocation6 + $0x34] sm:$0xf] %v7745_v12  ;;  %7965 = vst [vmem:[#allocation6 + $0x40] sm:$0xf] %v7755_v19  ;;  %v5540_v53 = vld [vmem:[#allocation5 + $0x24] sm:$0xf]  ;;  %v4719_v12 = vpop.f32.mrf.mxu1  ;;  %6815 = vmatprep.mubr.bf16.mxu0 %v10546_v14  ;;  %10231 = vmatpush3.bf16.msra.mxu0 %v10682_v24 }
 0x39f   : > { %v5804_v33 = vld [vmem:[#allocation5 + $0x24] sm:$0xf]  ;;  %v7766_v37 = vshrl.u32 %v7674_v62, 16  ;;  %v7772_v51 = vshll.u32 %v14279_v10, 16  ;;  %v5541_v19 = vld [vmem:[#allocation5 + $0x28] sm:$0xf]  ;;  %6816 = vmatmul.mubr.bf16.gmra.mxu0 %v9450_v61 }
 0x3a0   : > { %v5542_v11 = vld [vmem:[#allocation5 + $0x2c] sm:$0xf]  ;;  %v14325_v18 = vrot.slane %v5951_v45, 5  ;;  %v14328_v40 = vrot.slane %v7762_v60, 5  ;;  %v14336_v62 = vpop.f32.mrf.mxu1  ;;  %v14338_v7 = vld [vmem:[#allocation6 + $0x48] sm:$0xff]  ;;  %v5949_v27 = vrot.slane %v5948_v39, 4  ;;  %v7759_v45 = vor.u32 %v7758_v5, %v14228_v0 }
 0x3a1   : > { %v14333_v16 = vld [vmem:[%s16078_s4] ss:$0 sm:$0xff]  ;;  %16455 = vst [vmem:[#allocation13_spill] sm:$0xff] %v14338_v7  ;;  %v7768_v24 = vrot.slane %v7766_v37, 4  ;;  %v16163_v14 = vrot.slane %v14295_v55, 5  ;;  %v5005_v54 = vsel %vm14318_vm12, %v4840_v25, 0.0 }
 0x3a2   : > { %v4811_v52 = vadd.f32 %v14333_v16, %v4774_v47  ;;  %v5177_v26 = vld [vmem:[#allocation5 + $0x2c] sm:$0xf]  ;;  %v5805_v47 = vld [vmem:[#allocation5 + $0x28] sm:$0xf]  ;;  %5828 = vst [vmem:[#allocation6 + $0x48] sm:$0xf] %v5804_v33  ;;  %v4724_v35 = vpop.f32.mrf.mxu1  ;;  %v5954_v12 = vsel %vm11190_vm3, %v5949_v27, %v14325_v18 }
 0x3a3   : > { %v14350_v28 = vld [vmem:[#allocation5 + $0x2c] sm:$0xf]  ;;  %5201 = vst [vmem:[#allocation6 + $0x84] sm:$0xf] %v5177_v26  ;;  %6145 = vst [vmem:[#allocation6 + $0x4c] sm:$0xf] %v5944_v59  ;;  %v7769_v33 = vor.u32 %v7768_v24, %v14328_v40 }
 0x3a4   : > { %v4841_v0 = vmax.f32 %v4811_v52, 0.0  ;;  %v5607_v61 = vrot.slane %v5540_v53, 5  ;;  %v5610_v5 = vrot.slane %v5541_v19, 5  ;;  %v6172_v60 = vld [vmem:[#allocation5 + $0x30] sm:$0xf]  ;;  %v14357_v39 = vrot.slane %v7772_v51, 5  ;;  %v14368_v35 = vpop.f32.mrf.mxu1 }
 0x3a5   : > { %v5606_v37 = vrot.slane %v16163_v14, 4  ;;  %v5613_v26 = vrot.slane %v5542_v11, 5  ;;  %v6173_v21 = vld [vmem:[#allocation5 + $0x34] sm:$0xf]  ;;  %v14366_v52 = vld [vmem:[#allocation5 + $0x38] sm:$0xf] }
 0x3a6   : > { %v14361_v25 = vld [vmem:[#allocation6 + $0x54] sm:$0xff]  ;;  %v5006_v53 = vsel %vm14345_vm6, %v4841_v0, 0.0  ;;  %v5609_v59 = vrot.slane %v5607_v61, 4  ;;  %v5612_v19 = vrot.slane %v5610_v5, 4  ;;  %v7760_v51 = vrot.slane %v7759_v45, 4  ;;  %v16459_v45 = vld [vmem:[#allocation30_spill] sm:$0xff] }
 0x3a7   : > { %16458 = vst [vmem:[#allocation11_spill] sm:$0xff] %v14361_v25  ;;  %5829 = vst [vmem:[#allocation6 + $0x54] sm:$0xf] %v5805_v47  ;;  %v9796_v27 = vpack.c.bf16 %v5006_v53, %v5005_v54  ;;  %v5608_v11 = vsel %vm11077_vm1, %v5606_v37, %v5607_v61  ;;  %v5615_v14 = vrot.slane %v5613_v26, 4  ;;  %v14372_v41 = vld [vmem:[#allocation5 + $0x38] sm:$0xf]  ;;  %vm4875_vm4 = vcmp.ge.s32.totalorder %v16459_v45, %v13728_v43  ;;  %v4727_v54 = vpop.f32.mrf.mxu1 }
 0x3a8   : > { %6146 = vst [vmem:[#allocation6 + $0x58] sm:$0xf] %v5954_v12  ;;  %v14374_v24 = vld [vmem:[#allocation5 + $0x3c] sm:$0xf]  ;;  %v5611_v31 = vsel %vm11077_vm1, %v5609_v59, %v5610_v5  ;;  %v5614_v0 = vsel %vm11077_vm1, %v5612_v19, %v5613_v26  ;;  %5686 = vst [vmem:[#allocation6 + $0x68] sm:$0xf] %v5608_v11  ;;  %vm4908_vm10 = vcmp.lt.s32.totalorder %v16459_v45, %v13730_v30 }
 0x3a9   : > { %v16165_v47 = vrot.slane %v14350_v28, 5  ;;  %v6239_v12 = vrot.slane %v6172_v60, 5  ;;  %9827 = vst [vmem:[#allocation5 + $0x50] sm:$0xff] %v9796_v27   ;;  %v5617_v61 = vsel %vm11077_vm1, %v5615_v14, %v16164_v8  ;;  %5687 = vst [vmem:[#allocation6 + $0x74] sm:$0xf] %v5611_v31  ;;  %v6242_v5 = vrot.slane %v6173_v21, 5  ;;  %v14396_v14 = vpop.f32.mrf.mxu1 }
 0x3aa   : > { %5688 = vst [vmem:[#allocation6 + $0x80] sm:$0xf] %v5614_v0  ;;  %v6245_v37 = vrot.slane %v14366_v52, 5  ;;  %v14388_v26 = vld [vmem:[#allocation5 + $0x40] sm:$0xf]  ;;  %v7770_v60 = vrot.slane %v7769_v33, 4  ;;  %v7765_v21 = vsel %vm11190_vm3, %v7760_v51, %v14328_v40  ;;  %vm14462_vm9 = vmand %vm4875_vm4, %vm4908_vm10 }
 0x3ab   : > { %v14390_v53 = vld [vmem:[#allocation5 + $0x44] sm:$0xf]  ;;  %5689 = vst [vmem:[#allocation6 + $0x8c] sm:$0xf] %v5617_v61  ;;  %v6241_v59 = vrot.slane %v6239_v12, 4  ;;  %v16169_v19 = vrot.slane %v14372_v41, 5  ;;  %v4732_v40 = vpop.f32.mrf.mxu1 }
 0x3ac   : > { %v16170_v27 = vrot.slane %v14374_v24, 5  ;;  %v6238_v11 = vrot.slane %v16165_v47, 4  ;;  %v6247_v31 = vrot.slane %v6245_v37, 4  ;;  %v5223_v0 = vld [vmem:[#allocation5 + $0x24] sm:$0xf]  ;;  %v7775_v61 = vsel %vm11190_vm3, %v7770_v60, %v14357_v39  ;;  %v16460_v8 = vld [vmem:[#allocation32_spill] sm:$0xff] }
 0x3ad   : > { %v7625_v33 = vld [vmem:[#allocation5 + $0x30] sm:$0xf]  ;;  %v7626_v54 = vld [vmem:[#allocation5 + $0x34] sm:$0xf]  ;;  %v6244_v42 = vrot.slane %v6242_v5, 4  ;;  %v6346_v51 = vld [vmem:[#allocation6 + $0x48] sm:$0xff]  ;;  %v4775_v60 = vadd.f32 %v14336_v62, %v13700_v34  ;;  %vm4876_vm7 = vcmp.ge.s32.totalorder %v16460_v8, %v13728_v43  ;;  %v6243_v40 = vsel %vm11077_vm1, %v6241_v59, %v6242_v5 }
 0x3ae   : > { %v14409_v3 = vld [vmem:[#allocation5 + $0x28] sm:$0xf]  ;;  %v6240_v47 = vsel %vm11077_vm1, %v6238_v11, %v6239_v12  ;;  %v8059_v52 = vrot.slane %v16169_v19, 4  ;;  %v8062_v23 = vrot.slane %v16170_v27, 4  ;;  %v5855_v7 = vld [vmem:[#allocation5 + $0x30] sm:$0xf]  ;;  %vm4909_vm15 = vcmp.lt.s32.totalorder %v16460_v8, %v13730_v30  ;;  %v14429_v27 = vpop.f32.mrf.mxu1 }
 0x3af   : > { %v6348_v1 = vld [vmem:[#allocation6 + $0x54] sm:$0xff]  ;;  %v16461_v12 = vshrl.u32 %v14217_v48, 16  ;;  %v5329_v32 = vshll.u32 %v5223_v0, 16  ;;  %7649 = vst [vmem:[#allocation6 + $0x48] sm:$0xf] %v7625_v33  ;;  %v16462_v5 = vrot.slane %v14221_v17, 5  ;;  %v4812_v59 = vadd.f32 %v14333_v16, %v4775_v60  ;;  %vm14518_vm11 = vmand %vm4876_vm7, %vm4909_vm15 }
 0x3b0   : > { %v10550_v25 = vld [vmem:[#allocation6 + $0x4c] ss:$12 sps:$4 sm:$0xff]   ;;  %7650 = vst [vmem:[#allocation6 + $0x54] sm:$0xf] %v7626_v54  ;;  %v9453_v34 = vcombine.low %v6346_v51, %v6348_v1  ;;  %v14431_v62 = vld [vmem:[#allocation6 + $0x68] sm:$0xf]  ;;  %v6246_v33 = vsel %vm11077_vm1, %v6244_v42, %v6245_v37  ;;  %v4735_v51 = vpop.f32.mrf.mxu1  ;;  %vm14544_vm0 = vmand %vm14518_vm11, %vm4951_vm14 }
 0x3b1   : > { %v5325_v11 = vrot.slane %v16461_v12, 4  ;;  %v14425_v19 = vld [vmem:[#allocation5 + $0x34] sm:$0xf]  ;;  %7966 = vst [vmem:[#allocation6 + $0x4c] sm:$0xf] %v7765_v21  ;;  %v6249_v48 = vsel %vm11077_vm1, %v6247_v31, %v16462_v5  ;;  %v5333_v12 = vshrl.u32 %v5223_v0, 16  ;;  %6823 = vmatprep.mubr.bf16.mxu0 %v10550_v25 }
 0x3b2   : > { %7967 = vst [vmem:[#allocation6 + $0x58] sm:$0xf] %v7775_v61  ;;  %v5178_v9 = vld [vmem:[#allocation5 + $0x30] sm:$0xf]  ;;  %6318 = vst [vmem:[#allocation6 + $0x68] sm:$0xf] %v6240_v47  ;;  %6824 = vmatmul.mubr.bf16.gmra.mxu0 %v9453_v34 }
 0x3b3   : > { %v14438_v58 = vld [vmem:[#allocation6 + $0x74] sm:$0xf]  ;;  %v5326_v1 = vor.u32 %v5325_v11, %v14266_v36  ;;  %v5331_v21 = vrot.slane %v5329_v32, 5  ;;  %v5339_v54 = vshll.u32 %v14409_v3, 16  ;;  %v7676_v61 = vld [vmem:[#allocation5 + $0x3c] sm:$0xf] }
 0x3b4   : > { %5202 = vst [vmem:[#allocation6 + $0x90] sm:$0xf] %v5178_v9  ;;  %v14444_v31 = vld [vmem:[#allocation6 + $0x8c] sm:$0xf]  ;;  %6319 = vst [vmem:[#allocation6 + $0x74] sm:$0xf] %v6243_v40  ;;  %v14454_v9 = vpop.f32.mrf.mxu1 }
 0x3b5   : > { %v16463_v25 = vrot.slane %v14388_v26, 5  ;;  %v5335_v60 = vrot.slane %v5333_v12, 4  ;;  %v16464_v5 = vshrl.u32 %v14268_v20, 16  ;;  %v5961_v47 = vshll.u32 %v5855_v7, 16  ;;  %6321 = vst [vmem:[#allocation6 + $0x8c] sm:$0xf] %v6249_v48 }
 0x3b6   : > { %v4842_v36 = vmax.f32 %v4812_v59, 0.0  ;;  %v5327_v32 = vrot.slane %v5326_v1, 4  ;;  %v14450_v37 = vrot.slane %v5339_v54, 5  ;;  %v5965_v11 = vshrl.u32 %v5855_v7, 16  ;;  %v14452_v51 = vld [vmem:[#allocation6 + $0x80] sm:$0xf] }
 0x3b7   : > { %v8065_v0 = vrot.slane %v16463_v25, 4  ;;  %v5957_v42 = vrot.slane %v16464_v5, 4  ;;  %16465 = vst [vmem:[#allocation12_spill] sm:$0xff] %v14452_v51  ;;  %v5336_v40 = vor.u32 %v5335_v60, %v5331_v21  ;;  %v14467_v48 = vrot.slane %v5961_v47, 5  ;;  %6320 = vst [vmem:[#allocation6 + $0x80] sm:$0xf] %v6246_v33  ;;  %v4740_v60 = vpop.f32.mrf.mxu1 }
 0x3b8   : > { %v5971_v7 = vshll.u32 %v14425_v19, 16  ;;  %v16468_v59 = vld [vmem:[#allocation35_spill] sm:$0xff]  ;;  %v5179_v12 = vld [vmem:[#allocation5 + $0x34] sm:$0xf]  ;;  %v16469_v45 = vrot.slane %v14374_v24, 5  ;;  %v16470_v54 = vmov %v16463_v25  ;;  %v5332_v33 = vsel %vm11190_vm3, %v5327_v32, %v5331_v21  ;;  %v14527_v60 = vld [vmem:[%s16079_s5 + $0xb0] sm:$0xff]  }
 0x3b9   : > { %v5958_v34 = vor.u32 %v5957_v42, %v14325_v18  ;;  %vm4877_vm8 = vcmp.ge.s32.totalorder %v16468_v59, %v13728_v43  ;;  %vm4910_vm5 = vcmp.lt.s32.totalorder %v16468_v59, %v13730_v30  ;;  %v8064_v18 = vsel %vm11077_vm1, %v8062_v23, %v16470_v54  ;;  %5203 = vst [vmem:[#allocation6 + $0x9c] sm:$0xf] %v5179_v12  ;;  %v14485_v47 = vld [vmem:[#allocation5 + $0x40] sm:$0xf] }
 0x3ba   : > { %v8061_v1 = vsel %vm11077_vm1, %v8059_v52, %v16469_v45  ;;  %v5967_v25 = vrot.slane %v5965_v11, 4  ;;  %v5337_v5 = vrot.slane %v5336_v40, 4  ;;  %v5343_v42 = vshrl.u32 %v14409_v3, 16  ;;  %5515 = vst [vmem:[#allocation6 + $0x64] sm:$0xf] %v5332_v33  ;;  %v14498_v40 = vpop.f32.mrf.mxu1  ;;  %vm14578_vm4 = vmand %vm4877_vm8, %vm4910_vm5 }
 0x3bb   : > { %v16471_v24 = vshrl.u32 %v14279_v10, 16  ;;  %v7782_v45 = vshll.u32 %v7676_v61, 16  ;;  %v16472_v26 = vrot.slane %v14390_v53, 5  ;;  %v14495_v21 = vsel %vm14462_vm9, %v4842_v36, 0.0  ;;  %v5225_v3 = vld [vmem:[#allocation5 + $0x2c] sm:$0xf]  ;;  %vm14605_vm10 = vmand %vm14578_vm4, %vm4946_vm13 }
 0x3bc   : > { %v5968_v32 = vor.u32 %v5967_v25, %v14467_v48  ;;  %v7786_v11 = vshrl.u32 %v7676_v61, 16  ;;  %v5342_v10 = vsel %vm11190_vm3, %v5337_v5, %v14450_v37  ;;  %v5959_v12 = vrot.slane %v5958_v34, 4  ;;  %v10554_v20 = vld [vmem:[#allocation6 + $0x68] ss:$12 sps:$4 sm:$0xff]   ;;  %v14557_v34 = vld [vmem:[#allocation5 + $0x3c] sm:$0xf] }
 0x3bd   : > { %v7778_v52 = vrot.slane %v16471_v24, 4  ;;  %v8067_v23 = vsel %vm11077_vm1, %v8065_v0, %v16472_v26  ;;  %v14503_v54 = vrot.slane %v5971_v7, 5  ;;  %v14506_v0 = vld [vmem:[#allocation5 + $0x30] sm:$0xf]  ;;  %5516 = vst [vmem:[#allocation6 + $0x70] sm:$0xf] %v5342_v10  ;;  %v4776_v61 = vadd.f32 %v14368_v35, %v13702_v44  ;;  %v4743_v7 = vpop.f32.mrf.mxu1  ;;  %10240 = vmatprep.mubr.bf16.mxu1 %v10554_v20 }
 0x3be   : > { %v14508_v36 = vrot.slane %v7782_v45, 5  ;;  %v7788_v25 = vrot.slane %v7786_v11, 4  ;;  %8139 = vst [vmem:[#allocation6 + $0x68] sm:$0xf] %v8061_v1  ;;  %8140 = vst [vmem:[#allocation6 + $0x74] sm:$0xf] %v8064_v18  ;;  %v5964_v24 = vsel %vm11190_vm3, %v5959_v12, %v14467_v48 }
 0x3bf   : > { %v7779_v33 = vor.u32 %v7778_v52, %v14357_v39  ;;  %v4777_v39 = vadd.f32 %v14396_v14, %v13713_v22  ;;  %v5969_v44 = vrot.slane %v5968_v32, 4  ;;  %v5975_v35 = vshrl.u32 %v14425_v19, 16  ;;  %v10558_v45 = vld [vmem:[#allocation6 + $0x80] ss:$12 sps:$4 sm:$0xff]   ;;  %v14537_v26 = vpop.f32.mrf.mxu1  ;;  %v5806_v1 = vld [vmem:[#allocation5 + $0x2c] sm:$0xf] }
 0x3c0   : > { %v5345_v5 = vrot.slane %v5343_v42, 4  ;;  %v5349_v8 = vshll.u32 %v5225_v3, 16  ;;  %v7792_v22 = vshll.u32 %v14485_v47, 16  ;;  %v4813_v14 = vadd.f32 %v14333_v16, %v4776_v61  ;;  %8141 = vst [vmem:[#allocation6 + $0x80] sm:$0xf] %v8067_v23  ;;  %10241 = vmatmul.mubr.bf16.vlgmr.msra.gmra.mxu1 %v10558_v45 }
 0x3c1   : > { %v14533_v52 = vrot.slane %v7779_v33, 4  ;;  %v7796_v18 = vshrl.u32 %v14485_v47, 16  ;;  %v5353_v32 = vshrl.u32 %v5225_v3, 16  ;;  %v14549_v11 = vld [vmem:[#allocation6 + $0x60] sm:$0xff]  ;;  %v7789_v10 = vor.u32 %v7788_v25, %v14508_v36  ;;  %v5857_v20 = vld [vmem:[#allocation5 + $0x38] sm:$0xf]  ;;  %v4748_v61 = vpop.f32.mrf.mxu1  ;;  %10257 = vmatpush3.bf16.msra.mxu1 %v14053_v2 }
 0x3c2   : > { %v5346_v48 = vor.u32 %v5345_v5, %v14450_v37  ;;  %v5351_v42 = vrot.slane %v5349_v8, 5  ;;  %16477 = vst [vmem:[#allocation17_spill] sm:$0xff] %v14549_v11  ;;  %v4843_v12 = vmax.f32 %v4813_v14, 0.0  ;;  %v4814_v47 = vadd.f32 %v14333_v16, %v4777_v39  ;;  %5830 = vst [vmem:[#allocation6 + $0x60] sm:$0xf] %v5806_v1  ;;  %v16478_v25 = vld [vmem:[#allocation37_spill] sm:$0xff]  ;;  %10258 = vmatprep.subr.bf16.mxu1 %v14527_v60 }
 0x3c3   : > { %v5359_v33 = vshll.u32 %v14506_v0, 16  ;;  %v5974_v23 = vsel %vm11190_vm3, %v5969_v44, %v14503_v54  ;;  %6147 = vst [vmem:[#allocation6 + $0x64] sm:$0xf] %v5964_v24  ;;  %v5355_v3 = vrot.slane %v5353_v32, 4  ;;  %v5977_v7 = vrot.slane %v5975_v35, 4  ;;  %v14584_v24 = vpop.f32.mrf.mxu1  ;;  %v14599_v11 = vld [vmem:[%s16079_s5 + $0xa0] sm:$0xff]  }
 0x3c4   : > { %v5347_v37 = vrot.slane %v5346_v48, 4  ;;  %vm4878_vm12 = vcmp.ge.s32.totalorder %v16478_v25, %v13728_v43  ;;  %vm4911_vm6 = vcmp.lt.s32.totalorder %v16478_v25, %v13730_v30  ;;  %v14568_v44 = vrot.slane %v7792_v22, 5  ;;  %v7678_v8 = vld [vmem:[#allocation5 + $0x44] sm:$0xf]  ;;  %v10573_v22 = vld [vmem:[%s16079_s5 + $0xa8] sm:$0xff]   ;;  %v14590_v14 = vld [vmem:[#allocation6 + $0x6c] sm:$0xff] }
 0x3c5   : > { %v5008_v5 = vsel %vm14544_vm0, %v4843_v12, 0.0  ;;  %v14582_v2 = vrot.slane %v5359_v33, 5  ;;  %16481 = vst [vmem:[#allocation15_spill] sm:$0xff] %v14590_v14  ;;  %v5807_v45 = vld [vmem:[#allocation5 + $0x30] sm:$0xf]  ;;  %v5356_v19 = vor.u32 %v5355_v3, %v5351_v42  ;;  %v5978_v48 = vor.u32 %v5977_v7, %v14503_v54  ;;  %v4751_v39 = vpop.f32.mrf.mxu1  ;;  %10259 = vmatpush3.bf16.msra.mxu1 %v14527_v60  ;;  %vm14673_vm7 = vmand %vm4878_vm12, %vm4911_vm6 }
 0x3c6   : > { %v9801_v59 = vpack.c.bf16 %v5008_v5, %v14495_v21  ;;  %v5352_v1 = vsel %vm11190_vm3, %v5347_v37, %v5351_v42  ;;  %5831 = vst [vmem:[#allocation6 + $0x6c] sm:$0xf] %v5807_v45  ;;  %6148 = vst [vmem:[#allocation6 + $0x70] sm:$0xf] %v5974_v23  ;;  %v7790_v32 = vrot.slane %v7789_v10, 4  ;;  %v4844_v12 = vmax.f32 %v4814_v47, 0.0  ;;  %10260 = vmatprep.subr.bf16.mxu1 %v10573_v22 }
 0x3c7   : > { %5517 = vst [vmem:[#allocation6 + $0x7c] sm:$0xf] %v5352_v1  ;;  %v5981_v33 = vshll.u32 %v5857_v20, 16  ;;  %v5985_v61 = vshrl.u32 %v5857_v20, 16  ;;  %v5357_v54 = vrot.slane %v5356_v19, 4  ;;  %v5991_v42 = vshll.u32 %v14557_v34, 16 }
 0x3c8   : > { %9828 = vst [vmem:[#allocation5 + $0x58] sm:$0xff] %v9801_v59   ;;  %v14610_v10 = vld [vmem:[#allocation5 + $0x48] sm:$0xf]  ;;  %v7798_v47 = vrot.slane %v7796_v18, 4  ;;  %v7802_v20 = vshll.u32 %v7678_v8, 16  ;;  %v7806_v39 = vshrl.u32 %v7678_v8, 16  ;;  %v7795_v35 = vsel %vm11190_vm3, %v7790_v32, %v14568_v44 }
 0x3c9   : > { %v14612_v23 = vld [vmem:[#allocation5 + $0x34] sm:$0xf]  ;;  %v5983_v3 = vrot.slane %v5981_v33, 5  ;;  %v5987_v7 = vrot.slane %v5985_v61, 4  ;;  %v14616_v5 = vld [vmem:[#allocation5 + $0x38] sm:$0xf]  ;;  %v5362_v18 = vsel %vm11190_vm3, %v5357_v54, %v14582_v2  ;;  %10261 = vmatpush3.bf16.msra.mxu1 %v10573_v22 }
 0x3ca   : > { %v5979_v45 = vrot.slane %v5978_v48, 4  ;;  %v7799_v59 = vor.u32 %v7798_v47, %v14568_v44  ;;  %v14625_v60 = vld [vmem:[#allocation5 + $0x40] sm:$0xf]  ;;  %v5180_v1 = vld [vmem:[#allocation5 + $0x38] sm:$0xf]  ;;  %v14629_v8 = vsel %vm14605_vm10, %v4844_v12, 0.0  ;;  %10262 = vmatprep.subr.bf16.mxu1 %v14599_v11 }
 0x3cb   : > { %5518 = vst [vmem:[#allocation6 + $0x88] sm:$0xf] %v5362_v18  ;;  %v5988_v19 = vor.u32 %v5987_v7, %v5983_v3  ;;  %v14631_v33 = vrot.slane %v7802_v20, 5  ;;  %v14633_v61 = vrot.slane %v7806_v39, 4  ;;  %v5181_v32 = vld [vmem:[#allocation5 + $0x3c] sm:$0xf]  ;;  %v4778_v20 = vadd.f32 %v14429_v27, %v13716_v15 }
 0x3cc   : > { %5204 = vst [vmem:[#allocation6 + $0xa8] sm:$0xf] %v5180_v1  ;;  %v10588_v48 = vld [vmem:[%s16079_s5 + $0x78] sm:$0xff]   ;;  %v7627_v44 = vld [vmem:[#allocation5 + $0x38] sm:$0xf]  ;;  %v5984_v21 = vsel %vm11190_vm3, %v5979_v45, %v5983_v3  ;;  %v14640_v12 = vrot.slane %v5991_v42, 5 }
 0x3cd   : > { %v7628_v54 = vld [vmem:[#allocation5 + $0x3c] sm:$0xf]  ;;  %v5808_v47 = vld [vmem:[#allocation5 + $0x34] sm:$0xf]  ;;  %v16484_v7 = vrot.slane %v14180_v63, 5  ;;  %v5989_v1 = vrot.slane %v5988_v19, 4  ;;  %9960 = vmatprep.subr.bf16.mxu0 %v10588_v48  ;;  %v4815_v22 = vadd.f32 %v14333_v16, %v4778_v20  ;;  %10263 = vmatpush3.bf16.msra.mxu1 %v14599_v11 }
 0x3ce   : > { %5205 = vst [vmem:[#allocation6 + $0xb4] sm:$0xf] %v5181_v32  ;;  %v6350_v18 = vld [vmem:[#allocation6 + $0x60] sm:$0xff]  ;;  %v14646_v37 = vrot.slane %v7799_v59, 4  ;;  %v7812_v14 = vshll.u32 %v14610_v10, 16  ;;  %v5619_v51 = vrot.slane %v14612_v23, 5  ;;  %v16486_v23 = vsel %vm11190_vm3, %v14533_v52, %v14508_v36 }
 0x3cf   : > { %v5618_v39 = vrot.slane %v16484_v7, 4  ;;  %v10578_v42 = vld [vmem:[%s16079_s5 + $0x98] sm:$0xff]   ;;  %v10555_v63 = vld [vmem:[#allocation6 + $0x64] ss:$12 sps:$4 sm:$0xff]   ;;  %v14654_v27 = vld [vmem:[#allocation6 + $0x78] sm:$0xff]  ;;  %v5622_v3 = vrot.slane %v14616_v5, 5  ;;  %v7809_v32 = vor.u32 %v14633_v61, %v14631_v33  ;;  %v5994_v61 = vsel %vm11190_vm3, %v5989_v1, %v14640_v12 }
 0x3d0   : > { %v6352_v15 = vld [vmem:[#allocation6 + $0x6c] sm:$0xff]  ;;  %16485 = vst [vmem:[#allocation14_spill] sm:$0xff] %v14654_v27  ;;  %v6251_v45 = vrot.slane %v14625_v60, 5  ;;  %7651 = vst [vmem:[#allocation6 + $0x60] sm:$0xf] %v7627_v44  ;;  %v5995_v19 = vshrl.u32 %v14557_v34, 16  ;;  %6831 = vmatprep.mubr.bf16.mxu0 %v10555_v63  ;;  %10264 = vmatprep.subr.bf16.mxu1 %v10578_v42 }
 0x3d1   : > { %7652 = vst [vmem:[#allocation6 + $0x6c] sm:$0xf] %v7628_v54  ;;  %7968 = vst [vmem:[#allocation6 + $0x64] sm:$0xf] %v16486_v23  ;;  %v9456_v59 = vcombine.low %v6350_v18, %v6352_v15  ;;  %v5620_v36 = vsel %vm11077_vm1, %v5618_v39, %v5619_v51  ;;  %v6177_v52 = vld [vmem:[#allocation5 + $0x44] sm:$0xf]  ;;  %10265 = vmatpush3.bf16.msra.mxu1 %v10578_v42 }
 0x3d2   : > { %7969 = vst [vmem:[#allocation6 + $0x70] sm:$0xf] %v7795_v35  ;;  %5832 = vst [vmem:[#allocation6 + $0x78] sm:$0xf] %v5808_v47  ;;  %v7996_v35 = vld [vmem:[#allocation5 + $0x48] sm:$0xf] }
 0x3d3   : > { %6149 = vst [vmem:[#allocation6 + $0x7c] sm:$0xf] %v5984_v21  ;;  %v5809_v60 = vld [vmem:[#allocation5 + $0x38] sm:$0xf]  ;;  %v4845_v44 = vmax.f32 %v4815_v22, 0.0  ;;  %v5621_v54 = vrot.slane %v5619_v51, 4  ;;  %6832 = vmatmul.mubr.bf16.gmra.mxu0 %v9456_v59 }
 0x3d4   : > { %5690 = vst [vmem:[#allocation6 + $0x98] sm:$0xf] %v5620_v36  ;;  %v14683_v25 = vld [vmem:[#allocation5 + $0x4c] sm:$0xf]  ;;  %v14690_v21 = vrot.slane %v7812_v14, 5  ;;  %v16489_v20 = vrot.slane %v14221_v17, 5 }
 0x3d5   : > { %v6253_v39 = vrot.slane %v6251_v45, 4  ;;  %v14694_v18 = vld [vmem:[#allocation5 + $0x50] sm:$0xf]  ;;  %v16490_v51 = vld [vmem:[#allocation34_spill] sm:$0xff]  ;;  %v5010_v17 = vsel %vm14673_vm7, %v4845_v44, 0.0  ;;  %v5623_v14 = vsel %vm11077_vm1, %v5621_v54, %v5622_v3  ;;  %v16492_v15 = vrot.slane %v14390_v53, 5 }
 0x3d6   : > { %v6250_v7 = vrot.slane %v16489_v20, 4  ;;  %vm4879_vm15 = vcmp.ge.s32.totalorder %v16490_v51, %v13728_v43  ;;  %vm4912_vm9 = vcmp.lt.s32.totalorder %v16490_v51, %v13730_v30  ;;  %v10581_v11 = vld [vmem:[%s16079_s5 + $0x90] sm:$0xff]   ;;  %v8069_v22 = vrot.slane %v7996_v35, 5  ;;  %v5227_v23 = vld [vmem:[#allocation5 + $0x34] sm:$0xf]  ;;  %v16493_v59 = vld [vmem:[#allocation36_spill] sm:$0xff] }
 0x3d7   : > { %v14703_v1 = vld [vmem:[#allocation6 + $0x84] sm:$0xff]  ;;  %v8068_v63 = vrot.slane %v16492_v15, 4  ;;  %vm4880_vm8 = vcmp.ge.s32.totalorder %v16493_v59, %v13728_v43  ;;  %vm4913_vm5 = vcmp.lt.s32.totalorder %v16493_v59, %v13730_v30  ;;  %v7810_v36 = vrot.slane %v7809_v32, 4  ;;  %5691 = vst [vmem:[#allocation6 + $0xa4] sm:$0xf] %v5623_v14  ;;  %10266 = vmatprep.subr.bf16.mxu1 %v10581_v11  ;;  %vm14786_vm11 = vmand %vm4879_vm15, %vm4912_vm9 }
 0x3d8   : > { %16491 = vst [vmem:[#allocation16_spill] sm:$0xff] %v14703_v1  ;;  %5833 = vst [vmem:[#allocation6 + $0x84] sm:$0xf] %v5809_v60  ;;  %v9806_v5 = vpack.c.bf16 %v5010_v17, %v14629_v8  ;;  %v14716_v44 = vrot.slane %v5622_v3, 4  ;;  %v6254_v54 = vrot.slane %v6177_v52, 5  ;;  %v6252_v53 = vsel %vm11077_vm1, %v6250_v7, %v6251_v45  ;;  %10267 = vmatpush3.bf16.msra.mxu1 %v10581_v11 }
 0x3d9   : > { %6150 = vst [vmem:[#allocation6 + $0x88] sm:$0xf] %v5994_v61  ;;  %v14718_v20 = vld [vmem:[#allocation5 + $0x38] sm:$0xf]  ;;  %v8070_v35 = vsel %vm11077_vm1, %v8068_v63, %v8069_v22  ;;  %v8072_v15 = vrot.slane %v14683_v25, 5  ;;  %v8075_v60 = vrot.slane %v14694_v18, 5  ;;  %v7815_v8 = vsel %vm11190_vm3, %v7810_v36, %v14690_v21  ;;  %vm14803_vm0 = vmand %vm4880_vm8, %vm4913_vm5 }
 0x3da   : > { %9829 = vst [vmem:[#allocation5 + $0x60] sm:$0xff] %v9806_v5   ;;  %8142 = vst [vmem:[#allocation6 + $0x8c] sm:$0xf] %v8070_v35  ;;  %v16494_v3 = vshrl.u32 %v14506_v0, 16  ;;  %v5369_v52 = vshll.u32 %v5227_v23, 16  ;;  %v5373_v61 = vshrl.u32 %v5227_v23, 16  ;;  %v6255_v42 = vsel %vm11077_vm1, %v6253_v39, %v6254_v54 }
 0x3db   : > { %v5859_v45 = vld [vmem:[#allocation5 + $0x40] sm:$0xf]  ;;  %v10583_v25 = vld [vmem:[%s16079_s5 + $0x88] sm:$0xff]   ;;  %v8071_v7 = vrot.slane %v8069_v22, 4  ;;  %v4779_v18 = vadd.f32 %v14454_v9, %v13718_v49  ;;  %v5379_v17 = vshll.u32 %v14718_v20, 16  ;;  %v14741_v0 = vrot.slane %v6254_v54, 4  ;;  %vm14817_vm12 = vmand %vm14786_vm11, %vm4951_vm14 }
 0x3dc   : > { %v5365_v32 = vrot.slane %v16494_v3, 4  ;;  %v14739_v14 = vld [vmem:[#allocation6 + $0x98] sm:$0xf]  ;;  %v5371_v23 = vrot.slane %v5369_v52, 5  ;;  %v5375_v36 = vrot.slane %v5373_v61, 4  ;;  %v8074_v39 = vrot.slane %v8072_v15, 4  ;;  %10268 = vmatprep.subr.bf16.mxu1 %v10583_v25  ;;  %vm14830_vm6 = vmand %vm14803_vm0, %vm4946_vm13 }
 0x3dd   : > { %v14744_v5 = vld [vmem:[#allocation5 + $0x44] sm:$0xf]  ;;  %v7629_v35 = vld [vmem:[#allocation5 + $0x40] sm:$0xf]  ;;  %6322 = vst [vmem:[#allocation6 + $0x98] sm:$0xf] %v6252_v53  ;;  %v14759_v34 = vsel %vm11077_vm1, %v8071_v7, %v8072_v15  ;;  %10269 = vmatpush3.bf16.msra.mxu1 %v10583_v25 }
 0x3de   : > { %v5366_v63 = vor.u32 %v5365_v32, %v14582_v2  ;;  %v7630_v3 = vld [vmem:[#allocation5 + $0x44] sm:$0xf]  ;;  %v14746_v22 = vrot.slane %v8075_v60, 4  ;;  %v5997_v49 = vrot.slane %v5995_v19, 4  ;;  %v6001_v9 = vshll.u32 %v5859_v45, 16  ;;  %v6354_v54 = vld [vmem:[#allocation6 + $0x78] sm:$0xff] }
 0x3df   : > { %v7680_v48 = vld [vmem:[#allocation5 + $0x4c] sm:$0xf]  ;;  %v5376_v27 = vor.u32 %v5375_v36, %v5371_v23  ;;  %v14750_v2 = vrot.slane %v5379_v17, 5  ;;  %v6005_v32 = vshrl.u32 %v5859_v45, 16  ;;  %v14755_v1 = vld [vmem:[#allocation6 + $0xa4] sm:$0xf]  ;;  %v14762_v19 = vadd.f32 %v14333_v16, %v4779_v18 }
 0x3e0   : > { %v5367_v47 = vrot.slane %v5366_v63, 4  ;;  %v10586_v53 = vld [vmem:[%s16079_s5 + $0x80] sm:$0xff]   ;;  %v6356_v52 = vld [vmem:[#allocation6 + $0x84] sm:$0xff]  ;;  %v5998_v11 = vor.u32 %v5997_v49, %v14640_v12  ;;  %v4780_v45 = vadd.f32 %v14498_v40, %v13720_v29  ;;  %7653 = vst [vmem:[#allocation6 + $0x78] sm:$0xf] %v7629_v35  ;;  %v16495_v17 = vsel %vm11190_vm3, %v14646_v37, %v14631_v33 }
 0x3e1   : > { %v10559_v61 = vld [vmem:[#allocation6 + $0x7c] ss:$12 sps:$4 sm:$0xff]   ;;  %7654 = vst [vmem:[#allocation6 + $0x84] sm:$0xf] %v7630_v3  ;;  %v9459_v63 = vcombine.low %v6354_v54, %v6356_v52  ;;  %6323 = vst [vmem:[#allocation6 + $0xa4] sm:$0xf] %v6255_v42  ;;  %v8076_v36 = vsel %vm11077_vm1, %v8074_v39, %v8075_v60  ;;  %10270 = vmatprep.subr.bf16.mxu1 %v10586_v53 }
 0x3e2   : > { %7970 = vst [vmem:[#allocation6 + $0x7c] sm:$0xf] %v16495_v17  ;;  %7971 = vst [vmem:[#allocation6 + $0x88] sm:$0xf] %v7815_v8  ;;  %v5372_v15 = vsel %vm11190_vm3, %v5367_v47, %v5371_v23  ;;  %v5377_v7 = vrot.slane %v5376_v27, 4  ;;  %v14774_v18 = vrot.slane %v6001_v9, 5  ;;  %6839 = vmatprep.mubr.bf16.mxu0 %v10559_v61  ;;  %v4781_v9 = vadd.f32 %v14537_v26, %v13724_v46 }
 0x3e3   : > { %v14776_v12 = vld [vmem:[#allocation5 + $0x50] sm:$0xf]  ;;  %v5182_v29 = vld [vmem:[#allocation5 + $0x40] sm:$0xf]  ;;  %v5183_v40 = vld [vmem:[#allocation5 + $0x44] sm:$0xf]  ;;  %6840 = vmatmul.mubr.bf16.gmra.mxu0 %v9459_v63  ;;  %v4817_v61 = vadd.f32 %v14333_v16, %v4780_v45  ;;  %10271 = vmatpush3.bf16.msra.mxu1 %v10586_v53 }
 0x3e4   : > { %v5383_v33 = vshrl.u32 %v14718_v20, 16  ;;  %5519 = vst [vmem:[#allocation6 + $0x94] sm:$0xf] %v5372_v15  ;;  %v6007_v27 = vrot.slane %v6005_v32, 4  ;;  %v6011_v47 = vshll.u32 %v14744_v5, 16  ;;  %v5382_v60 = vsel %vm11190_vm3, %v5377_v7, %v14750_v2 }
 0x3e5   : > { %v5546_v8 = vld [vmem:[#allocation5 + $0x3c] sm:$0xf]  ;;  %5206 = vst [vmem:[#allocation6 + $0xc0] sm:$0xf] %v5182_v29  ;;  %5207 = vst [vmem:[#allocation6 + $0xcc] sm:$0xf] %v5183_v40 }
 0x3e6   : > { %v16498_v51 = vshrl.u32 %v14610_v10, 16  ;;  %v7822_v23 = vshll.u32 %v7680_v48, 16  ;;  %v7826_v35 = vshrl.u32 %v7680_v48, 16  ;;  %v14807_v25 = vld [vmem:[#allocation5 + $0x40] sm:$0xf]  ;;  %v4846_v39 = vmax.f32 %v14762_v19, 0.0 }
 0x3e7   : > { %5520 = vst [vmem:[#allocation6 + $0xa0] sm:$0xf] %v5382_v60  ;;  %v5999_v10 = vrot.slane %v5998_v11, 4  ;;  %v6008_v49 = vor.u32 %v6007_v27, %v14774_v18  ;;  %v6178_v48 = vld [vmem:[#allocation5 + $0x48] sm:$0xf]  ;;  %v7832_v11 = vshll.u32 %v14776_v12, 16 }
 0x3e8   : > { %v7818_v42 = vrot.slane %v16498_v51, 4  ;;  %v14822_v32 = vrot.slane %v7822_v23, 5  ;;  %v7828_v52 = vrot.slane %v7826_v35, 4  ;;  %v5625_v26 = vrot.slane %v5546_v8, 5  ;;  %v5810_v63 = vld [vmem:[#allocation5 + $0x3c] sm:$0xf] }
 0x3e9   : > { %v6009_v19 = vrot.slane %v6008_v49, 4  ;;  %v5628_v17 = vrot.slane %v14807_v25, 5  ;;  %v6004_v45 = vsel %vm11190_vm3, %v5999_v10, %v14774_v18  ;;  %v14840_v15 = vrot.slane %v6011_v47, 5  ;;  %v14842_v29 = vld [vmem:[#allocation5 + $0x54] sm:$0xf]  ;;  %v10598_v40 = vld [vmem:[%s16079_s5 + $0x1f8] sm:$0xff]  }
 0x3ea   : > { %v7819_v54 = vor.u32 %v7818_v42, %v14690_v21  ;;  %v14835_v21 = vld [vmem:[#allocation5 + $0x4c] sm:$0xf]  ;;  %v4847_v38 = vmax.f32 %v4817_v61, 0.0  ;;  %v6257_v7 = vrot.slane %v6178_v48, 5  ;;  %v10561_v37 = vld [vmem:[#allocation6 + $0x98] ss:$12 sps:$4 sm:$0xff]   ;;  %v7829_v53 = vor.u32 %v7828_v52, %v14822_v32  ;;  %10068 = vmatprep.subr.bf16.mxu1 %v10598_v40 }
 0x3eb   : > { %v5626_v8 = vsel %vm11077_vm1, %v14716_v44, %v5625_v26  ;;  %v5627_v18 = vrot.slane %v5625_v26, 4  ;;  %8143 = vst [vmem:[#allocation6 + $0x98] sm:$0xf] %v14759_v34  ;;  %8144 = vst [vmem:[#allocation6 + $0xa4] sm:$0xf] %v8076_v36  ;;  %v5011_v47 = vsel %vm14817_vm12, %v4846_v39, 0.0  ;;  %v6014_v42 = vsel %vm11190_vm3, %v6009_v19, %v14840_v15  ;;  %10244 = vmatprep.mubr.bf16.mxu1 %v10561_v37 }
 0x3ec   : > { %v14847_v27 = vrot.slane %v7819_v54, 4  ;;  %v14856_v60 = vld [vmem:[#allocation6 + $0x90] sm:$0xff]  ;;  %v5811_v51 = vld [vmem:[#allocation5 + $0x40] sm:$0xf]  ;;  %v6015_v23 = vshrl.u32 %v14744_v5, 16  ;;  %v5012_v35 = vsel %vm14830_vm6, %v4847_v38, 0.0  ;;  %v14886_v19 = vadd.f32 %v14333_v16, %v4781_v9 }
 0x3ed   : > { %16505 = vst [vmem:[#allocation18_spill] sm:$0xff] %v14856_v60  ;;  %5692 = vst [vmem:[#allocation6 + $0xb0] sm:$0xf] %v5626_v8  ;;  %v5229_v44 = vld [vmem:[#allocation5 + $0x3c] sm:$0xf]  ;;  %v14864_v34 = vrot.slane %v7832_v11, 5  ;;  %v9811_v3 = vpack.c.bf16 %v5012_v35, %v5011_v47  ;;  %v5629_v39 = vsel %vm11077_vm1, %v5627_v18, %v5628_v17  ;;  %v6258_v20 = vsel %vm11077_vm1, %v14741_v0, %v6257_v7 }
 0x3ee   : > { %5834 = vst [vmem:[#allocation6 + $0x90] sm:$0xf] %v5810_v63  ;;  %6151 = vst [vmem:[#allocation6 + $0x94] sm:$0xf] %v6004_v45  ;;  %v7836_v36 = vshrl.u32 %v14776_v12, 16  ;;  %v14875_v49 = vld [vmem:[#allocation6 + $0x9c] sm:$0xff]  ;;  %v7825_v52 = vsel %vm11190_vm3, %v14847_v27, %v14822_v32 }
 0x3ef   : > { %v14871_v5 = vld [vmem:[#allocation5 + $0x58] sm:$0xf]  ;;  %v14873_v10 = vld [vmem:[#allocation5 + $0x40] sm:$0xf]  ;;  %16506 = vst [vmem:[#allocation21_spill] sm:$0xff] %v14875_v49  ;;  %v6259_v48 = vrot.slane %v6257_v7, 4 }
 0x3f0   : > { %5693 = vst [vmem:[#allocation6 + $0xbc] sm:$0xf] %v5629_v39  ;;  %v6260_v59 = vrot.slane %v14835_v21, 5  ;;  %v8078_v54 = vrot.slane %v14842_v29, 5  ;;  %v5385_v12 = vrot.slane %v5383_v33, 4  ;;  %v7830_v61 = vrot.slane %v7829_v53, 4 }
 0x3f1   : > { %5835 = vst [vmem:[#allocation6 + $0x9c] sm:$0xf] %v5811_v51  ;;  %6152 = vst [vmem:[#allocation6 + $0xa0] sm:$0xf] %v6014_v42  ;;  %v16507_v11 = vld [vmem:[#allocation38_spill] sm:$0xff]  ;;  %v5389_v46 = vshll.u32 %v5229_v44, 16 }
 0x3f2   : > { %9830 = vst [vmem:[#allocation5 + $0x68] sm:$0xff] %v9811_v3   ;;  %vm4881_vm13 = vcmp.ge.s32.totalorder %v16507_v11, %v13728_v43  ;;  %v5386_v33 = vor.u32 %v5385_v12, %v14750_v2  ;;  %v5393_v26 = vshrl.u32 %v5229_v44, 16  ;;  %v5399_v63 = vshll.u32 %v14873_v10, 16  ;;  %v5861_v45 = vld [vmem:[#allocation5 + $0x48] sm:$0xf] }
 0x3f3   : > { %v7835_v32 = vsel %vm11190_vm3, %v7830_v61, %v14864_v34  ;;  %v8081_v16 = vrot.slane %v14871_v5, 5  ;;  %v5391_v9 = vrot.slane %v5389_v46, 5  ;;  %v14899_v38 = vld [vmem:[#allocation5 + $0x4c] sm:$0xf]  ;;  %v6017_v29 = vrot.slane %v6015_v23, 4 }
 0x3f4   : > { %v6261_v0 = vsel %vm11077_vm1, %v6259_v48, %v6260_v59  ;;  %v8080_v2 = vrot.slane %v8078_v54, 4  ;;  %v5387_v7 = vrot.slane %v5386_v33, 4  ;;  %v5395_v40 = vrot.slane %v5393_v26, 4  ;;  %v7682_v37 = vld [vmem:[#allocation5 + $0x54] sm:$0xf] }
 0x3f5   : > { %v14905_v27 = vld [vmem:[#allocation6 + $0xb0] sm:$0xf]  ;;  %v4848_v53 = vmax.f32 %v14886_v19, 0.0  ;;  %v6018_v8 = vor.u32 %v6017_v29, %v14840_v15  ;;  %v6021_v18 = vshll.u32 %v5861_v45, 16  ;;  %v6025_v47 = vshrl.u32 %v5861_v45, 16 }
 0x3f6   : > { %v7631_v51 = vld [vmem:[#allocation5 + $0x48] sm:$0xf]  ;;  %v7632_v42 = vld [vmem:[#allocation5 + $0x4c] sm:$0xf]  ;;  %6324 = vst [vmem:[#allocation6 + $0xb0] sm:$0xf] %v6258_v20  ;;  %v5392_v23 = vsel %vm11190_vm3, %v5387_v7, %v5391_v9  ;;  %v5396_v35 = vor.u32 %v5395_v40, %v5391_v9  ;;  %vm4914_vm4 = vcmp.lt.s32.totalorder %v16507_v11, %v13730_v30 }
 0x3f7   : > { %v14911_v44 = vrot.slane %v5399_v63, 5  ;;  %v14913_v3 = vld [vmem:[#allocation5 + $0x58] sm:$0xf]  ;;  %v7838_v39 = vrot.slane %v7836_v36, 4  ;;  %v5184_v48 = vld [vmem:[#allocation5 + $0x48] sm:$0xf]  ;;  %v8079_v36 = vsel %vm11077_vm1, %v14746_v22, %v8078_v54  ;;  %vm14945_vm10 = vmand %vm4881_vm13, %vm4914_vm4 }
 0x3f8   : > { %v6358_v12 = vld [vmem:[#allocation6 + $0x90] sm:$0xff]  ;;  %v14915_v61 = vld [vmem:[#allocation6 + $0xbc] sm:$0xf]  ;;  %5521 = vst [vmem:[#allocation6 + $0xac] sm:$0xf] %v5392_v23  ;;  %v6023_v15 = vrot.slane %v6021_v18, 5 }
 0x3f9   : > { %v6027_v46 = vrot.slane %v6025_v47, 4  ;;  %v6031_v20 = vshll.u32 %v14899_v38, 16  ;;  %5208 = vst [vmem:[#allocation6 + $0xd8] sm:$0xf] %v5184_v48  ;;  %v6360_v33 = vld [vmem:[#allocation6 + $0x9c] sm:$0xff]  ;;  %v5397_v63 = vrot.slane %v5396_v35, 4  ;;  %v7839_v18 = vor.u32 %v7838_v39, %v14864_v34 }
 0x3fa   : > { %v10562_v26 = vld [vmem:[#allocation6 + $0x94] ss:$12 sps:$4 sm:$0xff]   ;;  %6325 = vst [vmem:[#allocation6 + $0xbc] sm:$0xf] %v6261_v0  ;;  %v7842_v45 = vshll.u32 %v7682_v37, 16  ;;  %v7846_v9 = vshrl.u32 %v7682_v37, 16  ;;  %v9462_v29 = vcombine.low %v6358_v12, %v6360_v33 }
 0x3fb   : > { %7655 = vst [vmem:[#allocation6 + $0x90] sm:$0xf] %v7631_v51  ;;  %7656 = vst [vmem:[#allocation6 + $0x9c] sm:$0xf] %v7632_v42  ;;  %v6019_v7 = vrot.slane %v6018_v8, 4  ;;  %v6028_v40 = vor.u32 %v6027_v46, %v6023_v15  ;;  %6847 = vmatprep.mubr.bf16.mxu0 %v10562_v26  ;;  %v5402_v0 = vsel %vm11190_vm3, %v5397_v63, %v14911_v44  ;;  %v7852_v54 = vshll.u32 %v14913_v3, 16 }
 0x3fc   : > { %7972 = vst [vmem:[#allocation6 + $0x94] sm:$0xf] %v7825_v52  ;;  %7973 = vst [vmem:[#allocation6 + $0xa0] sm:$0xf] %v7835_v32  ;;  %v5185_v47 = vld [vmem:[#allocation5 + $0x4c] sm:$0xf]  ;;  %6848 = vmatmul.mubr.bf16.gmra.mxu0 %v9462_v29  ;;  %v8082_v52 = vsel %vm11077_vm1, %v8080_v2, %v8081_v16  ;;  %v4782_v8 = vadd.f32 %v14584_v24, %v13726_v57 }
 0x3fd   : > { %v14927_v23 = vrot.slane %v7842_v45, 5  ;;  %v7848_v22 = vrot.slane %v7846_v9, 4  ;;  %v5548_v37 = vld [vmem:[#allocation5 + $0x44] sm:$0xf]  ;;  %5209 = vst [vmem:[#allocation6 + $0xe4] sm:$0xf] %v5185_v47  ;;  %v6024_v32 = vsel %vm11190_vm3, %v6019_v7, %v6023_v15 }
 0x3fe   : > { %v5403_v34 = vshrl.u32 %v14873_v10, 16  ;;  %5522 = vst [vmem:[#allocation6 + $0xb8] sm:$0xf] %v5402_v0  ;;  %v5549_v51 = vld [vmem:[#allocation5 + $0x48] sm:$0xf]  ;;  %v6029_v2 = vrot.slane %v6028_v40, 4 }
 0x3ff   : > { %v6180_v42 = vld [vmem:[#allocation5 + $0x50] sm:$0xf]  ;;  %v5812_v10 = vld [vmem:[#allocation5 + $0x44] sm:$0xf]  ;;  %v7849_v39 = vor.u32 %v7848_v22, %v14927_v23  ;;  %v14954_v57 = vrot.slane %v7839_v18, 4  ;;  %v5630_v12 = vrot.slane %v5628_v17, 4 }
 0x400   : > { %v16510_v48 = vld [vmem:[#allocation44_spill] sm:$0xff]  ;;  %v5631_v15 = vrot.slane %v5548_v37, 5  ;;  %v14961_v46 = vld [vmem:[#allocation6 + $0xa8] sm:$0xff]  ;;  %v14963_v33 = vrot.slane %v6031_v20, 5  ;;  %v5634_v26 = vrot.slane %v5549_v51, 5  ;;  %v6263_v63 = vrot.slane %v6180_v42, 5 }
 0x401   : > { %vm4882_vm7 = vcmp.ge.s32.totalorder %v16510_v48, %v13728_v43  ;;  %vm4915_vm15 = vcmp.lt.s32.totalorder %v16510_v48, %v13730_v30  ;;  %v10684_v24 = vld [vmem:[%s16078_s4] ss:$0 sm:$0xff]  ;;  %16511 = vst [vmem:[#allocation19_spill] sm:$0xff] %v14961_v46  ;;  %v14965_v43 = vrot.slane %v7852_v54, 5  ;;  %5836 = vst [vmem:[#allocation6 + $0xa8] sm:$0xf] %v5812_v10  ;;  %v7845_v19 = vsel %vm11190_vm3, %v14954_v57, %v14927_v23 }
 0x402   : > { %v4819_v11 = vadd.f32 %v10684_v24, %v4782_v8  ;;  %vm4945_vm9 = vmand %vm4882_vm7, %vm4915_vm15  ;;  %v10564_v45 = vld [vmem:[#allocation6 + $0xb0] ss:$12 sps:$4 sm:$0xff]   ;;  %6153 = vst [vmem:[#allocation6 + $0xac] sm:$0xf] %v6024_v32  ;;  %v5632_v17 = vsel %vm11077_vm1, %v5630_v12, %v5631_v15  ;;  %v5633_v9 = vrot.slane %v5631_v15, 4  ;;  %v5013_v4 = vsel %vm14945_vm10, %v4848_v53, 0.0 }
 0x403   : > { %vm14969_vm8 = vmand %vm4945_vm9, %vm4951_vm14  ;;  %v14975_v20 = vld [vmem:[#allocation5 + $0x54] sm:$0xf]  ;;  %8145 = vst [vmem:[#allocation6 + $0xb0] sm:$0xf] %v8079_v36  ;;  %v5813_v7 = vld [vmem:[#allocation5 + $0x48] sm:$0xf]  ;;  %v6034_v40 = vsel %vm11190_vm3, %v6029_v2, %v14963_v33  ;;  %10245 = vmatmul.mubr.bf16.gmra.mxu1 %v10564_v45 }
 0x404   : > { %v4849_v25 = vmax.f32 %v4819_v11, 0.0  ;;  %8146 = vst [vmem:[#allocation6 + $0xbc] sm:$0xf] %v8082_v52  ;;  %v6035_v18 = vshrl.u32 %v14899_v38, 16  ;;  %v14987_v47 = vrot.slane %v7849_v39, 4  ;;  %v7856_v36 = vshrl.u32 %v14913_v3, 16 }
 0x405   : > { %5694 = vst [vmem:[#allocation6 + $0xc8] sm:$0xf] %v5632_v17  ;;  %v5231_v0 = vld [vmem:[#allocation5 + $0x44] sm:$0xf]  ;;  %v5635_v22 = vsel %vm11077_vm1, %v5633_v9, %v5634_v26  ;;  %v8001_v54 = vld [vmem:[#allocation5 + $0x5c] sm:$0xf] }
 0x406   : > { %v5014_v53 = vsel %vm14969_vm8, %v4849_v25, 0.0  ;;  %v14998_v38 = vld [vmem:[#allocation5 + $0x60] sm:$0xf]  ;;  %v15000_v37 = vld [vmem:[#allocation6 + $0xb4] sm:$0xff]  ;;  %v7855_v52 = vsel %vm11190_vm3, %v14987_v47, %v14965_v43  ;;  %5695 = vst [vmem:[#allocation6 + $0xd4] sm:$0xf] %v5635_v22 }
 0x407   : > { %16514 = vst [vmem:[#allocation20_spill] sm:$0xff] %v15000_v37  ;;  %v9816_v32 = vpack.c.bf16 %v5014_v53, %v5013_v4  ;;  %v6262_v3 = vrot.slane %v6260_v59, 4  ;;  %v15008_v8 = vld [vmem:[#allocation5 + $0x48] sm:$0xf]  ;;  %v5405_v51 = vrot.slane %v5403_v34, 4  ;;  %v15010_v42 = vrot.slane %v5634_v26, 4 }
 0x408   : > { %5837 = vst [vmem:[#allocation6 + $0xb4] sm:$0xf] %v5813_v7  ;;  %6154 = vst [vmem:[#allocation6 + $0xb8] sm:$0xf] %v6034_v40  ;;  %v6265_v35 = vrot.slane %v6263_v63, 4  ;;  %v5409_v10 = vshll.u32 %v5231_v0, 16 }
 0x409   : > { %v5413_v2 = vshrl.u32 %v5231_v0, 16  ;;  %v5863_v39 = vld [vmem:[#allocation5 + $0x50] sm:$0xf]  ;;  %9831 = vst [vmem:[#allocation5 + $0x70] sm:$0xff] %v9816_v32   ;;  %v6264_v48 = vsel %vm11077_vm1, %v6262_v3, %v6263_v63  ;;  %v6266_v24 = vrot.slane %v14975_v20, 5  ;;  %v8084_v11 = vrot.slane %v8001_v54, 5 }
 0x40a   : > { %v5406_v21 = vor.u32 %v5405_v51, %v14911_v44  ;;  %v8083_v59 = vrot.slane %v8081_v16, 4  ;;  %v5411_v34 = vrot.slane %v5409_v10, 5  ;;  %v5419_v15 = vshll.u32 %v15008_v8, 16  ;;  %v15020_v45 = vld [vmem:[#allocation5 + $0x54] sm:$0xf]  ;;  %v6362_v51 = vld [vmem:[#allocation6 + $0xa8] sm:$0xff] }
 0x40b   : > { %v5415_v12 = vrot.slane %v5413_v2, 4  ;;  %v8087_v30 = vrot.slane %v14998_v38, 5  ;;  %v6037_v25 = vrot.slane %v6035_v18, 4  ;;  %v6041_v17 = vshll.u32 %v5863_v39, 16  ;;  %v7684_v4 = vld [vmem:[#allocation5 + $0x5c] sm:$0xf] }
 0x40c   : > { %v5407_v26 = vrot.slane %v5406_v21, 4  ;;  %v15022_v63 = vld [vmem:[#allocation6 + $0xc8] sm:$0xf]  ;;  %v6267_v44 = vsel %vm11077_vm1, %v6265_v35, %v6266_v24  ;;  %v15028_v16 = vrot.slane %v5419_v15, 5  ;;  %v6045_v9 = vshrl.u32 %v5863_v39, 16 }
 0x40d   : > { %v5416_v5 = vor.u32 %v5415_v12, %v5411_v34  ;;  %v7633_v7 = vld [vmem:[#allocation5 + $0x50] sm:$0xf]  ;;  %v7634_v40 = vld [vmem:[#allocation5 + $0x54] sm:$0xf]  ;;  %6326 = vst [vmem:[#allocation6 + $0xc8] sm:$0xf] %v6264_v48  ;;  %v6038_v0 = vor.u32 %v6037_v25, %v14963_v33  ;;  %v8085_v33 = vsel %vm11077_vm1, %v8083_v59, %v8084_v11 }
 0x40e   : > { %v8086_v47 = vrot.slane %v8084_v11, 4  ;;  %v5412_v18 = vsel %vm11190_vm3, %v5407_v26, %v5411_v34  ;;  %v15033_v53 = vrot.slane %v6041_v17, 5  ;;  %v15035_v22 = vld [vmem:[#allocation5 + $0x60] sm:$0xf]  ;;  %v5550_v54 = vld [vmem:[#allocation5 + $0x4c] sm:$0xf] }
 0x40f   : > { %v5186_v32 = vld [vmem:[#allocation5 + $0x50] sm:$0xf]  ;;  %v5187_v3 = vld [vmem:[#allocation5 + $0x54] sm:$0xf]  ;;  %v5417_v10 = vrot.slane %v5416_v5, 4  ;;  %v6047_v2 = vrot.slane %v6045_v9, 4 }
 0x410   : > { %v15037_v35 = vld [vmem:[#allocation6 + $0xd4] sm:$0xf]  ;;  %5523 = vst [vmem:[#allocation6 + $0xc4] sm:$0xf] %v5412_v18  ;;  %v7858_v39 = vrot.slane %v7856_v36, 4  ;;  %v6051_v34 = vshll.u32 %v15020_v45, 16 }
 0x411   : > { %5210 = vst [vmem:[#allocation6 + $0xf0] sm:$0xf] %v5186_v32  ;;  %5211 = vst [vmem:[#allocation6 + $0xfc] sm:$0xf] %v5187_v3  ;;  %v6364_v48 = vld [vmem:[#allocation6 + $0xb4] sm:$0xff]  ;;  %v7862_v12 = vshll.u32 %v7684_v4, 16  ;;  %v5422_v26 = vsel %vm11190_vm3, %v5417_v10, %v15028_v16  ;;  %v6048_v11 = vor.u32 %v6047_v2, %v15033_v53  ;;  %v8088_v3 = vsel %vm11077_vm1, %v8086_v47, %v8087_v30 }
 0x412   : > { %v10565_v21 = vld [vmem:[#allocation6 + $0xac] ss:$12 sps:$4 sm:$0xff]   ;;  %6327 = vst [vmem:[#allocation6 + $0xd4] sm:$0xf] %v6267_v44  ;;  %v7866_v15 = vshrl.u32 %v7684_v4, 16  ;;  %v9465_v36 = vcombine.low %v6362_v51, %v6364_v48  ;;  %v7859_v59 = vor.u32 %v7858_v39, %v14965_v43  ;;  %v5423_v44 = vshrl.u32 %v15008_v8, 16 }
 0x413   : > { %7657 = vst [vmem:[#allocation6 + $0xa8] sm:$0xf] %v7633_v7  ;;  %7658 = vst [vmem:[#allocation6 + $0xb4] sm:$0xf] %v7634_v40  ;;  %v15052_v25 = vld [vmem:[#allocation5 + $0x50] sm:$0xf]  ;;  %6855 = vmatprep.mubr.bf16.mxu0 %v10565_v21 }
 0x414   : > { %7974 = vst [vmem:[#allocation6 + $0xac] sm:$0xf] %v7845_v19  ;;  %7975 = vst [vmem:[#allocation6 + $0xb8] sm:$0xf] %v7855_v52  ;;  %v6182_v17 = vld [vmem:[#allocation5 + $0x58] sm:$0xf]  ;;  %6856 = vmatmul.mubr.bf16.gmra.mxu0 %v9465_v36 }
 0x415   : > { %5524 = vst [vmem:[#allocation6 + $0xd0] sm:$0xf] %v5422_v26  ;;  %v6039_v5 = vrot.slane %v6038_v0, 4  ;;  %v15055_v23 = vrot.slane %v7862_v12, 5  ;;  %v7868_v57 = vrot.slane %v7866_v15, 4  ;;  %v6049_v19 = vrot.slane %v6048_v11, 4 }
 0x416   : > { %v15057_v52 = vrot.slane %v7859_v59, 4  ;;  %v7872_v9 = vshll.u32 %v15035_v22, 16  ;;  %v5637_v4 = vrot.slane %v5550_v54, 5  ;;  %v5814_v7 = vld [vmem:[#allocation5 + $0x4c] sm:$0xf]  ;;  %v5640_v8 = vrot.slane %v15052_v25, 5 }
 0x417   : > { %v6044_v43 = vsel %vm11190_vm3, %v6039_v5, %v15033_v53  ;;  %v7869_v40 = vor.u32 %v7868_v57, %v15055_v23  ;;  %v15065_v18 = vld [vmem:[#allocation5 + $0x5c] sm:$0xf]  ;;  %v6269_v0 = vrot.slane %v6182_v17, 5  ;;  %v5233_v32 = vld [vmem:[#allocation5 + $0x4c] sm:$0xf]  ;;  %v15071_v51 = vrot.slane %v6051_v34, 5 }
 0x418   : > { %v5638_v54 = vsel %vm11077_vm1, %v15010_v42, %v5637_v4  ;;  %v5639_v53 = vrot.slane %v5637_v4, 4  ;;  %v8003_v10 = vld [vmem:[#allocation5 + $0x64] sm:$0xf]  ;;  %v15076_v2 = vld [vmem:[#allocation5 + $0x50] sm:$0xf]  ;;  %v6268_v39 = vrot.slane %v6266_v24, 4  ;;  %v7865_v20 = vsel %vm11190_vm3, %v15057_v52, %v15055_v23 }
 0x419   : > { %v8089_v48 = vrot.slane %v8087_v30, 4  ;;  %v15082_v21 = vld [vmem:[#allocation6 + $0xc0] sm:$0xff]  ;;  %v6055_v47 = vshrl.u32 %v15020_v45, 16  ;;  %v7876_v34 = vshrl.u32 %v15035_v22, 16  ;;  %5696 = vst [vmem:[#allocation6 + $0xe0] sm:$0xf] %v5638_v54  ;;  %v6054_v15 = vsel %vm11190_vm3, %v6049_v19, %v15071_v51 }
 0x41a   : > { %16515 = vst [vmem:[#allocation23_spill] sm:$0xff] %v15082_v21  ;;  %v15086_v12 = vld [vmem:[#allocation5 + $0x68] sm:$0xf]  ;;  %v10567_v42 = vld [vmem:[#allocation6 + $0xc8] ss:$12 sps:$4 sm:$0xff]   ;;  %v15095_v38 = vrot.slane %v7872_v9, 5  ;;  %v5641_v24 = vsel %vm11077_vm1, %v5639_v53, %v5640_v8  ;;  %v6270_v17 = vsel %vm11077_vm1, %v6268_v39, %v6269_v0 }
 0x41b   : > { %5838 = vst [vmem:[#allocation6 + $0xc0] sm:$0xf] %v5814_v7  ;;  %6155 = vst [vmem:[#allocation6 + $0xc4] sm:$0xf] %v6044_v43  ;;  %v15101_v30 = vrot.slane %v7869_v40, 4  ;;  %v6271_v45 = vrot.slane %v6269_v0, 4  ;;  %10248 = vmatprep.mubr.bf16.mxu1 %v10567_v42 }
 0x41c   : > { %8147 = vst [vmem:[#allocation6 + $0xc8] sm:$0xf] %v8085_v33  ;;  %8148 = vst [vmem:[#allocation6 + $0xd4] sm:$0xf] %v8088_v3  ;;  %v5425_v22 = vrot.slane %v5423_v44, 4  ;;  %v5429_v36 = vshll.u32 %v5233_v32, 16 }
 0x41d   : > { %5697 = vst [vmem:[#allocation6 + $0xec] sm:$0xf] %v5641_v24  ;;  %v5865_v26 = vld [vmem:[#allocation5 + $0x58] sm:$0xf]  ;;  %v15103_v11 = vld [vmem:[#allocation6 + $0xcc] sm:$0xff]  ;;  %v16177_v5 = vrot.slane %v15065_v18, 5  ;;  %v7875_v7 = vsel %vm11190_vm3, %v15101_v30, %v15095_v38 }
 0x41e   : > { %16516 = vst [vmem:[#allocation25_spill] sm:$0xff] %v15103_v11  ;;  %v5815_v59 = vld [vmem:[#allocation5 + $0x50] sm:$0xf]  ;;  %v5433_v57 = vshrl.u32 %v5233_v32, 16  ;;  %v5439_v33 = vshll.u32 %v15076_v2, 16  ;;  %v8090_v19 = vrot.slane %v8003_v10, 5  ;;  %v5426_v9 = vor.u32 %v5425_v22, %v15028_v16 }
 0x41f   : > { %5839 = vst [vmem:[#allocation6 + $0xcc] sm:$0xf] %v5815_v59  ;;  %6156 = vst [vmem:[#allocation6 + $0xd0] sm:$0xf] %v6054_v15  ;;  %v5431_v44 = vrot.slane %v5429_v36, 5  ;;  %v6057_v4 = vrot.slane %v6055_v47, 4  ;;  %v6273_v3 = vsel %vm11077_vm1, %v6271_v45, %v16177_v5 }
 0x420   : > { %v8093_v43 = vrot.slane %v15086_v12, 5  ;;  %v5435_v40 = vrot.slane %v5433_v57, 4  ;;  %v15115_v0 = vld [vmem:[#allocation5 + $0x5c] sm:$0xf]  ;;  %v6061_v32 = vshll.u32 %v5865_v26, 16  ;;  %v5427_v54 = vrot.slane %v5426_v9, 4 }
 0x421   : > { %v6058_v16 = vor.u32 %v6057_v4, %v15071_v51  ;;  %v6065_v53 = vshrl.u32 %v5865_v26, 16  ;;  %v7686_v10 = vld [vmem:[#allocation5 + $0x64] sm:$0xf]  ;;  %v15122_v39 = vld [vmem:[#allocation5 + $0x68] sm:$0xf]  ;;  %v15126_v15 = vrot.slane %v5439_v33, 5  ;;  %v15132_v22 = vsel %vm11077_vm1, %v8089_v48, %v8090_v19 }
 0x422   : > { %v15124_v47 = vld [vmem:[#allocation6 + $0xe0] sm:$0xf]  ;;  %v5436_v42 = vor.u32 %v5435_v40, %v5431_v44  ;;  %v15128_v24 = vrot.slane %v6061_v32, 5  ;;  %v7878_v30 = vrot.slane %v7876_v34, 4  ;;  %v8092_v45 = vrot.slane %v8090_v19, 4 }
 0x423   : > { %6328 = vst [vmem:[#allocation6 + $0xe0] sm:$0xf] %v6270_v17  ;;  %v5432_v51 = vsel %vm11190_vm3, %v5427_v54, %v5431_v44  ;;  %v6067_v36 = vrot.slane %v6065_v53, 4  ;;  %v5552_v26 = vld [vmem:[#allocation5 + $0x54] sm:$0xf]  ;;  %v7882_v17 = vshll.u32 %v7686_v10, 16 }
 0x424   : > { %v15136_v59 = vld [vmem:[#allocation5 + $0x58] sm:$0xf]  ;;  %v7636_v9 = vld [vmem:[#allocation5 + $0x5c] sm:$0xf]  ;;  %v15138_v33 = vld [vmem:[#allocation6 + $0xec] sm:$0xf]  ;;  %v7879_v34 = vor.u32 %v7878_v30, %v15095_v38 }
 0x425   : > { %v7635_v57 = vld [vmem:[#allocation5 + $0x58] sm:$0xf]  ;;  %v5437_v4 = vrot.slane %v5436_v42, 4  ;;  %5525 = vst [vmem:[#allocation6 + $0xdc] sm:$0xf] %v5432_v51  ;;  %v7886_v40 = vshrl.u32 %v7686_v10, 16  ;;  %v6068_v44 = vor.u32 %v6067_v36, %v15128_v24 }
 0x426   : > { %v6366_v48 = vld [vmem:[#allocation6 + $0xc0] sm:$0xff]  ;;  %6329 = vst [vmem:[#allocation6 + $0xec] sm:$0xf] %v6273_v3  ;;  %v5443_v19 = vshrl.u32 %v15076_v2, 16  ;;  %v6059_v32 = vrot.slane %v6058_v16, 4  ;;  %v6071_v54 = vshll.u32 %v15115_v0, 16 }
 0x427   : > { %v6184_v53 = vld [vmem:[#allocation5 + $0x60] sm:$0xf]  ;;  %v6368_v29 = vld [vmem:[#allocation6 + $0xcc] sm:$0xff]  ;;  %v5442_v42 = vsel %vm11190_vm3, %v5437_v4, %v15126_v15  ;;  %v15147_v51 = vrot.slane %v7882_v17, 5  ;;  %v7888_v38 = vrot.slane %v7886_v40, 4  ;;  %v7892_v10 = vshll.u32 %v15122_v39, 16 }
 0x428   : > { %v10569_v5 = vld [vmem:[#allocation6 + $0xc4] ss:$12 sps:$4 sm:$0xff]   ;;  %7659 = vst [vmem:[#allocation6 + $0xc0] sm:$0xf] %v7635_v57  ;;  %7660 = vst [vmem:[#allocation6 + $0xcc] sm:$0xf] %v7636_v9  ;;  %v9468_v2 = vcombine.low %v6366_v48, %v6368_v29  ;;  %v8094_v57 = vsel %vm11077_vm1, %v8092_v45, %v8093_v43  ;;  %v6064_v25 = vsel %vm11190_vm3, %v6059_v32, %v15128_v24 }
 0x429   : > { %7976 = vst [vmem:[#allocation6 + $0xc4] sm:$0xf] %v7865_v20  ;;  %7977 = vst [vmem:[#allocation6 + $0xd0] sm:$0xf] %v7875_v7  ;;  %v6069_v3 = vrot.slane %v6068_v44, 4  ;;  %v15155_v16 = vrot.slane %v7879_v34, 4  ;;  %6863 = vmatprep.mubr.bf16.mxu0 %v10569_v5  ;;  %v7889_v23 = vor.u32 %v7888_v38, %v15147_v51 }
 0x42a   : > { %5526 = vst [vmem:[#allocation6 + $0xe8] sm:$0xf] %v5442_v42  ;;  %v5642_v30 = vrot.slane %v5640_v8, 4  ;;  %v15159_v36 = vld [vmem:[#allocation5 + $0x64] sm:$0xf]  ;;  %v5643_v52 = vrot.slane %v5552_v26, 5  ;;  %6864 = vmatmul.mubr.bf16.gmra.mxu0 %v9468_v2 }
 0x42b   : > { %v5646_v29 = vrot.slane %v15136_v59, 5  ;;  %v5235_v20 = vld [vmem:[#allocation5 + $0x54] sm:$0xf]  ;;  %v15170_v8 = vrot.slane %v6071_v54, 5  ;;  %v6075_v5 = vshrl.u32 %v15115_v0, 16  ;;  %v6275_v9 = vrot.slane %v6184_v53, 5 }
 0x42c   : > { %v5816_v7 = vld [vmem:[#allocation5 + $0x54] sm:$0xf]  ;;  %v15173_v4 = vld [vmem:[#allocation5 + $0x6c] sm:$0xf]  ;;  %v15175_v45 = vld [vmem:[#allocation5 + $0x58] sm:$0xf]  ;;  %v5644_v26 = vsel %vm11077_vm1, %v5642_v30, %v5643_v52 }
 0x42d   : > { %v5645_v59 = vrot.slane %v5643_v52, 4  ;;  %v16517_v34 = vrot.slane %v15065_v18, 5  ;;  %v6278_v40 = vrot.slane %v15159_v36, 5  ;;  %v15182_v48 = vld [vmem:[#allocation6 + $0xd8] sm:$0xff]  ;;  %v6074_v0 = vsel %vm11190_vm3, %v6069_v3, %v15170_v8  ;;  %5698 = vst [vmem:[#allocation6 + $0xf8] sm:$0xf] %v5644_v26 }
 0x42e   : > { %v15191_v32 = vrot.slane %v7892_v10, 5  ;;  %v7896_v44 = vshrl.u32 %v15122_v39, 16  ;;  %v15194_v18 = vld [vmem:[#allocation5 + $0x70] sm:$0xf]  ;;  %v5867_v54 = vld [vmem:[#allocation5 + $0x60] sm:$0xf] }
 0x42f   : > { %v6274_v17 = vrot.slane %v16517_v34, 4  ;;  %v5188_v53 = vld [vmem:[#allocation5 + $0x58] sm:$0xf]  ;;  %v10572_v42 = vld [vmem:[#allocation6 + $0xe0] ss:$12 sps:$4 sm:$0xff]   ;;  %v15196_v2 = vrot.slane %v7889_v23, 4  ;;  %v5647_v3 = vsel %vm11077_vm1, %v5645_v59, %v5646_v29 }
 0x430   : > { %v5817_v38 = vld [vmem:[#allocation5 + $0x58] sm:$0xf]  ;;  %5840 = vst [vmem:[#allocation6 + $0xd8] sm:$0xf] %v5816_v7  ;;  %6157 = vst [vmem:[#allocation6 + $0xdc] sm:$0xf] %v6064_v25  ;;  %10249 = vmatmul.mubr.bf16.gmra.mxu1 %v10572_v42 }
 0x431   : > { %v15200_v30 = vrot.slane %v5646_v29, 4  ;;  %v6276_v10 = vsel %vm11077_vm1, %v6274_v17, %v6275_v9  ;;  %v15204_v39 = vld [vmem:[#allocation5 + $0x64] sm:$0xf]  ;;  %5212 = vst [vmem:[#allocation6 + $0x108] sm:$0xf] %v5188_v53  ;;  %v6277_v36 = vrot.slane %v6275_v9, 4 }
 0x432   : > { %8149 = vst [vmem:[#allocation6 + $0xe0] sm:$0xf] %v15132_v22  ;;  %8150 = vst [vmem:[#allocation6 + $0xec] sm:$0xf] %v8094_v57  ;;  %v5445_v52 = vrot.slane %v5443_v19, 4  ;;  %v5449_v7 = vshll.u32 %v5235_v20, 16  ;;  %v7895_v22 = vsel %vm11190_vm3, %v15196_v2, %v15191_v32 }
 0x433   : > { %5699 = vst [vmem:[#allocation6 + $0x104] sm:$0xf] %v5647_v3  ;;  %v5453_v23 = vshrl.u32 %v5235_v20, 16  ;;  %v5189_v25 = vld [vmem:[#allocation5 + $0x5c] sm:$0xf]  ;;  %v15207_v26 = vld [vmem:[#allocation6 + $0xe4] sm:$0xff] }
 0x434   : > { %v15209_v29 = vrot.slane %v6278_v40, 4  ;;  %v8095_v59 = vrot.slane %v8093_v43, 4  ;;  %v8096_v34 = vrot.slane %v15173_v4, 5  ;;  %v5459_v17 = vshll.u32 %v15175_v45, 16  ;;  %5213 = vst [vmem:[#allocation6 + $0x114] sm:$0xf] %v5189_v25 }
 0x435   : > { %5841 = vst [vmem:[#allocation6 + $0xe4] sm:$0xf] %v5817_v38  ;;  %6158 = vst [vmem:[#allocation6 + $0xe8] sm:$0xf] %v6074_v0  ;;  %v5446_v19 = vor.u32 %v5445_v52, %v15126_v15  ;;  %v5451_v57 = vrot.slane %v5449_v7, 5  ;;  %v5455_v20 = vrot.slane %v5453_v23, 4  ;;  %v6279_v15 = vsel %vm11077_vm1, %v6277_v36, %v6278_v40 }
 0x436   : > { %v15221_v12 = vrot.slane %v5459_v17, 5  ;;  %v6077_v43 = vrot.slane %v6075_v5, 4  ;;  %v6081_v4 = vshll.u32 %v5867_v54, 16  ;;  %v7688_v53 = vld [vmem:[#allocation5 + $0x6c] sm:$0xf]  ;;  %v6085_v38 = vshrl.u32 %v5867_v54, 16 }
 0x437   : > { %v5447_v42 = vrot.slane %v5446_v19, 4  ;;  %v5456_v3 = vor.u32 %v5455_v20, %v5451_v57  ;;  %v6091_v0 = vshll.u32 %v15204_v39, 16  ;;  %v15224_v25 = vld [vmem:[#allocation5 + $0x70] sm:$0xf]  ;;  %v15226_v24 = vld [vmem:[#allocation6 + $0xf8] sm:$0xf] }
 0x438   : > { %v8098_v2 = vrot.slane %v8096_v34, 4  ;;  %v15230_v52 = vrot.slane %v6081_v4, 5  ;;  %v7898_v7 = vrot.slane %v7896_v44, 4  ;;  %6330 = vst [vmem:[#allocation6 + $0xf8] sm:$0xf] %v6276_v10  ;;  %v6078_v54 = vor.u32 %v6077_v43, %v15170_v8 }
 0x439   : > { %v5452_v5 = vsel %vm11190_vm3, %v5447_v42, %v5451_v57  ;;  %v5457_v23 = vrot.slane %v5456_v3, 4  ;;  %v6087_v17 = vrot.slane %v6085_v38, 4  ;;  %v5554_v19 = vld [vmem:[#allocation5 + $0x5c] sm:$0xf]  ;;  %v5555_v20 = vld [vmem:[#allocation5 + $0x60] sm:$0x1] }
 0x43a   : > { %v7637_v9 = vld [vmem:[#allocation5 + $0x60] sm:$0xf]  ;;  %v7638_v21 = vld [vmem:[#allocation5 + $0x64] sm:$0xf]  ;;  %v16518_v40 = vrot.slane %v15194_v18, 5  ;;  %v7899_v44 = vor.u32 %v7898_v7, %v15191_v32  ;;  %v7902_v10 = vshll.u32 %v7688_v53, 16  ;;  %v8097_v32 = vsel %vm11077_vm1, %v8095_v59, %v8096_v34 }
 0x43b   : > { %v15235_v11 = vld [vmem:[#allocation6 + $0x104] sm:$0xf]  ;;  %5527 = vst [vmem:[#allocation6 + $0xf4] sm:$0xf] %v5452_v5  ;;  %v7906_v4 = vshrl.u32 %v7688_v53, 16  ;;  %v6370_v57 = vld [vmem:[#allocation6 + $0xd8] sm:$0xff]  ;;  %v5462_v8 = vsel %vm11190_vm3, %v5457_v23, %v15221_v12  ;;  %v6088_v42 = vor.u32 %v6087_v17, %v15230_v52 }
 0x43c   : > { %v15239_v36 = vrot.slane %v16518_v40, 4  ;;  %6331 = vst [vmem:[#allocation6 + $0x104] sm:$0xf] %v6279_v15  ;;  %v15247_v3 = vrot.slane %v6091_v0, 5  ;;  %v6186_v38 = vld [vmem:[#allocation5 + $0x68] sm:$0xf]  ;;  %v16519_v0 = vsel %vm11190_vm3, %v15155_v16, %v15147_v51 }
 0x43d   : > { %v6372_v40 = vld [vmem:[#allocation6 + $0xe4] sm:$0xff]  ;;  %5528 = vst [vmem:[#allocation6 + $0x100] sm:$0xf] %v5462_v8  ;;  %v15251_v53 = vrot.slane %v7902_v10, 5  ;;  %v7908_v15 = vrot.slane %v7906_v4, 4  ;;  %v7912_v7 = vshll.u32 %v15224_v25, 16 }
 0x43e   : > { %v10574_v46 = vld [vmem:[#allocation6 + $0xdc] ss:$12 sps:$4 sm:$0xff]   ;;  %7661 = vst [vmem:[#allocation6 + $0xd8] sm:$0xf] %v7637_v9  ;;  %7662 = vst [vmem:[#allocation6 + $0xe4] sm:$0xf] %v7638_v21  ;;  %v9471_v23 = vcombine.low %v6370_v57, %v6372_v40 }
 0x43f   : > { %v5532_v5 = vld [vmem:[#allocation5 + $0x4] sm:$0xf]  ;;  %7978 = vst [vmem:[#allocation6 + $0xdc] sm:$0xf] %v16519_v0  ;;  %7979 = vst [vmem:[#allocation6 + $0xe8] sm:$0xf] %v7895_v22  ;;  %6871 = vmatprep.mubr.bf16.mxu0 %v10574_v46  ;;  %v7909_v4 = vor.u32 %v7908_v15, %v15251_v53 }
 0x440   : > { %v6079_v17 = vrot.slane %v6078_v54, 4  ;;  %v6089_v43 = vrot.slane %v6088_v42, 4  ;;  %v5649_v59 = vrot.slane %v5554_v19, 5  ;;  %v5533_v34 = vld [vmem:[#allocation5 + $0x8] sm:$0xf]  ;;  %v15259_v10 = vrot.slane %v7899_v44, 4  ;;  %6872 = vmatmul.mubr.bf16.gmra.mxu0 %v9471_v23 }
 0x441   : > { %v5652_v8 = vrot.slane %v5555_v20, 5  ;;  %v6187_v9 = vld [vmem:[#allocation5 + $0x6c] sm:$0x1]  ;;  %v6281_v21 = vrot.slane %v6186_v38, 5  ;;  %v16520_v60 = vrot.slane %v15194_v18, 5  ;;  %v6095_v18 = vshrl.u32 %v15204_v39, 16 }
 0x442   : > { %v5534_v37 = vld [vmem:[#allocation5 + $0xc] sm:$0xf]  ;;  %v5818_v16 = vld [vmem:[#allocation5 + $0x5c] sm:$0xf]  ;;  %v6084_v22 = vsel %vm11190_vm3, %v6079_v17, %v15230_v52  ;;  %v5650_v46 = vsel %vm11077_vm1, %v15200_v30, %v5649_v59  ;;  %v5651_v54 = vrot.slane %v5649_v59, 4  ;;  %v6284_v38 = vrot.slane %v6187_v9, 5 }
 0x443   : > { %v8100_v51 = vsel %vm11077_vm1, %v8098_v2, %v16520_v60  ;;  %v15272_v19 = vld [vmem:[#allocation5 + $0x74] sm:$0xf]  ;;  %v15274_v20 = vld [vmem:[#allocation5 + $0x78] sm:$0x1]  ;;  %v15276_v44 = vld [vmem:[#allocation5 + $0x10] sm:$0xf]  ;;  %v6094_v60 = vsel %vm11190_vm3, %v6089_v43, %v15247_v3 }
 0x444   : > { %v15282_v2 = vrot.slane %v7912_v7, 5  ;;  %5700 = vst [vmem:[#allocation6 + $0x110] sm:$0xf] %v5650_v46  ;;  %v15285_v57 = vld [vmem:[#allocation6 + $0xf0] sm:$0xff]  ;;  %v5819_v30 = vld [vmem:[#allocation5 + $0x60] sm:$0xf]  ;;  %v5653_v42 = vsel %vm11077_vm1, %v5651_v54, %v5652_v8  ;;  %v6282_v7 = vsel %vm11077_vm1, %v15209_v29, %v6281_v21 }
 0x445   : > { %v5583_v40 = vrot.slane %v5532_v5, 5  ;;  %v5586_v15 = vrot.slane %v5533_v34, 5  ;;  %v6163_v0 = vld [vmem:[#allocation5 + $0xc] sm:$0xe]  ;;  %v6165_v23 = vld [vmem:[#allocation5 + $0x14] sm:$0xf] }
 0x446   : > { %v10577_v17 = vld [vmem:[#allocation6 + $0xf8] ss:$12 sps:$4 sm:$0xff]   ;;  %5842 = vst [vmem:[#allocation6 + $0xf0] sm:$0xf] %v5818_v16  ;;  %6159 = vst [vmem:[#allocation6 + $0xf4] sm:$0xf] %v6084_v22 }
 0x447   : > { %v15293_v43 = vrot.slane %v7909_v4, 4  ;;  %5701 = vst [vmem:[#allocation6 + $0x11c] sm:$0xf] %v5653_v42  ;;  %v6283_v59 = vrot.slane %v6281_v21, 4  ;;  %8151 = vst [vmem:[#allocation6 + $0xf8] sm:$0xf] %v8097_v32  ;;  %10252 = vmatprep.mubr.bf16.mxu1 %v10577_v17 }
 0x448   : > { %8152 = vst [vmem:[#allocation6 + $0x104] sm:$0xf] %v8100_v51  ;;  %v15298_v5 = vld [vmem:[#allocation6 + $0xfc] sm:$0xff]  ;;  %v16521_v34 = vrot.slane %v14123_v50, 9  ;;  %v5585_v9 = vrot.slane %v5583_v40, 4  ;;  %v5588_v16 = vrot.slane %v5586_v15, 4 }
 0x449   : > { %v5589_v22 = vrot.slane %v5534_v37, 5  ;;  %v5237_v4 = vld [vmem:[#allocation5 + $0x5c] sm:$0xf]  ;;  %5843 = vst [vmem:[#allocation6 + $0xfc] sm:$0xf] %v5819_v30  ;;  %v7915_v29 = vsel %vm11190_vm3, %v15293_v43, %v15282_v2  ;;  %v8102_v32 = vrot.slane %v15272_v19, 5  ;;  %v6285_v42 = vsel %vm11077_vm1, %v6283_v59, %v6284_v38 }
 0x44a   : > { %v5584_v8 = vsel %vm11077_vm1, %v16521_v34, %v5583_v40  ;;  %6160 = vst [vmem:[#allocation6 + $0x100] sm:$0xf] %v6094_v60  ;;  %v6215_v50 = vrot.slane %v15276_v44, 5  ;;  %v5238_v51 = vld [vmem:[#allocation5 + $0x60] sm:$0x1]  ;;  %v5587_v37 = vsel %vm11077_vm1, %v5585_v9, %v5586_v15  ;;  %v6218_v30 = vrot.slane %v6165_v23, 5 }
 0x44b   : > { %5678 = vst [vmem:[#allocation6 + $0x8] sm:$0xf] %v5584_v8  ;;  %v5590_v46 = vsel %vm11077_vm1, %v5588_v16, %v5589_v22  ;;  %v5591_v54 = vrot.slane %v5589_v22, 4  ;;  %v15315_v60 = vld [vmem:[#allocation5 + $0x18] sm:$0xf]  ;;  %v9395_v19 = vrot.slane %v6163_v0, 9 }
 0x44c   : > { %5679 = vst [vmem:[#allocation6 + $0x14] sm:$0xf] %v5587_v37  ;;  %5680 = vst [vmem:[#allocation6 + $0x20] sm:$0xf] %v5590_v46  ;;  %v6217_v40 = vrot.slane %v6215_v50, 4  ;;  %v16522_v44 = vshrl.u32 %v15175_v45, 16 }
 0x44d   : > { %v5869_v43 = vld [vmem:[#allocation5 + $0x68] sm:$0xf]  ;;  %v15321_v34 = vld [vmem:[#allocation6 + $0x110] sm:$0xf]  ;;  %v16524_v15 = vrot.slane %v14116_v13, 5  ;;  %v5469_v9 = vshll.u32 %v5237_v4, 16 }
 0x44e   : > { %v5465_v17 = vrot.slane %v16522_v44, 4  ;;  %16523 = vst [vmem:[#allocation22_spill] sm:$0xff] %v15321_v34  ;;  %v5473_v23 = vshrl.u32 %v5237_v4, 16  ;;  %v5479_v16 = vshll.u32 %v5238_v51, 16  ;;  %6332 = vst [vmem:[#allocation6 + $0x110] sm:$0xf] %v6282_v7  ;;  %v6216_v44 = vsel %vm11077_vm1, %v9395_v19, %v6215_v50 }
 0x44f   : > { %v5593_v8 = vsel %vm11077_vm1, %v5591_v54, %v16524_v15  ;;  %v8104_v38 = vrot.slane %v8102_v32, 4  ;;  %v6097_v45 = vrot.slane %v6095_v18, 4  ;;  %v7639_v22 = vld [vmem:[#allocation5 + $0x68] sm:$0xf]  ;;  %v7640_v37 = vld [vmem:[#allocation5 + $0x6c] sm:$0xf]  ;;  %v9530_v19 = vcombine.low %v15022_v63, %v15037_v35 }
 0x450   : > { %5681 = vst [vmem:[#allocation6 + $0x2c] sm:$0xf] %v5593_v8  ;;  %v5466_v59 = vor.u32 %v5465_v17, %v15221_v12  ;;  %v15329_v46 = vld [vmem:[#allocation6 + $0x11c] sm:$0xf]  ;;  %v6220_v52 = vrot.slane %v6218_v30, 4  ;;  %v5471_v54 = vrot.slane %v5469_v9, 5  ;;  %v6219_v8 = vsel %vm11077_vm1, %v6217_v40, %v6218_v30 }
 0x451   : > { %v5475_v15 = vrot.slane %v5473_v23, 4  ;;  %v5870_v4 = vld [vmem:[#allocation5 + $0x6c] sm:$0x1]  ;;  %v7690_v51 = vld [vmem:[#allocation5 + $0x74] sm:$0xf]  ;;  %v6101_v12 = vshll.u32 %v5869_v43, 16  ;;  %v6098_v50 = vor.u32 %v6097_v45, %v15247_v3  ;;  %v16525_v30 = vsel %vm11190_vm3, %v15259_v10, %v15251_v53 }
 0x452   : > { %v6374_v7 = vld [vmem:[#allocation6 + $0xf0] sm:$0xff]  ;;  %6333 = vst [vmem:[#allocation6 + $0x11c] sm:$0xf] %v6285_v42  ;;  %v5467_v21 = vrot.slane %v5466_v59, 4  ;;  %v6105_v18 = vshrl.u32 %v5869_v43, 16  ;;  %v6376_v17 = vld [vmem:[#allocation6 + $0xfc] sm:$0xff] }
 0x453   : > { %v10579_v0 = vld [vmem:[#allocation6 + $0xf4] ss:$12 sps:$4 sm:$0xff]   ;;  %v5703_v39 = vld [vmem:[#allocation6 + $0x8] sm:$0xf]  ;;  %v5476_v49 = vor.u32 %v5475_v15, %v5471_v54  ;;  %v5481_v34 = vrot.slane %v5479_v16, 5  ;;  %v9474_v42 = vcombine.low %v6374_v7, %v6376_v17  ;;  %v16526_v40 = vrot.slane %v15315_v60, 5 }
 0x454   : > { %7663 = vst [vmem:[#allocation6 + $0xf0] sm:$0xf] %v7639_v22  ;;  %7664 = vst [vmem:[#allocation6 + $0xfc] sm:$0xf] %v7640_v37  ;;  %v5472_v3 = vsel %vm11190_vm3, %v5467_v21, %v5471_v54  ;;  %v6103_v9 = vrot.slane %v6101_v12, 5  ;;  %6879 = vmatprep.mubr.bf16.mxu0 %v10579_v0  ;;  %v8103_v16 = vsel %vm11077_vm1, %v15239_v36, %v8102_v32  ;;  %v6111_v22 = vshll.u32 %v5870_v4, 16 }
 0x455   : > { %7980 = vst [vmem:[#allocation6 + $0xf4] sm:$0xf] %v16525_v30  ;;  %7981 = vst [vmem:[#allocation6 + $0x100] sm:$0xf] %v7915_v29  ;;  %v6222_v43 = vsel %vm11077_vm1, %v6220_v52, %v16526_v40  ;;  %v7984_v23 = vld [vmem:[#allocation5 + $0x18] sm:$0xe]  ;;  %6880 = vmatmul.mubr.bf16.gmra.mxu0 %v9474_v42  ;;  %v9533_v30 = vcombine.low %v15124_v47, %v15138_v33 }
 0x456   : > { %6310 = vst [vmem:[#allocation6 + $0x8] sm:$0xf] %v6216_v44  ;;  %v5705_v53 = vld [vmem:[#allocation6 + $0x14] sm:$0xf]  ;;  %v5477_v10 = vrot.slane %v5476_v49, 4  ;;  %v6107_v29 = vrot.slane %v6105_v18, 4 }
 0x457   : > { %5529 = vst [vmem:[#allocation6 + $0x10c] sm:$0xf] %v5472_v3  ;;  %v15352_v59 = vld [vmem:[#allocation5 + $0x78] sm:$0x1]  ;;  %v7985_v45 = vld [vmem:[#allocation5 + $0x1c] sm:$0xf] }
 0x458   : > { %v16527_v52 = vrot.slane %v15274_v20, 5  ;;  %6311 = vst [vmem:[#allocation6 + $0x14] sm:$0xf] %v6219_v8  ;;  %v7922_v0 = vshll.u32 %v7690_v51, 16  ;;  %v7926_v37 = vshrl.u32 %v7690_v51, 16  ;;  %v5482_v49 = vsel %vm11190_vm3, %v5477_v10, %v5481_v34  ;;  %v10615_v35 = vld [vmem:[%s16079_s5] sm:$0xff]  }
 0x459   : > { %v15358_v44 = vld [vmem:[#allocation5 + $0x20] sm:$0xf]  ;;  %v15360_v36 = vld [vmem:[#allocation6 + $0x20] sm:$0xf]  ;;  %v6099_v32 = vrot.slane %v6098_v50, 4  ;;  %v6108_v54 = vor.u32 %v6107_v29, %v6103_v9  ;;  %v16528_v15 = vshrl.u32 %v15224_v25, 16  ;;  %v9506_v34 = vcombine.low %v5703_v39, %v5705_v53 }
 0x45a   : > { %v8106_v21 = vsel %vm11077_vm1, %v8104_v38, %v16527_v52  ;;  %6312 = vst [vmem:[#allocation6 + $0x20] sm:$0xf] %v6222_v43  ;;  %v5536_v20 = vld [vmem:[#allocation5 + $0x14] sm:$0xf]  ;;  %5530 = vst [vmem:[#allocation6 + $0x118] sm:$0xf] %v5482_v49 }
 0x45b   : > { %v7918_v7 = vrot.slane %v16528_v15, 4  ;;  %v15366_v38 = vrot.slane %v7922_v0, 5  ;;  %v7928_v4 = vrot.slane %v7926_v37, 4  ;;  %v9564_v8 = vrot.slane %v7984_v23, 9  ;;  %v5537_v12 = vld [vmem:[#allocation5 + $0x18] sm:$0xf] }
 0x45c   : > { %v8036_v51 = vrot.slane %v7985_v45, 5  ;;  %v10582_v18 = vld [vmem:[#allocation6 + $0x110] ss:$12 sps:$4 sm:$0xff]   ;;  %v6109_v17 = vrot.slane %v6108_v54, 4  ;;  %v5820_v50 = vld [vmem:[#allocation5 + $0x64] sm:$0xf]  ;;  %v6104_v25 = vsel %vm11190_vm3, %v6099_v32, %v6103_v9 }
 0x45d   : > { %8153 = vst [vmem:[#allocation6 + $0x110] sm:$0xf] %v8103_v16  ;;  %8154 = vst [vmem:[#allocation6 + $0x11c] sm:$0xf] %v8106_v21  ;;  %v6113_v42 = vrot.slane %v6111_v22, 5  ;;  %v7932_v40 = vshll.u32 %v15352_v59, 16  ;;  %10253 = vmatmul.mubr.bf16.gmra.mxu1 %v10582_v18  ;;  %v7919_v23 = vor.u32 %v7918_v7, %v15282_v2  ;;  %v7929_v10 = vor.u32 %v7928_v4, %v15366_v38 }
 0x45e   : > { %v6167_v43 = vld [vmem:[#allocation5 + $0x1c] sm:$0xf]  ;;  %v6168_v3 = vld [vmem:[#allocation5 + $0x20] sm:$0xf]  ;;  %v8038_v29 = vrot.slane %v8036_v51, 4  ;;  %v8039_v45 = vrot.slane %v15358_v44, 5  ;;  %10272 = vmatprep.mubr.bf16.mxu1 %v9506_v34  ;;  %v8037_v9 = vsel %vm11077_vm1, %v9564_v8, %v8036_v51 }
 0x45f   : > { %v5709_v16 = vld [vmem:[#allocation6 + $0x2c] sm:$0xf]  ;;  %v16529_v53 = vrot.slane %v14116_v13, 5  ;;  %v5595_v52 = vrot.slane %v5536_v20, 5  ;;  %v5598_v21 = vrot.slane %v5537_v12, 5  ;;  %v6114_v2 = vsel %vm11190_vm3, %v6109_v17, %v6113_v42  ;;  %v10602_v51 = vld [vmem:[%s16079_s5 + $0x1f0] sm:$0xff]  }
 0x460   : > { %v15376_v39 = vld [vmem:[#allocation6 + $0x108] sm:$0xff]  ;;  %v8040_v37 = vsel %vm11077_vm1, %v8038_v29, %v8039_v45  ;;  %v16530_v44 = vrot.slane %v15315_v60, 5  ;;  %v9536_v13 = vcombine.low %v15226_v24, %v15235_v11  ;;  %v6224_v60 = vrot.slane %v6167_v43, 5  ;;  %v16538_v33 = vld [vmem:[#allocation22_spill] sm:$0xff] }
 0x461   : > { %v5594_v59 = vrot.slane %v16529_v53, 4  ;;  %v5821_v22 = vld [vmem:[#allocation5 + $0x68] sm:$0xf]  ;;  %5844 = vst [vmem:[#allocation6 + $0x108] sm:$0xf] %v5820_v50  ;;  %v5597_v15 = vrot.slane %v5595_v52, 4  ;;  %v9509_v17 = vcombine.low %v15360_v36, %v5709_v16 }
 0x462   : > { %6161 = vst [vmem:[#allocation6 + $0x10c] sm:$0xf] %v6104_v25  ;;  %v15384_v0 = vld [vmem:[#allocation6 + $0x8] ss:$12 sps:$4 sm:$0xff]   ;;  %v6223_v49 = vrot.slane %v16530_v44, 4  ;;  %v6227_v8 = vrot.slane %v6168_v3, 5 }
 0x463   : > { %v7987_v32 = vld [vmem:[#allocation5 + $0x24] sm:$0xf]  ;;  %8131 = vst [vmem:[#allocation6 + $0x8] sm:$0xf] %v8037_v9  ;;  %8132 = vst [vmem:[#allocation6 + $0x14] sm:$0xf] %v8040_v37  ;;  %v5596_v54 = vsel %vm11077_vm1, %v5594_v59, %v5595_v52  ;;  %v5599_v34 = vsel %vm11077_vm1, %v5597_v15, %v5598_v21 }
 0x464   : > { %v10600_v7 = vld [vmem:[%s16079_s5 + $0x1b8] sm:$0xff]   ;;  %v15397_v20 = vld [vmem:[#allocation6 + $0x114] sm:$0xff]  ;;  %5682 = vst [vmem:[#allocation6 + $0x38] sm:$0xf] %v5596_v54  ;;  %v7920_v12 = vrot.slane %v7919_v23, 4  ;;  %v7934_v18 = vrot.slane %v7932_v40, 5  ;;  %v6225_v43 = vsel %vm11077_vm1, %v6223_v49, %v6224_v60 }
 0x465   : > { %v15399_v4 = vld [vmem:[#allocation5 + $0x24] sm:$0xf]  ;;  %5845 = vst [vmem:[#allocation6 + $0x114] sm:$0xf] %v5821_v22  ;;  %6162 = vst [vmem:[#allocation6 + $0x118] sm:$0xf] %v6114_v2  ;;  %10273 = vmatmul.mubr.bf16.vlgmr.msra.gmra.mxu1 %v9509_v17 }
 0x466   : > { %v7988_v50 = vld [vmem:[#allocation5 + $0x28] sm:$0xf]  ;;  %v5538_v25 = vld [vmem:[#allocation5 + $0x1c] sm:$0xf]  ;;  %v7930_v42 = vrot.slane %v7929_v10, 4  ;;  %v8042_v29 = vrot.slane %v7987_v32, 5  ;;  %v7925_v16 = vsel %vm11190_vm3, %v7920_v12, %v15366_v38  ;;  %10069 = vmatpush3.bf16.msra.mxu1 %v10600_v7 }
 0x467   : > { %v5600_v9 = vrot.slane %v5598_v21, 4  ;;  %5683 = vst [vmem:[#allocation6 + $0x44] sm:$0xf] %v5599_v34  ;;  %v6170_v3 = vld [vmem:[#allocation5 + $0x28] sm:$0xf]  ;;  %v6226_v53 = vrot.slane %v6224_v60, 4  ;;  %10070 = vmatprep.subr.bf16.mxu1 %v10602_v51 }
 0x468   : > { %v6229_v59 = vrot.slane %v6227_v8, 4  ;;  %6313 = vst [vmem:[#allocation6 + $0x2c] sm:$0xf] %v6225_v43  ;;  %v8041_v23 = vrot.slane %v8039_v45, 4  ;;  %v8045_v40 = vrot.slane %v7988_v50, 5  ;;  %v5601_v36 = vrot.slane %v5538_v25, 5 }
 0x469   : > { %v6228_v10 = vsel %vm11077_vm1, %v6226_v53, %v6227_v8  ;;  %v6230_v52 = vrot.slane %v15399_v4, 5  ;;  %v6233_v21 = vrot.slane %v6170_v3, 5  ;;  %v10604_v22 = vld [vmem:[%s16079_s5 + $0x1b0] sm:$0xff]   ;;  %v10606_v45 = vld [vmem:[%s16079_s5 + $0x1e8] sm:$0xff]   ;;  %v7641_v2 = vld [vmem:[#allocation5 + $0x70] sm:$0xf]  ;;  %v7935_v38 = vsel %vm11190_vm3, %v7930_v42, %v7934_v18 }
 0x46a   : > { %v7642_v37 = vld [vmem:[#allocation5 + $0x74] sm:$0xf]  ;;  %v7989_v44 = vld [vmem:[#allocation5 + $0x2c] sm:$0xf]  ;;  %v8044_v49 = vrot.slane %v8042_v29, 4  ;;  %v5602_v32 = vsel %vm11077_vm1, %v5600_v9, %v5601_v36  ;;  %v5603_v54 = vrot.slane %v5601_v36, 4  ;;  %v8043_v6 = vsel %vm11077_vm1, %v8041_v23, %v8042_v29  ;;  %10071 = vmatpush3.bf16.msra.mxu1 %v10604_v22 }
 0x46b   : > { %v5711_v15 = vld [vmem:[#allocation6 + $0x38] sm:$0xf]  ;;  %v6231_v7 = vsel %vm11077_vm1, %v6229_v59, %v6230_v52  ;;  %v7990_v4 = vld [vmem:[#allocation5 + $0x30] sm:$0xf]  ;;  %5684 = vst [vmem:[#allocation6 + $0x50] sm:$0xf] %v5602_v32  ;;  %10072 = vmatprep.subr.bf16.mxu1 %v10606_v45  ;;  %v9532_v22 = vcombine.high %v15182_v48, %v15207_v26  ;;  %v9531_v45 = vcombine.low %v15182_v48, %v15207_v26 }
 0x46c   : > { %v6378_v60 = vld [vmem:[#allocation6 + $0x108] sm:$0xff]  ;;  %v6380_v8 = vld [vmem:[#allocation6 + $0x114] sm:$0xff]  ;;  %6314 = vst [vmem:[#allocation6 + $0x38] sm:$0xf] %v6228_v10  ;;  %v8046_v18 = vsel %vm11077_vm1, %v8044_v49, %v8045_v40  ;;  %v16531_v17 = vrot.slane %v14295_v55, 5  ;;  %v8048_v25 = vrot.slane %v7989_v44, 5  ;;  %v9537_v32 = vcombine.low %v15376_v39, %v15397_v20 }
 0x46d   : > { %v10584_v12 = vld [vmem:[#allocation6 + $0x10c] ss:$12 sps:$4 sm:$0xff]   ;;  %7665 = vst [vmem:[#allocation6 + $0x108] sm:$0xf] %v7641_v2  ;;  %7666 = vst [vmem:[#allocation6 + $0x114] sm:$0xf] %v7642_v37  ;;  %v9477_v34 = vcombine.low %v6378_v60, %v6380_v8  ;;  %v9535_v2 = vcombine.high %v15285_v57, %v15298_v5  ;;  %v9534_v37 = vcombine.low %v15285_v57, %v15298_v5 }
 0x46e   : > { %v5605_v51 = vsel %vm11077_vm1, %v5603_v54, %v16531_v17  ;;  %7982 = vst [vmem:[#allocation6 + $0x10c] sm:$0xf] %v7925_v16  ;;  %7983 = vst [vmem:[#allocation6 + $0x118] sm:$0xf] %v7935_v38  ;;  %v5713_v50 = vld [vmem:[#allocation6 + $0x44] sm:$0xf]  ;;  %6887 = vmatprep.mubr.bf16.mxu0 %v10584_v12  ;;  %v9538_v38 = vcombine.high %v15376_v39, %v15397_v20 }
 0x46f   : > { %5685 = vst [vmem:[#allocation6 + $0x5c] sm:$0xf] %v5605_v51  ;;  %v6235_v42 = vrot.slane %v6233_v21, 4  ;;  %v10608_v29 = vld [vmem:[%s16079_s5 + $0x1a8] sm:$0xff]   ;;  %v6232_v9 = vrot.slane %v6230_v52, 4  ;;  %v9512_v55 = vcombine.low %v5711_v15, %v5713_v50  ;;  %v10610_v3 = vld [vmem:[%s16079_s5 + $0x1e0] sm:$0xff]   ;;  %6888 = vmatmul.mubr.bf16.gmra.mxu0 %v9477_v34 }
 0x470   : > { %6315 = vst [vmem:[#allocation6 + $0x44] sm:$0xf] %v6231_v7  ;;  %v10589_v43 = vld [vmem:[#allocation6 + $0x20] ss:$12 sps:$4 sm:$0xff]   ;;  %v8047_v53 = vrot.slane %v8045_v40, 4  ;;  %v8051_v59 = vrot.slane %v7990_v4, 5  ;;  %10232 = vmatprep.mubr.bf16.mxu0 %v15384_v0  ;;  %10073 = vmatpush3.bf16.msra.mxu1 %v10608_v29  ;;  %v9868_v7 = vpop.f32.mrf.mxu0 }
 0x471   : > { %8133 = vst [vmem:[#allocation6 + $0x20] sm:$0xf] %v8043_v6  ;;  %8134 = vst [vmem:[#allocation6 + $0x2c] sm:$0xf] %v8046_v18  ;;  %10276 = vmatprep.mubr.bf16.mxu1 %v9512_v55  ;;  %v6234_v23 = vsel %vm11077_vm1, %v6232_v9, %v6233_v21  ;;  %v7991_v36 = vld [vmem:[#allocation5 + $0x34] sm:$0xf]  ;;  %10074 = vmatprep.subr.bf16.mxu1 %v10610_v3 }
 0x472   : > { %v8050_v16 = vrot.slane %v8048_v25, 4  ;;  %v16532_v10 = vrot.slane %v14350_v28, 5  ;;  %v10612_v40 = vld [vmem:[%s16079_s5 + $0x1a0] sm:$0xff]   ;;  %v10590_v0 = vld [vmem:[%s16079_s5 + $0x38] sm:$0xff]   ;;  %v8049_v44 = vsel %vm11077_vm1, %v8047_v53, %v8048_v25  ;;  %v8054_v15 = vrot.slane %v7991_v36, 5  ;;  %v10592_v60 = vld [vmem:[%s16079_s5 + $0x70] sm:$0xff]   ;;  %v9869_v18 = vpop.f32.mrf.mxu0 }
 0x473   : > { %v5715_v21 = vld [vmem:[#allocation6 + $0x50] sm:$0xf]  ;;  %v10614_v28 = vld [vmem:[%s16079_s5 + $0x1d8] sm:$0xff]   ;;  %v8053_v12 = vrot.slane %v8051_v59, 4  ;;  %v10617_v17 = vld [vmem:[%s16079_s5 + $0x1d0] sm:$0xff]   ;;  %v15482_v51 = vadd.f32 %v9869_v18, %v9868_v7  ;;  %v16534_v55 = vrot.slane %v14372_v41, 5 }
 0x474   : > { %v6237_v52 = vsel %vm11077_vm1, %v6235_v42, %v16532_v10  ;;  %v8052_v49 = vsel %vm11077_vm1, %v8050_v16, %v8051_v59  ;;  %6316 = vst [vmem:[#allocation6 + $0x50] sm:$0xf] %v6234_v23  ;;  %10075 = vmatpush3.bf16.msra.mxu1 %v10612_v40  ;;  %v10616_v6 = vld [vmem:[%s16079_s5 + $0x198] sm:$0xff]   ;;  %v10593_v34 = vld [vmem:[%s16079_s5 + $0x30] sm:$0xff]   ;;  %v8056_v50 = vrot.slane %v8054_v15, 4  ;;  %v15487_v25 = vpop.f32.mrf.mxu0  ;;  %v16533_v42 = vcombine.low %v14431_v62, %v14438_v58  ;;  %v10594_v29 = vld [vmem:[%s16079_s5 + $0x68] sm:$0xff]  }
 0x475   : > { %10076 = vmatprep.subr.bf16.mxu1 %v10614_v28  ;;  %v8055_v9 = vsel %vm11077_vm1, %v8053_v12, %v8054_v15  ;;  %v10619_v3 = vld [vmem:[%s16079_s5 + $0x190] sm:$0xff]   ;;  %v10596_v58 = vld [vmem:[%s16079_s5 + $0x28] sm:$0xff]   ;;  %v16535_v41 = vld [vmem:[#allocation12_spill] sm:$0xff]  ;;  %v9524_v40 = vcombine.low %v14739_v14, %v14755_v1 }
 0x476   : > { %v5717_v54 = vld [vmem:[#allocation6 + $0x5c] sm:$0xf]  ;;  %v15504_v53 = vpop.f32.mrf.mxu0  ;;  %v9521_v59 = vcombine.low %v16535_v41, %v14444_v31  ;;  %v16536_v23 = vld [vmem:[#allocation40_spill] sm:$0xff]  ;;  %v16537_v36 = vld [vmem:[#allocation39_spill] sm:$0xff] }
 0x477   : > { %v10591_v4 = vld [vmem:[#allocation6 + $0x38] ss:$12 sps:$4 sm:$0xff]   ;;  %6317 = vst [vmem:[#allocation6 + $0x5c] sm:$0xf] %v6237_v52  ;;  %v9515_v8 = vcombine.low %v5715_v21, %v5717_v54  ;;  %10233 = vmatmul.mubr.bf16.vlgmr.msra.gmra.mxu0 %v10589_v43  ;;  %v8058_v43 = vsel %vm11077_vm1, %v8056_v50, %v16534_v55  ;;  %v9505_v16 = vcombine.high %v16537_v36, %v16536_v23  ;;  %v10599_v31 = vld [vmem:[%s16079_s5 + $0x20] sm:$0xff]   ;;  %v10601_v1 = vld [vmem:[%s16079_s5 + $0x58] sm:$0xff]  }
 0x478   : > { %8135 = vst [vmem:[#allocation6 + $0x38] sm:$0xf] %v8049_v44  ;;  %8136 = vst [vmem:[#allocation6 + $0x44] sm:$0xf] %v8052_v49  ;;  %9961 = vmatpush3.bf16.msra.mxu0 %v10590_v0  ;;  %10236 = vmatprep.mubr.bf16.mxu0 %v10591_v4  ;;  %v10620_v10 = vld [vmem:[%s16079_s5 + $0x1c8] sm:$0xff]   ;;  %v9874_v52 = vpop.f32.mrf.mxu0  ;;  %v10625_v21 = vld [vmem:[%s16079_s5 + $0x1c0] sm:$0xff]   ;;  %v9527_v54 = vcombine.low %v14905_v27, %v14915_v61  ;;  %v9504_v47 = vcombine.low %v16537_v36, %v16536_v23 }
 0x479   : > { %10277 = vmatmul.mubr.bf16.gmra.mxu1 %v9515_v8  ;;  %9962 = vmatprep.subr.bf16.mxu0 %v10592_v60  ;;  %v10621_v0 = vld [vmem:[%s16079_s5 + $0x188] sm:$0xff]   ;;  %v10603_v44 = vld [vmem:[%s16079_s5 + $0x18] sm:$0xff]   ;;  %v10605_v49 = vld [vmem:[%s16079_s5 + $0x50] sm:$0xff]  }
 0x47a   : > { %10280 = vmatprep.mubr.bf16.mxu1 %v16533_v42  ;;  %10077 = vmatpush3.bf16.msra.mxu1 %v10616_v6  ;;  %v9875_v28 = vpop.f32.mrf.mxu0  ;;  %v10626_v15 = vld [vmem:[%s16079_s5 + $0x180] sm:$0xff]   ;;  %v10607_v7 = vld [vmem:[%s16079_s5 + $0x10] sm:$0xff]   ;;  %v10609_v4 = vld [vmem:[%s16079_s5 + $0x48] sm:$0xff]  }
 0x47b   : > { %10078 = vmatprep.subr.bf16.mxu1 %v10617_v17  ;;  %v15533_v14 = vadd.f32 %v9875_v28, %v9874_v52  ;;  %v10611_v61 = vld [vmem:[%s16079_s5 + $0x8] sm:$0xff]   ;;  %v10613_v60 = vld [vmem:[%s16079_s5 + $0x40] sm:$0xff]   ;;  %v10627_v11 = vld [vmem:[%s16079_s5 + $0x230] sm:$0xff]  }
 0x47c   : > { %9963 = vmatpush3.bf16.msra.mxu0 %v10593_v34  ;;  %v15555_v27 = vpop.f32.mrf.mxu0  ;;  %v16540_v6 = vld [vmem:[#allocation43_spill] sm:$0xff]  ;;  %v10624_v17 = vld [vmem:[#allocation6 + $0x4] ss:$12 sps:$4 sm:$0xff]   ;;  %v16542_v55 = vld [vmem:[#allocation41_spill] sm:$0xff] }
 0x47d   : > { %9964 = vmatprep.subr.bf16.mxu0 %v10594_v29  ;;  %v10622_v50 = vld [vmem:[#allocation6] ss:$12 sps:$4 sm:$0xff]   ;;  %v10628_v23 = vld [vmem:[#allocation6 + $0x18] ss:$12 sps:$4 sm:$0xff]   ;;  %v10661_v26 = vld [vmem:[#allocation6 + $0xf0] ss:$12 sps:$4 sm:$0xff]  }
 0x47e   : > { %v10595_v62 = vld [vmem:[#allocation6 + $0x50] ss:$12 sps:$4 sm:$0xff]   ;;  %10079 = vmatpush3.bf16.msra.mxu1 %v10619_v3  ;;  %v15563_v63 = vpop.f32.mrf.mxu0  ;;  %v10671_v39 = vld [vmem:[#allocation6 + $0x68] ss:$12 sps:$4 sm:$0xff]  }
 0x47f   : > { %8137 = vst [vmem:[#allocation6 + $0x50] sm:$0xf] %v8055_v9  ;;  %8138 = vst [vmem:[#allocation6 + $0x5c] sm:$0xf] %v8058_v43  ;;  %10237 = vmatmul.mubr.bf16.gmra.mxu0 %v10595_v62  ;;  %10080 = vmatprep.subr.bf16.mxu1 %v10620_v10  ;;  %v16541_v9 = vld [vmem:[#allocation10_spill] sm:$0xff]  ;;  %v16544_v10 = vld [vmem:[#allocation13_spill] sm:$0xff] }
 0x480   : > { %9965 = vmatpush3.bf16.msra.mxu0 %v10596_v58  ;;  %7393 = vmatprep.mubr.bf16.mxu0 %v9505_v16  ;;  %v9880_v8 = vpop.f32.mrf.mxu0  ;;  %v9511_v43 = vcombine.high %v16542_v55, %v16541_v9  ;;  %v10630_v3 = vld [vmem:[#allocation6 + $0x1c] ss:$12 sps:$4 sm:$0xff]   ;;  %v10638_v58 = vld [vmem:[%s16079_s5 + $0x220] sm:$0xff]   ;;  %v9510_v36 = vcombine.low %v16542_v55, %v16541_v9 }
 0x481   : > { %10281 = vmatmul.mubr.bf16.gmra.mxu1 %v9521_v59  ;;  %9966 = vmatprep.subr.bf16.mxu0 %v10597_v56  ;;  %v10645_v56 = vld [vmem:[%s16079_s5 + $0x218] sm:$0xff]  }
 0x482   : > { %10284 = vmatprep.mubr.bf16.mxu1 %v9524_v40  ;;  %10081 = vmatpush3.bf16.msra.mxu1 %v10621_v0  ;;  %v9881_v12 = vpop.f32.mrf.mxu0  ;;  %v16543_v16 = vld [vmem:[#allocation11_spill] sm:$0xff]  ;;  %v10633_v40 = vld [vmem:[#allocation6 + $0x34] ss:$12 sps:$4 sm:$0xff]  }
 0x483   : > { %10082 = vmatprep.subr.bf16.mxu1 %v10625_v21  ;;  %v15584_v24 = vadd.f32 %v9881_v12, %v9880_v8  ;;  %v9514_v52 = vcombine.high %v16544_v10, %v16543_v16  ;;  %v10649_v0 = vld [vmem:[%s16079_s5 + $0x210] sm:$0xff]   ;;  %v10631_v21 = vld [vmem:[#allocation6 + $0x30] ss:$12 sps:$4 sm:$0xff]   ;;  %v9513_v28 = vcombine.low %v16544_v10, %v16543_v16  ;;  %v16552_v16 = vld [vmem:[#allocation19_spill] sm:$0xff] }
 0x484   : > { %9967 = vmatpush3.bf16.msra.mxu0 %v10599_v31  ;;  %v15591_v34 = vpop.f32.mrf.mxu0  ;;  %v10656_v31 = vld [vmem:[%s16079_s5 + $0x208] sm:$0xff]   ;;  %v10641_v12 = vld [vmem:[#allocation6 + $0x64] ss:$12 sps:$4 sm:$0xff]  }
 0x485   : > { %9968 = vmatprep.subr.bf16.mxu0 %v10601_v1  ;;  %v16545_v1 = vld [vmem:[#allocation15_spill] sm:$0xff] }
 0x486   : > { %10083 = vmatpush3.bf16.msra.mxu1 %v10626_v15  ;;  %v15595_v29 = vpop.f32.mrf.mxu0  ;;  %v10660_v15 = vld [vmem:[%s16079_s5 + $0x200] sm:$0xff]   ;;  %v10644_v9 = vld [vmem:[#allocation6 + $0x7c] ss:$12 sps:$4 sm:$0xff]  }
 0x488   : > { %9969 = vmatpush3.bf16.msra.mxu0 %v10603_v44  ;;  %v9886_v62 = vpop.f32.mrf.mxu0  ;;  %v16546_v44 = vld [vmem:[#allocation17_spill] sm:$0xff] }
 0x489   : > { %10285 = vmatmul.mubr.bf16.gmra.mxu1 %v9527_v54  ;;  %9970 = vmatprep.subr.bf16.mxu0 %v10605_v49  ;;  %v9517_v49 = vcombine.high %v16546_v44, %v16545_v1  ;;  %v10637_v54 = vld [vmem:[#allocation6 + $0x4c] ss:$12 sps:$4 sm:$0xff]  }
 0x48a   : > { %10288 = vmatprep.mubr.bf16.mxu1 %v9530_v19  ;;  %v10618_v19 = vld [vmem:[%s16079_s5 + $0x238] sm:$0xff]   ;;  %v9887_v41 = vpop.f32.mrf.mxu0 }
 0x48b   : > { %v15605_v59 = vadd.f32 %v9887_v41, %v9886_v62  ;;  %v10642_v41 = vld [vmem:[#allocation6 + $0x78] ss:$12 sps:$4 sm:$0xff]  }
 0x48c   : > { %9971 = vmatpush3.bf16.msra.mxu0 %v10607_v7  ;;  %v15624_v7 = vpop.f32.mrf.mxu0 }
 0x48d   : > { %9972 = vmatprep.subr.bf16.mxu0 %v10609_v4  ;;  %v10242_v4 = vpop.f32.mrf.mxu1 }
 0x490   : > { %9973 = vmatpush3.bf16.msra.mxu0 %v10611_v61  ;;  %v10635_v61 = vld [vmem:[#allocation6 + $0x48] ss:$12 sps:$4 sm:$0xff]  }
 0x491   : > { %10289 = vmatmul.mubr.bf16.gmra.mxu1 %v9533_v30  ;;  %9974 = vmatprep.subr.bf16.mxu0 %v10613_v60  ;;  %v9539_v30 = vcombine.low %v16538_v33, %v15329_v46  ;;  %v10634_v46 = vld [vmem:[%s16079_s5 + $0x228] sm:$0xff]   ;;  %v9516_v60 = vcombine.low %v16546_v44, %v16545_v1  ;;  %v6962_v33 = vpop.f32.mrf.mxu1 }
 0x492   : > { %10292 = vmatprep.mubr.bf16.mxu1 %v9536_v13  ;;  %v16539_v13 = vld [vmem:[#allocation42_spill] sm:$0xff]  ;;  %v10646_v44 = vld [vmem:[#allocation6 + $0x90] ss:$12 sps:$4 sm:$0xff]  }
 0x493   : > { %v9508_v18 = vcombine.high %v16540_v6, %v16539_v13  ;;  %v9507_v42 = vcombine.low %v16540_v6, %v16539_v13  ;;  %v10243_v13 = vpop.f32.mrf.mxu1  ;;  %v10639_v6 = vld [vmem:[#allocation6 + $0x60] ss:$12 sps:$4 sm:$0xff]  }
 0x494   : > { %9975 = vmatpush3.bf16.msra.mxu0 %v10615_v35  ;;  %v16547_v35 = vld [vmem:[#allocation16_spill] sm:$0xff] }
 0x495   : > { %10296 = vmatprep.subr.bf16.mxu0 %v10618_v19 }
 0x497   : > { %7394 = vmatmul.mubr.bf16.vlgmr.msra.gmra.mxu0 %v9504_v47  ;;  %v15630_v47 = vpop.f32.mrf.mxu0 }
 0x498   : > { %7401 = vmatprep.mubr.bf16.mxu0 %v9508_v18  ;;  %10297 = vmatpush3.bf16.msra.mxu0 %v10618_v19  ;;  %v16548_v19 = vld [vmem:[#allocation14_spill] sm:$0xff] }
 0x499   : > { %10293 = vmatmul.mubr.bf16.gmra.mxu1 %v9539_v30  ;;  %10298 = vmatprep.subr.bf16.mxu0 %v10627_v11  ;;  %v9520_v8 = vcombine.high %v16548_v19, %v16547_v35  ;;  %v9892_v30 = vpop.f32.mrf.mxu0  ;;  %v9519_v18 = vcombine.low %v16548_v19, %v16547_v35  ;;  %v10652_v35 = vld [vmem:[#allocation6 + $0xac] ss:$12 sps:$4 sm:$0xff]  }
 0x49a   : > { %8620 = vmatprep.mubr.bf16.mxu1 %v10624_v17 }
 0x49c   : > { %10299 = vmatpush3.bf16.msra.mxu0 %v10627_v11  ;;  %v9893_v11 = vpop.f32.mrf.mxu0 }
 0x49d   : > { %10300 = vmatprep.subr.bf16.mxu0 %v10634_v46  ;;  %v9894_v17 = vadd.f32 %v9893_v11, %v9892_v30 }
 0x49e   : > { %v9895_v55 = vpop.f32.mrf.mxu0 }
 0x49f   : > { %7402 = vmatmul.mubr.bf16.gmra.mxu0 %v9507_v42 }
 0x4a0   : > { %7409 = vmatprep.mubr.bf16.mxu0 %v9511_v43  ;;  %10301 = vmatpush3.bf16.msra.mxu0 %v10634_v46  ;;  %v16549_v46 = vld [vmem:[#allocation21_spill] sm:$0xff]  ;;  %v15636_v43 = vadd.f32 %v9894_v17, %v6962_v33 }
 0x4a1   : > { %8621 = vmatmul.mubr.bf16.vlgmr.msra.gmra.mxu1 %v10622_v50  ;;  %10302 = vmatprep.subr.bf16.mxu0 %v10638_v58  ;;  %v16550_v50 = vld [vmem:[#allocation18_spill] sm:$0xff] }
 0x4a2   : > { %8628 = vmatprep.mubr.bf16.mxu1 %v10630_v3  ;;  %v9523_v42 = vcombine.high %v16550_v50, %v16549_v46  ;;  %v9896_v3 = vpop.f32.mrf.mxu0 }
 0x4a3   : > { %v9897_v62 = vadd.f32 %v9896_v3, %v9895_v55  ;;  %v10657_v55 = vld [vmem:[#allocation6 + $0xd8] ss:$12 sps:$4 sm:$0xff]  }
 0x4a4   : > { %10303 = vmatpush3.bf16.msra.mxu0 %v10638_v58  ;;  %v6965_v58 = vpop.f32.mrf.mxu1 }
 0x4a5   : > { %10304 = vmatprep.subr.bf16.mxu0 %v10645_v56 }
 0x4a7   : > { %7410 = vmatmul.mubr.bf16.gmra.mxu0 %v9510_v36  ;;  %v16551_v36 = vld [vmem:[#allocation20_spill] sm:$0xff] }
 0x4a8   : > { %7417 = vmatprep.mubr.bf16.mxu0 %v9514_v52  ;;  %10305 = vmatpush3.bf16.msra.mxu0 %v10645_v56  ;;  %v15638_v56 = vadd.f32 %v9897_v62, %v6965_v58  ;;  %v9526_v10 = vcombine.high %v16552_v16, %v16551_v36  ;;  %v10648_v52 = vld [vmem:[#allocation6 + $0x94] ss:$12 sps:$4 sm:$0xff]  }
 0x4a9   : > { %8629 = vmatmul.mubr.bf16.gmra.mxu1 %v10628_v23  ;;  %10306 = vmatprep.subr.bf16.mxu0 %v10649_v0  ;;  %v9522_v23 = vcombine.low %v16550_v50, %v16549_v46  ;;  %v10663_v58 = vld [vmem:[#allocation6 + $0xf4] ss:$12 sps:$4 sm:$0xff]  }
 0x4aa   : > { %8636 = vmatprep.mubr.bf16.mxu1 %v10633_v40  ;;  %v9898_v40 = vpop.f32.mrf.mxu0 }
 0x4ac   : > { %10307 = vmatpush3.bf16.msra.mxu0 %v10649_v0  ;;  %v9899_v0 = vpop.f32.mrf.mxu0 }
 0x4ad   : > { %10308 = vmatprep.subr.bf16.mxu0 %v10656_v31 }
 0x4af   : > { %7418 = vmatmul.mubr.bf16.gmra.mxu0 %v9513_v28 }
 0x4b0   : > { %7425 = vmatprep.mubr.bf16.mxu0 %v9517_v49  ;;  %10309 = vmatpush3.bf16.msra.mxu0 %v10656_v31  ;;  %v9900_v31 = vadd.f32 %v9899_v0, %v9898_v40  ;;  %v9525_v49 = vcombine.low %v16552_v16, %v16551_v36  ;;  %v10665_v16 = vld [vmem:[#allocation6 + $0x108] ss:$12 sps:$4 sm:$0xff]   ;;  %v10670_v0 = vld [vmem:[#allocation6 + $0x50] ss:$12 sps:$4 sm:$0xff]  }
 0x4b1   : > { %8637 = vmatmul.mubr.bf16.gmra.mxu1 %v10631_v21  ;;  %10310 = vmatprep.subr.bf16.mxu0 %v10660_v15  ;;  %v9901_v21 = vpop.f32.mrf.mxu0 }
 0x4b2   : > { %8644 = vmatprep.mubr.bf16.mxu1 %v10637_v54  ;;  %v15644_v28 = vadd.f32 %v10242_v4, %v9900_v31 }
 0x4b3   : > { %v9902_v1 = vpop.f32.mrf.mxu0 }
 0x4b4   : > { %10311 = vmatpush3.bf16.msra.mxu0 %v10660_v15  ;;  %v9903_v54 = vadd.f32 %v9902_v1, %v9901_v21  ;;  %v16553_v15 = vld [vmem:[#allocation25_spill] sm:$0xff] }
 0x4b6   : > { %v15650_v19 = vadd.f32 %v10243_v13, %v9903_v54 }
 0x4b7   : > { %7426 = vmatmul.mubr.bf16.gmra.mxu0 %v9516_v60 }
 0x4b8   : > { %7433 = vmatprep.mubr.bf16.mxu0 %v9520_v8  ;;  %v10650_v8 = vld [vmem:[#allocation6 + $0xa8] ss:$12 sps:$4 sm:$0xff]  }
 0x4b9   : > { %8645 = vmatmul.mubr.bf16.gmra.mxu1 %v10635_v61  ;;  %v16554_v61 = vld [vmem:[#allocation23_spill] sm:$0xff] }
 0x4ba   : > { %8652 = vmatprep.mubr.bf16.mxu1 %v10641_v12  ;;  %v9529_v60 = vcombine.high %v16554_v61, %v16553_v15  ;;  %v9528_v4 = vcombine.low %v16554_v61, %v16553_v15  ;;  %v10655_v12 = vld [vmem:[#allocation6 + $0xc4] ss:$12 sps:$4 sm:$0xff]   ;;  %v10672_v15 = vld [vmem:[#allocation6 + $0x80] ss:$12 sps:$4 sm:$0xff]  }
 0x4bc   : > { %v9904_v33 = vpop.f32.mrf.mxu0 }
 0x4be   : > { %v9905_v30 = vpop.f32.mrf.mxu0 }
 0x4bf   : > { %7434 = vmatmul.mubr.bf16.gmra.mxu0 %v9519_v18  ;;  %v9906_v11 = vadd.f32 %v9905_v30, %v9904_v33  ;;  %v10659_v18 = vld [vmem:[#allocation6 + $0xdc] ss:$12 sps:$4 sm:$0xff]  }
 0x4c0   : > { %7441 = vmatprep.mubr.bf16.mxu0 %v9523_v42  ;;  %v9907_v13 = vpop.f32.mrf.mxu0  ;;  %v10675_v33 = vld [vmem:[#allocation6 + $0xc8] ss:$12 sps:$4 sm:$0xff]  }
 0x4c1   : > { %8653 = vmatmul.mubr.bf16.gmra.mxu1 %v10639_v6  ;;  %v10653_v6 = vld [vmem:[#allocation6 + $0xc0] ss:$12 sps:$4 sm:$0xff]  }
 0x4c2   : > { %8660 = vmatprep.mubr.bf16.mxu1 %v10644_v9  ;;  %v9908_v46 = vpop.f32.mrf.mxu0 }
 0x4c3   : > { %v10246_v17 = vpop.f32.mrf.mxu1 }
 0x4c5   : > { %v6978_v50 = vpop.f32.mrf.mxu1 }
 0x4c6   : > { %v15663_v42 = vadd.f32 %v9906_v11, %v6978_v50  ;;  %v10677_v50 = vld [vmem:[#allocation6 + $0xf8] ss:$12 sps:$4 sm:$0xff]  }
 0x4c7   : > { %7442 = vmatmul.mubr.bf16.gmra.mxu0 %v9522_v23  ;;  %v10247_v9 = vpop.f32.mrf.mxu1 }
 0x4c8   : > { %7449 = vmatprep.mubr.bf16.mxu0 %v9526_v10  ;;  %v10668_v10 = vld [vmem:[#allocation6 + $0x20] ss:$12 sps:$4 sm:$0xff]  }
 0x4c9   : > { %8661 = vmatmul.mubr.bf16.gmra.mxu1 %v10642_v41  ;;  %v6981_v3 = vpop.f32.mrf.mxu1  ;;  %v10667_v41 = vld [vmem:[#allocation6 + $0x10c] ss:$12 sps:$4 sm:$0xff]  }
 0x4ca   : > { %8668 = vmatprep.mubr.bf16.mxu1 %v10648_v52  ;;  %v10669_v52 = vld [vmem:[#allocation6 + $0x38] ss:$12 sps:$4 sm:$0xff]  }
 0x4cf   : > { %7450 = vmatmul.mubr.bf16.gmra.mxu0 %v9525_v49 }
 0x4d0   : > { %7457 = vmatprep.mubr.bf16.mxu0 %v9529_v60  ;;  %v10673_v60 = vld [vmem:[#allocation6 + $0x98] ss:$12 sps:$4 sm:$0xff]  }
 0x4d1   : > { %8669 = vmatmul.mubr.bf16.gmra.mxu1 %v10646_v44 }
 0x4d2   : > { %8676 = vmatprep.mubr.bf16.mxu1 %v10652_v35 }
 0x4d4   : > { %v9910_v48 = vpop.f32.mrf.mxu0 }
 0x4d7   : > { %7458 = vmatmul.mubr.bf16.gmra.mxu0 %v9528_v4 }
 0x4d8   : > { %7465 = vmatprep.mubr.bf16.mxu0 %v9532_v22  ;;  %v9909_v22 = vadd.f32 %v9908_v46, %v9907_v13  ;;  %v10676_v46 = vld [vmem:[#allocation6 + $0xe0] ss:$12 sps:$4 sm:$0xff]  }
 0x4d9   : > { %8677 = vmatmul.mubr.bf16.gmra.mxu1 %v10650_v8 }
 0x4da   : > { %8684 = vmatprep.mubr.bf16.mxu1 %v10655_v12  ;;  %v15665_v62 = vadd.f32 %v9909_v22, %v6981_v3  ;;  %v10674_v12 = vld [vmem:[#allocation6 + $0xb0] ss:$12 sps:$4 sm:$0xff]  }
 0x4df   : > { %7466 = vmatmul.mubr.bf16.gmra.mxu0 %v9531_v45  ;;  %v9911_v45 = vpop.f32.mrf.mxu0 }
 0x4e0   : > { %7473 = vmatprep.mubr.bf16.mxu0 %v9535_v2  ;;  %v10664_v2 = vld [vmem:[#allocation6 + $0x8] ss:$12 sps:$4 sm:$0xff]   ;;  %v9912_v23 = vadd.f32 %v9911_v45, %v9910_v48 }
 0x4e1   : > { %8685 = vmatmul.mubr.bf16.gmra.mxu1 %v10653_v6  ;;  %v9913_v36 = vpop.f32.mrf.mxu0 }
 0x4e2   : > { %8692 = vmatprep.mubr.bf16.mxu1 %v10659_v18  ;;  %v15676_v57 = vadd.f32 %v10246_v17, %v9912_v23 }
 0x4e3   : > { %v9914_v5 = vpop.f32.mrf.mxu0 }
 0x4e7   : > { %7474 = vmatmul.mubr.bf16.gmra.mxu0 %v9534_v37  ;;  %v9915_v37 = vadd.f32 %v9914_v5, %v9913_v36 }
 0x4e8   : > { %7481 = vmatprep.mubr.bf16.mxu0 %v9538_v38 }
 0x4e9   : > { %8693 = vmatmul.mubr.bf16.gmra.mxu1 %v10657_v55  ;;  %v15678_v38 = vadd.f32 %v10247_v9, %v9915_v37  ;;  %v10678_v55 = vld [vmem:[#allocation6 + $0x110] ss:$12 sps:$4 sm:$0xff]  }
 0x4ea   : > { %8700 = vmatprep.mubr.bf16.mxu1 %v10663_v58  ;;  %v9916_v40 = vpop.f32.mrf.mxu0 }
 0x4ec   : > { %v9917_v20 = vpop.f32.mrf.mxu0 }
 0x4ee   : > { %v9919_v31 = vpop.f32.mrf.mxu0 }
 0x4ef   : > { %7482 = vmatmul.mubr.bf16.gmra.mxu0 %v9537_v32  ;;  %v9918_v32 = vadd.f32 %v9917_v20, %v9916_v40 }
 0x4f0   : > { %10312 = vmatprep.mubr.bf16.mxu0 %v10664_v2  ;;  %v10250_v21 = vpop.f32.mrf.mxu1  ;;  %v9920_v1 = vpop.f32.mrf.mxu0 }
 0x4f1   : > { %8701 = vmatmul.mubr.bf16.gmra.mxu1 %v10661_v26  ;;  %v9921_v49 = vadd.f32 %v9920_v1, %v9919_v31 }
 0x4f2   : > { %8708 = vmatprep.mubr.bf16.mxu1 %v10667_v41  ;;  %v6994_v44 = vpop.f32.mrf.mxu1 }
 0x4f3   : > { %v15680_v54 = vadd.f32 %v9918_v32, %v6994_v44 }
 0x4f4   : > { %v10251_v61 = vpop.f32.mrf.mxu1 }
 0x4f6   : > { %v6997_v35 = vpop.f32.mrf.mxu1 }
 0x4f7   : > { %10313 = vmatmul.mubr.bf16.vlgmr.msra.gmra.mxu0 %v10668_v10  ;;  %v15682_v8 = vadd.f32 %v9921_v49, %v6997_v35 }
 0x4f8   : > { %10316 = vmatprep.mubr.bf16.mxu0 %v10669_v52 }
 0x4f9   : > { %8709 = vmatmul.mubr.bf16.gmra.mxu1 %v10665_v16 }
 0x4ff   : > { %10317 = vmatmul.mubr.bf16.gmra.mxu0 %v10670_v0 }
 0x500   : > { %10320 = vmatprep.mubr.bf16.mxu0 %v10671_v39  ;;  %v9922_v4 = vpop.f32.mrf.mxu0 }
 0x502   : > { %v9923_v30 = vpop.f32.mrf.mxu0 }
 0x503   : > { %v9924_v11 = vadd.f32 %v9923_v30, %v9922_v4  ;;  %v9879_v4 = vadd.f32 %v15563_v63, %v15555_v27 }
 0x504   : > { %v9925_v6 = vpop.f32.mrf.mxu0 }
 0x505   : > { %v15684_v13 = vadd.f32 %v10250_v21, %v9924_v11  ;;  %v9873_v11 = vadd.f32 %v15504_v53, %v15487_v25 }
 0x506   : > { %v9926_v18 = vpop.f32.mrf.mxu0 }
 0x507   : > { %10321 = vmatmul.mubr.bf16.gmra.mxu0 %v10672_v15  ;;  %v9927_v17 = vadd.f32 %v9926_v18, %v9925_v6 }
 0x508   : > { %10324 = vmatprep.mubr.bf16.mxu0 %v10673_v60 }
 0x509   : > { %v15686_v22 = vadd.f32 %v10251_v61, %v9927_v17 }
 0x50f   : > { %10325 = vmatmul.mubr.bf16.gmra.mxu0 %v10674_v12 }
 0x510   : > { %10328 = vmatprep.mubr.bf16.mxu0 %v10675_v33 }
 0x515   : > { %v9928_v9 = vpop.f32.mrf.mxu0 }
 0x517   : > { %10329 = vmatmul.mubr.bf16.gmra.mxu0 %v10676_v46  ;;  %v9929_v3 = vpop.f32.mrf.mxu0 }
 0x518   : > { %10332 = vmatprep.mubr.bf16.mxu0 %v10677_v50  ;;  %v9930_v58 = vadd.f32 %v9929_v3, %v9928_v9  ;;  %v9885_v3 = vadd.f32 %v15595_v29, %v15591_v34 }
 0x519   : > { %v9931_v48 = vpop.f32.mrf.mxu0 }
 0x51b   : > { %v9932_v45 = vpop.f32.mrf.mxu0 }
 0x51c   : > { %v9933_v41 = vadd.f32 %v9932_v45, %v9931_v48 }
 0x51d   : > { %v10254_v26 = vpop.f32.mrf.mxu1 }
 0x51f   : > { %10333 = vmatmul.mubr.bf16.gmra.mxu0 %v10678_v55  ;;  %v7010_v2 = vpop.f32.mrf.mxu1 }
 0x520   : > { %v15688_v23 = vadd.f32 %v9930_v58, %v7010_v2 }
 0x521   : > { %v10255_v36 = vpop.f32.mrf.mxu1 }
 0x522   : > { %16555 = vst [vmem:[#allocation24_spill] sm:$0xff] %v15688_v23 }
 0x523   : > { %v7013_v5 = vpop.f32.mrf.mxu1 }
 0x524   : > { %v15690_v37 = vadd.f32 %v9933_v41, %v7013_v5 }
 0x525   : > { %v15692_v16 = vpop.f32.mrf.mxu1 }
 0x526   : > { %16556 = vst [vmem:[#allocation29_spill] sm:$0xff] %v15690_v37 }
 0x527   : > { %v7524_v10 = vpop.f32.mrf.mxu1 }
 0x529   : > { %v15694_v40 = vpop.f32.mrf.mxu1 }
 0x52b   : > { %v7527_v32 = vpop.f32.mrf.mxu1 }
 0x52f   : > { %v9934_v52 = vpop.f32.mrf.mxu0 }
 0x531   : > { %v9935_v0 = vpop.f32.mrf.mxu0 }
 0x532   : > { %v9936_v39 = vadd.f32 %v9935_v0, %v9934_v52 }
 0x533   : > { %v9937_v20 = vpop.f32.mrf.mxu0 }
 0x534   : > { %v15696_v31 = vadd.f32 %v10254_v26, %v9936_v39 }
 0x535   : > { %v9938_v21 = vpop.f32.mrf.mxu0 }
 0x536   : > { %16557 = vst [vmem:[#allocation27_spill] sm:$0xff] %v15696_v31  ;;  %v9939_v1 = vadd.f32 %v9938_v21, %v9937_v20 }
 0x537   : > { %v10234_v44 = vpop.f32.mrf.mxu0 }
 0x538   : > { %v15700_v15 = vadd.f32 %v10255_v36, %v9939_v1  ;;  %v6939_v61 = vadd.f32 %v10234_v44, %v15533_v14 }
 0x539   : > { %v15698_v49 = vpop.f32.mrf.mxu1  ;;  %v6930_v60 = vpop.f32.mrf.mxu0 }
 0x53a   : > { %16558 = vst [vmem:[#allocation26_spill] sm:$0xff] %v15700_v15  ;;  %v6931_v12 = vadd.f32 %v15482_v51, %v6930_v60  ;;  %v9891_v51 = vadd.f32 %v15630_v47, %v15624_v7 }
 0x53b   : > { %v15703_v35 = vpop.f32.mrf.mxu1  ;;  %v10235_v33 = vpop.f32.mrf.mxu0 }
 0x53c   : > { %v6942_v6 = vadd.f32 %v10235_v33, %v9879_v4 }
 0x53d   : > { %v15708_v30 = vpop.f32.mrf.mxu1  ;;  %v6933_v18 = vpop.f32.mrf.mxu0 }
 0x53e   : > { %v6934_v46 = vadd.f32 %v9873_v11, %v6933_v18 }
 0x53f   : > { %v15712_v17 = vpop.f32.mrf.mxu1  ;;  %v10238_v14 = vpop.f32.mrf.mxu0 }
 0x540   : > { %v15717_v9 = vadd.f32 %v10238_v14, %v15605_v59 }
 0x541   : > { %v15714_v50 = vpop.f32.mrf.mxu1  ;;  %v6946_v27 = vpop.f32.mrf.mxu0 }
 0x542   : > { %16559 = vst [vmem:[#allocation28_spill] sm:$0xff] %v15714_v50  ;;  %v6947_v55 = vadd.f32 %v15584_v24, %v6946_v27 }
 0x543   : > { %v15719_v63 = vpop.f32.mrf.mxu1  ;;  %v10239_v25 = vpop.f32.mrf.mxu0 }
 0x544   : > { %v15728_v58 = vadd.f32 %v10239_v25, %v9891_v51 }
 0x545   : > { %v15724_v53 = vpop.f32.mrf.mxu1  ;;  %v6949_v48 = vpop.f32.mrf.mxu0 }
 0x546   : > { %16560 = vst [vmem:[#allocation31_spill] sm:$0xff] %v15724_v53  ;;  %v6950_v59 = vadd.f32 %v9885_v3, %v6949_v48 }
 0x547   : > { %v15730_v26 = vpop.f32.mrf.mxu1 }
 0x549   : > { %v15732_v45 = vpop.f32.mrf.mxu1 }
 0x54a   : > { %16561 = vst [vmem:[#allocation33_spill] sm:$0xff] %v15732_v45 }
 0x54b   : > { %v15734_v2 = vpop.f32.mrf.mxu1 }
 0x54c   : > { %16562 = vst [vmem:[#allocation30_spill] sm:$0xff] %v15734_v2 }
 0x54d   : > { %v15736_v41 = vpop.f32.mrf.mxu1 }
 0x54e   : > { %16563 = vst [vmem:[#allocation32_spill] sm:$0xff] %v15736_v41 }
 0x54f   : > { %v15738_v7 = vpop.f32.mrf.mxu1 }
 0x550   : > { %16564 = vst [vmem:[#allocation35_spill] sm:$0xff] %v15738_v7 }
 0x551   : > { %v15740_v24 = vpop.f32.mrf.mxu1 }
 0x552   : > { %16565 = vst [vmem:[#allocation37_spill] sm:$0xff] %v15740_v24 }
 0x553   : > { %v15742_v47 = vpop.f32.mrf.mxu1 }
 0x555   : > { %v15744_v36 = vpop.f32.mrf.mxu1 }
 0x556   : > { %16566 = vst [vmem:[#allocation34_spill] sm:$0xff] %v15744_v36 }
 0x557   : > { %v15746_v34 = vpop.f32.mrf.mxu1  ;;  %v9976_v29 = vpop.f32.mrf.mxu0 }
 0x559   : > { %v15748_v5 = vpop.f32.mrf.mxu1  ;;  %v9977_v52 = vpop.f32.mrf.mxu0 }
 0x55a   : > { %16567 = vst [vmem:[#allocation36_spill] sm:$0xff] %v15748_v5  ;;  %v9978_v39 = vadd.f32 %v9977_v52, %v9976_v29 }
 0x55b   : > { %v15750_v0 = vpop.f32.mrf.mxu1  ;;  %v9979_v20 = vpop.f32.mrf.mxu0 }
 0x55c   : > { %16568 = vst [vmem:[#allocation38_spill] sm:$0xff] %v15750_v0  ;;  %v7396_v1 = vadd.f32 %v9978_v39, %v6931_v12 }
 0x55d   : > { %v15752_v21 = vpop.f32.mrf.mxu1  ;;  %v9980_v44 = vpop.f32.mrf.mxu0 }
 0x55e   : > { %16569 = vst [vmem:[#allocation44_spill] sm:$0xff] %v15752_v21  ;;  %v9981_v4 = vadd.f32 %v9980_v44, %v9979_v20  ;;  %v15756_v33 = vadd.f32 %v7524_v10, %v7396_v1 }
 0x55f   : > { %v15754_v60 = vpop.f32.mrf.mxu1  ;;  %v9982_v11 = vpop.f32.mrf.mxu0 }
 0x560   : > { %16570 = vst [vmem:[#allocation12_spill] sm:$0xff] %v15754_v60  ;;  %v7399_v14 = vadd.f32 %v9981_v4, %v6934_v46 }
 0x561   : > { %v15758_v18 = vpop.f32.mrf.mxu1  ;;  %v9983_v27 = vpop.f32.mrf.mxu0 }
 0x562   : > { %v9984_v25 = vadd.f32 %v9983_v27, %v9982_v11  ;;  %v15762_v3 = vadd.f32 %v7527_v32, %v7399_v14 }
 0x563   : > { %v15760_v51 = vpop.f32.mrf.mxu1  ;;  %v9985_v48 = vpop.f32.mrf.mxu0 }
 0x564   : > { %v7404_v12 = vadd.f32 %v9984_v25, %v6939_v61 }
 0x565   : > { %v15764_v29 = vpop.f32.mrf.mxu1  ;;  %v9986_v52 = vpop.f32.mrf.mxu0 }
 0x566   : > { %v9987_v20 = vadd.f32 %v9986_v52, %v9985_v48  ;;  %v15769_v10 = vadd.f32 %v15692_v16, %v7404_v12 }
 0x567   : > { %v15766_v39 = vpop.f32.mrf.mxu1  ;;  %v9988_v1 = vpop.f32.mrf.mxu0 }
 0x568   : > { %v7407_v46 = vadd.f32 %v9987_v20, %v6942_v6 }
 0x569   : > { %v15771_v44 = vpop.f32.mrf.mxu1  ;;  %v9989_v4 = vpop.f32.mrf.mxu0 }
 0x56a   : > { %v9990_v32 = vadd.f32 %v9989_v4, %v9988_v1  ;;  %v15776_v11 = vadd.f32 %v15694_v40, %v7407_v46 }
 0x56b   : > { %v15773_v21 = vpop.f32.mrf.mxu1  ;;  %v9991_v14 = vpop.f32.mrf.mxu0 }
 0x56c   : > { %v7412_v27 = vadd.f32 %v9990_v32, %v6947_v55 }
 0x56d   : > { %v15778_v61 = vpop.f32.mrf.mxu1  ;;  %v9992_v25 = vpop.f32.mrf.mxu0 }
 0x56e   : > { %v9993_v16 = vadd.f32 %v9992_v25, %v9991_v14  ;;  %v15783_v12 = vadd.f32 %v15703_v35, %v7412_v27 }
 0x56f   : > { %v15780_v48 = vpop.f32.mrf.mxu1  ;;  %v9994_v52 = vpop.f32.mrf.mxu0 }
 0x570   : > { %v7415_v20 = vadd.f32 %v9993_v16, %v6950_v59 }
 0x571   : > { %v15785_v6 = vpop.f32.mrf.mxu1  ;;  %v9995_v41 = vpop.f32.mrf.mxu0 }
 0x572   : > { %v9996_v40 = vadd.f32 %v9995_v41, %v9994_v52  ;;  %v15790_v46 = vadd.f32 %v15712_v17, %v7415_v20 }
 0x573   : > { %v15787_v1 = vpop.f32.mrf.mxu1  ;;  %v9997_v4 = vpop.f32.mrf.mxu0 }
 0x574   : > { %v7420_v32 = vadd.f32 %v9996_v40, %v15717_v9 }
 0x575   : > { %v15792_v55 = vpop.f32.mrf.mxu1  ;;  %v9998_v14 = vpop.f32.mrf.mxu0 }
 0x576   : > { %v9999_v35 = vadd.f32 %v9998_v14, %v9997_v4  ;;  %v15798_v27 = vadd.f32 %v15698_v49, %v7420_v32 }
 0x577   : > { %v15795_v25 = vpop.f32.mrf.mxu1  ;;  %v10000_v59 = vpop.f32.mrf.mxu0 }
 0x578   : > { %v7423_v41 = vadd.f32 %v9999_v35, %v15728_v58 }
 0x579   : > { %v15800_v16 = vpop.f32.mrf.mxu1  ;;  %v10001_v52 = vpop.f32.mrf.mxu0 }
 0x57a   : > { %v10002_v20 = vadd.f32 %v10001_v52, %v10000_v59  ;;  %v15806_v5 = vadd.f32 %v15708_v30, %v7423_v41 }
 0x57b   : > { %v15803_v17 = vpop.f32.mrf.mxu1  ;;  %v10003_v9 = vpop.f32.mrf.mxu0 }
 0x57c   : > { %v7428_v4 = vadd.f32 %v10002_v20, %v15636_v43 }
 0x57d   : > { %v15808_v40 = vpop.f32.mrf.mxu1  ;;  %v10004_v14 = vpop.f32.mrf.mxu0 }
 0x57e   : > { %v10005_v32 = vadd.f32 %v10004_v14, %v10003_v9  ;;  %v15814_v15 = vadd.f32 %v15719_v63, %v7428_v4 }
 0x57f   : > { %v15811_v49 = vpop.f32.mrf.mxu1  ;;  %v10006_v58 = vpop.f32.mrf.mxu0 }
 0x580   : > { %v7431_v59 = vadd.f32 %v10005_v32, %v15638_v56 }
 0x581   : > { %v15816_v35 = vpop.f32.mrf.mxu1  ;;  %v10007_v52 = vpop.f32.mrf.mxu0 }
 0x582   : > { %v10008_v41 = vadd.f32 %v10007_v52, %v10006_v58  ;;  %v15822_v45 = vadd.f32 %v15730_v26, %v7431_v59 }
 0x583   : > { %v15819_v30 = vpop.f32.mrf.mxu1  ;;  %v10009_v43 = vpop.f32.mrf.mxu0 }
 0x584   : > { %v15827_v9 = vadd.f32 %v10008_v41, %v15644_v28 }
 0x585   : > { %v15824_v20 = vpop.f32.mrf.mxu1  ;;  %v10010_v63 = vpop.f32.mrf.mxu0 }
 0x586   : > { %16571 = vst [vmem:[#allocation40_spill] sm:$0xff] %v15827_v9  ;;  %v10011_v14 = vadd.f32 %v10010_v63, %v10009_v43 }
 0x587   : > { %v15829_v4 = vpop.f32.mrf.mxu1  ;;  %v10012_v31 = vpop.f32.mrf.mxu0 }
 0x588   : > { %v15834_v56 = vadd.f32 %v10011_v14, %v15650_v19 }
 0x589   : > { %v15831_v60 = vpop.f32.mrf.mxu1  ;;  %v10013_v32 = vpop.f32.mrf.mxu0 }
 0x58a   : > { %16572 = vst [vmem:[#allocation39_spill] sm:$0xff] %v15834_v56  ;;  %v10014_v26 = vadd.f32 %v10013_v32, %v10012_v31 }
 0x58b   : > { %v15836_v58 = vpop.f32.mrf.mxu1  ;;  %v10015_v59 = vpop.f32.mrf.mxu0 }
 0x58c   : > { %v15841_v28 = vadd.f32 %v10014_v26, %v15663_v42 }
 0x58d   : > { %v15838_v52 = vpop.f32.mrf.mxu1  ;;  %v10016_v41 = vpop.f32.mrf.mxu0 }
 0x58e   : > { %16573 = vst [vmem:[#allocation22_spill] sm:$0xff] %v15841_v28  ;;  %v10017_v43 = vadd.f32 %v10016_v41, %v10015_v59 }
 0x58f   : > { %v15843_v7 = vpop.f32.mrf.mxu1  ;;  %v10018_v63 = vpop.f32.mrf.mxu0 }
 0x590   : > { %v15846_v0 = vadd.f32 %v10017_v43, %v15665_v62 }
 0x591   : > { %v10019_v19 = vpop.f32.mrf.mxu0  ;;  %v15848_v14 = vpop.f32.mrf.mxu1 }
 0x592   : > { %16574 = vst [vmem:[#allocation42_spill] sm:$0xff] %v15846_v0  ;;  %16575 = vst [vmem:[#allocation43_spill] sm:$0xff] %v15848_v14  ;;  %v10020_v2 = vadd.f32 %v10019_v19, %v10018_v63 }
 0x593   : > { %v10021_v37 = vpop.f32.mrf.mxu0  ;;  %v15853_v36 = vpop.f32.mrf.mxu1 }
 0x594   : > { %v15851_v31 = vadd.f32 %v10020_v2, %v15676_v57  ;;  %16577 = vst [vmem:[#allocation41_spill] sm:$0xff] %v15853_v36 }
 0x595   : > { %v10022_v32 = vpop.f32.mrf.mxu0  ;;  %v15860_v41 = vpop.f32.mrf.mxu1 }
 0x596   : > { %16576 = vst [vmem:[#allocation10_spill] sm:$0xff] %v15851_v31  ;;  %v10023_v42 = vadd.f32 %v10022_v32, %v10021_v37  ;;  %16579 = vst [vmem:[#allocation13_spill] sm:$0xff] %v15860_v41 }
 0x597   : > { %v15855_v26 = vpop.f32.mrf.mxu0  ;;  %v15866_v63 = vpop.f32.mrf.mxu1 }
 0x598   : > { %v15858_v59 = vadd.f32 %v10023_v42, %v15678_v38  ;;  %16580 = vst [vmem:[#allocation15_spill] sm:$0xff] %v15866_v63 }
 0x599   : > { %v15862_v62 = vpop.f32.mrf.mxu0  ;;  %v15872_v2 = vpop.f32.mrf.mxu1 }
 0x59a   : > { %16578 = vst [vmem:[#allocation11_spill] sm:$0xff] %v15858_v59  ;;  %16581 = vst [vmem:[#allocation17_spill] sm:$0xff] %v15872_v2 }
 0x59b   : > { %v15864_v43 = vpop.f32.mrf.mxu0  ;;  %v15878_v38 = vpop.f32.mrf.mxu1 }
 0x59c   : > { %16582 = vst [vmem:[#allocation16_spill] sm:$0xff] %v15878_v38 }
 0x59d   : > { %v15868_v19 = vpop.f32.mrf.mxu0  ;;  %v15884_v31 = vpop.f32.mrf.mxu1 }
 0x59e   : > { %16584 = vst [vmem:[#allocation21_spill] sm:$0xff] %v15884_v31 }
 0x59f   : > { %v15870_v57 = vpop.f32.mrf.mxu0  ;;  %v15890_v63 = vpop.f32.mrf.mxu1 }
 0x5a0   : > { %16587 = vst [vmem:[#allocation19_spill] sm:$0xff] %v15890_v63 }
 0x5a1   : > { %v15874_v37 = vpop.f32.mrf.mxu0  ;;  %v15896_v23 = vpop.f32.mrf.mxu1 }
 0x5a3   : > { %v15876_v32 = vpop.f32.mrf.mxu0  ;;  %v15902_v56 = vpop.f32.mrf.mxu1 }
 0x5a5   : > { %v15880_v42 = vpop.f32.mrf.mxu0  ;;  %v15908_v14 = vpop.f32.mrf.mxu1 }
 0x5a7   : > { %v15882_v59 = vpop.f32.mrf.mxu0 }
 0x5a8   : > { %16583 = vst [vmem:[#allocation14_spill] sm:$0xff] %v15882_v59  ;;  %v15915_v59 = vpop.f32.mrf.mxu1 }
 0x5a9   : > { %v15886_v0 = vpop.f32.mrf.mxu0 }
 0x5aa   : > { %16585 = vst [vmem:[#allocation18_spill] sm:$0xff] %v15886_v0 }
 0x5ab   : > { %v15888_v28 = vpop.f32.mrf.mxu0 }
 0x5ac   : > { %16586 = vst [vmem:[#allocation20_spill] sm:$0xff] %v15888_v28  ;;  %v10086_v28 = vadd.f32 %v15760_v51, %v15758_v18  ;;  %v15920_v18 = vld [vmem:[%s16080_s6] ss:$0 sm:$0xff] }
 0x5ad   : > { %v15892_v41 = vpop.f32.mrf.mxu0 }
 0x5ae   : > { %16588 = vst [vmem:[#allocation25_spill] sm:$0xff] %v15892_v41 }
 0x5af   : > { %v15894_v2 = vpop.f32.mrf.mxu0 }
 0x5b0   : > { %16589 = vst [vmem:[#allocation23_spill] sm:$0xff] %v15894_v2  ;;  %v10089_v2 = vadd.f32 %v15766_v39, %v15764_v29  ;;  %v10095_v29 = vadd.f32 %v15780_v48, %v15778_v61 }
 0x5b1   : > { %v15898_v53 = vpop.f32.mrf.mxu0 }
 0x5b2   : > { %16590 = vst [vmem:[#allocation45_spill] sm:$0xff] %v15898_v53  ;;  %v10092_v53 = vadd.f32 %v15773_v21, %v15771_v44 }
 0x5b3   : > { %v15900_v38 = vpop.f32.mrf.mxu0 }
 0x5b4   : > { %16591 = vst [vmem:[#allocation46_spill] sm:$0xff] %v15900_v38 }
 0x5b5   : > { %v15904_v36 = vpop.f32.mrf.mxu0 }
 0x5b6   : > { %16592 = vst [vmem:[#allocation47_spill] sm:$0xff] %v15904_v36 }
 0x5b7   : > { %v10314_v31 = vpop.f32.mrf.mxu0 }
 0x5b8   : > { %v8760_v51 = vadd.f32 %v10314_v31, %v10092_v53  ;;  %v10098_v53 = vadd.f32 %v15787_v1, %v15785_v6 }
 0x5b9   : > { %v8751_v63 = vpop.f32.mrf.mxu0 }
 0x5ba   : > { %v8752_v41 = vadd.f32 %v10086_v28, %v8751_v63  ;;  %v8848_v44 = vadd.f32 %v8760_v51, %v15769_v10 }
 0x5bb   : > { %v10315_v0 = vpop.f32.mrf.mxu0 }
 0x5bc   : > { %v8846_v38 = vadd.f32 %v8752_v41, %v15756_v33  ;;  %v15926_v33 = vpop.f32.mrf.mxu1  ;;  %v8763_v41 = vadd.f32 %v10315_v0, %v10095_v29 }
 0x5bd   : > { %v8754_v36 = vpop.f32.mrf.mxu0 }
 0x5be   : > { %v8755_v24 = vadd.f32 %v10089_v2, %v8754_v36  ;;  %v8877_v28 = vadd.f32 %v15920_v18, %v8846_v38  ;;  %v10139_v36 = vpop.f32.mrf.mxu1  ;;  %v8849_v61 = vadd.f32 %v8763_v41, %v15776_v11  ;;  %v10101_v2 = vadd.f32 %v15795_v25, %v15792_v55 }
 0x5bf   : > { %v10318_v63 = vpop.f32.mrf.mxu0  ;;  %v10104_v11 = vadd.f32 %v15803_v17, %v15800_v16  ;;  %v10026_v16 = vadd.f32 %v15862_v62, %v15855_v26  ;;  %v10110_v41 = vadd.f32 %v15819_v30, %v15816_v35  ;;  %v10032_v62 = vadd.f32 %v15874_v37, %v15870_v57 }
 0x5c0   : > { %v8847_v21 = vadd.f32 %v8755_v24, %v15762_v3  ;;  %8901 = vxpose.xlu0.b32.start [1/16] (narrow) %v8877_v28, 8  ;;  %v8879_v24 = vadd.f32 %v15920_v18, %v8848_v44  ;;  %v15936_v0 = vpop.f32.mrf.mxu1  ;;  %v10113_v30 = vadd.f32 %v15829_v4, %v15824_v20  ;;  %v10116_v20 = vadd.f32 %v15836_v58, %v15831_v60 }
 0x5c1   : > { %v8767_v39 = vpop.f32.mrf.mxu0  ;;  %v8776_v29 = vadd.f32 %v10318_v63, %v10104_v11  ;;  %v7460_v26 = vadd.f32 %v10026_v16, %v15680_v54  ;;  %v7468_v4 = vadd.f32 %v10032_v62, %v15684_v13  ;;  %v16603_v62 = vld [vmem:[#allocation31_spill] sm:$0xff] }
 0x5c2   : > { %v8878_v50 = vadd.f32 %v15920_v18, %v8847_v21  ;;  %v8768_v48 = vadd.f32 %v10098_v53, %v8767_v39  ;;  %v10142_v1 = vpop.f32.mrf.mxu1 }
 0x5c3   : > { %v10319_v9 = vpop.f32.mrf.mxu0  ;;  %v8852_v17 = vadd.f32 %v8776_v29, %v15798_v27  ;;  %v16596_v29 = vld [vmem:[#allocation14_spill] sm:$0xff] }
 0x5c4   : > { %8902 = vxpose.xlu0.b32.cont [2/16] (narrow) %v8878_v50, 8  ;;  %v8850_v38 = vadd.f32 %v8768_v48, %v15783_v12  ;;  %v8880_v50 = vadd.f32 %v15920_v18, %v8849_v61  ;;  %v10107_v12 = vadd.f32 %v15811_v49, %v15808_v40  ;;  %v15950_v39 = vpop.f32.mrf.mxu1  ;;  %v10029_v40 = vadd.f32 %v15868_v19, %v15864_v43 }
 0x5c5   : > { %v8770_v31 = vpop.f32.mrf.mxu0  ;;  %v10134_v43 = vadd.f32 %v15902_v56, %v15896_v23  ;;  %v10035_v23 = vadd.f32 %v15880_v42, %v15876_v32  ;;  %v10137_v56 = vadd.f32 %v15915_v59, %v15908_v14  ;;  %v10119_v14 = vadd.f32 %v15843_v7, %v15838_v52  ;;  %v16593_v42 = vld [vmem:[#allocation40_spill] sm:$0xff] }
 0x5c6   : > { %v8771_v51 = vadd.f32 %v10101_v2, %v8770_v31  ;;  %v8881_v25 = vadd.f32 %v15920_v18, %v8850_v38  ;;  %v8779_v63 = vadd.f32 %v10319_v9, %v10107_v12  ;;  %v10145_v49 = vpop.f32.mrf.mxu1  ;;  %v8883_v9 = vadd.f32 %v15920_v18, %v8852_v17 }
 0x5c7   : > { %v10322_v3 = vpop.f32.mrf.mxu0  ;;  %v7463_v19 = vadd.f32 %v10029_v40, %v15682_v8  ;;  %v7589_v2 = vadd.f32 %v15742_v47, %v7460_v26  ;;  %v7471_v59 = vadd.f32 %v10035_v23, %v15686_v22  ;;  %v16598_v40 = vld [vmem:[#allocation43_spill] sm:$0xff] }
 0x5c8   : > { %8903 = vxpose.xlu0.b32.cont [3/16] (narrow) %v8879_v24, 8  ;;  %v8851_v55 = vadd.f32 %v8771_v51, %v15790_v46  ;;  %v8853_v27 = vadd.f32 %v8779_v63, %v15806_v5  ;;  %v15976_v48 = vpop.f32.mrf.mxu1  ;;  %v8792_v38 = vadd.f32 %v10322_v3, %v10116_v20  ;;  %v16595_v3 = vld [vmem:[#allocation37_spill] sm:$0xff] }
 0x5c9   : > { %v8783_v10 = vpop.f32.mrf.mxu0  ;;  %v7592_v51 = vadd.f32 %v15746_v34, %v7463_v19 }
 0x5ca   : > { %v8882_v46 = vadd.f32 %v15920_v18, %v8851_v55  ;;  %v8784_v31 = vadd.f32 %v10110_v41, %v8783_v10  ;;  %v8884_v57 = vadd.f32 %v15920_v18, %v8853_v27  ;;  %v10148_v47 = vpop.f32.mrf.mxu1  ;;  %v16597_v55 = vld [vmem:[#allocation18_spill] sm:$0xff]  ;;  %v16600_v27 = vld [vmem:[#allocation20_spill] sm:$0xff] }
 0x5cb   : > { %v15940_v6 = vpop.f32.mrf.mxu0 }
 0x5cc   : > { %8904 = vxpose.xlu0.b32.cont [4/16] (narrow) %v8880_v50, 8  ;;  %v8854_v54 = vadd.f32 %v8784_v31, %v15814_v15  ;;  %v10140_v15 = vadd.f32 %v10139_v36, %v15926_v33  ;;  %v16594_v33 = vld [vmem:[#allocation28_spill] sm:$0xff]  ;;  %v10150_v16 = vpop.f32.mrf.mxu1  ;;  %v8795_v7 = vadd.f32 %v15940_v6, %v10119_v14  ;;  %v16599_v31 = vld [vmem:[#allocation41_spill] sm:$0xff]  ;;  %v10146_v6 = vadd.f32 %v10145_v49, %v15950_v39  ;;  %v16609_v39 = vld [vmem:[#allocation22_spill] sm:$0xff] }
 0x5cd   : > { %v8786_v28 = vpop.f32.mrf.mxu0  ;;  %v7565_v36 = vadd.f32 %v16594_v33, %v16593_v42  ;;  %v10122_v26 = vadd.f32 %v16599_v31, %v16598_v40  ;;  %v16610_v49 = vld [vmem:[#allocation30_spill] sm:$0xff] }
 0x5ce   : > { %v8787_v24 = vadd.f32 %v10113_v30, %v8786_v28  ;;  %v8885_v60 = vadd.f32 %v15920_v18, %v8854_v54  ;;  %v7597_v28 = vadd.f32 %v16595_v3, %v7468_v4  ;;  %v16605_v54 = vld [vmem:[#allocation34_spill] sm:$0xff] }
 0x5cf   : > { %v15946_v21 = vpop.f32.mrf.mxu0  ;;  %v8856_v17 = vadd.f32 %v8792_v38, %v7565_v36 }
 0x5d0   : > { %8905 = vxpose.xlu0.b32.cont [5/16] (narrow) %v8881_v25, 8  ;;  %v8855_v13 = vadd.f32 %v8787_v24, %v15822_v45  ;;  %v10038_v25 = vadd.f32 %v16597_v55, %v16596_v29  ;;  %v10143_v45 = vadd.f32 %v10142_v1, %v15936_v0  ;;  %v16602_v1 = vld [vmem:[#allocation39_spill] sm:$0xff]  ;;  %v10151_v24 = vpop.f32.mrf.mxu1  ;;  %v16614_v29 = vld [vmem:[#allocation17_spill] sm:$0xff]  ;;  %v16615_v55 = vld [vmem:[#allocation16_spill] sm:$0xff] }
 0x5d1   : > { %v15952_v44 = vpop.f32.mrf.mxu0  ;;  %v8887_v23 = vadd.f32 %v15920_v18, %v8856_v17 }
 0x5d2   : > { %v8886_v41 = vadd.f32 %v15920_v18, %v8855_v13  ;;  %v16612_v13 = vld [vmem:[#allocation45_spill] sm:$0xff]  ;;  %v10153_v14 = vpop.f32.mrf.mxu1 }
 0x5d3   : > { %v15960_v53 = vpop.f32.mrf.mxu0 }
 0x5d4   : > { %8906 = vxpose.xlu0.b32.cont [6/16] (narrow) %v8882_v46, 8 }
 0x5d5   : > { %v15964_v61 = vpop.f32.mrf.mxu0 }
 0x5d7   : > { %v10330_v35 = vpop.f32.mrf.mxu0 }
 0x5d8   : > { %8907 = vxpose.xlu0.b32.cont [7/16] (narrow) %v8883_v9, 8  ;;  %v8824_v58 = vadd.f32 %v10330_v35, %v10140_v15  ;;  %v16601_v9 = vld [vmem:[#allocation25_spill] sm:$0xff]  ;;  %v7568_v35 = vadd.f32 %v16603_v62, %v16602_v1  ;;  %v16623_v62 = vld [vmem:[#allocation19_spill] sm:$0xff] }
 0x5d9   : > { %v8815_v5 = vpop.f32.mrf.mxu0  ;;  %v10041_v0 = vadd.f32 %v16601_v9, %v16600_v27  ;;  %v16622_v1 = vld [vmem:[#allocation21_spill] sm:$0xff] }
 0x5da   : > { %v8816_v10 = vadd.f32 %v10134_v43, %v8815_v5  ;;  %v8864_v22 = vadd.f32 %v8824_v58, %v7597_v28  ;;  %v16604_v43 = vld [vmem:[#allocation24_spill] sm:$0xff]  ;;  %v7600_v5 = vadd.f32 %v16605_v54, %v7471_v59  ;;  %v16626_v54 = vld [vmem:[#allocation26_spill] sm:$0xff] }
 0x5db   : > { %v10331_v8 = vpop.f32.mrf.mxu0  ;;  %v7476_v19 = vadd.f32 %v10038_v25, %v16604_v43  ;;  %v10128_v25 = vadd.f32 %v16615_v55, %v16614_v29  ;;  %v16624_v43 = vld [vmem:[#allocation10_spill] sm:$0xff] }
 0x5dc   : > { %v8862_v37 = vadd.f32 %v8816_v10, %v7589_v2  ;;  %8908 = vxpose.xlu0.b32.cont [8/16] (narrow) %v8884_v57, 8  ;;  %v8827_v63 = vadd.f32 %v10331_v8, %v10143_v45  ;;  %v8857_v2 = vadd.f32 %v8795_v7, %v7568_v35  ;;  %v8800_v10 = vadd.f32 %v10122_v26, %v15952_v44  ;;  %v16606_v8 = vld [vmem:[#allocation13_spill] sm:$0xff]  ;;  %v16616_v45 = vld [vmem:[#allocation42_spill] sm:$0xff]  ;;  %v16619_v7 = vld [vmem:[#allocation27_spill] sm:$0xff] }
 0x5dd   : > { %v8818_v50 = vpop.f32.mrf.mxu0  ;;  %v8895_v4 = vadd.f32 %v15920_v18, %v8864_v22  ;;  %v10149_v44 = vadd.f32 %v10148_v47, %v15976_v48  ;;  %v16618_v47 = vld [vmem:[#allocation12_spill] sm:$0xff]  ;;  %v16620_v22 = vld [vmem:[#allocation46_spill] sm:$0xff]  ;;  %v8808_v40 = vadd.f32 %v15946_v21, %v10128_v25  ;;  %v10131_v35 = vadd.f32 %v16623_v62, %v16622_v1 }
 0x5de   : > { %v8819_v11 = vadd.f32 %v10137_v56, %v8818_v50  ;;  %v8893_v32 = vadd.f32 %v15920_v18, %v8862_v37  ;;  %v8865_v57 = vadd.f32 %v8827_v63, %v7600_v5  ;;  %v16607_v56 = vld [vmem:[#allocation15_spill] sm:$0xff]  ;;  %v16608_v37 = vld [vmem:[#allocation29_spill] sm:$0xff]  ;;  %v8888_v42 = vadd.f32 %v15920_v18, %v8857_v2 }
 0x5df   : > { %v10334_v34 = vpop.f32.mrf.mxu0  ;;  %v10125_v15 = vadd.f32 %v16607_v56, %v16606_v8  ;;  %v7479_v38 = vadd.f32 %v10041_v0, %v16608_v37  ;;  %v16621_v63 = vld [vmem:[#allocation47_spill] sm:$0xff]  ;;  %v16629_v8 = vld [vmem:[#allocation32_spill] sm:$0xff] }
 0x5e0   : > { %v8863_v12 = vadd.f32 %v8819_v11, %v7592_v51  ;;  %8933 = vxpose.xlu1.b32.start [1/8] (short) (narrow) %v8893_v32, 8  ;;  %8909 = vxpose.xlu0.b32.cont [9/16] (narrow) %v8885_v60, 8  ;;  %v7573_v51 = vadd.f32 %v16610_v49, %v16609_v39  ;;  %v16611_v60 = vld [vmem:[#allocation23_spill] sm:$0xff]  ;;  %v16613_v11 = vld [vmem:[#allocation38_spill] sm:$0xff]  ;;  %v8896_v28 = vadd.f32 %v15920_v18, %v8865_v57 }
 0x5e1   : > { %v8831_v52 = vpop.f32.mrf.mxu0  ;;  %v10044_v58 = vadd.f32 %v16612_v13, %v16611_v60  ;;  %v7605_v32 = vadd.f32 %v16613_v11, %v7476_v19  ;;  %v8803_v33 = vadd.f32 %v10125_v15, %v15964_v61  ;;  %v7608_v17 = vadd.f32 %v16618_v47, %v7479_v38  ;;  %v10154_v61 = vpop.f32.mrf.mxu1  ;;  %v16625_v19 = vld [vmem:[#allocation33_spill] sm:$0xff]  ;;  %v16630_v15 = vld [vmem:[#allocation44_spill] sm:$0xff] }
 0x5e2   : > { %v8894_v46 = vadd.f32 %v15920_v18, %v8863_v12  ;;  %v8832_v20 = vadd.f32 %v10146_v6, %v8831_v52  ;;  %v8858_v59 = vadd.f32 %v8800_v10, %v7573_v51  ;;  %v16617_v12 = vld [vmem:[#allocation35_spill] sm:$0xff]  ;;  %v7581_v6 = vadd.f32 %v16625_v19, %v16624_v43 }
 0x5e3   : > { %v10335_v30 = vpop.f32.mrf.mxu0  ;;  %v7576_v48 = vadd.f32 %v16617_v12, %v16616_v45  ;;  %v7484_v52 = vadd.f32 %v10044_v58, %v16619_v7  ;;  %v10155_v5 = vadd.f32 %v10154_v61, %v10153_v14  ;;  %v8811_v10 = vadd.f32 %v15960_v53, %v10131_v35 }
 0x5e4   : > { %8934 = vxpose.xlu1.b32.cont [2/8] (short) (narrow) %v8894_v46, 8  ;;  %8910 = vxpose.xlu0.b32.cont [10/16] (narrow) %v8886_v41, 8  ;;  %v8866_v36 = vadd.f32 %v8832_v20, %v7605_v32  ;;  %v10047_v46 = vadd.f32 %v16621_v63, %v16620_v22  ;;  %v10152_v41 = vadd.f32 %v10151_v24, %v10150_v16  ;;  %v16627_v24 = vld [vmem:[#allocation36_spill] sm:$0xff] }
 0x5e5   : > { %v8834_v50 = vpop.f32.mrf.mxu0  ;;  %v8889_v31 = vadd.f32 %v15920_v18, %v8858_v59  ;;  %v8859_v26 = vadd.f32 %v8803_v33, %v7576_v48  ;;  %v7613_v2 = vadd.f32 %v16627_v24, %v7484_v52  ;;  %v8860_v21 = vadd.f32 %v8808_v40, %v7581_v6 }
 0x5e6   : > { %v8835_v3 = vadd.f32 %v10149_v44, %v8834_v50  ;;  %v8840_v27 = vadd.f32 %v10334_v34, %v10152_v41  ;;  %v8897_v0 = vadd.f32 %v15920_v18, %v8866_v36  ;;  %v7487_v16 = vadd.f32 %v10047_v46, %v16626_v54 }
 0x5e7   : > { %v8843_v57 = vadd.f32 %v10335_v30, %v10155_v5  ;;  %v8891_v53 = vadd.f32 %v15920_v18, %v8860_v21 }
 0x5e8   : > { %8935 = vxpose.xlu1.b32.cont [3/8] (short) (narrow) %v8895_v4, 8  ;;  %8911 = vxpose.xlu0.b32.cont [11/16] (narrow) %v8887_v23, 8  ;;  %v8867_v9 = vadd.f32 %v8835_v3, %v7608_v17  ;;  %v8868_v34 = vadd.f32 %v8840_v27, %v7613_v2  ;;  %v8890_v4 = vadd.f32 %v15920_v18, %v8859_v26  ;;  %v16628_v23 = vld [vmem:[#allocation11_spill] sm:$0xff] }
 0x5e9   : > { %v7584_v56 = vadd.f32 %v16629_v8, %v16628_v23  ;;  %v7616_v37 = vadd.f32 %v16630_v15, %v7487_v16 }
 0x5ea   : > { %v8898_v20 = vadd.f32 %v15920_v18, %v8867_v9  ;;  %v8899_v49 = vadd.f32 %v15920_v18, %v8868_v34 }
 0x5eb   : > { %v8861_v38 = vadd.f32 %v8811_v10, %v7584_v56  ;;  %v8869_v39 = vadd.f32 %v8843_v57, %v7616_v37 }
 0x5ec   : > { %8936 = vxpose.xlu1.b32.cont [4/8] (short) (narrow) %v8896_v28, 8  ;;  %8912 = vxpose.xlu0.b32.cont [12/16] (narrow) %v8888_v42, 8 }
 0x5ed   : > { %v8900_v30 = vadd.f32 %v15920_v18, %v8869_v39  ;;  %v8892_v51 = vadd.f32 %v15920_v18, %v8861_v38 }
 0x5f0   : > { %8937 = vxpose.xlu1.b32.cont [5/8] (short) (narrow) %v8897_v0, 8  ;;  %8913 = vxpose.xlu0.b32.cont [13/16] (narrow) %v8889_v31, 8 }
 0x5f4   : > { %8938 = vxpose.xlu1.b32.cont [6/8] (short) (narrow) %v8898_v20, 8  ;;  %8914 = vxpose.xlu0.b32.cont [14/16] (narrow) %v8890_v4, 8 }
 0x5f8   : > { %8939 = vxpose.xlu1.b32.cont [7/8] (short) (narrow) %v8899_v49, 8  ;;  %8915 = vxpose.xlu0.b32.cont [15/16] (narrow) %v8891_v53, 8 }
 0x5fc   : > { %8940 = vxpose.xlu1.b32.end [8/8] (short) (narrow) %v8900_v30, 8  ;;  %8916 = vxpose.xlu0.b32.end [16/16] (narrow) %v8892_v51, 8 }
 0x63c   : > { %v8917_v50 = vpop.trf.xlu0 }
 0x63d   : > { %8965 = vst [vmem:[%s10806_s19] sm:$0xff] %v8917_v50 }
 0x65c   : > { %v8949_v60 = vpop.trf.xlu1 }
 0x65d   : > { %8966 = vst.msk [vmem:[%s10806_s19 + $0x8] sm:$0xff] %vm2961_vm2, %v8949_v60 }
 0x65e PF: > { %s17_s28 = sadd.s32 1, %s10725_s28   ;;  %s16631_s24 = smov %s10717_s26 }
 0x65f   : > { %p14_p7 = scmp.ge.s32.totalorder %s17_s28, 6   ;;  %s16632_s25 = smov %s10721_s27 }
 0x660   : > { %s16633_s26 = smov %s16636_s29  ;;  %s16634_s27 = smov %s16640_s30 }
 0x661   :  { %16 = sbr.rel (!%p14_p7) target bundleno = 3 (0x3), region = 118 }
 0x666   :  { %8996 = vsyncmov [#allocation7] }
 0x669   :  { %s8997_s19 = vpop.sfrf %8996 }
 0x66a   :  { %p9676_p8 = scmp.ne.s32.totalorder %s8997_s19, 0 }
 0x66c   :  { %9001 = shalt.err (%p9676_p8)  }

</bundles_post_ra>
